<compile_context>
chip_gen: v7x
topology: tpu7x:2x2x1
jax: 0.10.0
libtpu: 0.0.40
codegen_flags: <defaults>
</compile_context>

<pallas_src>
import functools

import jax
import jax.numpy as jnp
import numpy as np
from jax.experimental import pallas as pl
from jax.experimental.pallas import tpu as pltpu

BN_EPS = 1e-5
LEAKY_SLOPE = 0.01  # nn.LeakyReLU() default negative_slope (the block's `self.tanh`)


# ------------------------------ Pallas kernel ------------------------------

def _resblock_kernel(*refs, stride, has_ds):
    """Whole ResidualBlock for one batch block, fully fused in VMEM."""
    if has_ds:
        (x_ref, w1_ref, w2_ref,
         s1_ref, b1_ref, s2_ref, b2_ref, sd_ref, bd_ref,
         o_ref, stage1_scr, h3_scr) = refs
    else:
        (x_ref, w1_ref, w2_ref,
         s1_ref, b1_ref, s2_ref, b2_ref,
         o_ref, stage1_scr, h3_scr) = refs

    nb, oh, ow, cout = o_ref.shape
    m = nb * oh * ow
    f32, bf16 = jnp.float32, jnp.bfloat16

    # ------------------ conv1 (+ fused downsample conv) --------------------
    if stride == 1:
        cin = x_ref.shape[3]
        xb = x_ref[...].astype(bf16)                     # cast once, store 3x
        # kw-merged staging: stage1[:, i, c, kw*cin:] = x_pad[:, i, c+kw, :]
        stage1_scr[:, 1:oh + 1, 1:ow, 0:cin] = xb[:, :, 0:ow - 1, :]
        stage1_scr[:, 1:oh + 1, :, cin:2 * cin] = xb
        stage1_scr[:, 1:oh + 1, 0:ow - 1, 2 * cin:3 * cin] = xb[:, :, 1:ow, :]
        # Zero only the 1-pixel halo strips (not the whole buffer).
        zrow = jnp.zeros((nb, 1, ow, 3 * cin), bf16)
        stage1_scr[:, 0:1, :, :] = zrow
        stage1_scr[:, oh + 1:oh + 2, :, :] = zrow
        zcol = jnp.zeros((nb, oh, 1, cin), bf16)
        stage1_scr[:, 1:oh + 1, 0:1, 0:cin] = zcol
        stage1_scr[:, 1:oh + 1, ow - 1:ow, 2 * cin:3 * cin] = zcol
        # 3 MXU matmuls with K = 3*cin (instead of 9 with K = cin).
        acc = None
        for kh in range(3):
            lhs = stage1_scr[:, kh:kh + oh, :, :].reshape(m, 3 * cin)
            d = jnp.dot(lhs, w1_ref[kh], preferred_element_type=f32)
            acc = d if acc is None else acc + d
    else:
        sps = stride * stride
        cin = x_ref.shape[3] // sps
        # Full tap merge at the decimated output resolution (~2.25x of x for
        # stride 2).  x_ref is the channel-folded space-to-depth input, so
        # every copy below is a contiguous slice; the cast to bf16 rides the
        # staging store.
        for kh in range(3):
            for kw in range(3):
                t = kh * 3 + kw
                ph = (kh % stride) * stride + (kw % stride)
                r0 = kh // stride
                c0 = kw // stride
                v = x_ref[:, r0:r0 + oh, c0:c0 + ow, ph * cin:(ph + 1) * cin]
                stage1_scr[:, :, :, t * cin:(t + 1) * cin] = v.astype(bf16)
        # ONE MXU matmul: (m, 9*cin) @ (9*cin, cout or 2*cout).
        lhs = stage1_scr[...].reshape(m, 9 * cin)
        acc = jnp.dot(lhs, w1_ref[...], preferred_element_type=f32)

    if has_ds:
        acc1 = acc[:, 0:cout]          # conv1 output
        accd = acc[:, cout:2 * cout]   # downsample-conv output (shared LHS)
    else:
        acc1 = acc

    # Folded BN1 + LeakyReLU (f32); cast once to bf16 for the conv2 staging.
    hv = acc1 * s1_ref[...] + b1_ref[...]
    hv = jnp.maximum(hv, LEAKY_SLOPE * hv)
    h_img = hv.reshape(nb, oh, ow, cout).astype(bf16)

    # ------------------ conv2 (stride 1), kw-merged staging ----------------
    h3_scr[:, 1:oh + 1, 1:ow, 0:cout] = h_img[:, :, 0:ow - 1, :]
    h3_scr[:, 1:oh + 1, :, cout:2 * cout] = h_img
    h3_scr[:, 1:oh + 1, 0:ow - 1, 2 * cout:3 * cout] = h_img[:, :, 1:ow, :]
    zrow2 = jnp.zeros((nb, 1, ow, 3 * cout), bf16)
    h3_scr[:, 0:1, :, :] = zrow2
    h3_scr[:, oh + 1:oh + 2, :, :] = zrow2
    zcol2 = jnp.zeros((nb, oh, 1, cout), bf16)
    h3_scr[:, 1:oh + 1, 0:1, 0:cout] = zcol2
    h3_scr[:, 1:oh + 1, ow - 1:ow, 2 * cout:3 * cout] = zcol2

    acc2 = None
    for kh in range(3):
        lhs = h3_scr[:, kh:kh + oh, :, :].reshape(m, 3 * cout)
        d = jnp.dot(lhs, w2_ref[kh], preferred_element_type=f32)
        acc2 = d if acc2 is None else acc2 + d

    # Folded BN2 + residual + LeakyReLU epilogue (all f32).
    out = acc2 * s2_ref[...] + b2_ref[...]
    if has_ds:
        out = out + (accd * sd_ref[...] + bd_ref[...])
    else:
        out = out + x_ref[...].reshape(m, cout)
    out = jnp.maximum(out, LEAKY_SLOPE * out)
    o_ref[...] = out.reshape(nb, oh, ow, cout).astype(o_ref.dtype)


# ------------------------------ Wrapper -------------------------------------

def _bn_fold(bn, eps=BN_EPS):
    scale = bn['gamma'] / jnp.sqrt(bn['var'] + eps)
    shift = bn['beta'] - bn['mean'] * scale
    return scale, shift


def _pick_batch_block(n, oh, ow):
    """Largest divisor of n that keeps the matmul M dimension around >=256."""
    target = max(1, -(-256 // (oh * ow)))
    nb = 1
    for cand in range(1, n + 1):
        if n % cand == 0 and cand <= target:
            nb = cand
    return nb


def residual_block_nhwc(x, params):
    """ResidualBlock forward.  x: (N, H, W, Cin) float32 NHWC."""
    n, h, w, cin = x.shape
    stride = int(params['stride'])
    cout = params['w1'].shape[-1]
    oh = (h - 1) // stride + 1
    ow = (w - 1) // stride + 1
    has_ds = params['ds_w'] is not None
    if not has_ds:
        assert stride == 1 and cin == cout, "identity skip needs matching shapes"

    nb = _pick_batch_block(n, oh, ow)
    grid = (n // nb,)
    ncols = 2 * cout if has_ds else cout
    bf16 = jnp.bfloat16

    s1, b1 = _bn_fold(params['bn1'])
    s2, b2 = _bn_fold(params['bn2'])
    _row = lambda v: jnp.asarray(v, jnp.float32).reshape(1, cout)

    inputs, in_specs, scratch = [], [], []

    if stride == 1:
        inputs.append(x)
        in_specs.append(pl.BlockSpec((nb, h, w, cin), lambda i: (i, 0, 0, 0)))
        # Weights packed kw-major along K: (3, 3*cin, cout[, +cout for ds]).
        w1k = params['w1'].reshape(3, 3 * cin, cout)
        if has_ds:
            w1k = jnp.concatenate(
                [w1k, params['ds_w'].reshape(3, 3 * cin, cout)], axis=-1)
        inputs.append(w1k.astype(bf16))
        in_specs.append(pl.BlockSpec((3, 3 * cin, ncols), lambda i: (0, 0, 0)))
        scratch.append(pltpu.VMEM((nb, h + 2, ow, 3 * cin), bf16))
    else:
        # Space-to-depth phase split folded into the channel axis: one cheap
        # XLA pad+transpose so every in-kernel tap copy is a contiguous slice.
        hs = -(-(h + 2) // stride)
        ws = -(-(w + 2) // stride)
        xp = jnp.pad(x, ((0, 0), (1, stride * hs - h - 1),
                         (1, stride * ws - w - 1), (0, 0)))
        xs = xp.reshape(n, hs, stride, ws, stride, cin)
        xs = xs.transpose(0, 1, 3, 2, 4, 5).reshape(n, hs, ws, stride * stride * cin)
        inputs.append(xs)
        in_specs.append(pl.BlockSpec((nb, hs, ws, stride * stride * cin),
                                     lambda i: (i, 0, 0, 0)))
        # Fully tap-merged weights: (9*cin, cout[, +cout for ds]).
        w1k = params['w1'].reshape(9 * cin, cout)
        if has_ds:
            w1k = jnp.concatenate(
                [w1k, params['ds_w'].reshape(9 * cin, cout)], axis=-1)
        inputs.append(w1k.astype(bf16))
        in_specs.append(pl.BlockSpec((9 * cin, ncols), lambda i: (0, 0)))
        scratch.append(pltpu.VMEM((nb, oh, ow, 9 * cin), bf16))

    inputs.append(params['w2'].reshape(3, 3 * cout, cout).astype(bf16))
    in_specs.append(pl.BlockSpec((3, 3 * cout, cout), lambda i: (0, 0, 0)))
    scratch.append(pltpu.VMEM((nb, oh + 2, ow, 3 * cout), bf16))

    scalars = [s1, b1, s2, b2]
    if has_ds:
        sd, bd = _bn_fold(params['ds_bn'])
        scalars += [sd, bd]
    inputs += [_row(v) for v in scalars]
    in_specs += [pl.BlockSpec((1, cout), lambda i: (0, 0))] * len(scalars)

    kernel = functools.partial(_resblock_kernel, stride=stride, has_ds=has_ds)
    return pl.pallas_call(
        kernel,
        out_shape=jax.ShapeDtypeStruct((n, oh, ow, cout), jnp.float32),
        grid_spec=pltpu.PrefetchScalarGridSpec(
            num_scalar_prefetch=0,
            grid=grid,                       # exact grid: no pad / slice passes
            in_specs=in_specs,
            out_specs=pl.BlockSpec((nb, oh, ow, cout), lambda i: (i, 0, 0, 0)),
            scratch_shapes=scratch,
        ),
        compiler_params=pltpu.CompilerParams(
            dimension_semantics=("parallel",),       # batch blocks across TCs
            vmem_limit_bytes=64 * 1024 * 1024,       # use the headroom for big blocks
        ),
    )(*inputs)


# ------------------------------ Parameters & reference ----------------------

def init_block_params(key, in_c, out_c, stride):
    ks = jax.random.split(key, 8)

    def conv_w(k, cin, cout):
        return jax.random.normal(k, (3, 3, cin, cout), jnp.float32) / np.sqrt(9 * cin)

    def bn_p(k):
        k1, k2, k3, k4 = jax.random.split(k, 4)
        return dict(
            gamma=1.0 + 0.1 * jax.random.normal(k1, (out_c,), jnp.float32),
            beta=0.1 * jax.random.normal(k2, (out_c,), jnp.float32),
            mean=0.1 * jax.random.normal(k3, (out_c,), jnp.float32),
            var=0.5 + jnp.abs(jax.random.normal(k4, (out_c,), jnp.float32)),
        )

    needs_ds = (stride != 1) or (in_c != out_c)
    return dict(
        stride=stride,
        w1=conv_w(ks[0], in_c, out_c), bn1=bn_p(ks[1]),
        w2=conv_w(ks[2], out_c, out_c), bn2=bn_p(ks[3]),
        ds_w=conv_w(ks[4], in_c, out_c) if needs_ds else None,
        ds_bn=bn_p(ks[5]) if needs_ds else None,
    )


def _conv3x3_ref(x, w, stride):
    return jax.lax.conv_general_dilated(
        x, w, window_strides=(stride, stride), padding=((1, 1), (1, 1)),
        dimension_numbers=('NHWC', 'HWIO', 'NHWC'))


def residual_block_ref(x, p):
    def bn(y, b):
        s = b['gamma'] / jnp.sqrt(b['var'] + BN_EPS)
        return y * s + (b['beta'] - b['mean'] * s)
    lrelu = lambda t: jnp.maximum(t, LEAKY_SLOPE * t)
    h = lrelu(bn(_conv3x3_ref(x, p['w1'], p['stride']), p['bn1']))
    out = bn(_conv3x3_ref(h, p['w2'], 1), p['bn2'])
    res = x if p['ds_w'] is None else bn(
        _conv3x3_ref(x, p['ds_w'], p['stride']), p['ds_bn'])
    return lrelu(out + res)


# ------------------------------ Main -----------------------------------------

if __name__ == "__main__":
    key = jax.random.PRNGKey(0)
    kx, ka, kb = jax.random.split(key, 3)

    # Demo shapes: batch=2, 16x16 spatial.  Channels 64 -> 128 keep the channel
    # axis lane-dense (>=128 lanes) for every output store.
    N, H, W, C_IN, C_OUT = 2, 16, 16, 64, 128

    block_a = init_block_params(ka, C_IN, C_OUT, stride=2)   # downsample skip
    block_b = init_block_params(kb, C_OUT, C_OUT, stride=1)  # identity skip

    x_nchw = jax.random.normal(kx, (N, C_IN, H, W), jnp.float32)  # PyTorch layout

    @jax.jit
    def forward(x):
        xh = jnp.transpose(x, (0, 2, 3, 1))      # NCHW -> NHWC (channels on lanes)
        y = residual_block_nhwc(xh, block_a)
        y = residual_block_nhwc(y, block_b)
        return jnp.transpose(y, (0, 3, 1, 2))    # back to NCHW

    out = forward(x_nchw)
    jax.block_until_ready(out)

    # Pure-JAX f32 reference (tolerance covers bf16 MXU operands, f32 accum).
    xh = jnp.transpose(x_nchw, (0, 2, 3, 1))
    ref = residual_block_ref(residual_block_ref(xh, block_a), block_b)
    ref = jnp.transpose(ref, (0, 3, 1, 2))

    assert out.shape == (N, C_OUT, H // 2, W // 2) and out.dtype == jnp.float32
    np.testing.assert_allclose(np.asarray(out), np.asarray(ref), atol=5e-2, rtol=5e-2)
    print("KERNEL_OK")
</pallas_src>

<mosaic_0001>
module attributes {stable_mosaic.version = 11 : i64} {
  func.func @_resblock_kernel(%arg0: i32, %arg1: memref<2x9x9x256xf32, #tpu.memory_space<vmem>>, %arg2: memref<576x256xbf16, #tpu.memory_space<vmem>>, %arg3: memref<3x384x128xbf16, #tpu.memory_space<vmem>>, %arg4: memref<1x128xf32, #tpu.memory_space<vmem>>, %arg5: memref<1x128xf32, #tpu.memory_space<vmem>>, %arg6: memref<1x128xf32, #tpu.memory_space<vmem>>, %arg7: memref<1x128xf32, #tpu.memory_space<vmem>>, %arg8: memref<1x128xf32, #tpu.memory_space<vmem>>, %arg9: memref<1x128xf32, #tpu.memory_space<vmem>>, %arg10: memref<2x8x8x128xf32, #tpu.memory_space<vmem>>, %arg11: memref<2x8x8x576xbf16, #tpu.memory_space<vmem>>, %arg12: memref<2x10x8x384xbf16, #tpu.memory_space<vmem>>) attributes {dimension_semantics = [#tpu.dimension_semantics<parallel>], iteration_bounds = array<i64: 1>, scalar_prefetch = 0 : i64, scratch_operands = 2 : i64, tpu.core_type = #tpu.core_type<tc>, window_params = [{transform_indices = @transform_0, window_bounds = array<i64: 2, 9, 9, 256>}, {pipeline_mode = #tpu.pipeline_mode<synchronous>, transform_indices = @transform_1, window_bounds = array<i64: 576, 256>}, {pipeline_mode = #tpu.pipeline_mode<synchronous>, transform_indices = @transform_2, window_bounds = array<i64: 3, 384, 128>}, {pipeline_mode = #tpu.pipeline_mode<synchronous>, transform_indices = @transform_3, window_bounds = array<i64: 1, 128>}, {pipeline_mode = #tpu.pipeline_mode<synchronous>, transform_indices = @transform_4, window_bounds = array<i64: 1, 128>}, {pipeline_mode = #tpu.pipeline_mode<synchronous>, transform_indices = @transform_5, window_bounds = array<i64: 1, 128>}, {pipeline_mode = #tpu.pipeline_mode<synchronous>, transform_indices = @transform_6, window_bounds = array<i64: 1, 128>}, {pipeline_mode = #tpu.pipeline_mode<synchronous>, transform_indices = @transform_7, window_bounds = array<i64: 1, 128>}, {pipeline_mode = #tpu.pipeline_mode<synchronous>, transform_indices = @transform_8, window_bounds = array<i64: 1, 128>}, {transform_indices = @transform_9, window_bounds = array<i64: 2, 8, 8, 128>}]} {
    %c0 = arith.constant 0 : index
    %c0_0 = arith.constant 0 : index
    %c0_1 = arith.constant 0 : index
    %c0_2 = arith.constant 0 : index
    %0 = vector.load %arg1[%c0, %c0_0, %c0_1, %c0_2] : memref<2x9x9x256xf32, #tpu.memory_space<vmem>>, vector<2x8x8x64xf32>
    %1 = arith.truncf %0 : vector<2x8x8x64xf32> to vector<2x8x8x64xbf16>
    %c0_3 = arith.constant 0 : index
    %c0_4 = arith.constant 0 : index
    %c0_5 = arith.constant 0 : index
    %c0_6 = arith.constant 0 : index
    %2 = vector.load %arg11[%c0_3, %c0_4, %c0_5, %c0_6] : memref<2x8x8x576xbf16, #tpu.memory_space<vmem>>, vector<2x8x8x64xbf16>
    tpu.vector_store %arg11[%c0_3, %c0_4, %c0_5, %c0_6], %1 {strides = array<i32>} : memref<2x8x8x576xbf16, #tpu.memory_space<vmem>>, vector<2x8x8x64xbf16>,
    %c0_7 = arith.constant 0 : index
    %c0_8 = arith.constant 0 : index
    %c0_9 = arith.constant 0 : index
    %c64 = arith.constant 64 : index
    %3 = vector.load %arg1[%c0_7, %c0_8, %c0_9, %c64] : memref<2x9x9x256xf32, #tpu.memory_space<vmem>>, vector<2x8x8x64xf32>
    %4 = arith.truncf %3 : vector<2x8x8x64xf32> to vector<2x8x8x64xbf16>
    %c0_10 = arith.constant 0 : index
    %c0_11 = arith.constant 0 : index
    %c0_12 = arith.constant 0 : index
    %c64_13 = arith.constant 64 : index
    %5 = vector.load %arg11[%c0_10, %c0_11, %c0_12, %c64_13] : memref<2x8x8x576xbf16, #tpu.memory_space<vmem>>, vector<2x8x8x64xbf16>
    tpu.vector_store %arg11[%c0_10, %c0_11, %c0_12, %c64_13], %4 {strides = array<i32>} : memref<2x8x8x576xbf16, #tpu.memory_space<vmem>>, vector<2x8x8x64xbf16>,
    %c0_14 = arith.constant 0 : index
    %c0_15 = arith.constant 0 : index
    %c1 = arith.constant 1 : index
    %c0_16 = arith.constant 0 : index
    %6 = vector.load %arg1[%c0_14, %c0_15, %c1, %c0_16] : memref<2x9x9x256xf32, #tpu.memory_space<vmem>>, vector<2x8x8x64xf32>
    %7 = arith.truncf %6 : vector<2x8x8x64xf32> to vector<2x8x8x64xbf16>
    %c0_17 = arith.constant 0 : index
    %c0_18 = arith.constant 0 : index
    %c0_19 = arith.constant 0 : index
    %c128 = arith.constant 128 : index
    %8 = vector.load %arg11[%c0_17, %c0_18, %c0_19, %c128] : memref<2x8x8x576xbf16, #tpu.memory_space<vmem>>, vector<2x8x8x64xbf16>
    tpu.vector_store %arg11[%c0_17, %c0_18, %c0_19, %c128], %7 {strides = array<i32>} : memref<2x8x8x576xbf16, #tpu.memory_space<vmem>>, vector<2x8x8x64xbf16>,
    %c0_20 = arith.constant 0 : index
    %c0_21 = arith.constant 0 : index
    %c0_22 = arith.constant 0 : index
    %c128_23 = arith.constant 128 : index
    %9 = vector.load %arg1[%c0_20, %c0_21, %c0_22, %c128_23] : memref<2x9x9x256xf32, #tpu.memory_space<vmem>>, vector<2x8x8x64xf32>
    %10 = arith.truncf %9 : vector<2x8x8x64xf32> to vector<2x8x8x64xbf16>
    %c0_24 = arith.constant 0 : index
    %c0_25 = arith.constant 0 : index
    %c0_26 = arith.constant 0 : index
    %c192 = arith.constant 192 : index
    %11 = vector.load %arg11[%c0_24, %c0_25, %c0_26, %c192] : memref<2x8x8x576xbf16, #tpu.memory_space<vmem>>, vector<2x8x8x64xbf16>
    tpu.vector_store %arg11[%c0_24, %c0_25, %c0_26, %c192], %10 {strides = array<i32>} : memref<2x8x8x576xbf16, #tpu.memory_space<vmem>>, vector<2x8x8x64xbf16>,
    %c0_27 = arith.constant 0 : index
    %c0_28 = arith.constant 0 : index
    %c0_29 = arith.constant 0 : index
    %c192_30 = arith.constant 192 : index
    %12 = vector.load %arg1[%c0_27, %c0_28, %c0_29, %c192_30] : memref<2x9x9x256xf32, #tpu.memory_space<vmem>>, vector<2x8x8x64xf32>
    %13 = arith.truncf %12 : vector<2x8x8x64xf32> to vector<2x8x8x64xbf16>
    %c0_31 = arith.constant 0 : index
    %c0_32 = arith.constant 0 : index
    %c0_33 = arith.constant 0 : index
    %c256 = arith.constant 256 : index
    %14 = vector.load %arg11[%c0_31, %c0_32, %c0_33, %c256] : memref<2x8x8x576xbf16, #tpu.memory_space<vmem>>, vector<2x8x8x64xbf16>
    tpu.vector_store %arg11[%c0_31, %c0_32, %c0_33, %c256], %13 {strides = array<i32>} : memref<2x8x8x576xbf16, #tpu.memory_space<vmem>>, vector<2x8x8x64xbf16>,
    %c0_34 = arith.constant 0 : index
    %c0_35 = arith.constant 0 : index
    %c1_36 = arith.constant 1 : index
    %c128_37 = arith.constant 128 : index
    %15 = vector.load %arg1[%c0_34, %c0_35, %c1_36, %c128_37] : memref<2x9x9x256xf32, #tpu.memory_space<vmem>>, vector<2x8x8x64xf32>
    %16 = arith.truncf %15 : vector<2x8x8x64xf32> to vector<2x8x8x64xbf16>
    %c0_38 = arith.constant 0 : index
    %c0_39 = arith.constant 0 : index
    %c0_40 = arith.constant 0 : index
    %c320 = arith.constant 320 : index
    %17 = vector.load %arg11[%c0_38, %c0_39, %c0_40, %c320] : memref<2x8x8x576xbf16, #tpu.memory_space<vmem>>, vector<2x8x8x64xbf16>
    tpu.vector_store %arg11[%c0_38, %c0_39, %c0_40, %c320], %16 {strides = array<i32>} : memref<2x8x8x576xbf16, #tpu.memory_space<vmem>>, vector<2x8x8x64xbf16>,
    %c0_41 = arith.constant 0 : index
    %c1_42 = arith.constant 1 : index
    %c0_43 = arith.constant 0 : index
    %c0_44 = arith.constant 0 : index
    %18 = vector.load %arg1[%c0_41, %c1_42, %c0_43, %c0_44] : memref<2x9x9x256xf32, #tpu.memory_space<vmem>>, vector<2x8x8x64xf32>
    %19 = arith.truncf %18 : vector<2x8x8x64xf32> to vector<2x8x8x64xbf16>
    %c0_45 = arith.constant 0 : index
    %c0_46 = arith.constant 0 : index
    %c0_47 = arith.constant 0 : index
    %c384 = arith.constant 384 : index
    %20 = vector.load %arg11[%c0_45, %c0_46, %c0_47, %c384] : memref<2x8x8x576xbf16, #tpu.memory_space<vmem>>, vector<2x8x8x64xbf16>
    tpu.vector_store %arg11[%c0_45, %c0_46, %c0_47, %c384], %19 {strides = array<i32>} : memref<2x8x8x576xbf16, #tpu.memory_space<vmem>>, vector<2x8x8x64xbf16>,
    %c0_48 = arith.constant 0 : index
    %c1_49 = arith.constant 1 : index
    %c0_50 = arith.constant 0 : index
    %c64_51 = arith.constant 64 : index
    %21 = vector.load %arg1[%c0_48, %c1_49, %c0_50, %c64_51] : memref<2x9x9x256xf32, #tpu.memory_space<vmem>>, vector<2x8x8x64xf32>
    %22 = arith.truncf %21 : vector<2x8x8x64xf32> to vector<2x8x8x64xbf16>
    %c0_52 = arith.constant 0 : index
    %c0_53 = arith.constant 0 : index
    %c0_54 = arith.constant 0 : index
    %c448 = arith.constant 448 : index
    %23 = vector.load %arg11[%c0_52, %c0_53, %c0_54, %c448] : memref<2x8x8x576xbf16, #tpu.memory_space<vmem>>, vector<2x8x8x64xbf16>
    tpu.vector_store %arg11[%c0_52, %c0_53, %c0_54, %c448], %22 {strides = array<i32>} : memref<2x8x8x576xbf16, #tpu.memory_space<vmem>>, vector<2x8x8x64xbf16>,
    %c0_55 = arith.constant 0 : index
    %c1_56 = arith.constant 1 : index
    %c1_57 = arith.constant 1 : index
    %c0_58 = arith.constant 0 : index
    %24 = vector.load %arg1[%c0_55, %c1_56, %c1_57, %c0_58] : memref<2x9x9x256xf32, #tpu.memory_space<vmem>>, vector<2x8x8x64xf32>
    %25 = arith.truncf %24 : vector<2x8x8x64xf32> to vector<2x8x8x64xbf16>
    %c0_59 = arith.constant 0 : index
    %c0_60 = arith.constant 0 : index
    %c0_61 = arith.constant 0 : index
    %c512 = arith.constant 512 : index
    %26 = vector.load %arg11[%c0_59, %c0_60, %c0_61, %c512] : memref<2x8x8x576xbf16, #tpu.memory_space<vmem>>, vector<2x8x8x64xbf16>
    tpu.vector_store %arg11[%c0_59, %c0_60, %c0_61, %c512], %25 {strides = array<i32>} : memref<2x8x8x576xbf16, #tpu.memory_space<vmem>>, vector<2x8x8x64xbf16>,
    %c0_62 = arith.constant 0 : index
    %c0_63 = arith.constant 0 : index
    %c0_64 = arith.constant 0 : index
    %c0_65 = arith.constant 0 : index
    %27 = vector.load %arg11[%c0_62, %c0_63, %c0_64, %c0_65] : memref<2x8x8x576xbf16, #tpu.memory_space<vmem>>, vector<2x8x8x576xbf16>
    %28 = vector.shape_cast %27 : vector<2x8x8x576xbf16> to vector<128x576xbf16>
    %c0_66 = arith.constant 0 : index
    %c0_67 = arith.constant 0 : index
    %29 = vector.load %arg2[%c0_66, %c0_67] : memref<576x256xbf16, #tpu.memory_space<vmem>>, vector<576x256xbf16>
    %cst = arith.constant dense<0.000000e+00> : vector<128x256xf32>
    %30 = tpu.matmul %28, %29, %cst {dimension_numbers = #tpu.dot_dimension_numbers<[1], [0], [0], [1], [0, 0, 1, 1], [], []>} : vector<128x576xbf16>, vector<576x256xbf16>, vector<128x256xf32> -> vector<128x256xf32>
    %31 = vector.extract_strided_slice %30 {offsets = [0, 0], sizes = [128, 128], strides = [1, 1]} : vector<128x256xf32> to vector<128x128xf32>
    %32 = vector.extract_strided_slice %30 {offsets = [0, 128], sizes = [128, 128], strides = [1, 1]} : vector<128x256xf32> to vector<128x128xf32>
    %c0_68 = arith.constant 0 : index
    %c0_69 = arith.constant 0 : index
    %33 = vector.load %arg4[%c0_68, %c0_69] : memref<1x128xf32, #tpu.memory_space<vmem>>, vector<1x128xf32>
    %34 = vector.broadcast %33 : vector<1x128xf32> to vector<128x128xf32>
    %35 = arith.mulf %31, %34 : vector<128x128xf32>
    %c0_70 = arith.constant 0 : index
    %c0_71 = arith.constant 0 : index
    %36 = vector.load %arg5[%c0_70, %c0_71] : memref<1x128xf32, #tpu.memory_space<vmem>>, vector<1x128xf32>
    %37 = vector.broadcast %36 : vector<1x128xf32> to vector<128x128xf32>
    %38 = arith.addf %35, %37 : vector<128x128xf32>
    %cst_72 = arith.constant 0.00999999977 : f32
    %39 = vector.broadcast %cst_72 : f32 to vector<128x128xf32>
    %40 = arith.mulf %39, %38 : vector<128x128xf32>
    %41 = arith.maximumf %38, %40 : vector<128x128xf32>
    %42 = vector.shape_cast %41 : vector<128x128xf32> to vector<2x8x8x128xf32>
    %43 = arith.truncf %42 : vector<2x8x8x128xf32> to vector<2x8x8x128xbf16>
    %44 = vector.extract_strided_slice %43 {offsets = [0, 0, 0, 0], sizes = [2, 8, 7, 128], strides = [1, 1, 1, 1]} : vector<2x8x8x128xbf16> to vector<2x8x7x128xbf16>
    %c0_73 = arith.constant 0 : index
    %c1_74 = arith.constant 1 : index
    %c1_75 = arith.constant 1 : index
    %c0_76 = arith.constant 0 : index
    %45 = vector.load %arg12[%c0_73, %c1_74, %c1_75, %c0_76] : memref<2x10x8x384xbf16, #tpu.memory_space<vmem>>, vector<2x8x7x128xbf16>
    tpu.vector_store %arg12[%c0_73, %c1_74, %c1_75, %c0_76], %44 {strides = array<i32>} : memref<2x10x8x384xbf16, #tpu.memory_space<vmem>>, vector<2x8x7x128xbf16>,
    %c0_77 = arith.constant 0 : index
    %c1_78 = arith.constant 1 : index
    %c0_79 = arith.constant 0 : index
    %c128_80 = arith.constant 128 : index
    %46 = vector.load %arg12[%c0_77, %c1_78, %c0_79, %c128_80] : memref<2x10x8x384xbf16, #tpu.memory_space<vmem>>, vector<2x8x8x128xbf16>
    tpu.vector_store %arg12[%c0_77, %c1_78, %c0_79, %c128_80], %43 {strides = array<i32>} : memref<2x10x8x384xbf16, #tpu.memory_space<vmem>>, vector<2x8x8x128xbf16>,
    %47 = vector.extract_strided_slice %43 {offsets = [0, 0, 1, 0], sizes = [2, 8, 7, 128], strides = [1, 1, 1, 1]} : vector<2x8x8x128xbf16> to vector<2x8x7x128xbf16>
    %c0_81 = arith.constant 0 : index
    %c1_82 = arith.constant 1 : index
    %c0_83 = arith.constant 0 : index
    %c256_84 = arith.constant 256 : index
    %48 = vector.load %arg12[%c0_81, %c1_82, %c0_83, %c256_84] : memref<2x10x8x384xbf16, #tpu.memory_space<vmem>>, vector<2x8x7x128xbf16>
    tpu.vector_store %arg12[%c0_81, %c1_82, %c0_83, %c256_84], %47 {strides = array<i32>} : memref<2x10x8x384xbf16, #tpu.memory_space<vmem>>, vector<2x8x7x128xbf16>,
    %cst_85 = arith.constant 0.000000e+00 : bf16
    %49 = vector.broadcast %cst_85 : bf16 to vector<2x1x8x384xbf16>
    %c0_86 = arith.constant 0 : index
    %c0_87 = arith.constant 0 : index
    %c0_88 = arith.constant 0 : index
    %c0_89 = arith.constant 0 : index
    %50 = vector.load %arg12[%c0_86, %c0_87, %c0_88, %c0_89] : memref<2x10x8x384xbf16, #tpu.memory_space<vmem>>, vector<2x1x8x384xbf16>
    tpu.vector_store %arg12[%c0_86, %c0_87, %c0_88, %c0_89], %49 {strides = array<i32>} : memref<2x10x8x384xbf16, #tpu.memory_space<vmem>>, vector<2x1x8x384xbf16>,
    %c0_90 = arith.constant 0 : index
    %c9 = arith.constant 9 : index
    %c0_91 = arith.constant 0 : index
    %c0_92 = arith.constant 0 : index
    %51 = vector.load %arg12[%c0_90, %c9, %c0_91, %c0_92] : memref<2x10x8x384xbf16, #tpu.memory_space<vmem>>, vector<2x1x8x384xbf16>
    tpu.vector_store %arg12[%c0_90, %c9, %c0_91, %c0_92], %49 {strides = array<i32>} : memref<2x10x8x384xbf16, #tpu.memory_space<vmem>>, vector<2x1x8x384xbf16>,
    %cst_93 = arith.constant 0.000000e+00 : bf16
    %52 = vector.broadcast %cst_93 : bf16 to vector<2x8x1x128xbf16>
    %c0_94 = arith.constant 0 : index
    %c1_95 = arith.constant 1 : index
    %c0_96 = arith.constant 0 : index
    %c0_97 = arith.constant 0 : index
    %53 = vector.load %arg12[%c0_94, %c1_95, %c0_96, %c0_97] : memref<2x10x8x384xbf16, #tpu.memory_space<vmem>>, vector<2x8x1x128xbf16>
    tpu.vector_store %arg12[%c0_94, %c1_95, %c0_96, %c0_97], %52 {strides = array<i32>} : memref<2x10x8x384xbf16, #tpu.memory_space<vmem>>, vector<2x8x1x128xbf16>,
    %c0_98 = arith.constant 0 : index
    %c1_99 = arith.constant 1 : index
    %c7 = arith.constant 7 : index
    %c256_100 = arith.constant 256 : index
    %54 = vector.load %arg12[%c0_98, %c1_99, %c7, %c256_100] : memref<2x10x8x384xbf16, #tpu.memory_space<vmem>>, vector<2x8x1x128xbf16>
    tpu.vector_store %arg12[%c0_98, %c1_99, %c7, %c256_100], %52 {strides = array<i32>} : memref<2x10x8x384xbf16, #tpu.memory_space<vmem>>, vector<2x8x1x128xbf16>,
    %c0_101 = arith.constant 0 : index
    %c0_102 = arith.constant 0 : index
    %c0_103 = arith.constant 0 : index
    %c0_104 = arith.constant 0 : index
    %55 = vector.load %arg12[%c0_101, %c0_102, %c0_103, %c0_104] : memref<2x10x8x384xbf16, #tpu.memory_space<vmem>>, vector<2x8x8x384xbf16>
    %56 = vector.shape_cast %55 : vector<2x8x8x384xbf16> to vector<128x384xbf16>
    %c0_105 = arith.constant 0 : index
    %c0_106 = arith.constant 0 : index
    %c0_107 = arith.constant 0 : index
    %57 = vector.load %arg3[%c0_105, %c0_106, %c0_107] : memref<3x384x128xbf16, #tpu.memory_space<vmem>>, vector<1x384x128xbf16>
    %58 = vector.shape_cast %57 : vector<1x384x128xbf16> to vector<384x128xbf16>
    %cst_108 = arith.constant dense<0.000000e+00> : vector<128x128xf32>
    %59 = tpu.matmul %56, %58, %cst_108 {dimension_numbers = #tpu.dot_dimension_numbers<[1], [0], [0], [1], [0, 0, 1, 1], [], []>} : vector<128x384xbf16>, vector<384x128xbf16>, vector<128x128xf32> -> vector<128x128xf32>
    %c0_109 = arith.constant 0 : index
    %c1_110 = arith.constant 1 : index
    %c0_111 = arith.constant 0 : index
    %c0_112 = arith.constant 0 : index
    %60 = vector.load %arg12[%c0_109, %c1_110, %c0_111, %c0_112] : memref<2x10x8x384xbf16, #tpu.memory_space<vmem>>, vector<2x8x8x384xbf16>
    %61 = vector.shape_cast %60 : vector<2x8x8x384xbf16> to vector<128x384xbf16>
    %c1_113 = arith.constant 1 : index
    %c0_114 = arith.constant 0 : index
    %c0_115 = arith.constant 0 : index
    %62 = vector.load %arg3[%c1_113, %c0_114, %c0_115] : memref<3x384x128xbf16, #tpu.memory_space<vmem>>, vector<1x384x128xbf16>
    %63 = vector.shape_cast %62 : vector<1x384x128xbf16> to vector<384x128xbf16>
    %cst_116 = arith.constant dense<0.000000e+00> : vector<128x128xf32>
    %64 = tpu.matmul %61, %63, %cst_116 {dimension_numbers = #tpu.dot_dimension_numbers<[1], [0], [0], [1], [0, 0, 1, 1], [], []>} : vector<128x384xbf16>, vector<384x128xbf16>, vector<128x128xf32> -> vector<128x128xf32>
    %65 = arith.addf %59, %64 : vector<128x128xf32>
    %c0_117 = arith.constant 0 : index
    %c2 = arith.constant 2 : index
    %c0_118 = arith.constant 0 : index
    %c0_119 = arith.constant 0 : index
    %66 = vector.load %arg12[%c0_117, %c2, %c0_118, %c0_119] : memref<2x10x8x384xbf16, #tpu.memory_space<vmem>>, vector<2x8x8x384xbf16>
    %67 = vector.shape_cast %66 : vector<2x8x8x384xbf16> to vector<128x384xbf16>
    %c2_120 = arith.constant 2 : index
    %c0_121 = arith.constant 0 : index
    %c0_122 = arith.constant 0 : index
    %68 = vector.load %arg3[%c2_120, %c0_121, %c0_122] : memref<3x384x128xbf16, #tpu.memory_space<vmem>>, vector<1x384x128xbf16>
    %69 = vector.shape_cast %68 : vector<1x384x128xbf16> to vector<384x128xbf16>
    %cst_123 = arith.constant dense<0.000000e+00> : vector<128x128xf32>
    %70 = tpu.matmul %67, %69, %cst_123 {dimension_numbers = #tpu.dot_dimension_numbers<[1], [0], [0], [1], [0, 0, 1, 1], [], []>} : vector<128x384xbf16>, vector<384x128xbf16>, vector<128x128xf32> -> vector<128x128xf32>
    %71 = arith.addf %65, %70 : vector<128x128xf32>
    %c0_124 = arith.constant 0 : index
    %c0_125 = arith.constant 0 : index
    %72 = vector.load %arg6[%c0_124, %c0_125] : memref<1x128xf32, #tpu.memory_space<vmem>>, vector<1x128xf32>
    %73 = vector.broadcast %72 : vector<1x128xf32> to vector<128x128xf32>
    %74 = arith.mulf %71, %73 : vector<128x128xf32>
    %c0_126 = arith.constant 0 : index
    %c0_127 = arith.constant 0 : index
    %75 = vector.load %arg7[%c0_126, %c0_127] : memref<1x128xf32, #tpu.memory_space<vmem>>, vector<1x128xf32>
    %76 = vector.broadcast %75 : vector<1x128xf32> to vector<128x128xf32>
    %77 = arith.addf %74, %76 : vector<128x128xf32>
    %c0_128 = arith.constant 0 : index
    %c0_129 = arith.constant 0 : index
    %78 = vector.load %arg8[%c0_128, %c0_129] : memref<1x128xf32, #tpu.memory_space<vmem>>, vector<1x128xf32>
    %79 = vector.broadcast %78 : vector<1x128xf32> to vector<128x128xf32>
    %80 = arith.mulf %32, %79 : vector<128x128xf32>
    %c0_130 = arith.constant 0 : index
    %c0_131 = arith.constant 0 : index
    %81 = vector.load %arg9[%c0_130, %c0_131] : memref<1x128xf32, #tpu.memory_space<vmem>>, vector<1x128xf32>
    %82 = vector.broadcast %81 : vector<1x128xf32> to vector<128x128xf32>
    %83 = arith.addf %80, %82 : vector<128x128xf32>
    %84 = arith.addf %77, %83 : vector<128x128xf32>
    %cst_132 = arith.constant 0.00999999977 : f32
    %85 = vector.broadcast %cst_132 : f32 to vector<128x128xf32>
    %86 = arith.mulf %85, %84 : vector<128x128xf32>
    %87 = arith.maximumf %84, %86 : vector<128x128xf32>
    %88 = vector.shape_cast %87 : vector<128x128xf32> to vector<2x8x8x128xf32>
    %c0_133 = arith.constant 0 : index
    %c0_134 = arith.constant 0 : index
    %c0_135 = arith.constant 0 : index
    %c0_136 = arith.constant 0 : index
    %89 = vector.load %arg10[%c0_133, %c0_134, %c0_135, %c0_136] : memref<2x8x8x128xf32, #tpu.memory_space<vmem>>, vector<2x8x8x128xf32>
    tpu.vector_store %arg10[%c0_133, %c0_134, %c0_135, %c0_136], %88 {strides = array<i32>} : memref<2x8x8x128xf32, #tpu.memory_space<vmem>>, vector<2x8x8x128xf32>,
    return
  }
  func.func @transform_0(%arg0: i32) -> (i32, i32, i32, i32) {
    %c0_i32 = arith.constant 0 : i32
    %c0_i32_0 = arith.constant 0 : i32
    %c0_i32_1 = arith.constant 0 : i32
    %c0_i32_2 = arith.constant 0 : i32
    return %arg0, %c0_i32, %c0_i32_0, %c0_i32_1 : i32, i32, i32, i32
  }
  func.func @transform_1(%arg0: i32) -> (i32, i32) {
    %c0_i32 = arith.constant 0 : i32
    %c0_i32_0 = arith.constant 0 : i32
    %c0_i32_1 = arith.constant 0 : i32
    return %c0_i32, %c0_i32_0 : i32, i32
  }
  func.func @transform_2(%arg0: i32) -> (i32, i32, i32) {
    %c0_i32 = arith.constant 0 : i32
    %c0_i32_0 = arith.constant 0 : i32
    %c0_i32_1 = arith.constant 0 : i32
    %c0_i32_2 = arith.constant 0 : i32
    return %c0_i32, %c0_i32_0, %c0_i32_1 : i32, i32, i32
  }
  func.func @transform_3(%arg0: i32) -> (i32, i32) {
    %c0_i32 = arith.constant 0 : i32
    %c0_i32_0 = arith.constant 0 : i32
    %c0_i32_1 = arith.constant 0 : i32
    return %c0_i32, %c0_i32_0 : i32, i32
  }
  func.func @transform_4(%arg0: i32) -> (i32, i32) {
    %c0_i32 = arith.constant 0 : i32
    %c0_i32_0 = arith.constant 0 : i32
    %c0_i32_1 = arith.constant 0 : i32
    return %c0_i32, %c0_i32_0 : i32, i32
  }
  func.func @transform_5(%arg0: i32) -> (i32, i32) {
    %c0_i32 = arith.constant 0 : i32
    %c0_i32_0 = arith.constant 0 : i32
    %c0_i32_1 = arith.constant 0 : i32
    return %c0_i32, %c0_i32_0 : i32, i32
  }
  func.func @transform_6(%arg0: i32) -> (i32, i32) {
    %c0_i32 = arith.constant 0 : i32
    %c0_i32_0 = arith.constant 0 : i32
    %c0_i32_1 = arith.constant 0 : i32
    return %c0_i32, %c0_i32_0 : i32, i32
  }
  func.func @transform_7(%arg0: i32) -> (i32, i32) {
    %c0_i32 = arith.constant 0 : i32
    %c0_i32_0 = arith.constant 0 : i32
    %c0_i32_1 = arith.constant 0 : i32
    return %c0_i32, %c0_i32_0 : i32, i32
  }
  func.func @transform_8(%arg0: i32) -> (i32, i32) {
    %c0_i32 = arith.constant 0 : i32
    %c0_i32_0 = arith.constant 0 : i32
    %c0_i32_1 = arith.constant 0 : i32
    return %c0_i32, %c0_i32_0 : i32, i32
  }
  func.func @transform_9(%arg0: i32) -> (i32, i32, i32, i32) {
    %c0_i32 = arith.constant 0 : i32
    %c0_i32_0 = arith.constant 0 : i32
    %c0_i32_1 = arith.constant 0 : i32
    %c0_i32_2 = arith.constant 0 : i32
    return %arg0, %c0_i32, %c0_i32_0, %c0_i32_1 : i32, i32, i32, i32
  }
}

module attributes {stable_mosaic.version = 11 : i64} {
  func.func @_resblock_kernel(%arg0: i32, %arg1: memref<2x8x8x128xf32, #tpu.memory_space<vmem>>, %arg2: memref<3x384x128xbf16, #tpu.memory_space<vmem>>, %arg3: memref<3x384x128xbf16, #tpu.memory_space<vmem>>, %arg4: memref<1x128xf32, #tpu.memory_space<vmem>>, %arg5: memref<1x128xf32, #tpu.memory_space<vmem>>, %arg6: memref<1x128xf32, #tpu.memory_space<vmem>>, %arg7: memref<1x128xf32, #tpu.memory_space<vmem>>, %arg8: memref<2x8x8x128xf32, #tpu.memory_space<vmem>>, %arg9: memref<2x10x8x384xbf16, #tpu.memory_space<vmem>>, %arg10: memref<2x10x8x384xbf16, #tpu.memory_space<vmem>>) attributes {dimension_semantics = [#tpu.dimension_semantics<parallel>], iteration_bounds = array<i64: 1>, scalar_prefetch = 0 : i64, scratch_operands = 2 : i64, tpu.core_type = #tpu.core_type<tc>, window_params = [{transform_indices = @transform_0, window_bounds = array<i64: 2, 8, 8, 128>}, {pipeline_mode = #tpu.pipeline_mode<synchronous>, transform_indices = @transform_1, window_bounds = array<i64: 3, 384, 128>}, {pipeline_mode = #tpu.pipeline_mode<synchronous>, transform_indices = @transform_2, window_bounds = array<i64: 3, 384, 128>}, {pipeline_mode = #tpu.pipeline_mode<synchronous>, transform_indices = @transform_3, window_bounds = array<i64: 1, 128>}, {pipeline_mode = #tpu.pipeline_mode<synchronous>, transform_indices = @transform_4, window_bounds = array<i64: 1, 128>}, {pipeline_mode = #tpu.pipeline_mode<synchronous>, transform_indices = @transform_5, window_bounds = array<i64: 1, 128>}, {pipeline_mode = #tpu.pipeline_mode<synchronous>, transform_indices = @transform_6, window_bounds = array<i64: 1, 128>}, {transform_indices = @transform_7, window_bounds = array<i64: 2, 8, 8, 128>}]} {
    %c0 = arith.constant 0 : index
    %c0_0 = arith.constant 0 : index
    %c0_1 = arith.constant 0 : index
    %c0_2 = arith.constant 0 : index
    %0 = vector.load %arg1[%c0, %c0_0, %c0_1, %c0_2] : memref<2x8x8x128xf32, #tpu.memory_space<vmem>>, vector<2x8x8x128xf32>
    %1 = arith.truncf %0 : vector<2x8x8x128xf32> to vector<2x8x8x128xbf16>
    %2 = vector.extract_strided_slice %1 {offsets = [0, 0, 0, 0], sizes = [2, 8, 7, 128], strides = [1, 1, 1, 1]} : vector<2x8x8x128xbf16> to vector<2x8x7x128xbf16>
    %c0_3 = arith.constant 0 : index
    %c1 = arith.constant 1 : index
    %c1_4 = arith.constant 1 : index
    %c0_5 = arith.constant 0 : index
    %3 = vector.load %arg9[%c0_3, %c1, %c1_4, %c0_5] : memref<2x10x8x384xbf16, #tpu.memory_space<vmem>>, vector<2x8x7x128xbf16>
    tpu.vector_store %arg9[%c0_3, %c1, %c1_4, %c0_5], %2 {strides = array<i32>} : memref<2x10x8x384xbf16, #tpu.memory_space<vmem>>, vector<2x8x7x128xbf16>,
    %c0_6 = arith.constant 0 : index
    %c1_7 = arith.constant 1 : index
    %c0_8 = arith.constant 0 : index
    %c128 = arith.constant 128 : index
    %4 = vector.load %arg9[%c0_6, %c1_7, %c0_8, %c128] : memref<2x10x8x384xbf16, #tpu.memory_space<vmem>>, vector<2x8x8x128xbf16>
    tpu.vector_store %arg9[%c0_6, %c1_7, %c0_8, %c128], %1 {strides = array<i32>} : memref<2x10x8x384xbf16, #tpu.memory_space<vmem>>, vector<2x8x8x128xbf16>,
    %5 = vector.extract_strided_slice %1 {offsets = [0, 0, 1, 0], sizes = [2, 8, 7, 128], strides = [1, 1, 1, 1]} : vector<2x8x8x128xbf16> to vector<2x8x7x128xbf16>
    %c0_9 = arith.constant 0 : index
    %c1_10 = arith.constant 1 : index
    %c0_11 = arith.constant 0 : index
    %c256 = arith.constant 256 : index
    %6 = vector.load %arg9[%c0_9, %c1_10, %c0_11, %c256] : memref<2x10x8x384xbf16, #tpu.memory_space<vmem>>, vector<2x8x7x128xbf16>
    tpu.vector_store %arg9[%c0_9, %c1_10, %c0_11, %c256], %5 {strides = array<i32>} : memref<2x10x8x384xbf16, #tpu.memory_space<vmem>>, vector<2x8x7x128xbf16>,
    %cst = arith.constant 0.000000e+00 : bf16
    %7 = vector.broadcast %cst : bf16 to vector<2x1x8x384xbf16>
    %c0_12 = arith.constant 0 : index
    %c0_13 = arith.constant 0 : index
    %c0_14 = arith.constant 0 : index
    %c0_15 = arith.constant 0 : index
    %8 = vector.load %arg9[%c0_12, %c0_13, %c0_14, %c0_15] : memref<2x10x8x384xbf16, #tpu.memory_space<vmem>>, vector<2x1x8x384xbf16>
    tpu.vector_store %arg9[%c0_12, %c0_13, %c0_14, %c0_15], %7 {strides = array<i32>} : memref<2x10x8x384xbf16, #tpu.memory_space<vmem>>, vector<2x1x8x384xbf16>,
    %c0_16 = arith.constant 0 : index
    %c9 = arith.constant 9 : index
    %c0_17 = arith.constant 0 : index
    %c0_18 = arith.constant 0 : index
    %9 = vector.load %arg9[%c0_16, %c9, %c0_17, %c0_18] : memref<2x10x8x384xbf16, #tpu.memory_space<vmem>>, vector<2x1x8x384xbf16>
    tpu.vector_store %arg9[%c0_16, %c9, %c0_17, %c0_18], %7 {strides = array<i32>} : memref<2x10x8x384xbf16, #tpu.memory_space<vmem>>, vector<2x1x8x384xbf16>,
    %cst_19 = arith.constant 0.000000e+00 : bf16
    %10 = vector.broadcast %cst_19 : bf16 to vector<2x8x1x128xbf16>
    %c0_20 = arith.constant 0 : index
    %c1_21 = arith.constant 1 : index
    %c0_22 = arith.constant 0 : index
    %c0_23 = arith.constant 0 : index
    %11 = vector.load %arg9[%c0_20, %c1_21, %c0_22, %c0_23] : memref<2x10x8x384xbf16, #tpu.memory_space<vmem>>, vector<2x8x1x128xbf16>
    tpu.vector_store %arg9[%c0_20, %c1_21, %c0_22, %c0_23], %10 {strides = array<i32>} : memref<2x10x8x384xbf16, #tpu.memory_space<vmem>>, vector<2x8x1x128xbf16>,
    %c0_24 = arith.constant 0 : index
    %c1_25 = arith.constant 1 : index
    %c7 = arith.constant 7 : index
    %c256_26 = arith.constant 256 : index
    %12 = vector.load %arg9[%c0_24, %c1_25, %c7, %c256_26] : memref<2x10x8x384xbf16, #tpu.memory_space<vmem>>, vector<2x8x1x128xbf16>
    tpu.vector_store %arg9[%c0_24, %c1_25, %c7, %c256_26], %10 {strides = array<i32>} : memref<2x10x8x384xbf16, #tpu.memory_space<vmem>>, vector<2x8x1x128xbf16>,
    %c0_27 = arith.constant 0 : index
    %c0_28 = arith.constant 0 : index
    %c0_29 = arith.constant 0 : index
    %c0_30 = arith.constant 0 : index
    %13 = vector.load %arg9[%c0_27, %c0_28, %c0_29, %c0_30] : memref<2x10x8x384xbf16, #tpu.memory_space<vmem>>, vector<2x8x8x384xbf16>
    %14 = vector.shape_cast %13 : vector<2x8x8x384xbf16> to vector<128x384xbf16>
    %c0_31 = arith.constant 0 : index
    %c0_32 = arith.constant 0 : index
    %c0_33 = arith.constant 0 : index
    %15 = vector.load %arg2[%c0_31, %c0_32, %c0_33] : memref<3x384x128xbf16, #tpu.memory_space<vmem>>, vector<1x384x128xbf16>
    %16 = vector.shape_cast %15 : vector<1x384x128xbf16> to vector<384x128xbf16>
    %cst_34 = arith.constant dense<0.000000e+00> : vector<128x128xf32>
    %17 = tpu.matmul %14, %16, %cst_34 {dimension_numbers = #tpu.dot_dimension_numbers<[1], [0], [0], [1], [0, 0, 1, 1], [], []>} : vector<128x384xbf16>, vector<384x128xbf16>, vector<128x128xf32> -> vector<128x128xf32>
    %c0_35 = arith.constant 0 : index
    %c1_36 = arith.constant 1 : index
    %c0_37 = arith.constant 0 : index
    %c0_38 = arith.constant 0 : index
    %18 = vector.load %arg9[%c0_35, %c1_36, %c0_37, %c0_38] : memref<2x10x8x384xbf16, #tpu.memory_space<vmem>>, vector<2x8x8x384xbf16>
    %19 = vector.shape_cast %18 : vector<2x8x8x384xbf16> to vector<128x384xbf16>
    %c1_39 = arith.constant 1 : index
    %c0_40 = arith.constant 0 : index
    %c0_41 = arith.constant 0 : index
    %20 = vector.load %arg2[%c1_39, %c0_40, %c0_41] : memref<3x384x128xbf16, #tpu.memory_space<vmem>>, vector<1x384x128xbf16>
    %21 = vector.shape_cast %20 : vector<1x384x128xbf16> to vector<384x128xbf16>
    %cst_42 = arith.constant dense<0.000000e+00> : vector<128x128xf32>
    %22 = tpu.matmul %19, %21, %cst_42 {dimension_numbers = #tpu.dot_dimension_numbers<[1], [0], [0], [1], [0, 0, 1, 1], [], []>} : vector<128x384xbf16>, vector<384x128xbf16>, vector<128x128xf32> -> vector<128x128xf32>
    %23 = arith.addf %17, %22 : vector<128x128xf32>
    %c0_43 = arith.constant 0 : index
    %c2 = arith.constant 2 : index
    %c0_44 = arith.constant 0 : index
    %c0_45 = arith.constant 0 : index
    %24 = vector.load %arg9[%c0_43, %c2, %c0_44, %c0_45] : memref<2x10x8x384xbf16, #tpu.memory_space<vmem>>, vector<2x8x8x384xbf16>
    %25 = vector.shape_cast %24 : vector<2x8x8x384xbf16> to vector<128x384xbf16>
    %c2_46 = arith.constant 2 : index
    %c0_47 = arith.constant 0 : index
    %c0_48 = arith.constant 0 : index
    %26 = vector.load %arg2[%c2_46, %c0_47, %c0_48] : memref<3x384x128xbf16, #tpu.memory_space<vmem>>, vector<1x384x128xbf16>
    %27 = vector.shape_cast %26 : vector<1x384x128xbf16> to vector<384x128xbf16>
    %cst_49 = arith.constant dense<0.000000e+00> : vector<128x128xf32>
    %28 = tpu.matmul %25, %27, %cst_49 {dimension_numbers = #tpu.dot_dimension_numbers<[1], [0], [0], [1], [0, 0, 1, 1], [], []>} : vector<128x384xbf16>, vector<384x128xbf16>, vector<128x128xf32> -> vector<128x128xf32>
    %29 = arith.addf %23, %28 : vector<128x128xf32>
    %c0_50 = arith.constant 0 : index
    %c0_51 = arith.constant 0 : index
    %30 = vector.load %arg4[%c0_50, %c0_51] : memref<1x128xf32, #tpu.memory_space<vmem>>, vector<1x128xf32>
    %31 = vector.broadcast %30 : vector<1x128xf32> to vector<128x128xf32>
    %32 = arith.mulf %29, %31 : vector<128x128xf32>
    %c0_52 = arith.constant 0 : index
    %c0_53 = arith.constant 0 : index
    %33 = vector.load %arg5[%c0_52, %c0_53] : memref<1x128xf32, #tpu.memory_space<vmem>>, vector<1x128xf32>
    %34 = vector.broadcast %33 : vector<1x128xf32> to vector<128x128xf32>
    %35 = arith.addf %32, %34 : vector<128x128xf32>
    %cst_54 = arith.constant 0.00999999977 : f32
    %36 = vector.broadcast %cst_54 : f32 to vector<128x128xf32>
    %37 = arith.mulf %36, %35 : vector<128x128xf32>
    %38 = arith.maximumf %35, %37 : vector<128x128xf32>
    %39 = vector.shape_cast %38 : vector<128x128xf32> to vector<2x8x8x128xf32>
    %40 = arith.truncf %39 : vector<2x8x8x128xf32> to vector<2x8x8x128xbf16>
    %41 = vector.extract_strided_slice %40 {offsets = [0, 0, 0, 0], sizes = [2, 8, 7, 128], strides = [1, 1, 1, 1]} : vector<2x8x8x128xbf16> to vector<2x8x7x128xbf16>
    %c0_55 = arith.constant 0 : index
    %c1_56 = arith.constant 1 : index
    %c1_57 = arith.constant 1 : index
    %c0_58 = arith.constant 0 : index
    %42 = vector.load %arg10[%c0_55, %c1_56, %c1_57, %c0_58] : memref<2x10x8x384xbf16, #tpu.memory_space<vmem>>, vector<2x8x7x128xbf16>
    tpu.vector_store %arg10[%c0_55, %c1_56, %c1_57, %c0_58], %41 {strides = array<i32>} : memref<2x10x8x384xbf16, #tpu.memory_space<vmem>>, vector<2x8x7x128xbf16>,
    %c0_59 = arith.constant 0 : index
    %c1_60 = arith.constant 1 : index
    %c0_61 = arith.constant 0 : index
    %c128_62 = arith.constant 128 : index
    %43 = vector.load %arg10[%c0_59, %c1_60, %c0_61, %c128_62] : memref<2x10x8x384xbf16, #tpu.memory_space<vmem>>, vector<2x8x8x128xbf16>
    tpu.vector_store %arg10[%c0_59, %c1_60, %c0_61, %c128_62], %40 {strides = array<i32>} : memref<2x10x8x384xbf16, #tpu.memory_space<vmem>>, vector<2x8x8x128xbf16>,
    %44 = vector.extract_strided_slice %40 {offsets = [0, 0, 1, 0], sizes = [2, 8, 7, 128], strides = [1, 1, 1, 1]} : vector<2x8x8x128xbf16> to vector<2x8x7x128xbf16>
    %c0_63 = arith.constant 0 : index
    %c1_64 = arith.constant 1 : index
    %c0_65 = arith.constant 0 : index
    %c256_66 = arith.constant 256 : index
    %45 = vector.load %arg10[%c0_63, %c1_64, %c0_65, %c256_66] : memref<2x10x8x384xbf16, #tpu.memory_space<vmem>>, vector<2x8x7x128xbf16>
    tpu.vector_store %arg10[%c0_63, %c1_64, %c0_65, %c256_66], %44 {strides = array<i32>} : memref<2x10x8x384xbf16, #tpu.memory_space<vmem>>, vector<2x8x7x128xbf16>,
    %cst_67 = arith.constant 0.000000e+00 : bf16
    %46 = vector.broadcast %cst_67 : bf16 to vector<2x1x8x384xbf16>
    %c0_68 = arith.constant 0 : index
    %c0_69 = arith.constant 0 : index
    %c0_70 = arith.constant 0 : index
    %c0_71 = arith.constant 0 : index
    %47 = vector.load %arg10[%c0_68, %c0_69, %c0_70, %c0_71] : memref<2x10x8x384xbf16, #tpu.memory_space<vmem>>, vector<2x1x8x384xbf16>
    tpu.vector_store %arg10[%c0_68, %c0_69, %c0_70, %c0_71], %46 {strides = array<i32>} : memref<2x10x8x384xbf16, #tpu.memory_space<vmem>>, vector<2x1x8x384xbf16>,
    %c0_72 = arith.constant 0 : index
    %c9_73 = arith.constant 9 : index
    %c0_74 = arith.constant 0 : index
    %c0_75 = arith.constant 0 : index
    %48 = vector.load %arg10[%c0_72, %c9_73, %c0_74, %c0_75] : memref<2x10x8x384xbf16, #tpu.memory_space<vmem>>, vector<2x1x8x384xbf16>
    tpu.vector_store %arg10[%c0_72, %c9_73, %c0_74, %c0_75], %46 {strides = array<i32>} : memref<2x10x8x384xbf16, #tpu.memory_space<vmem>>, vector<2x1x8x384xbf16>,
    %cst_76 = arith.constant 0.000000e+00 : bf16
    %49 = vector.broadcast %cst_76 : bf16 to vector<2x8x1x128xbf16>
    %c0_77 = arith.constant 0 : index
    %c1_78 = arith.constant 1 : index
    %c0_79 = arith.constant 0 : index
    %c0_80 = arith.constant 0 : index
    %50 = vector.load %arg10[%c0_77, %c1_78, %c0_79, %c0_80] : memref<2x10x8x384xbf16, #tpu.memory_space<vmem>>, vector<2x8x1x128xbf16>
    tpu.vector_store %arg10[%c0_77, %c1_78, %c0_79, %c0_80], %49 {strides = array<i32>} : memref<2x10x8x384xbf16, #tpu.memory_space<vmem>>, vector<2x8x1x128xbf16>,
    %c0_81 = arith.constant 0 : index
    %c1_82 = arith.constant 1 : index
    %c7_83 = arith.constant 7 : index
    %c256_84 = arith.constant 256 : index
    %51 = vector.load %arg10[%c0_81, %c1_82, %c7_83, %c256_84] : memref<2x10x8x384xbf16, #tpu.memory_space<vmem>>, vector<2x8x1x128xbf16>
    tpu.vector_store %arg10[%c0_81, %c1_82, %c7_83, %c256_84], %49 {strides = array<i32>} : memref<2x10x8x384xbf16, #tpu.memory_space<vmem>>, vector<2x8x1x128xbf16>,
    %c0_85 = arith.constant 0 : index
    %c0_86 = arith.constant 0 : index
    %c0_87 = arith.constant 0 : index
    %c0_88 = arith.constant 0 : index
    %52 = vector.load %arg10[%c0_85, %c0_86, %c0_87, %c0_88] : memref<2x10x8x384xbf16, #tpu.memory_space<vmem>>, vector<2x8x8x384xbf16>
    %53 = vector.shape_cast %52 : vector<2x8x8x384xbf16> to vector<128x384xbf16>
    %c0_89 = arith.constant 0 : index
    %c0_90 = arith.constant 0 : index
    %c0_91 = arith.constant 0 : index
    %54 = vector.load %arg3[%c0_89, %c0_90, %c0_91] : memref<3x384x128xbf16, #tpu.memory_space<vmem>>, vector<1x384x128xbf16>
    %55 = vector.shape_cast %54 : vector<1x384x128xbf16> to vector<384x128xbf16>
    %cst_92 = arith.constant dense<0.000000e+00> : vector<128x128xf32>
    %56 = tpu.matmul %53, %55, %cst_92 {dimension_numbers = #tpu.dot_dimension_numbers<[1], [0], [0], [1], [0, 0, 1, 1], [], []>} : vector<128x384xbf16>, vector<384x128xbf16>, vector<128x128xf32> -> vector<128x128xf32>
    %c0_93 = arith.constant 0 : index
    %c1_94 = arith.constant 1 : index
    %c0_95 = arith.constant 0 : index
    %c0_96 = arith.constant 0 : index
    %57 = vector.load %arg10[%c0_93, %c1_94, %c0_95, %c0_96] : memref<2x10x8x384xbf16, #tpu.memory_space<vmem>>, vector<2x8x8x384xbf16>
    %58 = vector.shape_cast %57 : vector<2x8x8x384xbf16> to vector<128x384xbf16>
    %c1_97 = arith.constant 1 : index
    %c0_98 = arith.constant 0 : index
    %c0_99 = arith.constant 0 : index
    %59 = vector.load %arg3[%c1_97, %c0_98, %c0_99] : memref<3x384x128xbf16, #tpu.memory_space<vmem>>, vector<1x384x128xbf16>
    %60 = vector.shape_cast %59 : vector<1x384x128xbf16> to vector<384x128xbf16>
    %cst_100 = arith.constant dense<0.000000e+00> : vector<128x128xf32>
    %61 = tpu.matmul %58, %60, %cst_100 {dimension_numbers = #tpu.dot_dimension_numbers<[1], [0], [0], [1], [0, 0, 1, 1], [], []>} : vector<128x384xbf16>, vector<384x128xbf16>, vector<128x128xf32> -> vector<128x128xf32>
    %62 = arith.addf %56, %61 : vector<128x128xf32>
    %c0_101 = arith.constant 0 : index
    %c2_102 = arith.constant 2 : index
    %c0_103 = arith.constant 0 : index
    %c0_104 = arith.constant 0 : index
    %63 = vector.load %arg10[%c0_101, %c2_102, %c0_103, %c0_104] : memref<2x10x8x384xbf16, #tpu.memory_space<vmem>>, vector<2x8x8x384xbf16>
    %64 = vector.shape_cast %63 : vector<2x8x8x384xbf16> to vector<128x384xbf16>
    %c2_105 = arith.constant 2 : index
    %c0_106 = arith.constant 0 : index
    %c0_107 = arith.constant 0 : index
    %65 = vector.load %arg3[%c2_105, %c0_106, %c0_107] : memref<3x384x128xbf16, #tpu.memory_space<vmem>>, vector<1x384x128xbf16>
    %66 = vector.shape_cast %65 : vector<1x384x128xbf16> to vector<384x128xbf16>
    %cst_108 = arith.constant dense<0.000000e+00> : vector<128x128xf32>
    %67 = tpu.matmul %64, %66, %cst_108 {dimension_numbers = #tpu.dot_dimension_numbers<[1], [0], [0], [1], [0, 0, 1, 1], [], []>} : vector<128x384xbf16>, vector<384x128xbf16>, vector<128x128xf32> -> vector<128x128xf32>
    %68 = arith.addf %62, %67 : vector<128x128xf32>
    %c0_109 = arith.constant 0 : index
    %c0_110 = arith.constant 0 : index
    %69 = vector.load %arg6[%c0_109, %c0_110] : memref<1x128xf32, #tpu.memory_space<vmem>>, vector<1x128xf32>
    %70 = vector.broadcast %69 : vector<1x128xf32> to vector<128x128xf32>
    %71 = arith.mulf %68, %70 : vector<128x128xf32>
    %c0_111 = arith.constant 0 : index
    %c0_112 = arith.constant 0 : index
    %72 = vector.load %arg7[%c0_111, %c0_112] : memref<1x128xf32, #tpu.memory_space<vmem>>, vector<1x128xf32>
    %73 = vector.broadcast %72 : vector<1x128xf32> to vector<128x128xf32>
    %74 = arith.addf %71, %73 : vector<128x128xf32>
    %c0_113 = arith.constant 0 : index
    %c0_114 = arith.constant 0 : index
    %c0_115 = arith.constant 0 : index
    %c0_116 = arith.constant 0 : index
    %75 = vector.load %arg1[%c0_113, %c0_114, %c0_115, %c0_116] : memref<2x8x8x128xf32, #tpu.memory_space<vmem>>, vector<2x8x8x128xf32>
    %76 = vector.shape_cast %75 : vector<2x8x8x128xf32> to vector<128x128xf32>
    %77 = arith.addf %74, %76 : vector<128x128xf32>
    %cst_117 = arith.constant 0.00999999977 : f32
    %78 = vector.broadcast %cst_117 : f32 to vector<128x128xf32>
    %79 = arith.mulf %78, %77 : vector<128x128xf32>
    %80 = arith.maximumf %77, %79 : vector<128x128xf32>
    %81 = vector.shape_cast %80 : vector<128x128xf32> to vector<2x8x8x128xf32>
    %c0_118 = arith.constant 0 : index
    %c0_119 = arith.constant 0 : index
    %c0_120 = arith.constant 0 : index
    %c0_121 = arith.constant 0 : index
    %82 = vector.load %arg8[%c0_118, %c0_119, %c0_120, %c0_121] : memref<2x8x8x128xf32, #tpu.memory_space<vmem>>, vector<2x8x8x128xf32>
    tpu.vector_store %arg8[%c0_118, %c0_119, %c0_120, %c0_121], %81 {strides = array<i32>} : memref<2x8x8x128xf32, #tpu.memory_space<vmem>>, vector<2x8x8x128xf32>,
    return
  }
  func.func @transform_0(%arg0: i32) -> (i32, i32, i32, i32) {
    %c0_i32 = arith.constant 0 : i32
    %c0_i32_0 = arith.constant 0 : i32
    %c0_i32_1 = arith.constant 0 : i32
    %c0_i32_2 = arith.constant 0 : i32
    return %arg0, %c0_i32, %c0_i32_0, %c0_i32_1 : i32, i32, i32, i32
  }
  func.func @transform_1(%arg0: i32) -> (i32, i32, i32) {
    %c0_i32 = arith.constant 0 : i32
    %c0_i32_0 = arith.constant 0 : i32
    %c0_i32_1 = arith.constant 0 : i32
    %c0_i32_2 = arith.constant 0 : i32
    return %c0_i32, %c0_i32_0, %c0_i32_1 : i32, i32, i32
  }
  func.func @transform_2(%arg0: i32) -> (i32, i32, i32) {
    %c0_i32 = arith.constant 0 : i32
    %c0_i32_0 = arith.constant 0 : i32
    %c0_i32_1 = arith.constant 0 : i32
    %c0_i32_2 = arith.constant 0 : i32
    return %c0_i32, %c0_i32_0, %c0_i32_1 : i32, i32, i32
  }
  func.func @transform_3(%arg0: i32) -> (i32, i32) {
    %c0_i32 = arith.constant 0 : i32
    %c0_i32_0 = arith.constant 0 : i32
    %c0_i32_1 = arith.constant 0 : i32
    return %c0_i32, %c0_i32_0 : i32, i32
  }
  func.func @transform_4(%arg0: i32) -> (i32, i32) {
    %c0_i32 = arith.constant 0 : i32
    %c0_i32_0 = arith.constant 0 : i32
    %c0_i32_1 = arith.constant 0 : i32
    return %c0_i32, %c0_i32_0 : i32, i32
  }
  func.func @transform_5(%arg0: i32) -> (i32, i32) {
    %c0_i32 = arith.constant 0 : i32
    %c0_i32_0 = arith.constant 0 : i32
    %c0_i32_1 = arith.constant 0 : i32
    return %c0_i32, %c0_i32_0 : i32, i32
  }
  func.func @transform_6(%arg0: i32) -> (i32, i32) {
    %c0_i32 = arith.constant 0 : i32
    %c0_i32_0 = arith.constant 0 : i32
    %c0_i32_1 = arith.constant 0 : i32
    return %c0_i32, %c0_i32_0 : i32, i32
  }
  func.func @transform_7(%arg0: i32) -> (i32, i32, i32, i32) {
    %c0_i32 = arith.constant 0 : i32
    %c0_i32_0 = arith.constant 0 : i32
    %c0_i32_1 = arith.constant 0 : i32
    %c0_i32_2 = arith.constant 0 : i32
    return %arg0, %c0_i32, %c0_i32_0, %c0_i32_1 : i32, i32, i32, i32
  }
}

</mosaic_0001>

<bundles_post_ra>
// kernel: forward.3
= control target key start
LH: loop header
LB: loop body
LE: loop exit
PB: predicated region body
PF: predicated region fallthrough
CT: control target
= control target key end

     0   :  { %12 = vsyncpa [#allocation5], 0  ;;  %s7547_s0 = inlined_call_operand.hbm [shape: f32[2,8,8,128], index: 0, kind: input, shape index: {}]   ;;  %s7548_s1 = inlined_call_operand.hbm [shape: bf16[3,384,128], index: 1, kind: input, shape index: {}]   ;;  %s7549_s2 = inlined_call_operand.hbm [shape: bf16[3,384,128], index: 2, kind: input, shape index: {}]   ;;  %s7550_s3 = inlined_call_operand.hbm [shape: f32[1,128], index: 3, kind: input, shape index: {}]   ;;  %s7551_s4 = inlined_call_operand.hbm [shape: f32[1,128], index: 4, kind: input, shape index: {}]   ;;  %s7552_s5 = inlined_call_operand.hbm [shape: f32[1,128], index: 5, kind: input, shape index: {}]   ;;  %s7553_s6 = inlined_call_operand.hbm [shape: f32[1,128], index: 6, kind: input, shape index: {}]   ;;  %s7554_s7 = inlined_call_operand.hbm [shape: f32[2,8,8,128], index: 7, kind: output, shape index: {}]  }
   0x1   :  { %13 = vsyncpa [#allocation8], 0 }
   0x2   :  { %14 = vsyncpa [#allocation11], 0 }
   0x3   :  { %15 = vsyncpa [#allocation14], 0 }
   0x4   :  { %16 = vsyncpa [#allocation6], 0  ;;  %s6296_s24 = smov [#allocation7]   ;;  %s6110_s28 = scalar_lea.hbm %s7548_s1, 9216 }
   0x5   :  { %s34_s25 = sshll.u32 %s6296_s24, 4  ;;  %p6111_p0 = scmp.ne.s32.totalorder %s7548_s1, %s6110_s28  ;;  %s35_s25 = int_to_ptr.vmem [resolvable:$true] %s34_s25 }
   0x6   :  { %p6114_p1 = scmp.lt.u32.totalorder %s6110_s28, %s7548_s1 }
   0x8   :  { %p6116_p2 = pnand %p6114_p1, %p6111_p0 }
   0xa   :  { %6119 = shalt.err (!%p6116_p2)
}
   0xb   :  { %s6120_s10 = scalar_lea.vmem %s35_s25, 9216  ;;  %p6125_p4 = scmp.lt.s32.totalorder %s35_s25, %s35_s25 }
   0xc   :  { %p6121_p3 = scmp.ne.s32.totalorder %s35_s25, %s6120_s10  ;;  %p6126_p5 = scmp.lt.s32.totalorder %s6120_s10, %s6120_s10 }
   0xe   :  { %p6127_p6 = por %p6126_p5, %p6125_p4 }
  0x10   :  { %p6128_p7 = pnand %p6127_p6, %p6121_p3 }
  0x12   :  { %6131 = shalt.err (!%p6128_p7)
}
  0x13   :  { %s6297_s11 = smov 64   ;;  %s6298_s12 = smov 4  }
  0x14   :  { %40 = dma.hbm_to_vmem [thread:$0]  %s7548_s1, 9216, %s35_s25, [#allocation8], %s6297_s11, %s6297_s11, %s6298_s12  }
  0x15   :  { %s6299_s15 = smov [#allocation10]   ;;  %s6300_s17 = smov [#allocation13]  }
  0x16   :  { %s59_s16 = sshll.u32 %s6299_s15, 4  ;;  %s79_s18 = sshll.u32 %s6300_s17, 4  ;;  %s60_s16 = int_to_ptr.vmem [resolvable:$true] %s59_s16  ;;  %s80_s18 = int_to_ptr.vmem [resolvable:$true] %s79_s18 }
  0x17   :  { %s6132_s21 = scalar_lea.hbm %s7550_s3, 16 }
  0x18   :  { %p6133_p8 = scmp.ne.s32.totalorder %s7550_s3, %s6132_s21  ;;  %p6136_p9 = scmp.lt.u32.totalorder %s6132_s21, %s7550_s3 }
  0x1a   :  { %p6138_p10 = pnand %p6136_p9, %p6133_p8 }
  0x1c   :  { %6141 = shalt.err (!%p6138_p10)
}
  0x1d   :  { %s6142_s1 = scalar_lea.vmem %s60_s16, 16  ;;  %s6146_s25 = scalar_lea.vmem %s60_s16, 32 }
  0x1e   :  { %p6143_p11 = scmp.ne.s32.totalorder %s60_s16, %s6142_s1  ;;  %p6147_p12 = scmp.lt.s32.totalorder %s60_s16, %s60_s16 }
  0x1f   :  { %p6148_p13 = scmp.lt.s32.totalorder %s6146_s25, %s6142_s1 }
  0x21   :  { %p6149_p0 = por %p6148_p13, %p6147_p12 }
  0x23   :  { %p6150_p1 = pnand %p6149_p0, %p6143_p11 }
  0x25   :  { %6153 = shalt.err (!%p6150_p1)
}
  0x26   :  { %62 = dma.hbm_to_vmem [thread:$0]  %s7550_s3, 16, %s60_s16, [#allocation11]  }
  0x27   :  { %s6154_s8 = scalar_lea.hbm %s7552_s5, 16 }
  0x28   :  { %p6155_p2 = scmp.ne.s32.totalorder %s7552_s5, %s6154_s8  ;;  %p6158_p3 = scmp.lt.u32.totalorder %s6154_s8, %s7552_s5 }
  0x2a   :  { %p6160_p4 = pnand %p6158_p3, %p6155_p2 }
  0x2c   :  { %6163 = shalt.err (!%p6160_p4)
}
  0x2d   :  { %s6164_s15 = scalar_lea.vmem %s80_s18, 16  ;;  %s6168_s17 = scalar_lea.vmem %s80_s18, 32 }
  0x2e   :  { %p6165_p5 = scmp.ne.s32.totalorder %s80_s18, %s6164_s15  ;;  %p6169_p6 = scmp.lt.s32.totalorder %s80_s18, %s80_s18 }
  0x2f   :  { %p6170_p7 = scmp.lt.s32.totalorder %s6168_s17, %s6164_s15 }
  0x31   :  { %p6171_p8 = por %p6170_p7, %p6169_p6 }
  0x33   :  { %p6172_p9 = pnand %p6171_p8, %p6165_p5 }
  0x35   :  { %6175 = shalt.err (!%p6172_p9)
}
  0x36   :  { %82 = dma.hbm_to_vmem [thread:$0]  %s7552_s5, 16, %s80_s18, [#allocation14]  }
  0x37   :  { %s6301_s19 = smov [#allocation4]   ;;  %s6176_s23 = scalar_lea.hbm %s7547_s0, 2048 }
  0x38   :  { %s22_s20 = sshll.u32 %s6301_s19, 4  ;;  %p6177_p10 = scmp.ne.s32.totalorder %s7547_s0, %s6176_s23  ;;  %s23_s20 = int_to_ptr.vmem [resolvable:$true] %s22_s20 }
  0x39   :  { %p6180_p11 = scmp.lt.u32.totalorder %s6176_s23, %s7547_s0 }
  0x3b   :  { %p6182_p12 = pnand %p6180_p11, %p6177_p10 }
  0x3d   :  { %6185 = shalt.err (!%p6182_p12)
}
  0x3e   :  { %s6186_s27 = scalar_lea.vmem %s23_s20, 2048  ;;  %p6191_p0 = scmp.lt.s32.totalorder %s23_s20, %s23_s20 }
  0x3f   :  { %p6187_p13 = scmp.ne.s32.totalorder %s23_s20, %s6186_s27  ;;  %p6192_p1 = scmp.lt.s32.totalorder %s6186_s27, %s6186_s27 }
  0x41   :  { %p6193_p2 = por %p6192_p1, %p6191_p0 }
  0x43   :  { %p6194_p3 = pnand %p6193_p2, %p6187_p13 }
  0x45   :  { %6197 = shalt.err (!%p6194_p3)
}
  0x46   :  { %s6302_s5 = smov 128   ;;  %s6303_s18 = smov 8  }
  0x47   :  { %28 = dma.hbm_to_vmem [thread:$0]  %s7547_s0, 2048, %s23_s20, [#allocation5], %s6302_s5, %s6302_s5, %s6303_s18  }
  0x48   :  { %s6304_s30 = smov [#allocation9]   ;;  %s6305_s9 = smov [#allocation12]  }
  0x49   :  { %s46_s8 = sshll.u32 %s6304_s30, 4  ;;  %s69_s10 = sshll.u32 %s6305_s9, 4  ;;  %s47_s8 = int_to_ptr.vmem [resolvable:$true] %s46_s8  ;;  %s70_s10 = int_to_ptr.vmem [resolvable:$true] %s69_s10 }
  0x4a   :  { %s6198_s15 = scalar_lea.hbm %s7549_s2, 9216 }
  0x4b   :  { %p6199_p4 = scmp.ne.s32.totalorder %s7549_s2, %s6198_s15  ;;  %p6202_p5 = scmp.lt.u32.totalorder %s6198_s15, %s7549_s2 }
  0x4d   :  { %p6204_p6 = pnand %p6202_p5, %p6199_p4 }
  0x4f   :  { %6207 = shalt.err (!%p6204_p6)
}
  0x50   :  { %s6208_s0 = scalar_lea.vmem %s47_s8, 9216  ;;  %p6213_p8 = scmp.lt.s32.totalorder %s47_s8, %s47_s8 }
  0x51   :  { %p6209_p7 = scmp.ne.s32.totalorder %s47_s8, %s6208_s0  ;;  %p6214_p9 = scmp.lt.s32.totalorder %s6208_s0, %s6208_s0 }
  0x53   :  { %p6215_p10 = por %p6214_p9, %p6213_p8 }
  0x55   :  { %p6216_p11 = pnand %p6215_p10, %p6209_p7 }
  0x57   :  { %6219 = shalt.err (!%p6216_p11)
}
  0x58   :  { %52 = dma.hbm_to_vmem [thread:$0]  %s7549_s2, 9216, %s47_s8, [#allocation8], %s6297_s11, %s6297_s11, %s6298_s12  }
  0x59   :  { %s6220_s24 = scalar_lea.hbm %s7551_s4, 16 }
  0x5a   :  { %p6221_p12 = scmp.ne.s32.totalorder %s7551_s4, %s6220_s24  ;;  %p6224_p13 = scmp.lt.u32.totalorder %s6220_s24, %s7551_s4 }
  0x5c   :  { %p6226_p0 = pnand %p6224_p13, %p6221_p12 }
  0x5e   :  { %6229 = shalt.err (!%p6226_p0)
}
  0x5f   :  { %s6230_s28 = scalar_lea.vmem %s70_s10, 16  ;;  %s6234_s29 = scalar_lea.vmem %s70_s10, 32 }
  0x60   :  { %p6231_p1 = scmp.ne.s32.totalorder %s70_s10, %s6230_s28  ;;  %p6235_p2 = scmp.lt.s32.totalorder %s70_s10, %s70_s10 }
  0x61   :  { %p6236_p3 = scmp.lt.s32.totalorder %s6234_s29, %s6230_s28 }
  0x63   :  { %p6237_p4 = por %p6236_p3, %p6235_p2 }
  0x65   :  { %p6238_p5 = pnand %p6237_p4, %p6231_p1 }
  0x67   :  { %6241 = shalt.err (!%p6238_p5)
}
  0x68   :  { %72 = dma.hbm_to_vmem [thread:$0]  %s7551_s4, 16, %s70_s10, [#allocation11]  }
  0x69   :  { %s6306_s12 = smov [#allocation15]   ;;  %s6242_s13 = scalar_lea.hbm %s7553_s6, 16 }
  0x6a   :  { %s89_s30 = sshll.u32 %s6306_s12, 4  ;;  %p6243_p6 = scmp.ne.s32.totalorder %s7553_s6, %s6242_s13  ;;  %s90_s30 = int_to_ptr.vmem [resolvable:$true] %s89_s30 }
  0x6b   :  { %p6246_p7 = scmp.lt.u32.totalorder %s6242_s13, %s7553_s6 }
  0x6d   :  { %p6248_p8 = pnand %p6246_p7, %p6243_p6 }
  0x6f   :  { %6251 = shalt.err (!%p6248_p8)
}
  0x70   :  { %s6252_s16 = scalar_lea.vmem %s90_s30, 16  ;;  %s6256_s4 = scalar_lea.vmem %s90_s30, 32 }
  0x71   :  { %p6253_p9 = scmp.ne.s32.totalorder %s90_s30, %s6252_s16  ;;  %p6257_p10 = scmp.lt.s32.totalorder %s90_s30, %s90_s30 }
  0x72   :  { %p6258_p11 = scmp.lt.s32.totalorder %s6256_s4, %s6252_s16 }
  0x74   :  { %p6259_p12 = por %p6258_p11, %p6257_p10 }
  0x76   :  { %p6260_p13 = pnand %p6259_p12, %p6253_p9 }
  0x78   :  { %6263 = shalt.err (!%p6260_p13)
}
  0x79   :  { %92 = dma.hbm_to_vmem [thread:$0]  %s7553_s6, 16, %s90_s30, [#allocation14]  }
  0x7a   :  { %6286 = dma.done.wait [#allocation5], 2048  }
  0x7b   :  { %6287 = vsyncadd [#allocation5], 4294965248 }
  0x7c   :  { %6288 = dma.done.wait [#allocation8], 18432  }
  0x7d   :  { %6289 = vsyncadd [#allocation8], 4294948864 }
  0x7e   :  { %6290 = dma.done.wait [#allocation11], 32  }
  0x7f   :  { %6291 = vsyncadd [#allocation11], 4294967264 }
  0x80   :  { %6292 = dma.done.wait [#allocation14], 32  }
  0x81   :  { %6293 = vsyncadd [#allocation14], 4294967264  ;;  %v6307_v0 = vmov 0   ;;  %v5861_v1 = vld [vmem:[#allocation7 + $0x100] sm:$0xff]   ;;  %v5865_v5 = vld [vmem:[#allocation7 + $0x108] sm:$0xff]   ;;  %vm324_vm0 = vcmask 1043456  }
  0x82   :  { %521 = vst [vmem:[#allocation2] sm:$0xff] %v6307_v0  ;;  %522 = vst [vmem:[#allocation2 + $0x8] sm:$0xf] %v6307_v0  ;;  %v5862_v2 = vld [vmem:[#allocation7 + $0xc0] sm:$0xff]   ;;  %5016 = vmatprep.subr.bf16.mxu0 %v5861_v1  ;;  %v5866_v6 = vld [vmem:[#allocation7 + $0xc8] sm:$0xff]   ;;  %vm530_vm4 = vcmask 1040384  }
  0x83   :  { %524 = vst [vmem:[#allocation2 + $0x80] sm:$0xf] %v6307_v0  ;;  %527 = vst [vmem:[#allocation2 + $0x74] sm:$0xf] %v6307_v0  ;;  %v5863_v3 = vld [vmem:[#allocation7 + $0x40] sm:$0xff]   ;;  %5017 = vmatpush3.bf16.msra.mxu0 %v5862_v2  ;;  %v5867_v7 = vld [vmem:[#allocation7 + $0x48] sm:$0xff]  }
  0x84   :  { %529 = vst [vmem:[#allocation2 + $0xec] sm:$0xf] %v6307_v0  ;;  %2753 = vst [vmem:[#allocation3 + $0x8] sm:$0xf] %v6307_v0  ;;  %v5864_v4 = vld [vmem:[#allocation7] sm:$0xff]   ;;  %5096 = vmatprep.subr.bf16.mxu1 %v5863_v3  ;;  %5018 = vmatprep.subr.bf16.mxu0 %v5865_v5  ;;  %v5868_v8 = vld [vmem:[#allocation7 + $0x8] sm:$0xff]  }
  0x85   :  { %2755 = vst [vmem:[#allocation3 + $0x80] sm:$0xf] %v6307_v0  ;;  %2758 = vst [vmem:[#allocation3 + $0x74] sm:$0xf] %v6307_v0  ;;  %5097 = vmatpush3.bf16.msra.mxu1 %v5864_v4  ;;  %v5869_v9 = vld [vmem:[#allocation7 + $0x110] sm:$0xff]   ;;  %v5873_v13 = vld [vmem:[#allocation7 + $0x118] sm:$0xff]  }
  0x86   :  { %2760 = vst [vmem:[#allocation3 + $0xec] sm:$0xf] %v6307_v0  ;;  %5098 = vmatprep.subr.bf16.mxu1 %v5867_v7  ;;  %v5870_v10 = vld [vmem:[#allocation7 + $0xd0] sm:$0xff]   ;;  %v5874_v14 = vld [vmem:[#allocation7 + $0xd8] sm:$0xff]   ;;  %v5877_v17 = vld [vmem:[#allocation7 + $0x120] sm:$0xff]   ;;  %vm581_vm9 = vcmask 1043459  }
  0x87   :  { %5019 = vmatpush3.bf16.msra.mxu0 %v5866_v6  ;;  %v5871_v11 = vld [vmem:[#allocation7 + $0x50] sm:$0xff]   ;;  %v5875_v15 = vld [vmem:[#allocation7 + $0x58] sm:$0xff]   ;;  %v5878_v18 = vld [vmem:[#allocation7 + $0xe0] sm:$0xff]   ;;  %vm325_vm1 = vsmask.f32 7938  ;;  %s6308_s6 = smov [#allocation16]  }
  0x88   :  { %5020 = vmatprep.subr.bf16.mxu0 %v5869_v9  ;;  %v5872_v12 = vld [vmem:[#allocation7 + $0x10] sm:$0xff]   ;;  %v5876_v16 = vld [vmem:[#allocation7 + $0x18] sm:$0xff]   ;;  %v5879_v19 = vld [vmem:[#allocation7 + $0x60] sm:$0xff]   ;;  %vm531_vm2 = vsmask.f32 256  ;;  %s4645_s0 = sshll.u32 %s6308_s6, 4  ;;  %s4646_s0 = int_to_ptr.vmem [resolvable:$true] %s4645_s0 }
  0x89   :  { %5099 = vmatpush3.bf16.msra.mxu1 %v5868_v8  ;;  %v5880_v20 = vld [vmem:[#allocation7 + $0x20] sm:$0xff]   ;;  %v5881_v21 = vld [vmem:[#allocation7 + $0x128] sm:$0xff]   ;;  %v5885_v25 = vld [vmem:[#allocation7 + $0x130] sm:$0xff]   ;;  %vm471_vm6 = vsmask.f32 3328  ;;  %s6264_s20 = scalar_lea.vmem %s4646_s0, 2048  ;;  %p6269_p1 = scmp.lt.s32.totalorder %s4646_s0, %s4646_s0 }
  0x8a   :  { %5100 = vmatprep.subr.bf16.mxu1 %v5871_v11  ;;  %v5882_v22 = vld [vmem:[#allocation7 + $0xe8] sm:$0xff]   ;;  %v5886_v26 = vld [vmem:[#allocation7 + $0xf0] sm:$0xff]   ;;  %v5889_v29 = vld [vmem:[#allocation7 + $0x138] sm:$0xff]   ;;  %vm582_vm7 = vsmask.f32 7950  ;;  %p6265_p0 = scmp.ne.s32.totalorder %s4646_s0, %s6264_s20  ;;  %p6270_p2 = scmp.lt.s32.totalorder %s6264_s20, %s6264_s20 }
  0x8b   :  { %5021 = vmatpush3.bf16.msra.mxu0 %v5870_v10  ;;  %v5883_v23 = vld [vmem:[#allocation7 + $0x68] sm:$0xff]   ;;  %v5887_v27 = vld [vmem:[#allocation7 + $0x70] sm:$0xff]   ;;  %v5890_v30 = vld [vmem:[#allocation7 + $0xf8] sm:$0xff]  }
  0x8c   :  { %5022 = vmatprep.subr.bf16.mxu0 %v5873_v13  ;;  %v5884_v24 = vld [vmem:[#allocation7 + $0x28] sm:$0xff]   ;;  %v5888_v28 = vld [vmem:[#allocation7 + $0x30] sm:$0xff]   ;;  %v5891_v31 = vld [vmem:[#allocation7 + $0x78] sm:$0xff]   ;;  %p6271_p3 = por %p6270_p2, %p6269_p1 }
  0x8d   :  { %5101 = vmatpush3.bf16.msra.mxu1 %v5872_v12  ;;  %v5892_v32 = vld [vmem:[#allocation7 + $0x38] sm:$0xff]   ;;  %v115_v33 = vld [vmem:[#allocation4] sm:$0xff]  ;;  %v116_v34 = vld [vmem:[#allocation4 + $0x8] sm:$0xff] }
  0x8e   :  { %5102 = vmatprep.subr.bf16.mxu1 %v5875_v15  ;;  %v131_v35 = vpack.c.bf16 %v115_v33, %v115_v33  ;;  %v6451_v36 = vpack.c.bf16 %v116_v34, %v116_v34  ;;  %v6453_v37 = vld [vmem:[#allocation7 + $0x140] sm:$0xff]   ;;  %v117_v38 = vld [vmem:[#allocation4 + $0x10] sm:$0xff]  ;;  %v118_v39 = vld [vmem:[#allocation4 + $0x18] sm:$0xff]  ;;  %p6272_p4 = pnand %p6271_p3, %p6265_p0 }
  0x8f   :  { %5023 = vmatpush3.bf16.msra.mxu0 %v5874_v14  ;;  %v133_v44 = vpack.c.bf16 %v117_v38, %v117_v38  ;;  %v134_v45 = vpack.c.bf16 %v118_v39, %v118_v39  ;;  %v119_v48 = vld [vmem:[#allocation4 + $0x20] sm:$0xff]  ;;  %vm6461_vm3 = vmand %vm324_vm0, %vm325_vm1  ;;  %v327_v50 = vld [vmem:[#allocation2 + $0xc] sm:$0xf] }
  0x90   :  { %5024 = vmatprep.subr.bf16.mxu0 %v5877_v17  ;;  %v196_v40 = vshrl.u32 %v131_v35, 16  ;;  %v199_v41 = vshll.u32 %v131_v35, 16  ;;  %v203_v42 = vshrl.u32 %v6451_v36, 16  ;;  %v206_v43 = vshll.u32 %v6451_v36, 16  ;;  %375 = vst [vmem:[#allocation2 + $0x10] sm:$0xf] %v131_v35  ;;  %vm6512_vm5 = vmand %vm530_vm4, %vm531_vm2 }
  0x91   :  { %5103 = vmatpush3.bf16.msra.mxu1 %v5876_v16  ;;  %376 = vst [vmem:[#allocation2 + $0x1c] sm:$0xf] %v6451_v36  ;;  %v330_v51 = vld [vmem:[#allocation2 + $0x18] sm:$0xf]  ;;  %v210_v52 = vshrl.u32 %v133_v44, 16  ;;  %v213_v53 = vshll.u32 %v133_v44, 16  ;;  %v6469_v61 = vpack.c.bf16 %v119_v48, %v119_v48  ;;  %vm6702_vm8 = vmand %vm324_vm0, %vm471_vm6 }
  0x92   :  { %5104 = vmatprep.subr.bf16.mxu1 %v5879_v19  ;;  %v198_v46 = vrot.slane %v196_v40, 7  ;;  %v205_v47 = vrot.slane %v203_v42, 7  ;;  %377 = vst [vmem:[#allocation2 + $0x28] sm:$0xf] %v133_v44  ;;  %378 = vst [vmem:[#allocation2 + $0x34] sm:$0xf] %v134_v45 }
  0x93   :  { %5025 = vmatpush3.bf16.msra.mxu0 %v5878_v18  ;;  %v217_v56 = vshrl.u32 %v134_v45, 16  ;;  %v220_v57 = vshll.u32 %v134_v45, 16  ;;  %v120_v58 = vld [vmem:[#allocation4 + $0x28] sm:$0xff]  ;;  %v6467_v59 = vrot.slane %v196_v40, 4  ;;  %v212_v60 = vrot.slane %v210_v52, 7  ;;  %v121_v62 = vld [vmem:[#allocation4 + $0x30] sm:$0xff]  ;;  %vm6765_vm10 = vmand %vm581_vm9, %vm582_vm7 }
  0x94   :  { %5026 = vmatprep.subr.bf16.mxu0 %v5881_v21  ;;  %v201_v54 = vor.u32 %v199_v41, %v198_v46  ;;  %v208_v55 = vor.u32 %v206_v43, %v205_v47  ;;  %v6475_v2 = vrot.slane %v199_v41, 5  ;;  %v333_v4 = vld [vmem:[#allocation2 + $0x24] sm:$0xf]  ;;  %v336_v6 = vld [vmem:[#allocation2 + $0x30] sm:$0xf]  ;;  %v6477_v7 = vrot.slane %v210_v52, 4 }
  0x95   :  { %5105 = vmatpush3.bf16.msra.mxu1 %v5880_v20  ;;  %v219_v3 = vrot.slane %v217_v56, 7  ;;  %v215_v5 = vor.u32 %v213_v53, %v212_v60  ;;  %v6479_v8 = vrot.slane %v213_v53, 5  ;;  %v6481_v9 = vpack.c.bf16 %v120_v58, %v120_v58  ;;  %379 = vst [vmem:[#allocation2 + $0x40] sm:$0xf] %v6469_v61  ;;  %v122_v10 = vld [vmem:[#allocation4 + $0x38] sm:$0xff]  ;;  %v123_v20 = vld [vmem:[#allocation4 + $0x40] sm:$0xff] }
  0x96   :  { %5106 = vmatprep.subr.bf16.mxu1 %v5883_v23  ;;  %v328_v63 = vsel %vm6461_vm3, %v201_v54, %v327_v50  ;;  %v331_v1 = vsel %vm6461_vm3, %v208_v55, %v330_v51  ;;  %v224_v12 = vshrl.u32 %v6469_v61, 16  ;;  %v227_v13 = vshll.u32 %v6469_v61, 16  ;;  %v339_v19 = vld [vmem:[#allocation2 + $0x3c] sm:$0xf]  ;;  %v345_v35 = vld [vmem:[#allocation2 + $0x54] sm:$0xf] }
  0x97   :  { %5027 = vmatpush3.bf16.msra.mxu0 %v5882_v22  ;;  %329 = vst [vmem:[#allocation2 + $0xc] sm:$0xf] %v328_v63  ;;  %332 = vst [vmem:[#allocation2 + $0x18] sm:$0xf] %v331_v1  ;;  %v222_v11 = vor.u32 %v220_v57, %v219_v3  ;;  %v6486_v14 = vpack.c.bf16 %v121_v62, %v121_v62  ;;  %v334_v15 = vsel %vm6461_vm3, %v215_v5, %v333_v4  ;;  %v6531_v44 = vld [vmem:[#allocation7 + $0x80] sm:$0xff]   ;;  %v126_v58 = vld [vmem:[#allocation4 + $0x58] sm:$0xff] }
  0x98   :  { %5028 = vmatprep.subr.bf16.mxu0 %v5885_v25  ;;  %v6490_v16 = vrot.slane %v217_v56, 4  ;;  %v6492_v17 = vrot.slane %v220_v57, 5  ;;  %v231_v18 = vshrl.u32 %v6481_v9, 16  ;;  %380 = vst [vmem:[#allocation2 + $0x4c] sm:$0xf] %v6481_v9  ;;  %v226_v22 = vrot.slane %v224_v12, 7 }
  0x99   :  { %5107 = vmatpush3.bf16.msra.mxu1 %v5884_v24  ;;  %335 = vst [vmem:[#allocation2 + $0x24] sm:$0xf] %v334_v15  ;;  %v337_v21 = vsel %vm6461_vm3, %v222_v11, %v336_v6  ;;  %v234_v23 = vshll.u32 %v6481_v9, 16  ;;  %v342_v24 = vld [vmem:[#allocation2 + $0x48] sm:$0xf]  ;;  %v6501_v25 = vpack.c.bf16 %v122_v10, %v122_v10  ;;  %v6521_v38 = vpack.c.bf16 %v123_v20, %v123_v20  ;;  %v125_v57 = vld [vmem:[#allocation4 + $0x50] sm:$0xff] }
  0x9a   :  { %5108 = vmatprep.subr.bf16.mxu1 %v5887_v27  ;;  %381 = vst [vmem:[#allocation2 + $0x58] sm:$0xf] %v6486_v14  ;;  %v6504_v27 = vrot.slane %v203_v42, 4  ;;  %338 = vst [vmem:[#allocation2 + $0x30] sm:$0xf] %v337_v21  ;;  %v401_v39 = vor.u32 %v6479_v8, %v6477_v7  ;;  %v405_v47 = vor.u32 %v6492_v17, %v6490_v16  ;;  %v5907_v61 = vld [vmem:[#allocation7 + $0x160] sm:$0xff]  }
  0x9b   :  { %5029 = vmatpush3.bf16.msra.mxu0 %v5886_v26  ;;  %v124_v26 = vld [vmem:[#allocation4 + $0x48] sm:$0xff]  ;;  %v245_v33 = vshrl.u32 %v6501_v25, 16  ;;  %v248_v34 = vshll.u32 %v6501_v25, 16  ;;  %382 = vst [vmem:[#allocation2 + $0x64] sm:$0xf] %v6501_v25  ;;  %v252_v51 = vshrl.u32 %v6521_v38, 16  ;;  %v6560_v8 = vpack.c.bf16 %v125_v57, %v125_v57 }
  0x9c   :  { %5030 = vmatprep.subr.bf16.mxu0 %v5889_v29  ;;  %v238_v29 = vshrl.u32 %v6486_v14, 16  ;;  %v6529_v42 = vpack.c.bf16 %v124_v26, %v124_v26  ;;  %383 = vst [vmem:[#allocation2 + $0x88] sm:$0xf] %v6521_v38  ;;  %v348_v56 = vld [vmem:[#allocation2 + $0x60] sm:$0xf]  ;;  %v255_v63 = vshll.u32 %v6521_v38, 16  ;;  %v6562_v10 = vpack.c.bf16 %v126_v58, %v126_v58 }
  0x9d   :  { %5109 = vmatpush3.bf16.msra.mxu1 %v5888_v28  ;;  %v233_v28 = vrot.slane %v231_v18, 7  ;;  %v247_v50 = vrot.slane %v245_v33, 7  ;;  %v254_v62 = vrot.slane %v252_v51, 7  ;;  %v351_v3 = vld [vmem:[#allocation2 + $0x84] sm:$0xf]  ;;  %v266_v21 = vshrl.u32 %v6560_v8, 16 }
  0x9e   :  { %5110 = vmatprep.subr.bf16.mxu1 %v5891_v31  ;;  %v240_v41 = vrot.slane %v238_v29, 7  ;;  %v533_v45 = vld [vmem:[#allocation2 + $0xc] sm:$0x1]  ;;  %v536_v46 = vld [vmem:[#allocation2 + $0x18] sm:$0x1]  ;;  %v259_v1 = vshrl.u32 %v6529_v42, 16 }
  0x9f   :  { %5031 = vmatpush3.bf16.msra.mxu0 %v5890_v30  ;;  %v241_v30 = vshll.u32 %v6486_v14, 16  ;;  %v236_v40 = vor.u32 %v234_v23, %v233_v28  ;;  %v534_v52 = vsel %vm6512_vm5, 0, %v533_v45  ;;  %v537_v53 = vsel %vm6512_vm5, 0, %v536_v46  ;;  %384 = vst [vmem:[#allocation2 + $0x94] sm:$0xf] %v6529_v42  ;;  %v6807_v25 = vld [vmem:[#allocation7 + $0x200] sm:$0xff]  }
  0xa0   :  { %5496 = vmatprep.subr.bf16.mxu0 %v6453_v37  ;;  %535 = vst [vmem:[#allocation2 + $0xc] sm:$0x1] %v534_v52  ;;  %538 = vst [vmem:[#allocation2 + $0x18] sm:$0x1] %v537_v53  ;;  %v250_v60 = vor.u32 %v248_v34, %v247_v50  ;;  %v539_v4 = vld [vmem:[#allocation2 + $0x24] sm:$0x1]  ;;  %v257_v17 = vor.u32 %v255_v63, %v254_v62 }
  0xa1   :  { %5111 = vmatpush3.bf16.msra.mxu1 %v5892_v32  ;;  %v229_v32 = vor.u32 %v227_v13, %v226_v22  ;;  %v343_v54 = vsel %vm6461_vm3, %v236_v40, %v342_v24  ;;  %v243_v55 = vor.u32 %v241_v30, %v240_v41  ;;  %v262_v6 = vshll.u32 %v6529_v42, 16  ;;  %v354_v7 = vld [vmem:[#allocation2 + $0x90] sm:$0xf]  ;;  %385 = vst [vmem:[#allocation2 + $0xa0] sm:$0xf] %v6560_v8  ;;  %v127_v52 = vld [vmem:[#allocation4 + $0x60] sm:$0xff] }
  0xa2   :  { %5528 = vmatprep.subr.bf16.mxu1 %v6531_v44  ;;  %344 = vst [vmem:[#allocation2 + $0x48] sm:$0xf] %v343_v54  ;;  %v540_v11 = vsel %vm6512_vm5, 0, %v539_v4  ;;  %v542_v15 = vld [vmem:[#allocation2 + $0x30] sm:$0x1]  ;;  %v349_v16 = vsel %vm6461_vm3, %v250_v60, %v348_v56  ;;  %v269_v22 = vshll.u32 %v6560_v8, 16  ;;  %v6606_v58 = vpack.c.bf16 %v127_v52, %v127_v52 }
  0xa3   :  { %v340_v48 = vsel %vm6461_vm3, %v229_v32, %v339_v19  ;;  %v346_v5 = vsel %vm6461_vm3, %v243_v55, %v345_v35  ;;  %v261_v19 = vrot.slane %v259_v1, 7  ;;  %541 = vst [vmem:[#allocation2 + $0x24] sm:$0x1] %v540_v11  ;;  %v543_v20 = vsel %vm6512_vm5, 0, %v542_v15  ;;  %350 = vst [vmem:[#allocation2 + $0x60] sm:$0xf] %v349_v16 }
  0xa4   :  { %341 = vst [vmem:[#allocation2 + $0x3c] sm:$0xf] %v340_v48  ;;  %347 = vst [vmem:[#allocation2 + $0x54] sm:$0xf] %v346_v5  ;;  %v273_v24 = vshrl.u32 %v6562_v10, 16  ;;  %v6581_v26 = vrot.slane %v206_v43, 5  ;;  %v352_v32 = vsel %vm6461_vm3, %v257_v17, %v351_v3 }
  0xa5   :  { %386 = vst [vmem:[#allocation2 + $0xac] sm:$0xf] %v6562_v10  ;;  %544 = vst [vmem:[#allocation2 + $0x30] sm:$0x1] %v543_v20  ;;  %v264_v28 = vor.u32 %v262_v6, %v261_v19  ;;  %v276_v35 = vshll.u32 %v6562_v10, 16  ;;  %v268_v45 = vrot.slane %v266_v21, 7 }
  0xa6   :  { %v357_v40 = vld [vmem:[#allocation2 + $0x9c] sm:$0xf]  ;;  %v360_v41 = vld [vmem:[#allocation2 + $0xa8] sm:$0xf]  ;;  %353 = vst [vmem:[#allocation2 + $0x84] sm:$0xf] %v352_v32 }
  0xa7   :  { %v275_v36 = vrot.slane %v273_v24, 7  ;;  %v6592_v43 = vrot.slane %v401_v39, 4  ;;  %v6594_v46 = vrot.slane %v405_v47, 4  ;;  %v355_v50 = vsel %vm6461_vm3, %v264_v28, %v354_v7  ;;  %v128_v53 = vld [vmem:[#allocation4 + $0x68] sm:$0xff]  ;;  %v6598_v55 = vld [vmem:[#allocation2 + $0x18] sm:$0xff]  ;;  %v6637_v52 = vld [vmem:[#allocation7 + $0x90] sm:$0xff]  }
  0xa8   :  { %v712_v54 = vld [vmem:[#allocation2 + $0xc] sm:$0xff]  ;;  %356 = vst [vmem:[#allocation2 + $0x90] sm:$0xf] %v355_v50  ;;  %v271_v39 = vor.u32 %v269_v22, %v268_v45  ;;  %v6618_v19 = vpack.c.bf16 %v128_v53, %v128_v53  ;;  %387 = vst [vmem:[#allocation2 + $0xb8] sm:$0xf] %v6606_v58  ;;  %v280_v32 = vshrl.u32 %v6606_v58, 16 }
  0xa9   :  { %v548_v57 = vld [vmem:[#allocation2 + $0x48] sm:$0x1]  ;;  %v278_v47 = vor.u32 %v276_v35, %v275_v36  ;;  %v4676_v60 = vcombine.low %v712_v54, %v6598_v55  ;;  %v4677_v62 = vcombine.high %v712_v54, %v6598_v55  ;;  %v4724_v3 = vcombine.low %v6307_v0, %v712_v54 }
  0xaa   :  { %v4725_v4 = vcombine.high %v6307_v0, %v712_v54  ;;  %v5898_v5 = vld [vmem:[#allocation7 + $0x148] sm:$0xff]   ;;  %v549_v7 = vsel %vm6512_vm5, 0, %v548_v57  ;;  %v358_v16 = vsel %vm6461_vm3, %v271_v39, %v357_v40  ;;  %v554_v28 = vld [vmem:[#allocation2 + $0x60] sm:$0x1]  ;;  %v283_v40 = vshll.u32 %v6606_v58, 16 }
  0xab   :  { %v545_v48 = vld [vmem:[#allocation2 + $0x3c] sm:$0x1]  ;;  %v551_v11 = vld [vmem:[#allocation2 + $0x54] sm:$0x1]  ;;  %v5909_v15 = vld [vmem:[#allocation7 + $0x88] sm:$0xff]   ;;  %v361_v17 = vsel %vm6461_vm3, %v278_v47, %v360_v41  ;;  %1097 = vmatprep.mubr.bf16.mxu0 %v4677_v62  ;;  %v393_v41 = vor.u32 %v6475_v2, %v6467_v59  ;;  %v555_v50 = vsel %vm6512_vm5, 0, %v554_v28  ;;  %v397_v39 = vor.u32 %v6581_v26, %v6504_v27 }
  0xac   :  { %v546_v56 = vsel %vm6512_vm5, 0, %v545_v48  ;;  %1563 = vmatprep.mubr.bf16.mxu1 %v4725_v4  ;;  %v6621_v0 = vld [vmem:[#allocation2 + $0x24] sm:$0xff]  ;;  %550 = vst [vmem:[#allocation2 + $0x48] sm:$0x1] %v549_v7  ;;  %v552_v20 = vsel %vm6512_vm5, 0, %v551_v11  ;;  %1098 = vmatmul.mubr.bf16.vlgmr.msra.gmra.mrb[0].mxu0 %v4676_v60  ;;  %v6629_v45 = vld [vmem:[#allocation2 + $0x30] sm:$0xff] }
  0xad   :  { %547 = vst [vmem:[#allocation2 + $0x3c] sm:$0x1] %v546_v56  ;;  %359 = vst [vmem:[#allocation2 + $0x9c] sm:$0xf] %v358_v16  ;;  %1564 = vmatmul.mubr.bf16.vlgmr.msra.gmra.mrb[0].mxu1 %v4724_v3  ;;  %v4728_v36 = vcombine.high %v6598_v55, %v6621_v0  ;;  %v6633_v48 = vld [vmem:[#allocation7 + $0x150] sm:$0xff]   ;;  %v287_v53 = vshrl.u32 %v6618_v19, 16  ;;  %5497 = vmatpush3.bf16.msra.mxu0 %v6453_v37  ;;  %v4680_v59 = vcombine.high %v6621_v0, %v6629_v45 }
  0xae   :  { %362 = vst [vmem:[#allocation2 + $0xa8] sm:$0xf] %v361_v17  ;;  %553 = vst [vmem:[#allocation2 + $0x54] sm:$0x1] %v552_v20  ;;  %v363_v54 = vld [vmem:[#allocation2 + $0xb4] sm:$0xf]  ;;  %5529 = vmatpush3.bf16.msra.mxu1 %v6531_v44  ;;  %5498 = vmatprep.subr.bf16.mxu0 %v5898_v5  ;;  %v4727_v44 = vcombine.low %v6598_v55, %v6621_v0  ;;  %v4679_v4 = vcombine.low %v6621_v0, %v6629_v45 }
  0xaf   :  { %388 = vst [vmem:[#allocation2 + $0xc4] sm:$0xf] %v6618_v19  ;;  %556 = vst [vmem:[#allocation2 + $0x60] sm:$0x1] %v555_v50  ;;  %v557_v2 = vld [vmem:[#allocation2 + $0x84] sm:$0x1]  ;;  %1571 = vmatprep.mubr.bf16.mxu1 %v4728_v36  ;;  %1105 = vmatprep.mubr.bf16.mxu0 %v4680_v59 }
  0xb0   :  { %v282_v56 = vrot.slane %v280_v32, 7  ;;  %v290_v57 = vshll.u32 %v6618_v19, 16  ;;  %v558_v37 = vsel %vm6512_vm5, 0, %v557_v2  ;;  %v289_v47 = vrot.slane %v287_v53, 7  ;;  %v560_v60 = vld [vmem:[#allocation2 + $0x90] sm:$0x1]  ;;  %5530 = vmatprep.subr.bf16.mxu1 %v5909_v15 }
  0xb1   :  { %559 = vst [vmem:[#allocation2 + $0x84] sm:$0x1] %v558_v37  ;;  %v366_v3 = vld [vmem:[#allocation2 + $0xc0] sm:$0xf]  ;;  %v129_v27 = vld [vmem:[#allocation4 + $0x70] sm:$0xff]  ;;  %v6658_v26 = vrot.slane %v393_v41, 4  ;;  %5499 = vmatpush3.bf16.msra.mxu0 %v5898_v5 }
  0xb2   :  { %v285_v62 = vor.u32 %v283_v40, %v282_v56  ;;  %v561_v11 = vsel %vm6512_vm5, 0, %v560_v60  ;;  %v292_v55 = vor.u32 %v290_v57, %v289_v47  ;;  %v130_v16 = vld [vmem:[#allocation4 + $0x78] sm:$0xff]  ;;  %v6668_v17 = vpack.c.bf16 %v129_v27, %v129_v27  ;;  %5531 = vmatpush3.bf16.msra.mxu1 %v5909_v15  ;;  %5500 = vmatprep.subr.bf16.mxu0 %v6633_v48  ;;  %v369_v27 = vld [vmem:[#allocation2 + $0xcc] sm:$0xf] }
  0xb3   :  { %v6672_v28 = vld [vmem:[#allocation7 + $0x158] sm:$0xff]   ;;  %562 = vst [vmem:[#allocation2 + $0x90] sm:$0x1] %v561_v11  ;;  %v398_v41 = vrot.slane %v397_v39, 4  ;;  %v6678_v36 = vrot.slane %v224_v12, 4  ;;  %v6680_v50 = vld [vmem:[#allocation2 + $0x48] sm:$0xff]  ;;  %5532 = vmatprep.subr.bf16.mxu1 %v6637_v52  ;;  %v6686_v2 = vpack.c.bf16 %v130_v16, %v130_v16 }
  0xb4   :  { %v6662_v7 = vld [vmem:[#allocation2 + $0x3c] sm:$0xff]  ;;  %v364_v0 = vsel %vm6461_vm3, %v285_v62, %v363_v54  ;;  %v367_v15 = vsel %vm6461_vm3, %v292_v55, %v366_v3  ;;  %v294_v54 = vshrl.u32 %v6668_v17, 16  ;;  %389 = vst [vmem:[#allocation2 + $0xd0] sm:$0xf] %v6668_v17  ;;  %v6698_v47 = vrot.slane %v227_v13, 5  ;;  %1106 = vmatmul.mubr.bf16.gmra.mrb[4].mxu0 %v4679_v4 }
  0xb5   :  { %v4731_v20 = vcombine.high %v6629_v45, %v6662_v7  ;;  %v563_v5 = vld [vmem:[#allocation2 + $0x9c] sm:$0x1]  ;;  %v566_v59 = vld [vmem:[#allocation2 + $0xa8] sm:$0x1]  ;;  %365 = vst [vmem:[#allocation2 + $0xb4] sm:$0xf] %v364_v0  ;;  %v4683_v12 = vcombine.high %v6662_v7, %v6680_v50  ;;  %1572 = vmatmul.mubr.bf16.gmra.mrb[4].mxu1 %v4727_v44  ;;  %5501 = vmatpush3.bf16.msra.mxu0 %v6633_v48 }
  0xb6   :  { %v564_v56 = vsel %vm6512_vm5, 0, %v563_v5  ;;  %v567_v39 = vsel %vm6512_vm5, 0, %v566_v59  ;;  %v5914_v37 = vld [vmem:[#allocation7 + $0x98] sm:$0xff]   ;;  %368 = vst [vmem:[#allocation2 + $0xc0] sm:$0xf] %v367_v15  ;;  %v296_v62 = vrot.slane %v294_v54, 7  ;;  %5533 = vmatpush3.bf16.msra.mxu1 %v6637_v52  ;;  %v4730_v5 = vcombine.low %v6629_v45, %v6662_v7  ;;  %5502 = vmatprep.subr.bf16.mxu0 %v6672_v28 }
  0xb7   :  { %565 = vst [vmem:[#allocation2 + $0x9c] sm:$0x1] %v564_v56  ;;  %568 = vst [vmem:[#allocation2 + $0xa8] sm:$0x1] %v567_v39  ;;  %v297_v3 = vshll.u32 %v6668_v17, 16  ;;  %1113 = vmatprep.mubr.bf16.mxu0 %v4683_v12  ;;  %1579 = vmatprep.mubr.bf16.mxu1 %v4731_v20  ;;  %v301_v13 = vshrl.u32 %v6686_v2, 16  ;;  %v409_v9 = vor.u32 %v6698_v47, %v6678_v36 }
  0xb8   :  { %390 = vst [vmem:[#allocation2 + $0xdc] sm:$0xf] %v6686_v2  ;;  %v304_v11 = vshll.u32 %v6686_v2, 16  ;;  %v6713_v44 = vld [vmem:[#allocation2 + $0x54] sm:$0xff]  ;;  %v6715_v4 = vld [vmem:[#allocation2 + $0x60] sm:$0xff]  ;;  %v411_v20 = vrot.slane %v231_v18, 4  ;;  %5534 = vmatprep.subr.bf16.mxu1 %v5914_v37  ;;  %v4682_v18 = vcombine.low %v6662_v7, %v6680_v50 }
  0xb9   :  { %v299_v55 = vor.u32 %v297_v3, %v296_v62  ;;  %v473_v16 = vld [vmem:[#allocation2 + $0x14] sm:$0xf]  ;;  %v412_v0 = vrot.slane %v234_v23, 5  ;;  %v5918_v48 = vld [vmem:[#allocation7 + $0xa0] sm:$0xff]   ;;  %v303_v52 = vrot.slane %v301_v13, 7  ;;  %v4686_v62 = vcombine.high %v6713_v44, %v6715_v4  ;;  %5503 = vmatpush3.bf16.msra.mxu0 %v6672_v28 }
  0xba   :  { %v474_v59 = vsel %vm6702_vm8, %v6658_v26, %v473_v16  ;;  %v476_v15 = vld [vmem:[#allocation2 + $0x20] sm:$0xf]  ;;  %v479_v12 = vld [vmem:[#allocation2 + $0x2c] sm:$0xf]  ;;  %v372_v45 = vld [vmem:[#allocation2 + $0xd8] sm:$0xf]  ;;  %v4734_v36 = vcombine.high %v6680_v50, %v6713_v44  ;;  %5535 = vmatpush3.bf16.msra.mxu1 %v5914_v37  ;;  %5504 = vmatprep.subr.bf16.mxu0 %v5907_v61 }
  0xbb   :  { %v370_v23 = vsel %vm6461_vm3, %v299_v55, %v369_v27  ;;  %475 = vst [vmem:[#allocation2 + $0x14] sm:$0xf] %v474_v59  ;;  %v477_v56 = vsel %vm6702_vm8, %v398_v41, %v476_v15  ;;  %v480_v26 = vsel %vm6702_vm8, %v6592_v43, %v479_v12  ;;  %v482_v39 = vld [vmem:[#allocation2 + $0x38] sm:$0xf]  ;;  %v306_v47 = vor.u32 %v304_v11, %v303_v52  ;;  %v5912_v16 = vld [vmem:[#allocation7 + $0x168] sm:$0xff]  }
  0xbc   :  { %v569_v7 = vld [vmem:[#allocation2 + $0xb4] sm:$0x1]  ;;  %371 = vst [vmem:[#allocation2 + $0xcc] sm:$0xf] %v370_v23  ;;  %478 = vst [vmem:[#allocation2 + $0x20] sm:$0xf] %v477_v56  ;;  %v483_v41 = vsel %vm6702_vm8, %v6594_v46, %v482_v39  ;;  %v413_v55 = vor.u32 %v412_v0, %v411_v20  ;;  %5536 = vmatprep.subr.bf16.mxu1 %v5918_v48  ;;  %1114 = vmatmul.mubr.bf16.gmra.mrb[8].mxu0 %v4682_v18 }
  0xbd   :  { %481 = vst [vmem:[#allocation2 + $0x2c] sm:$0xf] %v480_v26  ;;  %v570_v43 = vsel %vm6512_vm5, 0, %v569_v7  ;;  %v572_v27 = vld [vmem:[#allocation2 + $0xc0] sm:$0x1]  ;;  %v5919_v59 = vld [vmem:[#allocation7 + $0xa8] sm:$0xff]   ;;  %v373_v46 = vsel %vm6461_vm3, %v306_v47, %v372_v45  ;;  %1580 = vmatmul.mubr.bf16.gmra.mrb[8].mxu1 %v4730_v5  ;;  %1121 = vmatprep.mubr.bf16.mxu0 %v4686_v62  ;;  %v4685_v56 = vcombine.low %v6713_v44, %v6715_v4 }
  0xbe   :  { %484 = vst [vmem:[#allocation2 + $0x38] sm:$0xf] %v483_v41  ;;  %571 = vst [vmem:[#allocation2 + $0xb4] sm:$0x1] %v570_v43  ;;  %v573_v52 = vsel %vm6512_vm5, 0, %v572_v27  ;;  %v6759_v28 = vld [vmem:[#allocation2 + $0x84] sm:$0xff]  ;;  %1587 = vmatprep.mubr.bf16.mxu1 %v4734_v36  ;;  %5505 = vmatpush3.bf16.msra.mxu0 %v5907_v61  ;;  %v4733_v26 = vcombine.low %v6680_v50, %v6713_v44 }
  0xbf   :  { %574 = vst [vmem:[#allocation2 + $0xc0] sm:$0x1] %v573_v52  ;;  %374 = vst [vmem:[#allocation2 + $0xd8] sm:$0xf] %v373_v46  ;;  %v415_v37 = vrot.slane %v238_v29, 4  ;;  %v5917_v20 = vld [vmem:[#allocation7 + $0x170] sm:$0xff]   ;;  %5537 = vmatpush3.bf16.msra.mxu1 %v5918_v48  ;;  %5506 = vmatprep.subr.bf16.mxu0 %v5912_v16 }
  0xc0   :  { %v5923_v0 = vld [vmem:[#allocation7 + $0xb0] sm:$0xff]   ;;  %v410_v12 = vrot.slane %v409_v9, 4  ;;  %v416_v5 = vrot.slane %v241_v30, 5  ;;  %v414_v23 = vrot.slane %v413_v55, 4  ;;  %5538 = vmatprep.subr.bf16.mxu1 %v5919_v59  ;;  %v419_v61 = vrot.slane %v245_v33, 4  ;;  %v6783_v9 = vld [vmem:[#allocation2] sm:$0xff] }
  0xc1   :  { %v6771_v18 = vld [vmem:[#allocation2 + $0x90] sm:$0xff]  ;;  %v4737_v62 = vcombine.high %v6783_v9, %v6759_v28  ;;  %v5922_v33 = vld [vmem:[#allocation7 + $0x178] sm:$0xff]   ;;  %v485_v41 = vld [vmem:[#allocation2 + $0x44] sm:$0xf]  ;;  %v435_v42 = vrot.slane %v273_v24, 4 }
  0xc2   :  { %v584_v29 = vld [vmem:[#allocation2 + $0x14] sm:$0x8]  ;;  %v417_v45 = vor.u32 %v416_v5, %v415_v37  ;;  %v4689_v48 = vcombine.high %v6759_v28, %v6771_v18  ;;  %5507 = vmatpush3.bf16.msra.mxu0 %v5912_v16  ;;  %v5924_v55 = vld [vmem:[#allocation7 + $0xb8] sm:$0xff]   ;;  %v486_v16 = vsel %vm6702_vm8, %v410_v12, %v485_v41  ;;  %v488_v52 = vld [vmem:[#allocation2 + $0x50] sm:$0xf] }
  0xc3   :  { %v575_v39 = vld [vmem:[#allocation2 + $0xcc] sm:$0x1]  ;;  %v585_v14 = vsel %vm6765_vm10, 0, %v584_v29  ;;  %v587_v30 = vld [vmem:[#allocation2 + $0x20] sm:$0x8]  ;;  %5539 = vmatpush3.bf16.msra.mxu1 %v5919_v59  ;;  %5508 = vmatprep.subr.bf16.mxu0 %v5917_v20  ;;  %v420_v59 = vrot.slane %v248_v34, 5  ;;  %v489_v29 = vsel %vm6702_vm8, %v414_v23, %v488_v52 }
  0xc4   :  { %v576_v4 = vsel %vm6512_vm5, 0, %v575_v39  ;;  %586 = vst [vmem:[#allocation2 + $0x14] sm:$0x8] %v585_v14  ;;  %v588_v50 = vsel %vm6765_vm10, 0, %v587_v30  ;;  %v590_v44 = vld [vmem:[#allocation2 + $0x2c] sm:$0x8]  ;;  %5540 = vmatprep.subr.bf16.mxu1 %v5923_v0  ;;  %1122 = vmatmul.mubr.bf16.gmra.mrb[12].mxu0 %v4685_v56  ;;  %v4688_v14 = vcombine.low %v6759_v28, %v6771_v18  ;;  %v4736_v30 = vcombine.low %v6783_v9, %v6759_v28 }
  0xc5   :  { %v593_v36 = vld [vmem:[#allocation2 + $0x38] sm:$0x8]  ;;  %577 = vst [vmem:[#allocation2 + $0xcc] sm:$0x1] %v576_v4  ;;  %589 = vst [vmem:[#allocation2 + $0x20] sm:$0x8] %v588_v50  ;;  %1588 = vmatmul.mubr.bf16.gmra.mrb[12].mxu1 %v4733_v26  ;;  %1129 = vmatprep.mubr.bf16.mxu0 %v4689_v48  ;;  %v421_v34 = vor.u32 %v420_v59, %v419_v61 }
  0xc6   :  { %v591_v7 = vsel %vm6765_vm10, 0, %v590_v44  ;;  %v594_v47 = vsel %vm6765_vm10, 0, %v593_v36  ;;  %v418_v43 = vrot.slane %v417_v45, 4  ;;  %v578_v27 = vld [vmem:[#allocation2 + $0xd8] sm:$0x1]  ;;  %v6799_v46 = vld [vmem:[#allocation2 + $0x9c] sm:$0xff]  ;;  %1595 = vmatprep.mubr.bf16.mxu1 %v4737_v62  ;;  %5509 = vmatpush3.bf16.msra.mxu0 %v5917_v20 }
  0xc7   :  { %592 = vst [vmem:[#allocation2 + $0x2c] sm:$0x8] %v591_v7  ;;  %595 = vst [vmem:[#allocation2 + $0x38] sm:$0x8] %v594_v47  ;;  %v6801_v37 = vld [vmem:[#allocation2 + $0xa8] sm:$0xff]  ;;  %v579_v5 = vsel %vm6512_vm5, 0, %v578_v27  ;;  %5541 = vmatpush3.bf16.msra.mxu1 %v5923_v0  ;;  %5510 = vmatprep.subr.bf16.mxu0 %v5922_v33  ;;  %v4740_v20 = vcombine.high %v6771_v18, %v6799_v46  ;;  %v4739_v41 = vcombine.low %v6771_v18, %v6799_v46 }
  0xc8   :  { %487 = vst [vmem:[#allocation2 + $0x44] sm:$0xf] %v486_v16  ;;  %v491_v45 = vld [vmem:[#allocation2 + $0x5c] sm:$0xf]  ;;  %580 = vst [vmem:[#allocation2 + $0xd8] sm:$0x1] %v579_v5  ;;  %5542 = vmatprep.subr.bf16.mxu1 %v5924_v55  ;;  %v4692_v61 = vcombine.high %v6799_v46, %v6801_v37  ;;  %v4691_v47 = vcombine.low %v6799_v46, %v6801_v37 }
  0xc9   :  { %v5928_v12 = vld [vmem:[#allocation7 + $0x1c0] sm:$0xff]   ;;  %490 = vst [vmem:[#allocation2 + $0x50] sm:$0xf] %v489_v29  ;;  %v492_v56 = vsel %vm6702_vm8, %v418_v43, %v491_v45  ;;  %v494_v26 = vld [vmem:[#allocation2 + $0x68] sm:$0xf]  ;;  %v422_v39 = vrot.slane %v421_v34, 4 }
  0xca   :  { %493 = vst [vmem:[#allocation2 + $0x5c] sm:$0xf] %v492_v56  ;;  %v423_v23 = vrot.slane %v252_v51, 4  ;;  %v424_v48 = vrot.slane %v255_v63, 5  ;;  %5511 = vmatpush3.bf16.msra.mxu0 %v5922_v33  ;;  %v6825_v51 = vld [vmem:[#allocation2 + $0xb4] sm:$0xff]  ;;  %v6828_v62 = vld [vmem:[#allocation2 + $0xc0] sm:$0xff] }
  0xcb   :  { %v495_v0 = vsel %vm6702_vm8, %v422_v39, %v494_v26  ;;  %5543 = vmatpush3.bf16.msra.mxu1 %v5924_v55  ;;  %5176 = vmatprep.subr.bf16.mxu0 %v5928_v12  ;;  %v427_v33 = vrot.slane %v259_v1, 4  ;;  %v4743_v43 = vcombine.high %v6801_v37, %v6825_v51  ;;  %v428_v27 = vrot.slane %v262_v6, 5  ;;  %v497_v55 = vld [vmem:[#allocation2 + $0x8c] sm:$0xf]  ;;  %v500_v45 = vld [vmem:[#allocation2 + $0x98] sm:$0xf] }
  0xcc   :  { %496 = vst [vmem:[#allocation2 + $0x68] sm:$0xf] %v495_v0  ;;  %5560 = vmatprep.subr.bf16.mxu1 %v6807_v25  ;;  %v425_v28 = vor.u32 %v424_v48, %v423_v23  ;;  %1130 = vmatmul.mubr.bf16.gmra.mrb[16].mxu0 %v4688_v14  ;;  %v4695_v16 = vcombine.high %v6825_v51, %v6828_v62  ;;  %v431_v59 = vrot.slane %v266_v21, 4  ;;  %v432_v18 = vrot.slane %v269_v22, 5  ;;  %v740_v12 = vld [vmem:[#allocation2 + $0xcc] sm:$0xff] }
  0xcd   :  { %1596 = vmatmul.mubr.bf16.gmra.mrb[16].mxu1 %v4736_v30  ;;  %1137 = vmatprep.mubr.bf16.mxu0 %v4692_v61  ;;  %v429_v29 = vor.u32 %v428_v27, %v427_v33  ;;  %v436_v6 = vrot.slane %v276_v35, 5  ;;  %v503_v26 = vld [vmem:[#allocation2 + $0xa4] sm:$0xf]  ;;  %v506_v24 = vld [vmem:[#allocation2 + $0xb0] sm:$0xf]  ;;  %v4694_v10 = vcombine.low %v6825_v51, %v6828_v62  ;;  %v4742_v35 = vcombine.low %v6801_v37, %v6825_v51 }
  0xce   :  { %1603 = vmatprep.mubr.bf16.mxu1 %v4740_v20  ;;  %v426_v7 = vrot.slane %v425_v28, 4  ;;  %v433_v34 = vor.u32 %v432_v18, %v431_v59  ;;  %v6870_v30 = vcombine.high %v6828_v62, %v740_v12  ;;  %v439_v37 = vrot.slane %v280_v32, 4  ;;  %v509_v33 = vld [vmem:[#allocation2 + $0xbc] sm:$0xf] }
  0xcf   :  { %v596_v4 = vld [vmem:[#allocation2 + $0x44] sm:$0x8]  ;;  %v430_v21 = vrot.slane %v429_v29, 4  ;;  %v437_v8 = vor.u32 %v436_v6, %v435_v42  ;;  %v6860_v22 = vld [vmem:[#allocation2 + $0xd8] sm:$0xff]  ;;  %v440_v28 = vrot.slane %v283_v40, 5  ;;  %v447_v32 = vrot.slane %v294_v54, 4 }
  0xd0   :  { %v599_v50 = vld [vmem:[#allocation2 + $0x50] sm:$0x8]  ;;  %v597_v38 = vsel %vm6765_vm10, 0, %v596_v4  ;;  %v498_v1 = vsel %vm6702_vm8, %v426_v7, %v497_v55  ;;  %v434_v39 = vrot.slane %v433_v34, 4  ;;  %v4698_v14 = vcombine.high %v740_v12, %v6860_v22  ;;  %v515_v55 = vld [vmem:[#allocation2 + $0xd4] sm:$0xf] }
  0xd1   :  { %v600_v63 = vsel %vm6765_vm10, 0, %v599_v50  ;;  %v602_v44 = vld [vmem:[#allocation2 + $0x5c] sm:$0x8]  ;;  %598 = vst [vmem:[#allocation2 + $0x44] sm:$0x8] %v597_v38  ;;  %v501_v56 = vsel %vm6702_vm8, %v430_v21, %v500_v45  ;;  %v438_v23 = vrot.slane %v437_v8, 4  ;;  %v4697_v19 = vcombine.low %v740_v12, %v6860_v22 }
  0xd2   :  { %601 = vst [vmem:[#allocation2 + $0x50] sm:$0x8] %v600_v63  ;;  %v603_v36 = vsel %vm6765_vm10, 0, %v602_v44  ;;  %499 = vst [vmem:[#allocation2 + $0x8c] sm:$0xf] %v498_v1  ;;  %v504_v0 = vsel %vm6702_vm8, %v434_v39, %v503_v26  ;;  %v443_v4 = vrot.slane %v287_v53, 4  ;;  %v441_v63 = vor.u32 %v440_v28, %v439_v37 }
  0xd3   :  { %604 = vst [vmem:[#allocation2 + $0x5c] sm:$0x8] %v603_v36  ;;  %v605_v52 = vld [vmem:[#allocation2 + $0x68] sm:$0x8]  ;;  %502 = vst [vmem:[#allocation2 + $0x98] sm:$0xf] %v501_v56  ;;  %v507_v48 = vsel %vm6702_vm8, %v438_v23, %v506_v24 }
  0xd4   :  { %v606_v5 = vsel %vm6765_vm10, 0, %v605_v52  ;;  %1138 = vmatmul.mubr.bf16.gmra.mrb[20].mxu0 %v4691_v47  ;;  %505 = vst [vmem:[#allocation2 + $0xa4] sm:$0xf] %v504_v0  ;;  %508 = vst [vmem:[#allocation2 + $0xb0] sm:$0xf] %v507_v48  ;;  %v444_v50 = vrot.slane %v290_v57, 5  ;;  %v6897_v57 = vcombine.low %v6828_v62, %v740_v12 }
  0xd5   :  { %607 = vst [vmem:[#allocation2 + $0x68] sm:$0x8] %v606_v5  ;;  %1604 = vmatmul.mubr.bf16.gmra.mrb[20].mxu1 %v4739_v41  ;;  %1145 = vmatprep.mubr.bf16.mxu0 %v4695_v16  ;;  %v5925_v44 = vld [vmem:[#allocation2 + $0x14] ss:$12 sps:$4 sm:$0xff]   ;;  %v448_v7 = vrot.slane %v297_v3, 5  ;;  %v451_v53 = vrot.slane %v301_v13, 4 }
  0xd6   :  { %1611 = vmatprep.mubr.bf16.mxu1 %v4743_v43  ;;  %v5927_v36 = vld [vmem:[#allocation2 + $0x8] ss:$12 sps:$4 sm:$0xff]   ;;  %v445_v40 = vor.u32 %v444_v50, %v443_v4  ;;  %v442_v54 = vrot.slane %v441_v63, 4  ;;  %v452_v41 = vrot.slane %v304_v11, 5  ;;  %v518_v11 = vld [vmem:[#allocation2 + $0xe0] sm:$0xf] }
  0xd7   :  { %v512_v47 = vld [vmem:[#allocation2 + $0xc8] sm:$0xf]  ;;  %v449_v27 = vor.u32 %v448_v7, %v447_v32  ;;  %v5926_v29 = vld [vmem:[#allocation2 + $0x2c] ss:$12 sps:$4 sm:$0xff]   ;;  %v5930_v42 = vld [vmem:[#allocation7 + $0x180] sm:$0xff]  }
  0xd8   :  { %v446_v43 = vrot.slane %v445_v40, 4  ;;  %v510_v3 = vsel %vm6702_vm8, %v442_v54, %v509_v33  ;;  %v453_v13 = vor.u32 %v452_v41, %v451_v53  ;;  %v5929_v6 = vld [vmem:[#allocation2 + $0x20] ss:$12 sps:$4 sm:$0xff]   ;;  %v5937_v56 = vld [vmem:[#allocation2 + $0x38] ss:$12 sps:$4 sm:$0xff]   ;;  %v5938_v26 = vld [vmem:[#allocation7 + $0x1d0] sm:$0xff]  }
  0xd9   :  { %v608_v61 = vld [vmem:[#allocation2 + $0x8c] sm:$0x8]  ;;  %511 = vst [vmem:[#allocation2 + $0xbc] sm:$0xf] %v510_v3  ;;  %v450_v1 = vrot.slane %v449_v27, 4  ;;  %v5940_v48 = vld [vmem:[#allocation7 + $0x190] sm:$0xff]  }
  0xda   :  { %v609_v20 = vsel %vm6765_vm10, 0, %v608_v61  ;;  %v611_v38 = vld [vmem:[#allocation2 + $0x98] sm:$0x8]  ;;  %v513_v2 = vsel %vm6702_vm8, %v446_v43, %v512_v47  ;;  %v454_v59 = vrot.slane %v453_v13, 4  ;;  %v5932_v45 = vld [vmem:[#allocation7 + $0x1c8] sm:$0xff]   ;;  %v5951_v63 = vld [vmem:[#allocation7 + $0x220] sm:$0xff]  }
  0xdb   :  { %610 = vst [vmem:[#allocation2 + $0x8c] sm:$0x8] %v609_v20  ;;  %v612_v58 = vsel %vm6765_vm10, 0, %v611_v38  ;;  %v614_v16 = vld [vmem:[#allocation2 + $0xa4] sm:$0x8]  ;;  %v516_v18 = vsel %vm6702_vm8, %v450_v1, %v515_v55  ;;  %v5934_v12 = vld [vmem:[#allocation7 + $0x208] sm:$0xff]  }
  0xdc   :  { %1146 = vmatmul.mubr.bf16.gmra.mrb[24].mxu0 %v4694_v10  ;;  %613 = vst [vmem:[#allocation2 + $0x98] sm:$0x8] %v612_v58  ;;  %v617_v17 = vld [vmem:[#allocation2 + $0xb0] sm:$0x8]  ;;  %v615_v52 = vsel %vm6765_vm10, 0, %v614_v16  ;;  %v519_v5 = vsel %vm6702_vm8, %v454_v59, %v518_v11  ;;  %v5933_v8 = vld [vmem:[#allocation7 + $0x188] sm:$0xff]  }
  0xdd   :  { %1612 = vmatmul.mubr.bf16.gmra.mrb[24].mxu1 %v4742_v35  ;;  %1153 = vmatprep.mubr.bf16.mxu0 %v4698_v14  ;;  %v618_v62 = vsel %vm6765_vm10, 0, %v617_v17  ;;  %616 = vst [vmem:[#allocation2 + $0xa4] sm:$0x8] %v615_v52  ;;  %514 = vst [vmem:[#allocation2 + $0xc8] sm:$0xf] %v513_v2  ;;  %v5941_v10 = vld [vmem:[#allocation7 + $0x210] sm:$0xff]  }
  0xde   :  { %1619 = vmatprep.mubr.bf16.mxu1 %v6870_v30  ;;  %619 = vst [vmem:[#allocation2 + $0xb0] sm:$0x8] %v618_v62  ;;  %517 = vst [vmem:[#allocation2 + $0xd4] sm:$0xf] %v516_v18  ;;  %v5935_v21 = vld [vmem:[#allocation2 + $0x44] ss:$12 sps:$4 sm:$0xff]  }
  0xdf   :  { %520 = vst [vmem:[#allocation2 + $0xe0] sm:$0xf] %v519_v5  ;;  %v5939_v39 = vld [vmem:[#allocation2 + $0x50] ss:$12 sps:$4 sm:$0xff]   ;;  %v5948_v38 = vld [vmem:[#allocation7 + $0x1e0] sm:$0xff]   ;;  %v5952_v40 = vld [vmem:[#allocation7 + $0x1e8] sm:$0xff]  }
  0xe0   :  { %v620_v34 = vld [vmem:[#allocation2 + $0xbc] sm:$0x8]  ;;  %v5954_v33 = vld [vmem:[#allocation7 + $0x228] sm:$0xff]   ;;  %v5958_v54 = vld [vmem:[#allocation7 + $0x1f0] sm:$0xff]  }
  0xe1   :  { %v621_v24 = vsel %vm6765_vm10, 0, %v620_v34  ;;  %v5936_v0 = vld [vmem:[#allocation2 + $0x5c] ss:$12 sps:$4 sm:$0xff]   ;;  %v5961_v47 = vld [vmem:[#allocation7 + $0x230] sm:$0xff]   ;;  %v5968_v3 = vld [vmem:[#allocation2 + $0x20] ss:$12 sps:$4 sm:$0xff]  }
  0xe2   :  { %622 = vst [vmem:[#allocation2 + $0xbc] sm:$0x8] %v621_v24  ;;  %v5942_v37 = vld [vmem:[#allocation7 + $0x1d8] sm:$0xff]   ;;  %v5947_v4 = vld [vmem:[#allocation2 + $0x80] ss:$12 sps:$4 sm:$0xff]   ;;  %v5960_v27 = vld [vmem:[#allocation7 + $0x1b0] sm:$0xff]  }
  0xe3   :  { %v5944_v28 = vld [vmem:[#allocation7 + $0x218] sm:$0xff]   ;;  %v5970_v2 = vld [vmem:[#allocation2 + $0x34] ss:$12 sps:$4 sm:$0xff]  }
  0xe4   :  { %1154 = vmatmul.mubr.bf16.gmra.mrb[28].mxu0 %v4697_v19  ;;  %v623_v35 = vld [vmem:[#allocation2 + $0xc8] sm:$0x8]  ;;  %v5945_v50 = vld [vmem:[#allocation2 + $0x8c] ss:$12 sps:$4 sm:$0xff]   ;;  %v5973_v11 = vld [vmem:[#allocation2 + $0x50] ss:$12 sps:$4 sm:$0xff]  }
  0xe5   :  { %1620 = vmatmul.mubr.bf16.gmra.mrb[28].mxu1 %v6897_v57  ;;  %5512 = vmatprep.mubr.bf16.mxu0 %v5925_v44  ;;  %v624_v23 = vsel %vm6765_vm10, 0, %v623_v35  ;;  %v626_v14 = vld [vmem:[#allocation2 + $0xd4] sm:$0x8]  ;;  %v5943_v32 = vld [vmem:[#allocation7 + $0x198] sm:$0xff]   ;;  %v5950_v44 = vld [vmem:[#allocation7 + $0x1a0] sm:$0xff]  }
  0xe6   :  { %5544 = vmatprep.mubr.bf16.mxu1 %v5927_v36  ;;  %v629_v61 = vld [vmem:[#allocation2 + $0xe0] sm:$0x8]  ;;  %625 = vst [vmem:[#allocation2 + $0xc8] sm:$0x8] %v624_v23  ;;  %v627_v20 = vsel %vm6765_vm10, 0, %v626_v14  ;;  %v5953_v19 = vld [vmem:[#allocation7 + $0x1a8] sm:$0xff]  }
  0xe7   :  { %628 = vst [vmem:[#allocation2 + $0xd4] sm:$0x8] %v627_v20  ;;  %v5946_v36 = vld [vmem:[#allocation2 + $0xa4] ss:$12 sps:$4 sm:$0xff]   ;;  %v5962_v55 = vld [vmem:[#allocation7 + $0x1f8] sm:$0xff]   ;;  %v5985_v20 = vld [vmem:[#allocation9 + $0xc8] sm:$0xff]  }
  0xe8   :  { %v5949_v58 = vld [vmem:[#allocation2 + $0x98] ss:$12 sps:$4 sm:$0xff]   ;;  %v5967_v17 = vld [vmem:[#allocation2 + $0x1c] ss:$12 sps:$4 sm:$0xff]  }
  0xe9   :  { %v5957_v7 = vld [vmem:[#allocation2 + $0xb0] ss:$12 sps:$4 sm:$0xff]   ;;  %v5965_v52 = vld [vmem:[#allocation2 + $0x18] ss:$12 sps:$4 sm:$0xff]   ;;  %v5974_v59 = vld [vmem:[#allocation2 + $0x68] ss:$12 sps:$4 sm:$0xff]  }
  0xea   :  { %v5964_v16 = vld [vmem:[#allocation7 + $0x238] sm:$0xff]   ;;  %v5982_v14 = vld [vmem:[#allocation9 + $0x100] sm:$0xff]  }
  0xeb   :  { %v5963_v13 = vld [vmem:[#allocation7 + $0x1b8] sm:$0xff]  }
  0xec   :  { %5513 = vmatmul.mubr.bf16.vlgmr.msra.gmra.mrb[32].mxu0 %v5926_v29  ;;  %v5969_v62 = vld [vmem:[#allocation2 + $0x38] ss:$12 sps:$4 sm:$0xff]   ;;  %v5972_v1 = vld [vmem:[#allocation2 + $0x30] ss:$12 sps:$4 sm:$0xff]  }
  0xed   :  { %5545 = vmatmul.mubr.bf16.vlgmr.msra.gmra.mrb[32].mxu1 %v5929_v6  ;;  %5177 = vmatpush3.bf16.msra.mxu0 %v5930_v42  ;;  %v5955_v53 = vld [vmem:[#allocation2 + $0xbc] ss:$12 sps:$4 sm:$0xff]   ;;  %v5975_v18 = vld [vmem:[#allocation2 + $0x4c] ss:$12 sps:$4 sm:$0xff]   ;;  %v1738_v29 = vld [vmem:[#allocation2 + $0x60] sm:$0xff] }
  0xee   :  { %5561 = vmatpush3.bf16.msra.mxu1 %v6807_v25  ;;  %5178 = vmatprep.subr.bf16.mxu0 %v5932_v45  ;;  %v630_v25 = vsel %vm6765_vm10, 0, %v629_v61  ;;  %v5959_v43 = vld [vmem:[#allocation2 + $0xc8] ss:$12 sps:$4 sm:$0xff]   ;;  %v5978_v5 = vld [vmem:[#allocation2 + $0x98] ss:$12 sps:$4 sm:$0xff]  }
  0xef   :  { %5562 = vmatprep.subr.bf16.mxu1 %v5934_v12  ;;  %5516 = vmatprep.mubr.bf16.mxu0 %v5935_v21  ;;  %631 = vst [vmem:[#allocation2 + $0xe0] sm:$0x8] %v630_v25  ;;  %v5977_v42 = vld [vmem:[#allocation2 + $0x48] ss:$12 sps:$4 sm:$0xff]   ;;  %v5979_v6 = vld [vmem:[#allocation2 + $0xb0] ss:$12 sps:$4 sm:$0xff]  }
  0xf0   :  { %5548 = vmatprep.mubr.bf16.mxu1 %v5937_v56  ;;  %v5980_v45 = vld [vmem:[#allocation2 + $0xc8] ss:$12 sps:$4 sm:$0xff]   ;;  %v5988_v25 = vld [vmem:[#allocation9 + $0x140] sm:$0xff]  }
  0xf1   :  { %5179 = vmatpush3.bf16.msra.mxu0 %v5933_v8  ;;  %v1742_v21 = vld [vmem:[#allocation2 + $0x90] sm:$0xff]  ;;  %v4781_v8 = vcombine.low %v1738_v29, %v6783_v9  ;;  %v5984_v61 = vld [vmem:[#allocation9 + $0x108] sm:$0xff]  }
  0xf2   :  { %5563 = vmatpush3.bf16.msra.mxu1 %v5934_v12  ;;  %5180 = vmatprep.subr.bf16.mxu0 %v5938_v26  ;;  %v4782_v12 = vcombine.high %v1738_v29, %v6783_v9  ;;  %v4785_v56 = vcombine.high %v1742_v21, %v6799_v46  ;;  %v1746_v26 = vld [vmem:[#allocation2 + $0xa8] sm:$0xff]  ;;  %v4784_v24 = vcombine.low %v1742_v21, %v6799_v46  ;;  %v5983_v46 = vld [vmem:[#allocation9 + $0xc0] sm:$0xff]   ;;  %v5999_v29 = vld [vmem:[#allocation9 + $0xf0] sm:$0xff]  }
  0xf3   :  { %5564 = vmatprep.subr.bf16.mxu1 %v5941_v10  ;;  %v4787_v35 = vcombine.low %v1746_v26, %v6825_v51 }
  0xf4   :  { %5517 = vmatmul.mubr.bf16.gmra.mrb[36].mxu0 %v5936_v0 }
  0xf5   :  { %5549 = vmatmul.mubr.bf16.gmra.mrb[36].mxu1 %v5939_v39  ;;  %5181 = vmatpush3.bf16.msra.mxu0 %v5940_v48  ;;  %v6107_v39 = vld [vmem:[#allocation2] sm:$0xff]  ;;  %v5989_v48 = vld [vmem:[#allocation9 + $0x118] sm:$0xff]  }
  0xf6   :  { %5565 = vmatpush3.bf16.msra.mxu1 %v5941_v10  ;;  %5182 = vmatprep.subr.bf16.mxu0 %v5942_v37  ;;  %v5956_v41 = vld [vmem:[#allocation2 + $0xd4] ss:$12 sps:$4 sm:$0xff]   ;;  %v4788_v10 = vcombine.high %v1746_v26, %v6825_v51  ;;  %v4794_v9 = vcombine.high %v6860_v22, %v6107_v39  ;;  %v4793_v23 = vcombine.low %v6860_v22, %v6107_v39  ;;  %v5991_v22 = vld [vmem:[#allocation9 + $0x148] sm:$0xff]   ;;  %v6002_v39 = vld [vmem:[#allocation9 + $0xf8] sm:$0xff]  }
  0xf7   :  { %5566 = vmatprep.subr.bf16.mxu1 %v5944_v28  ;;  %5520 = vmatprep.mubr.bf16.mxu0 %v5945_v50  ;;  %v5981_v34 = vld [vmem:[#allocation2 + $0xe0] ss:$12 sps:$4 sm:$0xff]   ;;  %v5986_v51 = vld [vmem:[#allocation9 + $0x110] sm:$0xff]  }
  0xf8   :  { %5552 = vmatprep.mubr.bf16.mxu1 %v5947_v4  ;;  %v5990_v4 = vld [vmem:[#allocation9 + $0xd8] sm:$0xff]  }
  0xf9   :  { %5183 = vmatpush3.bf16.msra.mxu0 %v5943_v32 }
  0xfa   :  { %5567 = vmatpush3.bf16.msra.mxu1 %v5944_v28  ;;  %5184 = vmatprep.subr.bf16.mxu0 %v5948_v38 }
  0xfb   :  { %5568 = vmatprep.subr.bf16.mxu1 %v5951_v63 }
  0xfc   :  { %5521 = vmatmul.mubr.bf16.gmra.mrb[40].mxu0 %v5946_v36 }
  0xfd   :  { %5553 = vmatmul.mubr.bf16.gmra.mrb[40].mxu1 %v5949_v58  ;;  %5185 = vmatpush3.bf16.msra.mxu0 %v5950_v44 }
  0xfe   :  { %5569 = vmatpush3.bf16.msra.mxu1 %v5951_v63  ;;  %5186 = vmatprep.subr.bf16.mxu0 %v5952_v40 }
  0xff   :  { %5570 = vmatprep.subr.bf16.mxu1 %v5954_v33  ;;  %5524 = vmatprep.mubr.bf16.mxu0 %v5955_v53  ;;  %v5993_v53 = vld [vmem:[#allocation9 + $0xe0] sm:$0xff]  }
 0x100   :  { %5556 = vmatprep.mubr.bf16.mxu1 %v5957_v7  ;;  %v5994_v7 = vld [vmem:[#allocation9 + $0x150] sm:$0xff]  }
 0x101   :  { %5187 = vmatpush3.bf16.msra.mxu0 %v5953_v19 }
 0x102   :  { %5571 = vmatpush3.bf16.msra.mxu1 %v5954_v33  ;;  %5188 = vmatprep.subr.bf16.mxu0 %v5958_v54  ;;  %v5992_v33 = vld [vmem:[#allocation9 + $0x120] sm:$0xff]  }
 0x103   :  { %5572 = vmatprep.subr.bf16.mxu1 %v5961_v47 }
 0x104   :  { %5525 = vmatmul.mubr.bf16.gmra.mrb[44].mxu0 %v5956_v41 }
 0x105   :  { %5557 = vmatmul.mubr.bf16.gmra.mrb[44].mxu1 %v5959_v43  ;;  %5189 = vmatpush3.bf16.msra.mxu0 %v5960_v27 }
 0x106   :  { %5573 = vmatpush3.bf16.msra.mxu1 %v5961_v47  ;;  %5190 = vmatprep.subr.bf16.mxu0 %v5962_v55 }
 0x107   :  { %5574 = vmatprep.subr.bf16.mxu1 %v5964_v16  ;;  %2111 = vmatprep.mubr.bf16.mxu0 %v5967_v17 }
 0x108   :  { %5576 = vmatprep.mubr.bf16.mxu1 %v5968_v3 }
 0x109   :  { %5191 = vmatpush3.bf16.msra.mxu0 %v5963_v13  ;;  %v5995_v13 = vld [vmem:[#allocation9 + $0x128] sm:$0xff]  }
 0x10a   :  { %5575 = vmatpush3.bf16.msra.mxu1 %v5964_v16  ;;  %5256 = vmatprep.subr.bf16.mxu0 %v5982_v14 }
 0x10b   :  { %5592 = vmatprep.subr.bf16.mxu1 %v5988_v25 }
 0x10c   :  { %2112 = vmatmul.mubr.bf16.vlgmr.msra.gmra.mrb[48].mxu0 %v5965_v52  ;;  %v5997_v52 = vld [vmem:[#allocation9 + $0x158] sm:$0xff]  }
 0x10d   :  { %5577 = vmatmul.mubr.bf16.vlgmr.msra.gmra.mrb[32].mxu1 %v5969_v62  ;;  %2119 = vmatprep.mubr.bf16.mxu0 %v5970_v2 }
 0x10e   :  { %5580 = vmatprep.mubr.bf16.mxu1 %v5973_v11  ;;  %5257 = vmatpush3.bf16.msra.mxu0 %v5983_v46  ;;  %v5996_v11 = vld [vmem:[#allocation9 + $0xe8] sm:$0xff]  }
 0x10f   :  { %5258 = vmatprep.subr.bf16.mxu0 %v5984_v61  ;;  %5593 = vmatpush3.bf16.msra.mxu1 %v5988_v25 }
 0x110   :  { %5594 = vmatprep.subr.bf16.mxu1 %v5991_v22 }
 0x112   :  { %5259 = vmatpush3.bf16.msra.mxu0 %v5985_v20 }
 0x113   :  { %5260 = vmatprep.subr.bf16.mxu0 %v5986_v51  ;;  %5595 = vmatpush3.bf16.msra.mxu1 %v5991_v22  ;;  %v6006_v22 = vld [vmem:[#allocation9 + $0x170] sm:$0xff]  }
 0x114   :  { %2120 = vmatmul.mubr.bf16.gmra.mrb[52].mxu0 %v5972_v1  ;;  %5596 = vmatprep.subr.bf16.mxu1 %v5994_v7  ;;  %v5998_v1 = vld [vmem:[#allocation9 + $0x130] sm:$0xff]  }
 0x115   :  { %5581 = vmatmul.mubr.bf16.gmra.mrb[36].mxu1 %v5974_v59  ;;  %2127 = vmatprep.mubr.bf16.mxu0 %v5975_v18  ;;  %v6000_v59 = vld [vmem:[#allocation9 + $0x160] sm:$0xff]  }
 0x116   :  { %5584 = vmatprep.mubr.bf16.mxu1 %v5978_v5 }
 0x117   :  { %5597 = vmatpush3.bf16.msra.mxu1 %v5994_v7 }
 0x118   :  { %5598 = vmatprep.subr.bf16.mxu1 %v5997_v52 }
 0x11b   :  { %5599 = vmatpush3.bf16.msra.mxu1 %v5997_v52 }
 0x11c   :  { %2128 = vmatmul.mubr.bf16.gmra.mrb[56].mxu0 %v5977_v42  ;;  %5600 = vmatprep.subr.bf16.mxu1 %v6000_v59 }
 0x11d   :  { %5585 = vmatmul.mubr.bf16.gmra.mrb[40].mxu1 %v5979_v6  ;;  %2135 = vmatprep.mubr.bf16.mxu0 %v4782_v12 }
 0x11e   :  { %5588 = vmatprep.mubr.bf16.mxu1 %v5980_v45 }
 0x11f   :  { %5601 = vmatpush3.bf16.msra.mxu1 %v6000_v59 }
 0x124   :  { %2136 = vmatmul.mubr.bf16.gmra.mrb[60].mxu0 %v4781_v8 }
 0x125   :  { %5589 = vmatmul.mubr.bf16.gmra.mrb[44].mxu1 %v5981_v34  ;;  %2143 = vmatprep.mubr.bf16.mxu0 %v4785_v56 }
 0x12c   :  { %2144 = vmatmul.mubr.bf16.gmra.mrb[64].mxu0 %v4784_v24 }
 0x12d   :  { %2151 = vmatprep.mubr.bf16.mxu0 %v4788_v10  ;;  %v6001_v10 = vld [vmem:[#allocation9 + $0x138] sm:$0xff]  }
 0x134   :  { %2152 = vmatmul.mubr.bf16.gmra.mrb[68].mxu0 %v4787_v35  ;;  %v6003_v35 = vld [vmem:[#allocation9 + $0x168] sm:$0xff]  }
 0x135   :  { %2159 = vmatprep.mubr.bf16.mxu0 %v6870_v30  ;;  %v5987_v30 = vld [vmem:[#allocation9 + $0xd0] sm:$0xff]   ;;  %5602 = vmatprep.subr.bf16.mxu1 %v6003_v35 }
 0x136   :  { %5261 = vmatpush3.bf16.msra.mxu0 %v5987_v30  ;;  %5603 = vmatpush3.bf16.msra.mxu1 %v6003_v35 }
 0x137   :  { %5262 = vmatprep.subr.bf16.mxu0 %v5989_v48  ;;  %5604 = vmatprep.subr.bf16.mxu1 %v6006_v22 }
 0x13a   :  { %5263 = vmatpush3.bf16.msra.mxu0 %v5990_v4  ;;  %5605 = vmatpush3.bf16.msra.mxu1 %v6006_v22 }
 0x13b   :  { %5264 = vmatprep.subr.bf16.mxu0 %v5992_v33 }
 0x13c   :  { %2160 = vmatmul.mubr.bf16.gmra.mrb[72].mxu0 %v6897_v57 }
 0x13d   :  { %2167 = vmatprep.mubr.bf16.mxu0 %v4794_v9 }
 0x13e   :  { %5265 = vmatpush3.bf16.msra.mxu0 %v5993_v53 }
 0x13f   :  { %5266 = vmatprep.subr.bf16.mxu0 %v5995_v13 }
 0x142   :  { %5267 = vmatpush3.bf16.msra.mxu0 %v5996_v11 }
 0x143   :  { %5268 = vmatprep.subr.bf16.mxu0 %v5998_v1 }
 0x144   :  { %2168 = vmatmul.mubr.bf16.gmra.mrb[76].mxu0 %v4793_v23 }
 0x146   :  { %5269 = vmatpush3.bf16.msra.mxu0 %v5999_v29 }
 0x147   :  { %5270 = vmatprep.subr.bf16.mxu0 %v6001_v10 }
 0x14a   :  { %5271 = vmatpush3.bf16.msra.mxu0 %v6002_v39 }
 0x17f   :  { %v5032_v57 = vpop.f32.mrb[0].mxu0 }
 0x180   :  { %v5112_v0 = vpop.f32.mrb[0].mxu1  ;;  %v5033_v37 = vpop.f32.mrb[1].mxu0 }
 0x181   :  { %v5113_v28 = vpop.f32.mrb[1].mxu1  ;;  %v6933_v50 = vadd.f32 %v5033_v37, %v5032_v57  ;;  %v5035_v32 = vpop.f32.mrb[2].mxu0 }
 0x182   :  { %v6935_v38 = vadd.f32 %v5113_v28, %v5112_v0  ;;  %v5115_v63 = vpop.f32.mrb[2].mxu1  ;;  %v5036_v44 = vpop.f32.mrb[3].mxu0 }
 0x183   :  { %v5116_v36 = vpop.f32.mrb[3].mxu1  ;;  %v6937_v58 = vadd.f32 %v5036_v44, %v5035_v32 }
 0x184   :  { %v6939_v40 = vadd.f32 %v5116_v36, %v5115_v63  ;;  %v6008_v63 = vld [vmem:[#allocation9 + $0x178] sm:$0xff]  }
 0x185   :  { %5606 = vmatprep.subr.bf16.mxu1 %v6008_v63 }
 0x186   :  { %5607 = vmatpush3.bf16.msra.mxu1 %v6008_v63 }
 0x187   :  { %v5038_v19 = vpop.f32.mrb[4].mxu0 }
 0x188   :  { %v5118_v54 = vpop.f32.mrb[4].mxu1  ;;  %v5039_v47 = vpop.f32.mrb[5].mxu0 }
 0x189   :  { %v5119_v41 = vpop.f32.mrb[5].mxu1  ;;  %v6941_v43 = vadd.f32 %v5039_v47, %v5038_v19  ;;  %v5041_v27 = vpop.f32.mrb[6].mxu0 }
 0x18a   :  { %v6943_v55 = vadd.f32 %v5119_v41, %v5118_v54  ;;  %v5121_v16 = vpop.f32.mrb[6].mxu1  ;;  %v5042_v17 = vpop.f32.mrb[7].mxu0 }
 0x18b   :  { %v5122_v3 = vpop.f32.mrb[7].mxu1  ;;  %v6945_v62 = vadd.f32 %v5042_v17, %v5041_v27 }
 0x18c   :  { %v6947_v2 = vadd.f32 %v5122_v3, %v5121_v16 }
 0x18f   :  { %v5044_v18 = vpop.f32.mrb[8].mxu0 }
 0x190   :  { %v5124_v5 = vpop.f32.mrb[8].mxu1  ;;  %v5045_v42 = vpop.f32.mrb[9].mxu0 }
 0x191   :  { %v5125_v6 = vpop.f32.mrb[9].mxu1  ;;  %v6949_v45 = vadd.f32 %v5045_v42, %v5044_v18  ;;  %v5047_v12 = vpop.f32.mrb[10].mxu0 }
 0x192   :  { %v6951_v21 = vadd.f32 %v5125_v6, %v5124_v5  ;;  %v5127_v34 = vpop.f32.mrb[10].mxu1  ;;  %v5048_v8 = vpop.f32.mrb[11].mxu0 }
 0x193   :  { %v5128_v56 = vpop.f32.mrb[11].mxu1  ;;  %v6953_v26 = vadd.f32 %v5048_v8, %v5047_v12 }
 0x194   :  { %v6955_v24 = vadd.f32 %v5128_v56, %v5127_v34 }
 0x197   :  { %v5050_v9 = vpop.f32.mrb[12].mxu0 }
 0x198   :  { %v5130_v23 = vpop.f32.mrb[12].mxu1  ;;  %v5051_v14 = vpop.f32.mrb[13].mxu0 }
 0x199   :  { %v5131_v46 = vpop.f32.mrb[13].mxu1  ;;  %v6957_v61 = vadd.f32 %v5051_v14, %v5050_v9  ;;  %v5053_v20 = vpop.f32.mrb[14].mxu0 }
 0x19a   :  { %v6959_v51 = vadd.f32 %v5131_v46, %v5130_v23  ;;  %v5133_v25 = vpop.f32.mrb[14].mxu1  ;;  %v5054_v30 = vpop.f32.mrb[15].mxu0 }
 0x19b   :  { %v5134_v57 = vpop.f32.mrb[15].mxu1  ;;  %v6961_v0 = vadd.f32 %v5054_v30, %v5053_v20 }
 0x19c   :  { %v6963_v48 = vadd.f32 %v5134_v57, %v5133_v25 }
 0x19f   :  { %v5056_v37 = vpop.f32.mrb[16].mxu0 }
 0x1a0   :  { %v5136_v28 = vpop.f32.mrb[16].mxu1  ;;  %v5057_v4 = vpop.f32.mrb[17].mxu0 }
 0x1a1   :  { %v5137_v32 = vpop.f32.mrb[17].mxu1  ;;  %v6965_v44 = vadd.f32 %v5057_v4, %v5056_v37  ;;  %v5059_v36 = vpop.f32.mrb[18].mxu0 }
 0x1a2   :  { %v6967_v33 = vadd.f32 %v5137_v32, %v5136_v28  ;;  %v5139_v7 = vpop.f32.mrb[18].mxu1  ;;  %v5060_v53 = vpop.f32.mrb[19].mxu0 }
 0x1a3   :  { %v5140_v19 = vpop.f32.mrb[19].mxu1  ;;  %v6969_v54 = vadd.f32 %v5060_v53, %v5059_v36 }
 0x1a4   :  { %v6971_v47 = vadd.f32 %v5140_v19, %v5139_v7  ;;  %v6020_v19 = vld [vmem:[#allocation9 + $0x40] sm:$0xff]  }
 0x1a5   :  { %5336 = vmatprep.subr.bf16.mxu0 %v6020_v19 }
 0x1a7   :  { %v5062_v41 = vpop.f32.mrb[20].mxu0 }
 0x1a8   :  { %v5142_v27 = vpop.f32.mrb[20].mxu1  ;;  %v5063_v16 = vpop.f32.mrb[21].mxu0 }
 0x1a9   :  { %v5143_v17 = vpop.f32.mrb[21].mxu1  ;;  %v5064_v3 = vadd.f32 %v5063_v16, %v5062_v41  ;;  %v5065_v13 = vpop.f32.mrb[22].mxu0  ;;  %v6986_v41 = vld [vmem:[#allocation9 + $0x80] sm:$0xff]  }
 0x1aa   :  { %v6973_v52 = vadd.f32 %v5143_v17, %v5142_v27  ;;  %v5145_v11 = vpop.f32.mrb[22].mxu1  ;;  %v5066_v1 = vpop.f32.mrb[23].mxu0  ;;  %5624 = vmatprep.subr.bf16.mxu1 %v6986_v41 }
 0x1ab   :  { %v5146_v59 = vpop.f32.mrb[23].mxu1  ;;  %v5067_v18 = vadd.f32 %v5066_v1, %v5065_v13 }
 0x1ac   :  { %v6975_v5 = vadd.f32 %v5146_v59, %v5145_v11 }
 0x1af   :  { %v5068_v29 = vpop.f32.mrb[24].mxu0 }
 0x1b0   :  { %v5148_v42 = vpop.f32.mrb[24].mxu1  ;;  %v5069_v6 = vpop.f32.mrb[25].mxu0 }
 0x1b1   :  { %v5149_v12 = vpop.f32.mrb[25].mxu1  ;;  %v6977_v34 = vadd.f32 %v5069_v6, %v5068_v29  ;;  %v5071_v8 = vpop.f32.mrb[26].mxu0 }
 0x1b2   :  { %v6979_v56 = vadd.f32 %v5149_v12, %v5148_v42  ;;  %v5151_v10 = vpop.f32.mrb[26].mxu1  ;;  %v5072_v35 = vpop.f32.mrb[27].mxu0 }
 0x1b3   :  { %v5152_v39 = vpop.f32.mrb[27].mxu1  ;;  %v6981_v9 = vadd.f32 %v5072_v35, %v5071_v8 }
 0x1b4   :  { %v6983_v23 = vadd.f32 %v5152_v39, %v5151_v10 }
 0x1b7   :  { %v5074_v14 = vpop.f32.mrb[28].mxu0 }
 0x1b8   :  { %v5154_v46 = vpop.f32.mrb[28].mxu1  ;;  %v5075_v20 = vpop.f32.mrb[29].mxu0 }
 0x1b9   :  { %v5155_v25 = vpop.f32.mrb[29].mxu1  ;;  %v5076_v30 = vadd.f32 %v5075_v20, %v5074_v14  ;;  %v5077_v57 = vpop.f32.mrb[30].mxu0 }
 0x1ba   :  { %v5156_v22 = vadd.f32 %v5155_v25, %v5154_v46  ;;  %v5157_v37 = vpop.f32.mrb[30].mxu1  ;;  %v5078_v28 = vpop.f32.mrb[31].mxu0 }
 0x1bb   :  { %v5158_v4 = vpop.f32.mrb[31].mxu1  ;;  %v5079_v32 = vadd.f32 %v5078_v28, %v5077_v57 }
 0x1bc   :  { %v5159_v63 = vadd.f32 %v5158_v4, %v5157_v37 }
 0x1bf   :  { %v5514_v36 = vpop.f32.mrb[32].mxu0 }
 0x1c0   :  { %v1205_v7 = vadd.f32 %v5514_v36, %v6941_v43  ;;  %v1196_v53 = vpop.f32.mrb[33].mxu0 }
 0x1c1   :  { %v1197_v27 = vadd.f32 %v6933_v50, %v1196_v53  ;;  %v5515_v16 = vpop.f32.mrb[34].mxu0 }
 0x1c2   :  { %v6990_v17 = vadd.f32 %v6943_v55, %v1205_v7  ;;  %v1208_v13 = vadd.f32 %v5515_v16, %v6945_v62  ;;  %v1199_v11 = vpop.f32.mrb[35].mxu0 }
 0x1c3   :  { %v1566_v1 = vadd.f32 %v6935_v38, %v1197_v27  ;;  %v1200_v43 = vadd.f32 %v6937_v58, %v1199_v11 }
 0x1c4   :  { %v6997_v59 = vadd.f32 %v6947_v2, %v1208_v13 }
 0x1c5   :  { %v1569_v29 = vadd.f32 %v6939_v40, %v1200_v43 }
 0x1c7   :  { %v5518_v50 = vpop.f32.mrb[36].mxu0 }
 0x1c8   :  { %v1221_v42 = vadd.f32 %v5518_v50, %v6957_v61  ;;  %v1212_v55 = vpop.f32.mrb[37].mxu0 }
 0x1c9   :  { %v1213_v6 = vadd.f32 %v6949_v45, %v1212_v55  ;;  %v5519_v62 = vpop.f32.mrb[38].mxu0 }
 0x1ca   :  { %v7003_v12 = vadd.f32 %v6959_v51, %v1221_v42  ;;  %v1224_v8 = vadd.f32 %v5519_v62, %v6961_v0  ;;  %v1215_v38 = vpop.f32.mrb[39].mxu0 }
 0x1cb   :  { %v7007_v58 = vadd.f32 %v6951_v21, %v1213_v6  ;;  %v1216_v2 = vadd.f32 %v6953_v26, %v1215_v38 }
 0x1cc   :  { %v7011_v40 = vadd.f32 %v6963_v48, %v1224_v8 }
 0x1cd   :  { %v7014_v61 = vadd.f32 %v6955_v24, %v1216_v2 }
 0x1cf   :  { %v5522_v10 = vpop.f32.mrb[40].mxu0 }
 0x1d0   :  { %v1237_v45 = vadd.f32 %v5522_v10, %v5064_v3  ;;  %v1228_v35 = vpop.f32.mrb[41].mxu0 }
 0x1d1   :  { %v1229_v51 = vadd.f32 %v6965_v44, %v1228_v35  ;;  %v5523_v39 = vpop.f32.mrb[42].mxu0 }
 0x1d2   :  { %v7018_v0 = vadd.f32 %v6973_v52, %v1237_v45  ;;  %v1240_v14 = vadd.f32 %v5523_v39, %v5067_v18  ;;  %v1231_v21 = vpop.f32.mrb[43].mxu0 }
 0x1d3   :  { %v7021_v46 = vadd.f32 %v6967_v33, %v1229_v51  ;;  %v1232_v26 = vadd.f32 %v6969_v54, %v1231_v21 }
 0x1d4   :  { %v7025_v48 = vadd.f32 %v6975_v5, %v1240_v14 }
 0x1d5   :  { %v7028_v24 = vadd.f32 %v6971_v47, %v1232_v26 }
 0x1d7   :  { %v5526_v3 = vpop.f32.mrb[44].mxu0 }
 0x1d8   :  { %v1253_v20 = vadd.f32 %v5526_v3, %v5076_v30  ;;  %v1244_v44 = vpop.f32.mrb[45].mxu0 }
 0x1d9   :  { %v1245_v25 = vadd.f32 %v6977_v34, %v1244_v44  ;;  %v5527_v52 = vpop.f32.mrb[46].mxu0 }
 0x1da   :  { %v7031_v57 = vadd.f32 %v5156_v22, %v1253_v20  ;;  %v1256_v18 = vadd.f32 %v5527_v52, %v5079_v32  ;;  %v1247_v37 = vpop.f32.mrb[47].mxu0 }
 0x1db   :  { %v7034_v33 = vadd.f32 %v6979_v56, %v1245_v25  ;;  %v1248_v54 = vadd.f32 %v6981_v9, %v1247_v37  ;;  %v7042_v56 = vld [vmem:[#allocation10] ss:$0 sm:$0xff] }
 0x1dc   :  { %v7037_v5 = vadd.f32 %v5159_v63, %v1256_v18  ;;  %v7044_v63 = vld [vmem:[#allocation12] ss:$0 sm:$0xff] }
 0x1dd   :  { %v7040_v47 = vadd.f32 %v6983_v23, %v1248_v54 }
 0x1df   :  { %v5192_v28 = vpop.f32.mrb[48].mxu0 }
 0x1e0   :  { %v5578_v30 = vpop.f32.mrb[32].mxu1  ;;  %v5193_v4 = vpop.f32.mrb[49].mxu0 }
 0x1e1   :  { %v2210_v36 = vpop.f32.mrb[33].mxu1  ;;  %v5194_v34 = vadd.f32 %v5193_v4, %v5192_v28  ;;  %v5195_v7 = vpop.f32.mrb[50].mxu0 }
 0x1e2   :  { %v5579_v22 = vpop.f32.mrb[34].mxu1  ;;  %v5196_v53 = vpop.f32.mrb[51].mxu0 }
 0x1e3   :  { %v2213_v32 = vpop.f32.mrb[35].mxu1  ;;  %v5694_v19 = vadd.f32 %v5194_v34, %v1566_v1  ;;  %v5197_v27 = vadd.f32 %v5196_v53, %v5195_v7 }
 0x1e5   :  { %v5695_v16 = vadd.f32 %v5694_v19, %v2210_v36  ;;  %v5702_v9 = vadd.f32 %v5197_v27, %v1569_v29 }
 0x1e7   :  { %v2296_v23 = vmul.f32 %v5695_v16, %v7042_v56  ;;  %v5703_v13 = vadd.f32 %v5702_v9, %v2213_v32  ;;  %v5198_v11 = vpop.f32.mrb[52].mxu0  ;;  %v2560_v16 = vld [vmem:[#allocation3 + $0xc] sm:$0xf] }
 0x1e8   :  { %v7047_v43 = vpop.f32.mrb[36].mxu1  ;;  %v5199_v50 = vpop.f32.mrb[53].mxu0 }
 0x1e9   :  { %v2226_v42 = vpop.f32.mrb[37].mxu1  ;;  %v2319_v55 = vadd.f32 %v7044_v63, %v2296_v23  ;;  %v2297_v6 = vmul.f32 %v5703_v13, %v7042_v56  ;;  %v5200_v1 = vadd.f32 %v5199_v50, %v5198_v11  ;;  %v5201_v62 = vpop.f32.mrb[54].mxu0 }
 0x1ea   :  { %v7051_v8 = vpop.f32.mrb[38].mxu1  ;;  %v5202_v38 = vpop.f32.mrb[55].mxu0 }
 0x1eb   :  { %v7053_v29 = vpop.f32.mrb[39].mxu1  ;;  %v2335_v2 = vmul.f32 0.01, %v2319_v55  ;;  %v2320_v10 = vadd.f32 %v7044_v63, %v2297_v6  ;;  %v5690_v45 = vadd.f32 %v5200_v1, %v6990_v17  ;;  %v5203_v35 = vadd.f32 %v5202_v38, %v5201_v62  ;;  %v2704_v6 = vld [vmem:[#allocation3 + $0x14] sm:$0xf] }
 0x1ec   :  { %v2563_v38 = vld [vmem:[#allocation3 + $0x18] sm:$0xf] }
 0x1ed   :  { %v2351_v51 = vmax.f32 %v2319_v55, %v2335_v2  ;;  %v2336_v39 = vmul.f32 0.01, %v2320_v10  ;;  %v5691_v14 = vadd.f32 %v5690_v45, %v5578_v30  ;;  %v5698_v21 = vadd.f32 %v5203_v35, %v6997_v59 }
 0x1ef   :  { %v2367_v26 = vpack.c.bf16 %v2351_v51, %v2351_v51  ;;  %v2352_v3 = vmax.f32 %v2320_v10, %v2336_v39  ;;  %v2298_v20 = vmul.f32 %v5691_v14, %v7042_v56  ;;  %v5699_v44 = vadd.f32 %v5698_v21, %v5579_v22  ;;  %v5204_v25 = vpop.f32.mrb[56].mxu0 }
 0x1f0   :  { %v7059_v52 = vpop.f32.mrb[40].mxu1  ;;  %v5205_v18 = vpop.f32.mrb[57].mxu0 }
 0x1f1   :  { %v7061_v37 = vpop.f32.mrb[41].mxu1  ;;  %v2432_v54 = vshrl.u32 %v2367_v26, 16  ;;  %v2435_v28 = vshll.u32 %v2367_v26, 16  ;;  %2608 = vst [vmem:[#allocation3 + $0x10] sm:$0xf] %v2367_v26  ;;  %v2368_v17 = vpack.c.bf16 %v2352_v3, %v2352_v3  ;;  %v2321_v4 = vadd.f32 %v7044_v63, %v2298_v20  ;;  %v5207_v30 = vpop.f32.mrb[58].mxu0 }
 0x1f2   :  { %v7064_v36 = vpop.f32.mrb[42].mxu1  ;;  %v2299_v59 = vmul.f32 %v5699_v44, %v7042_v56  ;;  %v5206_v34 = vadd.f32 %v5205_v18, %v5204_v25  ;;  %v5208_v7 = vpop.f32.mrb[59].mxu0 }
 0x1f3   :  { %v7067_v22 = vpop.f32.mrb[43].mxu1  ;;  %v2434_v53 = vrot.slane %v2432_v54, 7  ;;  %v2624_v32 = vrot.slane %v2432_v54, 4  ;;  %v2625_v19 = vrot.slane %v2435_v28, 5  ;;  %v2439_v27 = vshrl.u32 %v2368_v17, 16 }
 0x1f4   :  { %2609 = vst [vmem:[#allocation3 + $0x1c] sm:$0xf] %v2368_v17  ;;  %v2442_v9 = vshll.u32 %v2368_v17, 16  ;;  %v2337_v23 = vmul.f32 0.01, %v2321_v4  ;;  %v2322_v13 = vadd.f32 %v7044_v63, %v2299_v59  ;;  %v5710_v11 = vadd.f32 %v5206_v34, %v7007_v58 }
 0x1f5   :  { %v2437_v50 = vor.u32 %v2435_v28, %v2434_v53  ;;  %v2626_v55 = vor.u32 %v2625_v19, %v2624_v32  ;;  %v2441_v1 = vrot.slane %v2439_v27, 7  ;;  %v2628_v62 = vrot.slane %v2439_v27, 4  ;;  %v2707_v17 = vld [vmem:[#allocation3 + $0x20] sm:$0xf] }
 0x1f6   :  { %v2629_v2 = vrot.slane %v2442_v9, 5  ;;  %v2353_v10 = vmax.f32 %v2321_v4, %v2337_v23  ;;  %v2338_v45 = vmul.f32 0.01, %v2322_v13  ;;  %v5711_v35 = vadd.f32 %v5710_v11, %v2226_v42 }
 0x1f7   :  { %v2561_v51 = vsel %vm6461_vm3, %v2437_v50, %v2560_v16  ;;  %v2627_v39 = vrot.slane %v2626_v55, 4  ;;  %v2444_v14 = vor.u32 %v2442_v9, %v2441_v1  ;;  %v5209_v21 = vadd.f32 %v5208_v7, %v5207_v30  ;;  %v5210_v26 = vpop.f32.mrb[60].mxu0  ;;  %v2566_v1 = vld [vmem:[#allocation3 + $0x24] sm:$0xf] }
 0x1f8   :  { %v7073_v3 = vpop.f32.mrb[44].mxu1  ;;  %2562 = vst [vmem:[#allocation3 + $0xc] sm:$0xf] %v2561_v51  ;;  %v2630_v58 = vor.u32 %v2629_v2, %v2628_v62  ;;  %v2369_v20 = vpack.c.bf16 %v2353_v10, %v2353_v10  ;;  %v2354_v44 = vmax.f32 %v2322_v13, %v2338_v45  ;;  %v2300_v25 = vmul.f32 %v5711_v35, %v7042_v56  ;;  %v5211_v18 = vpop.f32.mrb[61].mxu0  ;;  %v2569_v51 = vld [vmem:[#allocation3 + $0x30] sm:$0xf] }
 0x1f9   :  { %v7076_v54 = vpop.f32.mrb[45].mxu1  ;;  %v2705_v42 = vsel %vm6702_vm8, %v2627_v39, %v2704_v6  ;;  %v2564_v28 = vsel %vm6461_vm3, %v2444_v14, %v2563_v38  ;;  %v5718_v4 = vadd.f32 %v5209_v21, %v7014_v61  ;;  %v5212_v30 = vadd.f32 %v5211_v18, %v5210_v26  ;;  %v5213_v59 = vpop.f32.mrb[62].mxu0 }
 0x1fa   :  { %v7083_v34 = vpop.f32.mrb[46].mxu1  ;;  %2706 = vst [vmem:[#allocation3 + $0x14] sm:$0xf] %v2705_v42  ;;  %2565 = vst [vmem:[#allocation3 + $0x18] sm:$0xf] %v2564_v28  ;;  %v2631_v7 = vrot.slane %v2630_v58, 4  ;;  %v2370_v19 = vpack.c.bf16 %v2354_v44, %v2354_v44  ;;  %v2323_v9 = vadd.f32 %v7044_v63, %v2300_v25 }
 0x1fb   :  { %v2446_v53 = vshrl.u32 %v2369_v20, 16  ;;  %v2449_v32 = vshll.u32 %v2369_v20, 16  ;;  %2610 = vst [vmem:[#allocation3 + $0x28] sm:$0xf] %v2369_v20  ;;  %v5214_v27 = vpop.f32.mrb[63].mxu0  ;;  %v7085_v16 = vpop.f32.mrb[47].mxu1  ;;  %v5719_v23 = vadd.f32 %v5718_v4, %v7053_v29  ;;  %v5706_v61 = vadd.f32 %v5212_v30, %v7003_v12 }
 0x1fc   :  { %v5215_v13 = vadd.f32 %v5214_v27, %v5213_v59  ;;  %v2708_v11 = vsel %vm6702_vm8, %v2631_v7, %v2707_v17  ;;  %2611 = vst [vmem:[#allocation3 + $0x34] sm:$0xf] %v2370_v19  ;;  %v2453_v62 = vshrl.u32 %v2370_v19, 16  ;;  %v2456_v38 = vshll.u32 %v2370_v19, 16  ;;  %v2710_v29 = vld [vmem:[#allocation3 + $0x2c] sm:$0xf] }
 0x1fd   :  { %v2448_v50 = vrot.slane %v2446_v53, 7  ;;  %v2632_v55 = vrot.slane %v2446_v53, 4  ;;  %v2633_v6 = vrot.slane %v2449_v32, 5  ;;  %2709 = vst [vmem:[#allocation3 + $0x20] sm:$0xf] %v2708_v11  ;;  %v2301_v10 = vmul.f32 %v5719_v23, %v7042_v56 }
 0x1fe   :  { %v2339_v2 = vmul.f32 0.01, %v2323_v9  ;;  %v5707_v12 = vadd.f32 %v5706_v61, %v7047_v43  ;;  %v5714_v39 = vadd.f32 %v5215_v13, %v7011_v40  ;;  %v2455_v21 = vrot.slane %v2453_v62, 7  ;;  %v2713_v28 = vld [vmem:[#allocation3 + $0x38] sm:$0xf] }
 0x1ff   :  { %v2451_v45 = vor.u32 %v2449_v32, %v2448_v50  ;;  %v2634_v35 = vor.u32 %v2633_v6, %v2632_v55  ;;  %v2761_v14 = vld [vmem:[#allocation3 + $0xc] sm:$0x1]  ;;  %v2636_v26 = vrot.slane %v2453_v62, 4  ;;  %v2637_v58 = vrot.slane %v2456_v38, 5  ;;  %v5216_v44 = vpop.f32.mrb[64].mxu0 }
 0x200   :  { %v2355_v20 = vmax.f32 %v2323_v9, %v2339_v2  ;;  %v2762_v25 = vsel %vm6512_vm5, 0, %v2761_v14  ;;  %v2324_v17 = vadd.f32 %v7044_v63, %v2301_v10  ;;  %v5217_v4 = vpop.f32.mrb[65].mxu0  ;;  %v2458_v30 = vor.u32 %v2456_v38, %v2455_v21 }
 0x201   :  { %v2567_v18 = vsel %vm6461_vm3, %v2451_v45, %v2566_v1  ;;  %v2635_v42 = vrot.slane %v2634_v35, 4  ;;  %2763 = vst [vmem:[#allocation3 + $0xc] sm:$0x1] %v2762_v25  ;;  %v2809_v43 = vld [vmem:[#allocation3 + $0x14] sm:$0x8]  ;;  %v2638_v59 = vor.u32 %v2637_v58, %v2636_v26  ;;  %v2302_v53 = vmul.f32 %v5707_v12, %v7042_v56  ;;  %v5219_v32 = vpop.f32.mrb[66].mxu0 }
 0x202   :  { %v2764_v40 = vld [vmem:[#allocation3 + $0x18] sm:$0x1]  ;;  %2568 = vst [vmem:[#allocation3 + $0x24] sm:$0xf] %v2567_v18  ;;  %v2371_v7 = vpack.c.bf16 %v2355_v20, %v2355_v20  ;;  %v2810_v19 = vsel %vm6765_vm10, 0, %v2809_v43  ;;  %v5220_v61 = vpop.f32.mrb[67].mxu0  ;;  %v2570_v13 = vsel %vm6461_vm3, %v2458_v30, %v2569_v51  ;;  %v5715_v38 = vadd.f32 %v5714_v39, %v7051_v8 }
 0x203   :  { %v2765_v27 = vsel %vm6512_vm5, 0, %v2764_v40  ;;  %v2711_v9 = vsel %vm6702_vm8, %v2635_v42, %v2710_v29  ;;  %v2340_v23 = vmul.f32 0.01, %v2324_v17  ;;  %2811 = vst [vmem:[#allocation3 + $0x14] sm:$0x8] %v2810_v19  ;;  %v2639_v11 = vrot.slane %v2638_v59, 4 }
 0x204   :  { %2766 = vst [vmem:[#allocation3 + $0x18] sm:$0x1] %v2765_v27  ;;  %2712 = vst [vmem:[#allocation3 + $0x2c] sm:$0xf] %v2711_v9  ;;  %v2460_v50 = vshrl.u32 %v2371_v7, 16  ;;  %v2463_v55 = vshll.u32 %v2371_v7, 16  ;;  %v2325_v62 = vadd.f32 %v7044_v63, %v2302_v53  ;;  %v5218_v2 = vadd.f32 %v5217_v4, %v5216_v44 }
 0x205   :  { %2612 = vst [vmem:[#allocation3 + $0x40] sm:$0xf] %v2371_v7  ;;  %v2812_v6 = vld [vmem:[#allocation3 + $0x20] sm:$0x8]  ;;  %2571 = vst [vmem:[#allocation3 + $0x30] sm:$0xf] %v2570_v13  ;;  %v2356_v1 = vmax.f32 %v2324_v17, %v2340_v23  ;;  %v2714_v45 = vsel %vm6702_vm8, %v2639_v11, %v2713_v28  ;;  %v2303_v26 = vmul.f32 %v5715_v38, %v7042_v56 }
 0x206   :  { %v2813_v10 = vsel %vm6765_vm10, 0, %v2812_v6  ;;  %v2462_v35 = vrot.slane %v2460_v50, 7  ;;  %v2640_v29 = vrot.slane %v2460_v50, 4  ;;  %2715 = vst [vmem:[#allocation3 + $0x38] sm:$0xf] %v2714_v45  ;;  %v2641_v12 = vrot.slane %v2463_v55, 5 }
 0x207   :  { %2814 = vst [vmem:[#allocation3 + $0x20] sm:$0x8] %v2813_v10  ;;  %v2572_v51 = vld [vmem:[#allocation3 + $0x3c] sm:$0xf]  ;;  %v2372_v14 = vpack.c.bf16 %v2356_v1, %v2356_v1  ;;  %v2341_v21 = vmul.f32 0.01, %v2325_v62  ;;  %v5726_v8 = vadd.f32 %v5218_v2, %v7021_v46  ;;  %v5221_v39 = vadd.f32 %v5220_v61, %v5219_v32 }
 0x208   :  { %v2465_v58 = vor.u32 %v2463_v55, %v2462_v35  ;;  %v5222_v20 = vpop.f32.mrb[68].mxu0  ;;  %v2642_v25 = vor.u32 %v2641_v12, %v2640_v29  ;;  %v2716_v40 = vld [vmem:[#allocation3 + $0x44] sm:$0xf]  ;;  %v2575_v30 = vld [vmem:[#allocation3 + $0x48] sm:$0xf]  ;;  %v2326_v59 = vadd.f32 %v7044_v63, %v2303_v26 }
 0x209   :  { %v2767_v44 = vld [vmem:[#allocation3 + $0x24] sm:$0x1]  ;;  %v2467_v18 = vshrl.u32 %v2372_v14, 16  ;;  %v2470_v42 = vshll.u32 %v2372_v14, 16  ;;  %2613 = vst [vmem:[#allocation3 + $0x4c] sm:$0xf] %v2372_v14  ;;  %v2357_v28 = vmax.f32 %v2325_v62, %v2341_v21  ;;  %v5727_v46 = vadd.f32 %v5726_v8, %v7061_v37 }
 0x20a   :  { %v5223_v17 = vpop.f32.mrb[69].mxu0  ;;  %v2768_v4 = vsel %vm6512_vm5, 0, %v2767_v44  ;;  %v2573_v43 = vsel %vm6461_vm3, %v2465_v58, %v2572_v51  ;;  %v2643_v32 = vrot.slane %v2642_v25, 4  ;;  %v2719_v13 = vld [vmem:[#allocation3 + $0x50] sm:$0xf]  ;;  %v5734_v26 = vadd.f32 %v5221_v39, %v7028_v24 }
 0x20b   :  { %v7123_v7 = vpop.f32.mrb[70].mxu0  ;;  %2769 = vst [vmem:[#allocation3 + $0x24] sm:$0x1] %v2768_v4  ;;  %v2815_v53 = vld [vmem:[#allocation3 + $0x2c] sm:$0x8]  ;;  %v2469_v19 = vrot.slane %v2467_v18, 7  ;;  %v2373_v11 = vpack.c.bf16 %v2357_v28, %v2357_v28  ;;  %v2304_v55 = vmul.f32 %v5727_v46, %v7042_v56 }
 0x20c   :  { %2574 = vst [vmem:[#allocation3 + $0x3c] sm:$0xf] %v2573_v43  ;;  %v2644_v27 = vrot.slane %v2467_v18, 4  ;;  %v2645_v9 = vrot.slane %v2470_v42, 5  ;;  %v2816_v23 = vsel %vm6765_vm10, 0, %v2815_v53  ;;  %v7128_v6 = vpop.f32.mrb[71].mxu0  ;;  %v2717_v1 = vsel %vm6702_vm8, %v2643_v32, %v2716_v40 }
 0x20d   :  { %v2770_v61 = vld [vmem:[#allocation3 + $0x30] sm:$0x1]  ;;  %v2342_v50 = vmul.f32 0.01, %v2326_v59  ;;  %2817 = vst [vmem:[#allocation3 + $0x2c] sm:$0x8] %v2816_v23  ;;  %v2472_v62 = vor.u32 %v2470_v42, %v2469_v19  ;;  %v2327_v29 = vadd.f32 %v7044_v63, %v2304_v55  ;;  %v5735_v43 = vadd.f32 %v5734_v26, %v7067_v22 }
 0x20e   :  { %v2771_v37 = vsel %vm6512_vm5, 0, %v2770_v61  ;;  %v2646_v38 = vor.u32 %v2645_v9, %v2644_v27  ;;  %v2818_v2 = vld [vmem:[#allocation3 + $0x38] sm:$0x8]  ;;  %2718 = vst [vmem:[#allocation3 + $0x44] sm:$0xf] %v2717_v1  ;;  %v2474_v10 = vshrl.u32 %v2373_v11, 16  ;;  %v5224_v40 = vadd.f32 %v5223_v17, %v5222_v20 }
 0x20f   :  { %2772 = vst [vmem:[#allocation3 + $0x30] sm:$0x1] %v2771_v37  ;;  %v2477_v45 = vshll.u32 %v2373_v11, 16  ;;  %2614 = vst [vmem:[#allocation3 + $0x58] sm:$0xf] %v2373_v11  ;;  %v2358_v35 = vmax.f32 %v2326_v59, %v2342_v50  ;;  %v2819_v51 = vsel %vm6765_vm10, 0, %v2818_v2  ;;  %v2576_v12 = vsel %vm6461_vm3, %v2472_v62, %v2575_v30 }
 0x210   :  { %v2647_v14 = vrot.slane %v2646_v38, 4  ;;  %v2578_v21 = vld [vmem:[#allocation3 + $0x54] sm:$0xf]  ;;  %2820 = vst [vmem:[#allocation3 + $0x38] sm:$0x8] %v2819_v51  ;;  %v2476_v8 = vrot.slane %v2474_v10, 7  ;;  %v2305_v22 = vmul.f32 %v5735_v43, %v7042_v56  ;;  %v5722_v20 = vadd.f32 %v5224_v40, %v7018_v0 }
 0x211   :  { %v6007_v58 = vld [vmem:[#allocation3 + $0x14] ss:$12 sps:$4 sm:$0xff]   ;;  %2577 = vst [vmem:[#allocation3 + $0x48] sm:$0xf] %v2576_v12  ;;  %v2648_v44 = vrot.slane %v2474_v10, 4  ;;  %v2649_v25 = vrot.slane %v2477_v45, 5  ;;  %v2374_v18 = vpack.c.bf16 %v2358_v35, %v2358_v35  ;;  %v5227_v35 = vadd.f32 %v7128_v6, %v7123_v7 }
 0x212   :  { %v7140_v42 = vpop.f32.mrb[72].mxu0  ;;  %v2720_v28 = vsel %vm6702_vm8, %v2647_v14, %v2719_v13  ;;  %v2343_v4 = vmul.f32 0.01, %v2327_v29  ;;  %5608 = vmatprep.mubr.bf16.mxu1 %v6007_v58  ;;  %v2479_v39 = vor.u32 %v2477_v45, %v2476_v8  ;;  %v2722_v27 = vld [vmem:[#allocation3 + $0x5c] sm:$0xf]  ;;  %v2328_v62 = vadd.f32 %v7044_v63, %v2305_v22 }
 0x213   :  { %v7145_v30 = vpop.f32.mrb[73].mxu0  ;;  %v2773_v24 = vld [vmem:[#allocation3 + $0x3c] sm:$0x1]  ;;  %2721 = vst [vmem:[#allocation3 + $0x50] sm:$0xf] %v2720_v28  ;;  %v2650_v59 = vor.u32 %v2649_v25, %v2648_v44  ;;  %v2481_v46 = vshrl.u32 %v2374_v18, 16  ;;  %v5723_v38 = vadd.f32 %v5722_v20, %v7059_v52  ;;  %v5730_v6 = vadd.f32 %v5227_v35, %v7025_v48 }
 0x214   :  { %v2484_v53 = vshll.u32 %v2374_v18, 16  ;;  %2615 = vst [vmem:[#allocation3 + $0x64] sm:$0xf] %v2374_v18  ;;  %v7147_v32 = vpop.f32.mrb[74].mxu0  ;;  %v2774_v19 = vsel %vm6512_vm5, 0, %v2773_v24  ;;  %v2359_v23 = vmax.f32 %v2327_v29, %v2343_v4  ;;  %v2579_v61 = vsel %vm6461_vm3, %v2479_v39, %v2578_v21  ;;  %v7165_v29 = vld [vmem:[#allocation3 + $0x18] sm:$0xff] }
 0x215   :  { %v2581_v9 = vld [vmem:[#allocation3 + $0x60] sm:$0xf]  ;;  %v7153_v17 = vpop.f32.mrb[75].mxu0  ;;  %2775 = vst [vmem:[#allocation3 + $0x3c] sm:$0x1] %v2774_v19  ;;  %v2651_v13 = vrot.slane %v2650_v59, 4  ;;  %v2306_v7 = vmul.f32 %v5723_v38, %v7042_v56 }
 0x216   :  { %v2483_v11 = vrot.slane %v2481_v46, 7  ;;  %v2652_v50 = vrot.slane %v2481_v46, 4  ;;  %v2821_v55 = vld [vmem:[#allocation3 + $0x44] sm:$0x8]  ;;  %2580 = vst [vmem:[#allocation3 + $0x54] sm:$0xf] %v2579_v61  ;;  %v2375_v1 = vpack.c.bf16 %v2359_v23, %v2359_v23 }
 0x217   :  { %v2653_v37 = vrot.slane %v2484_v53, 5  ;;  %v2822_v0 = vsel %vm6765_vm10, 0, %v2821_v55  ;;  %v2723_v2 = vsel %vm6702_vm8, %v2651_v13, %v2722_v27  ;;  %v2725_v45 = vld [vmem:[#allocation3 + $0x68] sm:$0xf]  ;;  %v7167_v51 = vld [vmem:[#allocation9 + $0x88] sm:$0xff]   ;;  %v7175_v25 = vpop.f32.mrb[76].mxu0  ;;  %v2329_v46 = vadd.f32 %v7044_v63, %v2306_v7 }
 0x218   :  { %v2486_v10 = vor.u32 %v2484_v53, %v2483_v11  ;;  %2823 = vst [vmem:[#allocation3 + $0x44] sm:$0x8] %v2822_v0  ;;  %v2776_v12 = vld [vmem:[#allocation3 + $0x48] sm:$0x1]  ;;  %2724 = vst [vmem:[#allocation3 + $0x5c] sm:$0xf] %v2723_v2  ;;  %v5731_v53 = vadd.f32 %v5730_v6, %v7064_v36  ;;  %v5230_v2 = vadd.f32 %v7145_v30, %v7140_v42 }
 0x219   :  { %v2654_v14 = vor.u32 %v2653_v37, %v2652_v50  ;;  %v2488_v52 = vshrl.u32 %v2375_v1, 16  ;;  %v2491_v21 = vshll.u32 %v2375_v1, 16  ;;  %2616 = vst [vmem:[#allocation3 + $0x88] sm:$0xf] %v2375_v1  ;;  %v2344_v26 = vmul.f32 0.01, %v2328_v62 }
 0x21a   :  { %v2777_v58 = vsel %vm6512_vm5, 0, %v2776_v12  ;;  %v2582_v8 = vsel %vm6461_vm3, %v2486_v10, %v2581_v9  ;;  %v2584_v44 = vld [vmem:[#allocation3 + $0x84] sm:$0xf]  ;;  %v6011_v18 = vld [vmem:[#allocation3 + $0x2c] ss:$12 sps:$4 sm:$0xff]   ;;  %v7183_v48 = vpop.f32.mrb[77].mxu0  ;;  %v2307_v55 = vmul.f32 %v5731_v53, %v7042_v56  ;;  %v5742_v42 = vadd.f32 %v5230_v2, %v7034_v33 }
 0x21b   :  { %2778 = vst [vmem:[#allocation3 + $0x48] sm:$0x1] %v2777_v58  ;;  %v2824_v28 = vld [vmem:[#allocation3 + $0x50] sm:$0x8]  ;;  %2583 = vst [vmem:[#allocation3 + $0x60] sm:$0xf] %v2582_v8  ;;  %v2360_v59 = vmax.f32 %v2328_v62, %v2344_v26  ;;  %5609 = vmatmul.mubr.bf16.vlgmr.msra.gmra.mrb[48].mxu1 %v6011_v18  ;;  %v5233_v30 = vadd.f32 %v7153_v17, %v7147_v32 }
 0x21c   :  { %v2655_v4 = vrot.slane %v2654_v14, 4  ;;  %v2490_v43 = vrot.slane %v2488_v52, 7  ;;  %v2656_v40 = vrot.slane %v2488_v52, 4  ;;  %v2657_v24 = vrot.slane %v2491_v21, 5  ;;  %v7181_v19 = vld [vmem:[#allocation3 + $0xc] sm:$0xff]  ;;  %v7189_v61 = vpop.f32.mrb[78].mxu0  ;;  %5625 = vmatpush3.bf16.msra.mxu1 %v6986_v41 }
 0x21d   :  { %v2825_v39 = vsel %vm6765_vm10, 0, %v2824_v28  ;;  %v2728_v22 = vld [vmem:[#allocation3 + $0x8c] sm:$0xf]  ;;  %v4838_v20 = vcombine.low %v7181_v19, %v7165_v29  ;;  %v6022_v13 = vld [vmem:[#allocation9] sm:$0xff]   ;;  %v2376_v11 = vpack.c.bf16 %v2360_v59, %v2360_v59  ;;  %v2345_v50 = vmul.f32 0.01, %v2329_v46  ;;  %5626 = vmatprep.subr.bf16.mxu1 %v7167_v51 }
 0x21e   :  { %2826 = vst [vmem:[#allocation3 + $0x50] sm:$0x8] %v2825_v39  ;;  %v2726_v27 = vsel %vm6702_vm8, %v2655_v4, %v2725_v45  ;;  %v2493_v9 = vor.u32 %v2491_v21, %v2490_v43  ;;  %v2658_v23 = vor.u32 %v2657_v24, %v2656_v40  ;;  %v2779_v36 = vld [vmem:[#allocation3 + $0x54] sm:$0x1]  ;;  %v4839_v37 = vcombine.high %v7181_v19, %v7165_v29  ;;  %v7195_v1 = vpop.f32.mrb[79].mxu0  ;;  %v6032_v62 = vld [vmem:[#allocation9 + $0x90] sm:$0xff]  }
 0x21f   :  { %2727 = vst [vmem:[#allocation3 + $0x68] sm:$0xf] %v2726_v27  ;;  %v2780_v38 = vsel %vm6512_vm5, 0, %v2779_v36  ;;  %v6024_v10 = vld [vmem:[#allocation9 + $0x48] sm:$0xff]   ;;  %v2495_v35 = vshrl.u32 %v2376_v11, 16  ;;  %v2498_v12 = vshll.u32 %v2376_v11, 16  ;;  %v2361_v14 = vmax.f32 %v2329_v46, %v2345_v50 }
 0x220   :  { %v2585_v41 = vsel %vm6461_vm3, %v2493_v9, %v2584_v44  ;;  %v2659_v0 = vrot.slane %v2658_v23, 4  ;;  %2781 = vst [vmem:[#allocation3 + $0x54] sm:$0x1] %v2780_v38  ;;  %v2827_v45 = vld [vmem:[#allocation3 + $0x5c] sm:$0x8]  ;;  %v2330_v52 = vadd.f32 %v7044_v63, %v2307_v55  ;;  %3322 = vmatprep.mubr.bf16.mxu0 %v4839_v37  ;;  %5627 = vmatpush3.bf16.msra.mxu1 %v7167_v51  ;;  %v6029_v44 = vld [vmem:[#allocation9 + $0x50] sm:$0xff]  }
 0x221   :  { %2586 = vst [vmem:[#allocation3 + $0x84] sm:$0xf] %v2585_v41  ;;  %2617 = vst [vmem:[#allocation3 + $0x94] sm:$0xf] %v2376_v11  ;;  %v2828_v21 = vsel %vm6765_vm10, 0, %v2827_v45  ;;  %3323 = vmatmul.mubr.bf16.vlgmr.msra.gmra.mrb[80].mxu0 %v4838_v20  ;;  %v6025_v8 = vld [vmem:[#allocation9 + $0x8] sm:$0xff]   ;;  %v2377_v4 = vpack.c.bf16 %v2361_v14, %v2361_v14  ;;  %5628 = vmatprep.subr.bf16.mxu1 %v6032_v62  ;;  %v5743_v51 = vadd.f32 %v5742_v42, %v7076_v54 }
 0x222   :  { %v2729_v26 = vsel %vm6702_vm8, %v2659_v0, %v2728_v22  ;;  %v2587_v58 = vld [vmem:[#allocation3 + $0x90] sm:$0xf]  ;;  %2829 = vst [vmem:[#allocation3 + $0x5c] sm:$0x8] %v2828_v21  ;;  %v2782_v7 = vld [vmem:[#allocation3 + $0x60] sm:$0x1]  ;;  %5337 = vmatpush3.bf16.msra.mxu0 %v6022_v13  ;;  %v5750_v24 = vadd.f32 %v5233_v30, %v7040_v47 }
 0x223   :  { %2730 = vst [vmem:[#allocation3 + $0x8c] sm:$0xf] %v2729_v26  ;;  %v2497_v6 = vrot.slane %v2495_v35, 7  ;;  %v2660_v18 = vrot.slane %v2495_v35, 4  ;;  %v2661_v28 = vrot.slane %v2498_v12, 5  ;;  %v7213_v43 = vld [vmem:[#allocation3 + $0x30] sm:$0xff]  ;;  %5338 = vmatprep.subr.bf16.mxu0 %v6024_v10  ;;  %v2308_v13 = vmul.f32 %v5743_v51, %v7042_v56 }
 0x224   :  { %v6035_v40 = vld [vmem:[#allocation9 + $0x98] sm:$0xff]   ;;  %v2783_v33 = vsel %vm6512_vm5, 0, %v2782_v7  ;;  %v2731_v32 = vld [vmem:[#allocation3 + $0x98] sm:$0xf]  ;;  %v2346_v17 = vmul.f32 0.01, %v2330_v52  ;;  %v5751_v36 = vadd.f32 %v5750_v24, %v7085_v16  ;;  %5629 = vmatpush3.bf16.msra.mxu1 %v6032_v62 }
 0x225   :  { %v7219_v39 = vld [vmem:[#allocation3 + $0x24] sm:$0xff]  ;;  %2784 = vst [vmem:[#allocation3 + $0x60] sm:$0x1] %v2783_v33  ;;  %v2500_v59 = vor.u32 %v2498_v12, %v2497_v6  ;;  %v2662_v46 = vor.u32 %v2661_v28, %v2660_v18  ;;  %v2502_v53 = vshrl.u32 %v2377_v4, 16  ;;  %v2505_v27 = vshll.u32 %v2377_v4, 16  ;;  %v6041_v38 = vld [vmem:[#allocation9 + $0xa0] sm:$0xff]   ;;  %5630 = vmatprep.subr.bf16.mxu1 %v6035_v40 }
 0x226   :  { %2618 = vst [vmem:[#allocation3 + $0xa0] sm:$0xf] %v2377_v4  ;;  %v6014_v9 = vld [vmem:[#allocation3 + $0x44] ss:$12 sps:$4 sm:$0xff]   ;;  %v2830_v23 = vld [vmem:[#allocation3 + $0x68] sm:$0x8]  ;;  %v2362_v20 = vmax.f32 %v2330_v52, %v2346_v17  ;;  %v4842_v47 = vcombine.high %v7219_v39, %v7213_v43  ;;  %5339 = vmatpush3.bf16.msra.mxu0 %v6025_v8  ;;  %v2331_v62 = vadd.f32 %v7044_v63, %v2308_v13 }
 0x227   :  { %v2590_v22 = vld [vmem:[#allocation3 + $0x9c] sm:$0xf]  ;;  %v2831_v54 = vsel %vm6765_vm10, 0, %v2830_v23  ;;  %v2588_v11 = vsel %vm6461_vm3, %v2500_v59, %v2587_v58  ;;  %v2663_v50 = vrot.slane %v2662_v46, 4  ;;  %v2504_v55 = vrot.slane %v2502_v53, 7  ;;  %5612 = vmatprep.mubr.bf16.mxu1 %v6014_v9  ;;  %v6031_v37 = vld [vmem:[#allocation9 + $0x10] sm:$0xff]   ;;  %5340 = vmatprep.subr.bf16.mxu0 %v6029_v44 }
 0x228   :  { %2832 = vst [vmem:[#allocation3 + $0x68] sm:$0x8] %v2831_v54  ;;  %v2785_v41 = vld [vmem:[#allocation3 + $0x84] sm:$0x1]  ;;  %2589 = vst [vmem:[#allocation3 + $0x90] sm:$0xf] %v2588_v11  ;;  %v2378_v2 = vpack.c.bf16 %v2362_v20, %v2362_v20  ;;  %3330 = vmatprep.mubr.bf16.mxu0 %v4842_v47  ;;  %v2309_v52 = vmul.f32 %v5751_v36, %v7042_v56  ;;  %5631 = vmatpush3.bf16.msra.mxu1 %v6035_v40 }
 0x229   :  { %v2664_v16 = vrot.slane %v2502_v53, 4  ;;  %v2665_v0 = vrot.slane %v2505_v27, 5  ;;  %v6033_v10 = vld [vmem:[#allocation9 + $0x58] sm:$0xff]   ;;  %v2786_v45 = vsel %vm6512_vm5, 0, %v2785_v41  ;;  %v2732_v35 = vsel %vm6702_vm8, %v2663_v50, %v2731_v32  ;;  %v2734_v14 = vld [vmem:[#allocation3 + $0xa4] sm:$0xf]  ;;  %5632 = vmatprep.subr.bf16.mxu1 %v6041_v38 }
 0x22a   :  { %v2507_v12 = vor.u32 %v2505_v27, %v2504_v55  ;;  %v6034_v21 = vld [vmem:[#allocation9 + $0x18] sm:$0xff]   ;;  %2787 = vst [vmem:[#allocation3 + $0x84] sm:$0x1] %v2786_v45  ;;  %2733 = vst [vmem:[#allocation3 + $0x98] sm:$0xf] %v2732_v35  ;;  %v2509_v42 = vshrl.u32 %v2378_v2, 16  ;;  %v2332_v18 = vadd.f32 %v7044_v63, %v2309_v52  ;;  %v4841_v28 = vcombine.low %v7219_v39, %v7213_v43 }
 0x22b   :  { %v2833_v26 = vld [vmem:[#allocation3 + $0x8c] sm:$0x8]  ;;  %v2666_v58 = vor.u32 %v2665_v0, %v2664_v16  ;;  %v2512_v30 = vshll.u32 %v2378_v2, 16  ;;  %2619 = vst [vmem:[#allocation3 + $0xac] sm:$0xf] %v2378_v2  ;;  %5341 = vmatpush3.bf16.msra.mxu0 %v6031_v37  ;;  %v6038_v51 = vld [vmem:[#allocation9 + $0x60] sm:$0xff]   ;;  %v5236_v53 = vadd.f32 %v7183_v48, %v7175_v25  ;;  %v5239_v27 = vadd.f32 %v7195_v1, %v7189_v61 }
 0x22c   :  { %v2347_v8 = vmul.f32 0.01, %v2331_v62  ;;  %v2834_v44 = vsel %vm6765_vm10, 0, %v2833_v26  ;;  %v2591_v7 = vsel %vm6461_vm3, %v2507_v12, %v2590_v22  ;;  %v2593_v6 = vld [vmem:[#allocation3 + $0xa8] sm:$0xf]  ;;  %v2511_v40 = vrot.slane %v2509_v42, 7  ;;  %5342 = vmatprep.subr.bf16.mxu0 %v6033_v10  ;;  %3331 = vmatmul.mubr.bf16.gmra.mrb[84].mxu0 %v4841_v28 }
 0x22d   :  { %v7242_v4 = vld [vmem:[#allocation3 + $0x48] sm:$0xff]  ;;  %2835 = vst [vmem:[#allocation3 + $0x8c] sm:$0x8] %v2834_v44  ;;  %2592 = vst [vmem:[#allocation3 + $0x9c] sm:$0xf] %v2591_v7  ;;  %v2667_v33 = vrot.slane %v2666_v58, 4  ;;  %5633 = vmatpush3.bf16.msra.mxu1 %v6041_v38  ;;  %v5738_v1 = vadd.f32 %v5236_v53, %v7031_v57  ;;  %v5746_v50 = vadd.f32 %v5239_v27, %v7037_v5 }
 0x22e   :  { %v2668_v32 = vrot.slane %v2509_v42, 4  ;;  %v2669_v17 = vrot.slane %v2512_v30, 5  ;;  %v2737_v24 = vld [vmem:[#allocation3 + $0xb0] sm:$0xf]  ;;  %v2363_v59 = vmax.f32 %v2331_v62, %v2347_v8  ;;  %v2348_v46 = vmul.f32 0.01, %v2332_v18 }
 0x22f   :  { %v7248_v9 = vld [vmem:[#allocation3 + $0x3c] sm:$0xff]  ;;  %v6040_v23 = vld [vmem:[#allocation9 + $0x20] sm:$0xff]   ;;  %v2735_v20 = vsel %vm6702_vm8, %v2667_v33, %v2734_v14  ;;  %v2514_v13 = vor.u32 %v2512_v30, %v2511_v40  ;;  %5343 = vmatpush3.bf16.msra.mxu0 %v6034_v21  ;;  %v5739_v10 = vadd.f32 %v5738_v1, %v7073_v3  ;;  %v5747_v52 = vadd.f32 %v5746_v50, %v7083_v34  ;;  %v6054_v3 = vld [vmem:[#allocation9 + $0xb8] sm:$0xff]  }
 0x230   :  { %v6044_v22 = vld [vmem:[#allocation9 + $0xa8] sm:$0xff]   ;;  %v2670_v36 = vor.u32 %v2669_v17, %v2668_v32  ;;  %v4845_v47 = vcombine.high %v7248_v9, %v7242_v4  ;;  %v7254_v54 = vld [vmem:[#allocation3 + $0x60] sm:$0xff]  ;;  %v2788_v25 = vld [vmem:[#allocation3 + $0x90] sm:$0x1]  ;;  %2736 = vst [vmem:[#allocation3 + $0xa4] sm:$0xf] %v2735_v20  ;;  %v2379_v48 = vpack.c.bf16 %v2363_v59, %v2363_v59  ;;  %v2364_v61 = vmax.f32 %v2332_v18, %v2348_v46 }
 0x231   :  { %v7256_v11 = vld [vmem:[#allocation9 + $0xb0] sm:$0xff]   ;;  %v6017_v55 = vld [vmem:[#allocation3 + $0x5c] ss:$12 sps:$4 sm:$0xff]   ;;  %v2789_v37 = vsel %vm6512_vm5, 0, %v2788_v25  ;;  %v2594_v41 = vsel %vm6461_vm3, %v2514_v13, %v2593_v6  ;;  %v4844_v38 = vcombine.low %v7248_v9, %v7242_v4  ;;  %5344 = vmatprep.subr.bf16.mxu0 %v6038_v51  ;;  %v2836_v2 = vld [vmem:[#allocation3 + $0x98] sm:$0x8]  ;;  %5634 = vmatprep.subr.bf16.mxu1 %v6044_v22  ;;  %v2310_v18 = vmul.f32 %v5739_v10, %v7042_v56 }
 0x232   :  { %v2671_v16 = vrot.slane %v2670_v36, 4  ;;  %3338 = vmatprep.mubr.bf16.mxu0 %v4845_v47  ;;  %v6042_v0 = vld [vmem:[#allocation9 + $0x68] sm:$0xff]   ;;  %2790 = vst [vmem:[#allocation3 + $0x90] sm:$0x1] %v2789_v37  ;;  %2595 = vst [vmem:[#allocation3 + $0xa8] sm:$0xf] %v2594_v41  ;;  %v2380_v62 = vpack.c.bf16 %v2364_v61, %v2364_v61  ;;  %5613 = vmatmul.mubr.bf16.gmra.mrb[52].mxu1 %v6017_v55  ;;  %v2311_v28 = vmul.f32 %v5747_v52, %v7042_v56 }
 0x233   :  { %v2516_v57 = vshrl.u32 %v2379_v48, 16  ;;  %v2519_v5 = vshll.u32 %v2379_v48, 16  ;;  %2620 = vst [vmem:[#allocation3 + $0xb8] sm:$0xf] %v2379_v48  ;;  %v7267_v45 = vld [vmem:[#allocation3 + $0x54] sm:$0xff]  ;;  %v2837_v35 = vsel %vm6765_vm10, 0, %v2836_v2  ;;  %5635 = vmatpush3.bf16.msra.mxu1 %v6044_v22  ;;  %5345 = vmatpush3.bf16.msra.mxu0 %v6040_v23  ;;  %v2333_v53 = vadd.f32 %v7044_v63, %v2310_v18 }
 0x234   :  { %v2738_v12 = vsel %vm6702_vm8, %v2671_v16, %v2737_v24  ;;  %v2596_v14 = vld [vmem:[#allocation3 + $0xb4] sm:$0xf]  ;;  %v4848_v21 = vcombine.high %v7267_v45, %v7254_v54  ;;  %v6043_v26 = vld [vmem:[#allocation9 + $0x28] sm:$0xff]   ;;  %v6047_v58 = vld [vmem:[#allocation9 + $0x70] sm:$0xff]   ;;  %2838 = vst [vmem:[#allocation3 + $0x98] sm:$0x8] %v2837_v35  ;;  %5636 = vmatprep.subr.bf16.mxu1 %v7256_v11  ;;  %5346 = vmatprep.subr.bf16.mxu0 %v6042_v0 }
 0x235   :  { %v2791_v42 = vld [vmem:[#allocation3 + $0x9c] sm:$0x1]  ;;  %2739 = vst [vmem:[#allocation3 + $0xb0] sm:$0xf] %v2738_v12  ;;  %v2518_v30 = vrot.slane %v2516_v57, 7  ;;  %v2672_v8 = vrot.slane %v2516_v57, 4  ;;  %3339 = vmatmul.mubr.bf16.gmra.mrb[88].mxu0 %v4844_v38  ;;  %v4847_v41 = vcombine.low %v7267_v45, %v7254_v54 }
 0x236   :  { %v2673_v44 = vrot.slane %v2519_v5, 5  ;;  %v2523_v7 = vshrl.u32 %v2380_v62, 16  ;;  %2621 = vst [vmem:[#allocation3 + $0xc4] sm:$0xf] %v2380_v62  ;;  %v2792_v34 = vsel %vm6512_vm5, 0, %v2791_v42  ;;  %v2526_v6 = vshll.u32 %v2380_v62, 16  ;;  %3346 = vmatprep.mubr.bf16.mxu0 %v4848_v21 }
 0x237   :  { %2793 = vst [vmem:[#allocation3 + $0x9c] sm:$0x1] %v2792_v34  ;;  %v2521_v33 = vor.u32 %v2519_v5, %v2518_v30  ;;  %v2740_v32 = vld [vmem:[#allocation3 + $0xbc] sm:$0xf]  ;;  %v2839_v24 = vld [vmem:[#allocation3 + $0xa4] sm:$0x8]  ;;  %5637 = vmatpush3.bf16.msra.mxu1 %v7256_v11  ;;  %5347 = vmatpush3.bf16.msra.mxu0 %v6043_v26  ;;  %v7317_v42 = vcombine.high %v7242_v4, %v7267_v45 }
 0x238   :  { %v2674_v40 = vor.u32 %v2673_v44, %v2672_v8  ;;  %v2525_v17 = vrot.slane %v2523_v7, 7  ;;  %v2676_v51 = vrot.slane %v2523_v7, 4  ;;  %v2599_v59 = vld [vmem:[#allocation3 + $0xc0] sm:$0xf]  ;;  %v2677_v46 = vrot.slane %v2526_v6, 5  ;;  %v6052_v47 = vld [vmem:[#allocation9 + $0x78] sm:$0xff]   ;;  %5638 = vmatprep.subr.bf16.mxu1 %v6054_v3  ;;  %5348 = vmatprep.subr.bf16.mxu0 %v6047_v58 }
 0x239   :  { %v6108_v27 = vld [vmem:[#allocation12] ss:$0 sm:$0xff]  ;;  %v2840_v56 = vsel %vm6765_vm10, 0, %v2839_v24  ;;  %v2597_v22 = vsel %vm6461_vm3, %v2521_v33, %v2596_v14  ;;  %v6049_v36 = vld [vmem:[#allocation9 + $0x30] sm:$0xff]   ;;  %v2794_v63 = vld [vmem:[#allocation3 + $0xa8] sm:$0x1]  ;;  %v7305_v14 = vcombine.low %v7165_v29, %v7219_v39  ;;  %v7321_v30 = vcombine.low %v7242_v4, %v7267_v45 }
 0x23a   :  { %v2334_v23 = vadd.f32 %v6108_v27, %v2311_v28  ;;  %v2675_v20 = vrot.slane %v2674_v40, 4  ;;  %v2528_v13 = vor.u32 %v2526_v6, %v2525_v17  ;;  %v6057_v25 = vld [vmem:[#allocation9 + $0x1c0] sm:$0xff]   ;;  %2841 = vst [vmem:[#allocation3 + $0xa4] sm:$0x8] %v2840_v56  ;;  %2598 = vst [vmem:[#allocation3 + $0xb4] sm:$0xf] %v2597_v22  ;;  %v2678_v48 = vor.u32 %v2677_v46, %v2676_v51 }
 0x23b   :  { %v2349_v61 = vmul.f32 0.01, %v2333_v53  ;;  %v2795_v11 = vsel %vm6512_vm5, 0, %v2794_v63  ;;  %v2743_v37 = vld [vmem:[#allocation3 + $0xc8] sm:$0xf]  ;;  %v7297_v38 = vld [vmem:[#allocation3 + $0x90] sm:$0xff]  ;;  %5639 = vmatpush3.bf16.msra.mxu1 %v6054_v3  ;;  %5349 = vmatpush3.bf16.msra.mxu0 %v6049_v36  ;;  %v7313_v3 = vcombine.low %v7213_v43, %v7248_v9 }
 0x23c   :  { %v2350_v1 = vmul.f32 0.01, %v2334_v23  ;;  %v2741_v50 = vsel %vm6702_vm8, %v2675_v20, %v2740_v32  ;;  %v2600_v55 = vsel %vm6461_vm3, %v2528_v13, %v2599_v59  ;;  %v7295_v16 = vld [vmem:[#allocation3 + $0x84] sm:$0xff]  ;;  %2796 = vst [vmem:[#allocation3 + $0xa8] sm:$0x1] %v2795_v11  ;;  %v2679_v2 = vrot.slane %v2678_v48, 4  ;;  %5416 = vmatprep.subr.bf16.mxu1 %v6057_v25  ;;  %5350 = vmatprep.subr.bf16.mxu0 %v6052_v47 }
 0x23d   :  { %v2842_v0 = vld [vmem:[#allocation3 + $0xb0] sm:$0x8]  ;;  %2742 = vst [vmem:[#allocation3 + $0xbc] sm:$0xf] %v2741_v50  ;;  %2601 = vst [vmem:[#allocation3 + $0xc0] sm:$0xf] %v2600_v55  ;;  %v2365_v57 = vmax.f32 %v2333_v53, %v2349_v61  ;;  %v4851_v62 = vcombine.high %v7295_v16, %v7297_v38  ;;  %3347 = vmatmul.mubr.bf16.gmra.mrb[92].mxu0 %v4847_v41  ;;  %v4850_v27 = vcombine.low %v7295_v16, %v7297_v38 }
 0x23e   :  { %v2366_v5 = vmax.f32 %v2334_v23, %v2350_v1  ;;  %v2843_v10 = vsel %vm6765_vm10, 0, %v2842_v0  ;;  %v6021_v35 = vld [vmem:[#allocation3 + $0x8c] ss:$12 sps:$4 sm:$0xff]   ;;  %v2744_v52 = vsel %vm6702_vm8, %v2679_v2, %v2743_v37  ;;  %v7309_v58 = vld [vmem:[#allocation3 + $0x9c] sm:$0xff]  ;;  %v2746_v59 = vld [vmem:[#allocation3 + $0xd4] sm:$0xf] }
 0x23f   :  { %v6053_v12 = vld [vmem:[#allocation9 + $0x38] sm:$0xff]   ;;  %2844 = vst [vmem:[#allocation3 + $0xb0] sm:$0x8] %v2843_v10  ;;  %v2381_v21 = vpack.c.bf16 %v2365_v57, %v2365_v57  ;;  %2745 = vst [vmem:[#allocation3 + $0xc8] sm:$0xf] %v2744_v52  ;;  %5616 = vmatprep.mubr.bf16.mxu1 %v6021_v35  ;;  %3354 = vmatprep.mubr.bf16.mxu0 %v4851_v62  ;;  %v7325_v28 = vcombine.high %v7297_v38, %v7309_v58 }
 0x240   :  { %v2382_v26 = vpack.c.bf16 %v2366_v5, %v2366_v5  ;;  %v2602_v18 = vld [vmem:[#allocation3 + $0xcc] sm:$0xf]  ;;  %5351 = vmatpush3.bf16.msra.mxu0 %v6053_v12  ;;  %v7329_v33 = vcombine.low %v7297_v38, %v7309_v58  ;;  %v2605_v17 = vld [vmem:[#allocation3 + $0xd8] sm:$0xf]  ;;  %v2749_v41 = vld [vmem:[#allocation3 + $0xe0] sm:$0xf] }
 0x241   :  { %v2530_v8 = vshrl.u32 %v2381_v21, 16  ;;  %v2533_v44 = vshll.u32 %v2381_v21, 16  ;;  %2622 = vst [vmem:[#allocation3 + $0xd0] sm:$0xf] %v2381_v21  ;;  %v2797_v6 = vld [vmem:[#allocation3 + $0xb4] sm:$0x1] }
 0x242   :  { %v2537_v7 = vshrl.u32 %v2382_v26, 16  ;;  %v2540_v34 = vshll.u32 %v2382_v26, 16  ;;  %2623 = vst [vmem:[#allocation3 + $0xdc] sm:$0xf] %v2382_v26  ;;  %v2798_v4 = vsel %vm6512_vm5, 0, %v2797_v6 }
 0x243   :  { %v2532_v45 = vrot.slane %v2530_v8, 7  ;;  %v2680_v40 = vrot.slane %v2530_v8, 4  ;;  %v2681_v32 = vrot.slane %v2533_v44, 5  ;;  %2799 = vst [vmem:[#allocation3 + $0xb4] sm:$0x1] %v2798_v4  ;;  %v2959_v13 = vld [vmem:[#allocation3 + $0xa8] sm:$0xff] }
 0x244   :  { %v2845_v51 = vld [vmem:[#allocation3 + $0xbc] sm:$0x8]  ;;  %v2800_v24 = vld [vmem:[#allocation3 + $0xc0] sm:$0x1]  ;;  %v2539_v46 = vrot.slane %v2537_v7, 7  ;;  %v2684_v53 = vrot.slane %v2537_v7, 4  ;;  %v4854_v25 = vcombine.high %v7309_v58, %v2959_v13  ;;  %v4853_v57 = vcombine.low %v7309_v58, %v2959_v13 }
 0x245   :  { %v2846_v23 = vsel %vm6765_vm10, 0, %v2845_v51  ;;  %v2801_v56 = vsel %vm6512_vm5, 0, %v2800_v24  ;;  %v2535_v22 = vor.u32 %v2533_v44, %v2532_v45  ;;  %v2682_v20 = vor.u32 %v2681_v32, %v2680_v40  ;;  %3355 = vmatmul.mubr.bf16.gmra.mrb[96].mxu0 %v4850_v27  ;;  %v6051_v15 = vld [vmem:[#allocation3 + $0x8] ss:$12 sps:$4 sm:$0xff]   ;;  %v6061_v27 = vld [vmem:[#allocation9 + $0x188] sm:$0xff]  }
 0x246   :  { %2847 = vst [vmem:[#allocation3 + $0xbc] sm:$0x8] %v2846_v23  ;;  %2802 = vst [vmem:[#allocation3 + $0xc0] sm:$0x1] %v2801_v56  ;;  %v2542_v36 = vor.u32 %v2540_v34, %v2539_v46  ;;  %v2685_v47 = vrot.slane %v2540_v34, 5  ;;  %3362 = vmatprep.mubr.bf16.mxu0 %v4854_v25  ;;  %v7379_v40 = vld [vmem:[#allocation2] sm:$0xff] }
 0x247   :  { %v6030_v63 = vld [vmem:[#allocation3 + $0xa4] ss:$12 sps:$4 sm:$0xff]   ;;  %v2848_v48 = vld [vmem:[#allocation3 + $0xc8] sm:$0x8]  ;;  %v2603_v61 = vsel %vm6461_vm3, %v2535_v22, %v2602_v18  ;;  %v2683_v1 = vrot.slane %v2682_v20, 4  ;;  %v4887_v32 = vcombine.high %v7379_v40, %v7181_v19  ;;  %v4886_v24 = vcombine.low %v7379_v40, %v7181_v19  ;;  %v6060_v46 = vld [vmem:[#allocation9 + $0x1c8] sm:$0xff]  }
 0x248   :  { %v2849_v11 = vsel %vm6765_vm10, 0, %v2848_v48  ;;  %2604 = vst [vmem:[#allocation3 + $0xcc] sm:$0xf] %v2603_v61  ;;  %v2606_v50 = vsel %vm6461_vm3, %v2542_v36, %v2605_v17  ;;  %v2686_v55 = vor.u32 %v2685_v47, %v2684_v53  ;;  %5617 = vmatmul.mubr.bf16.gmra.mrb[56].mxu1 %v6030_v63  ;;  %v6056_v17 = vld [vmem:[#allocation3 + $0x20] ss:$12 sps:$4 sm:$0xff]   ;;  %v6059_v51 = vld [vmem:[#allocation9 + $0x180] sm:$0xff]   ;;  %v4890_v53 = vcombine.high %v7165_v29, %v7219_v39 }
 0x249   :  { %2850 = vst [vmem:[#allocation3 + $0xc8] sm:$0x8] %v2849_v11  ;;  %v2747_v37 = vsel %vm6702_vm8, %v2683_v1, %v2746_v59  ;;  %2607 = vst [vmem:[#allocation3 + $0xd8] sm:$0xf] %v2606_v50  ;;  %v6058_v59 = vld [vmem:[#allocation3 + $0x38] ss:$12 sps:$4 sm:$0xff]   ;;  %v4893_v19 = vcombine.high %v7213_v43, %v7248_v9  ;;  %v4899_v11 = vcombine.high %v7379_v40, %v7295_v16 }
 0x24a   :  { %2748 = vst [vmem:[#allocation3 + $0xd4] sm:$0xf] %v2747_v37  ;;  %v2687_v38 = vrot.slane %v2686_v55, 4  ;;  %v2961_v0 = vld [vmem:[#allocation3 + $0xb4] sm:$0xff]  ;;  %v6065_v23 = vld [vmem:[#allocation9 + $0x1d0] sm:$0xff]   ;;  %v6069_v29 = vld [vmem:[#allocation9 + $0x198] sm:$0xff]   ;;  %v4898_v37 = vcombine.low %v7379_v40, %v7295_v16 }
 0x24b   :  { %v7351_v49 = vcombine.high %v2959_v13, %v2961_v0  ;;  %v7353_v5 = vcombine.low %v2959_v13, %v2961_v0  ;;  %v6064_v56 = vld [vmem:[#allocation3 + $0x50] ss:$12 sps:$4 sm:$0xff]   ;;  %v6067_v22 = vld [vmem:[#allocation9 + $0x190] sm:$0xff]   ;;  %v6068_v13 = vld [vmem:[#allocation9 + $0x1d8] sm:$0xff]  }
 0x24c   :  { %v2750_v2 = vsel %vm6702_vm8, %v2687_v38, %v2749_v41  ;;  %v6066_v20 = vld [vmem:[#allocation3 + $0x80] ss:$12 sps:$4 sm:$0xff]   ;;  %v6073_v39 = vld [vmem:[#allocation9 + $0x1e0] sm:$0xff]   ;;  %v6072_v36 = vld [vmem:[#allocation3 + $0x98] ss:$12 sps:$4 sm:$0xff]  }
 0x24d   :  { %2751 = vst [vmem:[#allocation3 + $0xe0] sm:$0xf] %v2750_v2  ;;  %v7355_v62 = vld [vmem:[#allocation3 + $0xc0] sm:$0xff]  ;;  %3363 = vmatmul.mubr.bf16.gmra.mrb[100].mxu0 %v4853_v57  ;;  %v6075_v47 = vld [vmem:[#allocation9 + $0x1a0] sm:$0xff]   ;;  %v6076_v63 = vld [vmem:[#allocation9 + $0x1e8] sm:$0xff]   ;;  %v4944_v2 = vcombine.high %v7254_v54, %v7379_v40 }
 0x24e   :  { %v4857_v10 = vcombine.high %v2961_v0, %v7355_v62  ;;  %v4856_v44 = vcombine.low %v2961_v0, %v7355_v62  ;;  %v6074_v25 = vld [vmem:[#allocation3 + $0xb0] ss:$12 sps:$4 sm:$0xff]   ;;  %v6080_v9 = vld [vmem:[#allocation9 + $0x1f0] sm:$0xff]   ;;  %v6082_v1 = vld [vmem:[#allocation9 + $0x1f8] sm:$0xff]  }
 0x24f   :  { %v2803_v35 = vld [vmem:[#allocation3 + $0xcc] sm:$0x1]  ;;  %v6077_v43 = vld [vmem:[#allocation9 + $0x1a8] sm:$0xff]   ;;  %v6081_v61 = vld [vmem:[#allocation9 + $0x1b0] sm:$0xff]  }
 0x250   :  { %v2804_v12 = vsel %vm6512_vm5, 0, %v2803_v35  ;;  %v2806_v52 = vld [vmem:[#allocation3 + $0xd8] sm:$0x1]  ;;  %3370 = vmatprep.mubr.bf16.mxu0 %v4857_v10  ;;  %v6039_v26 = vld [vmem:[#allocation3 + $0xbc] ss:$12 sps:$4 sm:$0xff]   ;;  %v6085_v55 = vld [vmem:[#allocation9 + $0x200] sm:$0xff]  }
 0x251   :  { %2805 = vst [vmem:[#allocation3 + $0xcc] sm:$0x1] %v2804_v12  ;;  %v2851_v60 = vld [vmem:[#allocation3 + $0xd4] sm:$0x8]  ;;  %v2807_v21 = vsel %vm6512_vm5, 0, %v2806_v52  ;;  %5620 = vmatprep.mubr.bf16.mxu1 %v6039_v26  ;;  %v6083_v50 = vld [vmem:[#allocation9 + $0x1b8] sm:$0xff]  }
 0x252   :  { %v2852_v58 = vsel %vm6765_vm10, 0, %v2851_v60  ;;  %2808 = vst [vmem:[#allocation3 + $0xd8] sm:$0x1] %v2807_v21  ;;  %v6088_v41 = vld [vmem:[#allocation9 + $0x208] sm:$0xff]   ;;  %v6091_v38 = vld [vmem:[#allocation9 + $0x210] sm:$0xff]   ;;  %v6093_v0 = vld [vmem:[#allocation9 + $0x218] sm:$0xff]  }
 0x253   :  { %2853 = vst [vmem:[#allocation3 + $0xd4] sm:$0x8] %v2852_v58  ;;  %v6094_v16 = vld [vmem:[#allocation9 + $0x220] sm:$0xff]   ;;  %v6095_v57 = vld [vmem:[#allocation9 + $0x228] sm:$0xff]  }
 0x254   :  { %v2854_v8 = vld [vmem:[#allocation3 + $0xe0] sm:$0x8]  ;;  %v6099_v10 = vld [vmem:[#allocation3 + $0x38] ss:$12 sps:$4 sm:$0xff]   ;;  %v6100_v35 = vld [vmem:[#allocation3 + $0x50] ss:$12 sps:$4 sm:$0xff]  }
 0x255   :  { %v2855_v7 = vsel %vm6765_vm10, 0, %v2854_v8  ;;  %3371 = vmatmul.mubr.bf16.gmra.mrb[104].mxu0 %v4856_v44 }
 0x256   :  { %2856 = vst [vmem:[#allocation3 + $0xe0] sm:$0x8] %v2855_v7 }
 0x258   :  { %v7367_v34 = vld [vmem:[#allocation3 + $0xcc] sm:$0xff] }
 0x259   :  { %v7369_v31 = vld [vmem:[#allocation3 + $0xd8] sm:$0xff]  ;;  %v7373_v6 = vcombine.low %v7355_v62, %v7367_v34 }
 0x25a   :  { %v4860_v18 = vcombine.high %v7367_v34, %v7369_v31  ;;  %v4859_v4 = vcombine.low %v7367_v34, %v7369_v31  ;;  %v6079_v48 = vld [vmem:[#allocation3 + $0xc8] ss:$12 sps:$4 sm:$0xff]  }
 0x25b   :  { %v6104_v12 = vld [vmem:[#allocation3 + $0xc8] ss:$12 sps:$4 sm:$0xff]  }
 0x25c   :  { %3378 = vmatprep.mubr.bf16.mxu0 %v4860_v18 }
 0x25d   :  { %v6048_v45 = vld [vmem:[#allocation3 + $0xd4] ss:$12 sps:$4 sm:$0xff]   ;;  %3379 = vmatmul.mubr.bf16.gmra.mrb[108].mxu0 %v4859_v4 }
 0x25e   :  { %5621 = vmatmul.mubr.bf16.gmra.mrb[60].mxu1 %v6048_v45  ;;  %3788 = vmatprep.mubr.bf16.mxu0 %v4887_v32  ;;  %v6105_v52 = vld [vmem:[#allocation3 + $0xe0] ss:$12 sps:$4 sm:$0xff]  }
 0x25f   :  { %5640 = vmatprep.mubr.bf16.mxu1 %v6051_v15 }
 0x265   :  { %3789 = vmatmul.mubr.bf16.vlgmr.msra.gmra.mrb[112].mxu0 %v4886_v24 }
 0x266   :  { %5641 = vmatmul.mubr.bf16.vlgmr.msra.gmra.mrb[48].mxu1 %v6056_v17  ;;  %3796 = vmatprep.mubr.bf16.mxu0 %v4890_v53 }
 0x267   :  { %5644 = vmatprep.mubr.bf16.mxu1 %v6058_v59  ;;  %5417 = vmatpush3.bf16.msra.mxu1 %v6059_v51 }
 0x268   :  { %5418 = vmatprep.subr.bf16.mxu1 %v6060_v46 }
 0x26b   :  { %5419 = vmatpush3.bf16.msra.mxu1 %v6061_v27 }
 0x26c   :  { %5420 = vmatprep.subr.bf16.mxu1 %v6065_v23 }
 0x26d   :  { %3797 = vmatmul.mubr.bf16.gmra.mrb[116].mxu0 %v7305_v14 }
 0x26e   :  { %5645 = vmatmul.mubr.bf16.gmra.mrb[52].mxu1 %v6064_v56  ;;  %3804 = vmatprep.mubr.bf16.mxu0 %v4893_v19 }
 0x26f   :  { %5648 = vmatprep.mubr.bf16.mxu1 %v6066_v20  ;;  %5421 = vmatpush3.bf16.msra.mxu1 %v6067_v22 }
 0x270   :  { %5422 = vmatprep.subr.bf16.mxu1 %v6068_v13 }
 0x273   :  { %5423 = vmatpush3.bf16.msra.mxu1 %v6069_v29 }
 0x274   :  { %5424 = vmatprep.subr.bf16.mxu1 %v6073_v39 }
 0x275   :  { %3805 = vmatmul.mubr.bf16.gmra.mrb[120].mxu0 %v7313_v3 }
 0x276   :  { %5649 = vmatmul.mubr.bf16.gmra.mrb[56].mxu1 %v6072_v36  ;;  %3812 = vmatprep.mubr.bf16.mxu0 %v7317_v42 }
 0x277   :  { %5652 = vmatprep.mubr.bf16.mxu1 %v6074_v25  ;;  %5425 = vmatpush3.bf16.msra.mxu1 %v6075_v47 }
 0x278   :  { %5426 = vmatprep.subr.bf16.mxu1 %v6076_v63 }
 0x27b   :  { %5427 = vmatpush3.bf16.msra.mxu1 %v6077_v43 }
 0x27c   :  { %5428 = vmatprep.subr.bf16.mxu1 %v6080_v9 }
 0x27d   :  { %3813 = vmatmul.mubr.bf16.gmra.mrb[124].mxu0 %v7321_v30 }
 0x27e   :  { %5653 = vmatmul.mubr.bf16.gmra.mrb[60].mxu1 %v6079_v48  ;;  %3820 = vmatprep.mubr.bf16.mxu0 %v4899_v11 }
 0x27f   :  { %4336 = vmatprep.mubr.bf16.mxu1 %v4890_v53  ;;  %5429 = vmatpush3.bf16.msra.mxu1 %v6081_v61 }
 0x280   :  { %5430 = vmatprep.subr.bf16.mxu1 %v6082_v1 }
 0x283   :  { %5431 = vmatpush3.bf16.msra.mxu1 %v6083_v50 }
 0x284   :  { %5656 = vmatprep.subr.bf16.mxu1 %v6085_v55 }
 0x285   :  { %3821 = vmatmul.mubr.bf16.gmra.mrb[128].mxu0 %v4898_v37 }
 0x286   :  { %4337 = vmatmul.mubr.bf16.vlgmr.msra.gmra.mrb[64].mxu1 %v7305_v14  ;;  %3828 = vmatprep.mubr.bf16.mxu0 %v7325_v28  ;;  %v4908_v14 = vcombine.high %v7355_v62, %v7367_v34  ;;  %v6097_v62 = vld [vmem:[#allocation9 + $0x238] sm:$0xff]  }
 0x287   :  { %4344 = vmatprep.mubr.bf16.mxu1 %v4893_v19  ;;  %5657 = vmatpush3.bf16.msra.mxu1 %v6085_v55 }
 0x288   :  { %5658 = vmatprep.subr.bf16.mxu1 %v6088_v41 }
 0x28b   :  { %5659 = vmatpush3.bf16.msra.mxu1 %v6088_v41 }
 0x28c   :  { %5660 = vmatprep.subr.bf16.mxu1 %v6091_v38 }
 0x28d   :  { %3829 = vmatmul.mubr.bf16.gmra.mrb[132].mxu0 %v7329_v33 }
 0x28e   :  { %4345 = vmatmul.mubr.bf16.gmra.mrb[68].mxu1 %v7313_v3  ;;  %3836 = vmatprep.mubr.bf16.mxu0 %v7351_v49  ;;  %v6096_v3 = vld [vmem:[#allocation9 + $0x230] sm:$0xff]  }
 0x28f   :  { %4352 = vmatprep.mubr.bf16.mxu1 %v7317_v42  ;;  %5661 = vmatpush3.bf16.msra.mxu1 %v6091_v38  ;;  %v4943_v42 = vcombine.low %v7254_v54, %v7379_v40  ;;  %v4956_v54 = vcombine.high %v7369_v31, %v7379_v40 }
 0x290   :  { %5662 = vmatprep.subr.bf16.mxu1 %v6093_v0 }
 0x293   :  { %5663 = vmatpush3.bf16.msra.mxu1 %v6093_v0 }
 0x294   :  { %5664 = vmatprep.subr.bf16.mxu1 %v6094_v16 }
 0x295   :  { %3837 = vmatmul.mubr.bf16.gmra.mrb[136].mxu0 %v7353_v5 }
 0x296   :  { %4353 = vmatmul.mubr.bf16.gmra.mrb[72].mxu1 %v7321_v30  ;;  %3844 = vmatprep.mubr.bf16.mxu0 %v4908_v14  ;;  %v4955_v30 = vcombine.low %v7369_v31, %v7379_v40 }
 0x297   :  { %4360 = vmatprep.mubr.bf16.mxu1 %v4944_v2  ;;  %5665 = vmatpush3.bf16.msra.mxu1 %v6094_v16 }
 0x298   :  { %5666 = vmatprep.subr.bf16.mxu1 %v6095_v57 }
 0x29b   :  { %5667 = vmatpush3.bf16.msra.mxu1 %v6095_v57 }
 0x29c   :  { %5668 = vmatprep.subr.bf16.mxu1 %v6096_v3 }
 0x29d   :  { %3845 = vmatmul.mubr.bf16.gmra.mrb[140].mxu0 %v7373_v6 }
 0x29e   :  { %4361 = vmatmul.mubr.bf16.gmra.mrb[76].mxu1 %v4943_v42 }
 0x29f   :  { %4368 = vmatprep.mubr.bf16.mxu1 %v7325_v28  ;;  %5669 = vmatpush3.bf16.msra.mxu1 %v6096_v3  ;;  %v6098_v28 = vld [vmem:[#allocation3 + $0x20] ss:$12 sps:$4 sm:$0xff]  }
 0x2a0   :  { %5670 = vmatprep.subr.bf16.mxu1 %v6097_v62 }
 0x2a3   :  { %5671 = vmatpush3.bf16.msra.mxu1 %v6097_v62 }
 0x2a6   :  { %4369 = vmatmul.mubr.bf16.gmra.mrb[80].mxu1 %v7329_v33  ;;  %v6101_v33 = vld [vmem:[#allocation3 + $0x68] ss:$12 sps:$4 sm:$0xff]  }
 0x2a7   :  { %4376 = vmatprep.mubr.bf16.mxu1 %v7351_v49  ;;  %v6102_v49 = vld [vmem:[#allocation3 + $0x98] ss:$12 sps:$4 sm:$0xff]  }
 0x2ae   :  { %4377 = vmatmul.mubr.bf16.gmra.mrb[84].mxu1 %v7353_v5  ;;  %v6103_v5 = vld [vmem:[#allocation3 + $0xb0] ss:$12 sps:$4 sm:$0xff]  }
 0x2af   :  { %4384 = vmatprep.mubr.bf16.mxu1 %v4908_v14 }
 0x2b6   :  { %4385 = vmatmul.mubr.bf16.gmra.mrb[88].mxu1 %v7373_v6 }
 0x2b7   :  { %4392 = vmatprep.mubr.bf16.mxu1 %v4956_v54 }
 0x2be   :  { %4393 = vmatmul.mubr.bf16.gmra.mrb[92].mxu1 %v4955_v30 }
 0x2bf   :  { %5672 = vmatprep.mubr.bf16.mxu1 %v6098_v28 }
 0x2c6   :  { %5673 = vmatmul.mubr.bf16.vlgmr.msra.gmra.mrb[48].mxu1 %v6099_v10 }
 0x2c7   :  { %5676 = vmatprep.mubr.bf16.mxu1 %v6100_v35 }
 0x2ce   :  { %5677 = vmatmul.mubr.bf16.gmra.mrb[52].mxu1 %v6101_v33 }
 0x2cf   :  { %5680 = vmatprep.mubr.bf16.mxu1 %v6102_v49 }
 0x2d6   :  { %5681 = vmatmul.mubr.bf16.gmra.mrb[56].mxu1 %v6103_v5 }
 0x2d7   :  { %5684 = vmatprep.mubr.bf16.mxu1 %v6104_v12 }
 0x2de   :  { %5685 = vmatmul.mubr.bf16.gmra.mrb[60].mxu1 %v6105_v52 }
 0x2f4   :  { %v5272_v60 = vpop.f32.mrb[80].mxu0 }
 0x2f5   :  { %v5273_v21 = vpop.f32.mrb[81].mxu0 }
 0x2f6   :  { %v5274_v26 = vadd.f32 %v5273_v21, %v5272_v60  ;;  %v5275_v58 = vpop.f32.mrb[82].mxu0 }
 0x2f7   :  { %v5276_v8 = vpop.f32.mrb[83].mxu0 }
 0x2f8   :  { %v5277_v44 = vadd.f32 %v5276_v8, %v5275_v58 }
 0x2ff   :  { %v5278_v7 = vpop.f32.mrb[84].mxu0 }
 0x300   :  { %v5279_v34 = vpop.f32.mrb[85].mxu0 }
 0x301   :  { %v5280_v31 = vadd.f32 %v5279_v34, %v5278_v7  ;;  %v5281_v6 = vpop.f32.mrb[86].mxu0 }
 0x302   :  { %v5282_v18 = vpop.f32.mrb[87].mxu0 }
 0x303   :  { %v5283_v4 = vadd.f32 %v5282_v18, %v5281_v6 }
 0x308   :  { %v5284_v45 = vpop.f32.mrb[88].mxu0 }
 0x309   :  { %v5285_v15 = vpop.f32.mrb[89].mxu0 }
 0x30a   :  { %v5286_v40 = vadd.f32 %v5285_v15, %v5284_v45  ;;  %v5287_v32 = vpop.f32.mrb[90].mxu0 }
 0x30b   :  { %v5288_v17 = vpop.f32.mrb[91].mxu0 }
 0x30c   :  { %v5289_v51 = vadd.f32 %v5288_v17, %v5287_v32 }
 0x310   :  { %v5290_v24 = vpop.f32.mrb[92].mxu0 }
 0x311   :  { %v5291_v59 = vpop.f32.mrb[93].mxu0 }
 0x312   :  { %v5292_v46 = vadd.f32 %v5291_v59, %v5290_v24  ;;  %v5293_v53 = vpop.f32.mrb[94].mxu0 }
 0x313   :  { %v5294_v27 = vpop.f32.mrb[95].mxu0 }
 0x314   :  { %v5295_v23 = vadd.f32 %v5294_v27, %v5293_v53 }
 0x318   :  { %v5296_v56 = vpop.f32.mrb[96].mxu0 }
 0x319   :  { %v5297_v22 = vpop.f32.mrb[97].mxu0 }
 0x31a   :  { %v7421_v20 = vadd.f32 %v5297_v22, %v5296_v56  ;;  %v5299_v13 = vpop.f32.mrb[98].mxu0 }
 0x31b   :  { %v5300_v19 = vpop.f32.mrb[99].mxu0 }
 0x31c   :  { %v7423_v29 = vadd.f32 %v5300_v19, %v5299_v13 }
 0x320   :  { %v5302_v39 = vpop.f32.mrb[100].mxu0 }
 0x321   :  { %v5303_v36 = vpop.f32.mrb[101].mxu0 }
 0x322   :  { %v7425_v47 = vadd.f32 %v5303_v36, %v5302_v39  ;;  %v5305_v25 = vpop.f32.mrb[102].mxu0 }
 0x323   :  { %v5306_v63 = vpop.f32.mrb[103].mxu0 }
 0x324   :  { %v7427_v43 = vadd.f32 %v5306_v63, %v5305_v25 }
 0x328   :  { %v5308_v9 = vpop.f32.mrb[104].mxu0 }
 0x329   :  { %v5309_v48 = vpop.f32.mrb[105].mxu0 }
 0x32a   :  { %v7429_v61 = vadd.f32 %v5309_v48, %v5308_v9  ;;  %v5311_v1 = vpop.f32.mrb[106].mxu0 }
 0x32b   :  { %v5312_v11 = vpop.f32.mrb[107].mxu0 }
 0x32c   :  { %v7431_v50 = vadd.f32 %v5312_v11, %v5311_v1 }
 0x330   :  { %v5314_v55 = vpop.f32.mrb[108].mxu0 }
 0x331   :  { %v5315_v37 = vpop.f32.mrb[109].mxu0 }
 0x332   :  { %v7433_v41 = vadd.f32 %v5315_v37, %v5314_v55  ;;  %v5317_v38 = vpop.f32.mrb[110].mxu0 }
 0x333   :  { %v5318_v0 = vpop.f32.mrb[111].mxu0 }
 0x334   :  { %v7435_v16 = vadd.f32 %v5318_v0, %v5317_v38 }
 0x338   :  { %v5352_v14 = vpop.f32.mrb[112].mxu0 }
 0x339   :  { %v5353_v2 = vpop.f32.mrb[113].mxu0 }
 0x33a   :  { %v5354_v57 = vadd.f32 %v5353_v2, %v5352_v14  ;;  %v5355_v3 = vpop.f32.mrb[114].mxu0 }
 0x33b   :  { %v5356_v42 = vpop.f32.mrb[115].mxu0 }
 0x33c   :  { %v5755_v62 = vadd.f32 %v5354_v57, %v5274_v26  ;;  %v5357_v54 = vadd.f32 %v5356_v42, %v5355_v3 }
 0x33e   :  { %v5761_v30 = vadd.f32 %v5357_v54, %v5277_v44 }
 0x340   :  { %v5358_v28 = vpop.f32.mrb[116].mxu0 }
 0x341   :  { %v5359_v10 = vpop.f32.mrb[117].mxu0 }
 0x342   :  { %v5360_v35 = vadd.f32 %v5359_v10, %v5358_v28  ;;  %v5361_v33 = vpop.f32.mrb[118].mxu0 }
 0x343   :  { %v5362_v49 = vpop.f32.mrb[119].mxu0 }
 0x344   :  { %v5752_v5 = vadd.f32 %v5360_v35, %v5280_v31  ;;  %v5363_v12 = vadd.f32 %v5362_v49, %v5361_v33 }
 0x346   :  { %v5758_v52 = vadd.f32 %v5363_v12, %v5283_v4 }
 0x348   :  { %v5364_v60 = vpop.f32.mrb[120].mxu0 }
 0x349   :  { %v5365_v21 = vpop.f32.mrb[121].mxu0 }
 0x34a   :  { %v5366_v58 = vadd.f32 %v5365_v21, %v5364_v60  ;;  %v5367_v8 = vpop.f32.mrb[122].mxu0 }
 0x34b   :  { %v5368_v7 = vpop.f32.mrb[123].mxu0 }
 0x34c   :  { %v5767_v34 = vadd.f32 %v5366_v58, %v5286_v40  ;;  %v5369_v6 = vadd.f32 %v5368_v7, %v5367_v8 }
 0x34e   :  { %v5773_v18 = vadd.f32 %v5369_v6, %v5289_v51 }
 0x350   :  { %v5370_v45 = vpop.f32.mrb[124].mxu0 }
 0x351   :  { %v5371_v26 = vpop.f32.mrb[125].mxu0 }
 0x352   :  { %v5372_v15 = vadd.f32 %v5371_v26, %v5370_v45  ;;  %v5373_v44 = vpop.f32.mrb[126].mxu0 }
 0x353   :  { %v5374_v32 = vpop.f32.mrb[127].mxu0 }
 0x354   :  { %v7437_v17 = vadd.f32 %v5372_v15, %v5292_v46  ;;  %v5375_v24 = vadd.f32 %v5374_v32, %v5373_v44 }
 0x356   :  { %v7439_v59 = vadd.f32 %v5375_v24, %v5295_v23 }
 0x358   :  { %v5376_v31 = vpop.f32.mrb[128].mxu0 }
 0x359   :  { %v5432_v4 = vpop.f32.mrb[64].mxu1  ;;  %v5377_v53 = vpop.f32.mrb[129].mxu0 }
 0x35a   :  { %v5433_v27 = vpop.f32.mrb[65].mxu1  ;;  %v5378_v56 = vadd.f32 %v5377_v53, %v5376_v31  ;;  %v5379_v22 = vpop.f32.mrb[130].mxu0 }
 0x35b   :  { %v5434_v13 = vadd.f32 %v5433_v27, %v5432_v4  ;;  %v5435_v40 = vpop.f32.mrb[66].mxu1  ;;  %v5380_v19 = vpop.f32.mrb[131].mxu0 }
 0x35c   :  { %v5436_v51 = vpop.f32.mrb[67].mxu1  ;;  %v5779_v39 = vadd.f32 %v5378_v56, %v7421_v20  ;;  %v5381_v36 = vadd.f32 %v5380_v19, %v5379_v22 }
 0x35d   :  { %v5437_v25 = vadd.f32 %v5436_v51, %v5435_v40  ;;  %v7442_v63 = vadd.f32 %v5755_v62, %v5434_v13 }
 0x35e   :  { %v5785_v46 = vadd.f32 %v5381_v36, %v7423_v29 }
 0x35f   :  { %v7445_v23 = vadd.f32 %v5761_v30, %v5437_v25 }
 0x360   :  { %v5382_v9 = vpop.f32.mrb[132].mxu0 }
 0x361   :  { %v5438_v48 = vpop.f32.mrb[68].mxu1  ;;  %v5383_v1 = vpop.f32.mrb[133].mxu0 }
 0x362   :  { %v5439_v11 = vpop.f32.mrb[69].mxu1  ;;  %v5384_v55 = vadd.f32 %v5383_v1, %v5382_v9  ;;  %v5385_v37 = vpop.f32.mrb[134].mxu0 }
 0x363   :  { %v5440_v38 = vadd.f32 %v5439_v11, %v5438_v48  ;;  %v5441_v0 = vpop.f32.mrb[70].mxu1  ;;  %v5386_v14 = vpop.f32.mrb[135].mxu0 }
 0x364   :  { %v5442_v2 = vpop.f32.mrb[71].mxu1  ;;  %v5776_v20 = vadd.f32 %v5384_v55, %v7425_v47  ;;  %v5387_v57 = vadd.f32 %v5386_v14, %v5385_v37 }
 0x365   :  { %v5443_v3 = vadd.f32 %v5442_v2, %v5441_v0  ;;  %v7448_v42 = vadd.f32 %v5752_v5, %v5440_v38 }
 0x366   :  { %v5782_v29 = vadd.f32 %v5387_v57, %v7427_v43 }
 0x367   :  { %v7451_v62 = vadd.f32 %v5758_v52, %v5443_v3 }
 0x368   :  { %v5388_v54 = vpop.f32.mrb[136].mxu0 }
 0x369   :  { %v5444_v30 = vpop.f32.mrb[72].mxu1  ;;  %v5389_v28 = vpop.f32.mrb[137].mxu0 }
 0x36a   :  { %v5445_v10 = vpop.f32.mrb[73].mxu1  ;;  %v5390_v35 = vadd.f32 %v5389_v28, %v5388_v54  ;;  %v5391_v33 = vpop.f32.mrb[138].mxu0 }
 0x36b   :  { %v5446_v49 = vadd.f32 %v5445_v10, %v5444_v30  ;;  %v5447_v12 = vpop.f32.mrb[74].mxu1  ;;  %v5392_v60 = vpop.f32.mrb[139].mxu0 }
 0x36c   :  { %v5448_v21 = vpop.f32.mrb[75].mxu1  ;;  %v5791_v47 = vadd.f32 %v5390_v35, %v7429_v61  ;;  %v5393_v58 = vadd.f32 %v5392_v60, %v5391_v33  ;;  %v7481_v33 = vld [vmem:[#allocation13] ss:$0 sm:$0xff]  ;;  %v7484_v60 = vld [vmem:[#allocation15] ss:$0 sm:$0xff] }
 0x36d   :  { %v5449_v8 = vadd.f32 %v5448_v21, %v5447_v12  ;;  %v7454_v5 = vadd.f32 %v5767_v34, %v5446_v49 }
 0x36e   :  { %v5797_v43 = vadd.f32 %v5393_v58, %v7431_v50 }
 0x36f   :  { %v7457_v52 = vadd.f32 %v5773_v18, %v5449_v8 }
 0x370   :  { %v5394_v7 = vpop.f32.mrb[140].mxu0 }
 0x371   :  { %v5450_v6 = vpop.f32.mrb[76].mxu1  ;;  %v5395_v45 = vpop.f32.mrb[141].mxu0 }
 0x372   :  { %v5451_v26 = vpop.f32.mrb[77].mxu1  ;;  %v5396_v15 = vadd.f32 %v5395_v45, %v5394_v7  ;;  %v5397_v44 = vpop.f32.mrb[142].mxu0  ;;  %v4562_v7 = vld [vmem:[#allocation4 + $0x10] sm:$0xff] }
 0x373   :  { %v5452_v32 = vadd.f32 %v5451_v26, %v5450_v6  ;;  %v5453_v24 = vpop.f32.mrb[78].mxu1  ;;  %v5398_v31 = vpop.f32.mrb[143].mxu0 }
 0x374   :  { %v5454_v4 = vpop.f32.mrb[79].mxu1  ;;  %v5788_v61 = vadd.f32 %v5396_v15, %v7433_v41  ;;  %v5399_v53 = vadd.f32 %v5398_v31, %v5397_v44  ;;  %v4560_v15 = vld [vmem:[#allocation4] sm:$0xff] }
 0x375   :  { %v5455_v27 = vadd.f32 %v5454_v4, %v5453_v24  ;;  %v5765_v34 = vadd.f32 %v7437_v17, %v5452_v32  ;;  %v4563_v32 = vld [vmem:[#allocation4 + $0x18] sm:$0xff] }
 0x376   :  { %v5794_v50 = vadd.f32 %v5399_v53, %v7435_v16 }
 0x377   :  { %v7463_v18 = vadd.f32 %v7439_v59, %v5455_v27 }
 0x379   :  { %v5456_v56 = vpop.f32.mrb[80].mxu1 }
 0x37a   :  { %v5457_v22 = vpop.f32.mrb[81].mxu1 }
 0x37b   :  { %v5458_v13 = vadd.f32 %v5457_v22, %v5456_v56  ;;  %v5459_v40 = vpop.f32.mrb[82].mxu1 }
 0x37c   :  { %v5460_v19 = vpop.f32.mrb[83].mxu1 }
 0x37d   :  { %v5461_v51 = vadd.f32 %v5460_v19, %v5459_v40  ;;  %v7465_v36 = vadd.f32 %v5779_v39, %v5458_v13 }
 0x37f   :  { %v7467_v25 = vadd.f32 %v5785_v46, %v5461_v51 }
 0x381   :  { %v5462_v41 = vpop.f32.mrb[84].mxu1 }
 0x382   :  { %v5463_v9 = vpop.f32.mrb[85].mxu1 }
 0x383   :  { %v5464_v48 = vadd.f32 %v5463_v9, %v5462_v41  ;;  %v5465_v1 = vpop.f32.mrb[86].mxu1 }
 0x384   :  { %v5466_v17 = vpop.f32.mrb[87].mxu1 }
 0x385   :  { %v5467_v11 = vadd.f32 %v5466_v17, %v5465_v1  ;;  %v7469_v16 = vadd.f32 %v5776_v20, %v5464_v48 }
 0x387   :  { %v7471_v59 = vadd.f32 %v5782_v29, %v5467_v11 }
 0x389   :  { %v5468_v55 = vpop.f32.mrb[88].mxu1 }
 0x38a   :  { %v5469_v37 = vpop.f32.mrb[89].mxu1 }
 0x38b   :  { %v5470_v38 = vadd.f32 %v5469_v37, %v5468_v55  ;;  %v5471_v0 = vpop.f32.mrb[90].mxu1  ;;  %v4566_v55 = vld [vmem:[#allocation4 + $0x30] sm:$0xff] }
 0x38c   :  { %v5472_v14 = vpop.f32.mrb[91].mxu1 }
 0x38d   :  { %v5473_v2 = vadd.f32 %v5472_v14, %v5471_v0  ;;  %v7473_v39 = vadd.f32 %v5791_v47, %v5470_v38 }
 0x38f   :  { %v7475_v46 = vadd.f32 %v5797_v43, %v5473_v2 }
 0x391   :  { %v5474_v57 = vpop.f32.mrb[92].mxu1 }
 0x392   :  { %v5475_v3 = vpop.f32.mrb[93].mxu1 }
 0x393   :  { %v5476_v54 = vadd.f32 %v5475_v3, %v5474_v57  ;;  %v5477_v30 = vpop.f32.mrb[94].mxu1 }
 0x394   :  { %v5478_v28 = vpop.f32.mrb[95].mxu1 }
 0x395   :  { %v5479_v10 = vadd.f32 %v5478_v28, %v5477_v30  ;;  %v7477_v20 = vadd.f32 %v5788_v61, %v5476_v54  ;;  %v4565_v28 = vld [vmem:[#allocation4 + $0x28] sm:$0xff] }
 0x397   :  { %v7479_v29 = vadd.f32 %v5794_v50, %v5479_v10 }
 0x399   :  { %v5674_v35 = vpop.f32.mrb[48].mxu1 }
 0x39a   :  { %v5754_v49 = vadd.f32 %v7448_v42, %v5674_v35  ;;  %v4435_v12 = vpop.f32.mrb[49].mxu1 }
 0x39b   :  { %v5757_v21 = vadd.f32 %v7442_v63, %v4435_v12  ;;  %v5675_v47 = vpop.f32.mrb[50].mxu1 }
 0x39c   :  { %v4523_v58 = vmul.f32 %v5754_v49, %v7481_v33  ;;  %v5760_v8 = vadd.f32 %v7451_v62, %v5675_v47  ;;  %v4438_v43 = vpop.f32.mrb[51].mxu1  ;;  %v4561_v62 = vld [vmem:[#allocation4 + $0x8] sm:$0xff] }
 0x39d   :  { %v4521_v6 = vmul.f32 %v5757_v21, %v7481_v33  ;;  %v5763_v45 = vadd.f32 %v7445_v23, %v4438_v43 }
 0x39e   :  { %v4546_v26 = vadd.f32 %v7484_v60, %v4523_v58  ;;  %v4524_v42 = vmul.f32 %v5760_v8, %v7481_v33 }
 0x39f   :  { %v4544_v44 = vadd.f32 %v7484_v60, %v4521_v6  ;;  %v4522_v63 = vmul.f32 %v5763_v45, %v7481_v33 }
 0x3a0   :  { %v4578_v24 = vadd.f32 %v4562_v7, %v4546_v26  ;;  %v4547_v31 = vadd.f32 %v7484_v60, %v4524_v42 }
 0x3a1   :  { %v4576_v4 = vadd.f32 %v4560_v15, %v4544_v44  ;;  %v4545_v61 = vadd.f32 %v7484_v60, %v4522_v63  ;;  %v5678_v53 = vpop.f32.mrb[52].mxu1  ;;  %v4570_v63 = vld [vmem:[#allocation4 + $0x50] sm:$0xff] }
 0x3a2   :  { %v4594_v27 = vmul.f32 0.01, %v4578_v24  ;;  %v4579_v23 = vadd.f32 %v4563_v32, %v4547_v31  ;;  %v5766_v50 = vadd.f32 %v5765_v34, %v5678_v53  ;;  %v4451_v56 = vpop.f32.mrb[53].mxu1 }
 0x3a3   :  { %v4592_v22 = vmul.f32 0.01, %v4576_v4  ;;  %v4577_v13 = vadd.f32 %v4561_v62, %v4545_v61  ;;  %v5769_v40 = vadd.f32 %v7454_v5, %v4451_v56  ;;  %v5679_v19 = vpop.f32.mrb[54].mxu1  ;;  %v4564_v5 = vld [vmem:[#allocation4 + $0x20] sm:$0xff]  ;;  %v4569_v56 = vld [vmem:[#allocation4 + $0x48] sm:$0xff] }
 0x3a4   :  { %v4610_v51 = vmax.f32 %v4578_v24, %v4594_v27  ;;  %v4595_v41 = vmul.f32 0.01, %v4579_v23  ;;  %v4527_v9 = vmul.f32 %v5766_v50, %v7481_v33  ;;  %v5772_v48 = vadd.f32 %v7463_v18, %v5679_v19  ;;  %v4454_v1 = vpop.f32.mrb[55].mxu1  ;;  %v4567_v18 = vld [vmem:[#allocation4 + $0x38] sm:$0xff] }
 0x3a5   :  { %v4608_v17 = vmax.f32 %v4576_v4, %v4592_v22  ;;  %v4593_v11 = vmul.f32 0.01, %v4577_v13  ;;  %v4525_v37 = vmul.f32 %v5769_v40, %v7481_v33  ;;  %v5775_v34 = vadd.f32 %v7457_v52, %v4454_v1 }
 0x3a6   :  { %4626 = vst [vmem:[#allocation16 + $0x10] sm:$0xff] %v4610_v51  ;;  %v4611_v38 = vmax.f32 %v4579_v23, %v4595_v41  ;;  %v4550_v0 = vadd.f32 %v7484_v60, %v4527_v9  ;;  %v4528_v14 = vmul.f32 %v5772_v48, %v7481_v33 }
 0x3a7   :  { %4624 = vst [vmem:[#allocation16] sm:$0xff] %v4608_v17  ;;  %v4609_v2 = vmax.f32 %v4577_v13, %v4593_v11  ;;  %v4548_v57 = vadd.f32 %v7484_v60, %v4525_v37  ;;  %v4526_v3 = vmul.f32 %v5775_v34, %v7481_v33 }
 0x3a8   :  { %4627 = vst [vmem:[#allocation16 + $0x18] sm:$0xff] %v4611_v38  ;;  %v4582_v54 = vadd.f32 %v4566_v55, %v4550_v0  ;;  %v4551_v30 = vadd.f32 %v7484_v60, %v4528_v14  ;;  %v4574_v14 = vld [vmem:[#allocation4 + $0x70] sm:$0xff] }
 0x3a9   :  { %4625 = vst [vmem:[#allocation16 + $0x8] sm:$0xff] %v4609_v2  ;;  %v4580_v52 = vadd.f32 %v4564_v5, %v4548_v57  ;;  %v4549_v10 = vadd.f32 %v7484_v60, %v4526_v3  ;;  %v5682_v35 = vpop.f32.mrb[56].mxu1 }
 0x3aa   :  { %v4598_v49 = vmul.f32 0.01, %v4582_v54  ;;  %v4583_v12 = vadd.f32 %v4567_v18, %v4551_v30  ;;  %v5778_v21 = vadd.f32 %v7469_v16, %v5682_v35  ;;  %v4467_v47 = vpop.f32.mrb[57].mxu1  ;;  %v4573_v35 = vld [vmem:[#allocation4 + $0x68] sm:$0xff] }
 0x3ab   :  { %v4596_v58 = vmul.f32 0.01, %v4580_v52  ;;  %v4581_v8 = vadd.f32 %v4565_v28, %v4549_v10  ;;  %v5781_v43 = vadd.f32 %v7465_v36, %v4467_v47  ;;  %v5683_v7 = vpop.f32.mrb[58].mxu1  ;;  %v4568_v36 = vld [vmem:[#allocation4 + $0x40] sm:$0xff] }
 0x3ac   :  { %v4614_v6 = vmax.f32 %v4582_v54, %v4598_v49  ;;  %v4599_v45 = vmul.f32 0.01, %v4583_v12  ;;  %v4531_v26 = vmul.f32 %v5778_v21, %v7481_v33  ;;  %v5784_v15 = vadd.f32 %v7471_v59, %v5683_v7  ;;  %v4470_v42 = vpop.f32.mrb[59].mxu1  ;;  %v4571_v59 = vld [vmem:[#allocation4 + $0x58] sm:$0xff] }
 0x3ad   :  { %v4612_v44 = vmax.f32 %v4580_v52, %v4596_v58  ;;  %v4597_v32 = vmul.f32 0.01, %v4581_v8  ;;  %v4529_v24 = vmul.f32 %v5781_v43, %v7481_v33  ;;  %v5787_v16 = vadd.f32 %v7467_v25, %v4470_v42 }
 0x3ae   :  { %4630 = vst [vmem:[#allocation16 + $0x30] sm:$0xff] %v4614_v6  ;;  %v4615_v31 = vmax.f32 %v4583_v12, %v4599_v45  ;;  %v4554_v62 = vadd.f32 %v7484_v60, %v4531_v26  ;;  %v4532_v4 = vmul.f32 %v5784_v15, %v7481_v33 }
 0x3af   :  { %4628 = vst [vmem:[#allocation16 + $0x20] sm:$0xff] %v4612_v44  ;;  %v4613_v61 = vmax.f32 %v4581_v8, %v4597_v32  ;;  %v4552_v53 = vadd.f32 %v7484_v60, %v4529_v24  ;;  %v4530_v27 = vmul.f32 %v5787_v16, %v7481_v33 }
 0x3b0   :  { %4631 = vst [vmem:[#allocation16 + $0x38] sm:$0xff] %v4615_v31  ;;  %v4586_v23 = vadd.f32 %v4570_v63, %v4554_v62  ;;  %v4555_v50 = vadd.f32 %v7484_v60, %v4532_v4 }
 0x3b1   :  { %4629 = vst [vmem:[#allocation16 + $0x28] sm:$0xff] %v4613_v61  ;;  %v4584_v25 = vadd.f32 %v4568_v36, %v4552_v53  ;;  %v4553_v22 = vadd.f32 %v7484_v60, %v4530_v27  ;;  %v5686_v13 = vpop.f32.mrb[60].mxu1 }
 0x3b2   :  { %v4602_v40 = vmul.f32 0.01, %v4586_v23  ;;  %v4587_v19 = vadd.f32 %v4571_v59, %v4555_v50  ;;  %v5790_v51 = vadd.f32 %v7477_v20, %v5686_v13  ;;  %v4483_v41 = vpop.f32.mrb[61].mxu1 }
 0x3b3   :  { %v4600_v9 = vmul.f32 0.01, %v4584_v25  ;;  %v4585_v48 = vadd.f32 %v4569_v56, %v4553_v22  ;;  %v5793_v1 = vadd.f32 %v7473_v39, %v4483_v41  ;;  %v5687_v17 = vpop.f32.mrb[62].mxu1  ;;  %v4572_v39 = vld [vmem:[#allocation4 + $0x60] sm:$0xff] }
 0x3b4   :  { %v4618_v11 = vmax.f32 %v4586_v23, %v4602_v40  ;;  %v4603_v55 = vmul.f32 0.01, %v4587_v19  ;;  %v4535_v37 = vmul.f32 %v5790_v51, %v7481_v33  ;;  %v5796_v34 = vadd.f32 %v7479_v29, %v5687_v17  ;;  %v4486_v38 = vpop.f32.mrb[63].mxu1  ;;  %v4575_v29 = vld [vmem:[#allocation4 + $0x78] sm:$0xff] }
 0x3b5   :  { %v4616_v0 = vmax.f32 %v4584_v25, %v4600_v9  ;;  %v4601_v5 = vmul.f32 0.01, %v4585_v48  ;;  %v4533_v2 = vmul.f32 %v5793_v1, %v7481_v33  ;;  %v5799_v20 = vadd.f32 %v7475_v46, %v4486_v38 }
 0x3b6   :  { %4634 = vst [vmem:[#allocation16 + $0x50] sm:$0xff] %v4618_v11  ;;  %v4619_v57 = vmax.f32 %v4587_v19, %v4603_v55  ;;  %v4558_v18 = vadd.f32 %v7484_v60, %v4535_v37  ;;  %v4536_v3 = vmul.f32 %v5796_v34, %v7481_v33 }
 0x3b7   :  { %4632 = vst [vmem:[#allocation16 + $0x40] sm:$0xff] %v4616_v0  ;;  %v4617_v54 = vmax.f32 %v4585_v48, %v4601_v5  ;;  %v4556_v30 = vadd.f32 %v7484_v60, %v4533_v2  ;;  %v4534_v28 = vmul.f32 %v5799_v20, %v7481_v33 }
 0x3b8   :  { %4635 = vst [vmem:[#allocation16 + $0x58] sm:$0xff] %v4619_v57  ;;  %v4590_v52 = vadd.f32 %v4574_v14, %v4558_v18  ;;  %v4559_v10 = vadd.f32 %v7484_v60, %v4536_v3 }
 0x3b9   :  { %4633 = vst [vmem:[#allocation16 + $0x48] sm:$0xff] %v4617_v54  ;;  %v4588_v46 = vadd.f32 %v4572_v39, %v4556_v30  ;;  %v4557_v49 = vadd.f32 %v7484_v60, %v4534_v28 }
 0x3ba   :  { %v4606_v12 = vmul.f32 0.01, %v4590_v52  ;;  %v4591_v21 = vadd.f32 %v4575_v29, %v4559_v10 }
 0x3bb   :  { %v4604_v47 = vmul.f32 0.01, %v4588_v46  ;;  %v4589_v58 = vadd.f32 %v4573_v35, %v4557_v49 }
 0x3bc   :  { %v4622_v8 = vmax.f32 %v4590_v52, %v4606_v12  ;;  %v4607_v43 = vmul.f32 0.01, %v4591_v21 }
 0x3bd   :  { %v4620_v7 = vmax.f32 %v4588_v46, %v4604_v47  ;;  %v4605_v6 = vmul.f32 0.01, %v4589_v58 }
 0x3be   :  { %4638 = vst [vmem:[#allocation16 + $0x70] sm:$0xff] %v4622_v8  ;;  %v4623_v33 = vmax.f32 %v4591_v21, %v4607_v43 }
 0x3bf   :  { %4636 = vst [vmem:[#allocation16 + $0x60] sm:$0xff] %v4620_v7  ;;  %v4621_v45 = vmax.f32 %v4589_v58, %v4605_v6 }
 0x3c0   :  { %4639 = vst [vmem:[#allocation16 + $0x78] sm:$0xff] %v4623_v33 }
 0x3c1   :  { %4637 = vst [vmem:[#allocation16 + $0x68] sm:$0xff] %v4621_v45 }
 0x3c2   :  { %6275 = shalt.err (!%p6272_p4)
}
 0x3c3   :  { %s6276_s23 = scalar_lea.hbm %s7554_s7, 2048 }
 0x3c4   :  { %p6277_p5 = scmp.ne.s32.totalorder %s7554_s7, %s6276_s23  ;;  %p6280_p6 = scmp.lt.u32.totalorder %s6276_s23, %s7554_s7 }
 0x3c6   :  { %p6282_p7 = pnand %p6280_p6, %p6277_p5 }
 0x3c8   :  { %6285 = shalt.err (!%p6282_p7)
}
 0x3c9   :  { %4651 = dma.vmem_to_hbm [thread:$0]  %s4646_s0, 2048, %s7554_s7, [#allocation6], %s6302_s5, %s6302_s5, %s6303_s18  }
 0x3ca   :  { %6294 = dma.done.wait [#allocation6], 2048  }
 0x3cb   :  { %6295 = vsyncadd [#allocation6], 4294965248 }
 0x3cc   :  { %4655 = vsyncpa [#allocation5], 1 }
 0x3cd   :  { %4656 = vsyncpa [#allocation8], 1 }
 0x3ce   :  { %4657 = vsyncpa [#allocation11], 1 }
 0x3cf   :  { %4658 = vsyncpa [#allocation14], 1 }
 0x3d0   :  { %4659 = vsyncpa [#allocation6], 1 }

// kernel: forward.2
= control target key start
LH: loop header
LB: loop body
LE: loop exit
PB: predicated region body
PF: predicated region fallthrough
CT: control target
= control target key end

     0   :  { %14 = vsyncpa [#allocation5], 0  ;;  %s8088_s0 = inlined_call_operand.hbm [shape: f32[2,9,9,256], index: 0, kind: input, shape index: {}]   ;;  %s8089_s1 = inlined_call_operand.hbm [shape: bf16[576,256], index: 1, kind: input, shape index: {}]   ;;  %s8090_s2 = inlined_call_operand.hbm [shape: bf16[3,384,128], index: 2, kind: input, shape index: {}]   ;;  %s8091_s3 = inlined_call_operand.hbm [shape: f32[1,128], index: 3, kind: input, shape index: {}]   ;;  %s8092_s4 = inlined_call_operand.hbm [shape: f32[1,128], index: 4, kind: input, shape index: {}]   ;;  %s8093_s5 = inlined_call_operand.hbm [shape: f32[1,128], index: 5, kind: input, shape index: {}]   ;;  %s8094_s6 = inlined_call_operand.hbm [shape: f32[1,128], index: 6, kind: input, shape index: {}]   ;;  %s8095_s7 = inlined_call_operand.hbm [shape: f32[1,128], index: 7, kind: input, shape index: {}]   ;;  %s8096_s8 = inlined_call_operand.hbm [shape: f32[1,128], index: 8, kind: input, shape index: {}]   ;;  %s8097_s9 = inlined_call_operand.hbm [shape: f32[2,8,8,128], index: 9, kind: output, shape index: {}]  }
   0x1   :  { %15 = vsyncpa [#allocation8], 0 }
   0x2   :  { %16 = vsyncpa [#allocation11], 0 }
   0x3   :  { %17 = vsyncpa [#allocation14], 0 }
   0x4   :  { %18 = vsyncpa [#allocation17], 0 }
   0x5   :  { %19 = vsyncpa [#allocation6], 0  ;;  %s6857_s30 = smov [#allocation7]   ;;  %s6625_s13 = scalar_lea.hbm %s8089_s1, 9216 }
   0x6   :  { %s37_s10 = sshll.u32 %s6857_s30, 4  ;;  %p6626_p0 = scmp.ne.s32.totalorder %s8089_s1, %s6625_s13  ;;  %s38_s10 = int_to_ptr.vmem [resolvable:$true] %s37_s10 }
   0x7   :  { %p6629_p1 = scmp.lt.u32.totalorder %s6625_s13, %s8089_s1 }
   0x9   :  { %p6631_p2 = pnand %p6629_p1, %p6626_p0 }
   0xb   :  { %6634 = shalt.err (!%p6631_p2)
}
   0xc   :  { %s6635_s18 = scalar_lea.vmem %s38_s10, 9216  ;;  %p6640_p4 = scmp.lt.s32.totalorder %s38_s10, %s38_s10 }
   0xd   :  { %p6636_p3 = scmp.ne.s32.totalorder %s38_s10, %s6635_s18  ;;  %p6641_p5 = scmp.lt.s32.totalorder %s6635_s18, %s6635_s18 }
   0xf   :  { %p6642_p6 = por %p6641_p5, %p6640_p4 }
  0x11   :  { %p6643_p7 = pnand %p6642_p6, %p6636_p3 }
  0x13   :  { %6646 = shalt.err (!%p6643_p7)
}
  0x14   :  { %s6858_s19 = smov 128   ;;  %s6859_s20 = smov 8  }
  0x15   :  { %43 = dma.hbm_to_vmem [thread:$0]  %s8089_s1, 9216, %s38_s10, [#allocation8], %s6858_s19, %s6858_s19, %s6859_s20  }
  0x16   :  { %s6860_s23 = smov [#allocation10]   ;;  %s6861_s25 = smov [#allocation13]  }
  0x17   :  { %s62_s24 = sshll.u32 %s6860_s23, 4  ;;  %s82_s26 = sshll.u32 %s6861_s25, 4  ;;  %s63_s24 = int_to_ptr.vmem [resolvable:$true] %s62_s24  ;;  %s83_s26 = int_to_ptr.vmem [resolvable:$true] %s82_s26 }
  0x18   :  { %s6647_s29 = scalar_lea.hbm %s8091_s3, 16 }
  0x19   :  { %p6648_p8 = scmp.ne.s32.totalorder %s8091_s3, %s6647_s29  ;;  %p6651_p9 = scmp.lt.u32.totalorder %s6647_s29, %s8091_s3 }
  0x1b   :  { %p6653_p10 = pnand %p6651_p9, %p6648_p8 }
  0x1d   :  { %6656 = shalt.err (!%p6653_p10)
}
  0x1e   :  { %s6657_s1 = scalar_lea.vmem %s63_s24, 16  ;;  %s6661_s10 = scalar_lea.vmem %s63_s24, 32 }
  0x1f   :  { %p6658_p11 = scmp.ne.s32.totalorder %s63_s24, %s6657_s1  ;;  %p6662_p12 = scmp.lt.s32.totalorder %s63_s24, %s63_s24 }
  0x20   :  { %p6663_p13 = scmp.lt.s32.totalorder %s6661_s10, %s6657_s1 }
  0x22   :  { %p6664_p0 = por %p6663_p13, %p6662_p12 }
  0x24   :  { %p6665_p1 = pnand %p6664_p0, %p6658_p11 }
  0x26   :  { %6668 = shalt.err (!%p6665_p1)
}
  0x27   :  { %65 = dma.hbm_to_vmem [thread:$0]  %s8091_s3, 16, %s63_s24, [#allocation11]  }
  0x28   :  { %s6669_s18 = scalar_lea.hbm %s8093_s5, 16 }
  0x29   :  { %p6670_p2 = scmp.ne.s32.totalorder %s8093_s5, %s6669_s18  ;;  %p6673_p3 = scmp.lt.u32.totalorder %s6669_s18, %s8093_s5 }
  0x2b   :  { %p6675_p4 = pnand %p6673_p3, %p6670_p2 }
  0x2d   :  { %6678 = shalt.err (!%p6675_p4)
}
  0x2e   :  { %s6679_s27 = scalar_lea.vmem %s83_s26, 16  ;;  %s6683_s28 = scalar_lea.vmem %s83_s26, 32 }
  0x2f   :  { %p6680_p5 = scmp.ne.s32.totalorder %s83_s26, %s6679_s27  ;;  %p6684_p6 = scmp.lt.s32.totalorder %s83_s26, %s83_s26 }
  0x30   :  { %p6685_p7 = scmp.lt.s32.totalorder %s6683_s28, %s6679_s27 }
  0x32   :  { %p6686_p8 = por %p6685_p7, %p6684_p6 }
  0x34   :  { %p6687_p9 = pnand %p6686_p8, %p6680_p5 }
  0x36   :  { %6690 = shalt.err (!%p6687_p9)
}
  0x37   :  { %85 = dma.hbm_to_vmem [thread:$0]  %s8093_s5, 16, %s83_s26, [#allocation14]  }
  0x38   :  { %s6862_s29 = smov [#allocation16]   ;;  %s6863_s11 = smov [#allocation4]  }
  0x39   :  { %s102_s30 = sshll.u32 %s6862_s29, 4  ;;  %s25_s12 = sshll.u32 %s6863_s11, 4  ;;  %s103_s30 = int_to_ptr.vmem [resolvable:$true] %s102_s30  ;;  %s26_s12 = int_to_ptr.vmem [resolvable:$true] %s25_s12 }
  0x3a   :  { %s6691_s10 = scalar_lea.hbm %s8095_s7, 16 }
  0x3b   :  { %p6692_p10 = scmp.ne.s32.totalorder %s8095_s7, %s6691_s10  ;;  %p6695_p11 = scmp.lt.u32.totalorder %s6691_s10, %s8095_s7 }
  0x3d   :  { %p6697_p12 = pnand %p6695_p11, %p6692_p10 }
  0x3f   :  { %6700 = shalt.err (!%p6697_p12)
}
  0x40   :  { %s6701_s5 = scalar_lea.vmem %s103_s30, 16  ;;  %s6705_s26 = scalar_lea.vmem %s103_s30, 32 }
  0x41   :  { %p6702_p13 = scmp.ne.s32.totalorder %s103_s30, %s6701_s5  ;;  %p6706_p0 = scmp.lt.s32.totalorder %s103_s30, %s103_s30 }
  0x42   :  { %p6707_p1 = scmp.lt.s32.totalorder %s6705_s26, %s6701_s5 }
  0x44   :  { %p6708_p2 = por %p6707_p1, %p6706_p0 }
  0x46   :  { %p6709_p3 = pnand %p6708_p2, %p6702_p13 }
  0x48   :  { %6712 = shalt.err (!%p6709_p3)
}
  0x49   :  { %105 = dma.hbm_to_vmem [thread:$0]  %s8095_s7, 16, %s103_s30, [#allocation17]  }
  0x4a   :  { %s6713_s25 = scalar_lea.hbm %s8088_s0, 9216 }
  0x4b   :  { %p6714_p4 = scmp.ne.s32.totalorder %s8088_s0, %s6713_s25  ;;  %p6717_p5 = scmp.lt.u32.totalorder %s6713_s25, %s8088_s0 }
  0x4d   :  { %p6719_p6 = pnand %p6717_p5, %p6714_p4 }
  0x4f   :  { %6722 = shalt.err (!%p6719_p6)
}
  0x50   :  { %s6723_s29 = scalar_lea.vmem %s26_s12, 9216  ;;  %p6728_p8 = scmp.lt.s32.totalorder %s26_s12, %s26_s12 }
  0x51   :  { %p6724_p7 = scmp.ne.s32.totalorder %s26_s12, %s6723_s29  ;;  %p6729_p9 = scmp.lt.s32.totalorder %s6723_s29, %s6723_s29 }
  0x53   :  { %p6730_p10 = por %p6729_p9, %p6728_p8 }
  0x55   :  { %p6731_p11 = pnand %p6730_p10, %p6724_p7 }
  0x57   :  { %6734 = shalt.err (!%p6731_p11)
}
  0x58   :  { %s6864_s7 = smov 256   ;;  %s6865_s30 = smov 16  }
  0x59   :  { %31 = dma.hbm_to_vmem [thread:$0]  %s8088_s0, 9216, %s26_s12, [#allocation5], %s6864_s7, %s6864_s7, %s6865_s30  }
  0x5a   :  { %s6866_s1 = smov [#allocation9]   ;;  %s6735_s16 = scalar_lea.hbm %s8090_s2, 9216 }
  0x5b   :  { %s49_s10 = sshll.u32 %s6866_s1, 4  ;;  %p6736_p12 = scmp.ne.s32.totalorder %s8090_s2, %s6735_s16  ;;  %s50_s10 = int_to_ptr.vmem [resolvable:$true] %s49_s10 }
  0x5c   :  { %p6739_p13 = scmp.lt.u32.totalorder %s6735_s16, %s8090_s2 }
  0x5e   :  { %p6741_p0 = pnand %p6739_p13, %p6736_p12 }
  0x60   :  { %6744 = shalt.err (!%p6741_p0)
}
  0x61   :  { %s6745_s21 = scalar_lea.vmem %s50_s10, 9216  ;;  %p6750_p2 = scmp.lt.s32.totalorder %s50_s10, %s50_s10 }
  0x62   :  { %p6746_p1 = scmp.ne.s32.totalorder %s50_s10, %s6745_s21  ;;  %p6751_p3 = scmp.lt.s32.totalorder %s6745_s21, %s6745_s21 }
  0x64   :  { %p6752_p4 = por %p6751_p3, %p6750_p2 }
  0x66   :  { %p6753_p5 = pnand %p6752_p4, %p6746_p1 }
  0x68   :  { %6756 = shalt.err (!%p6753_p5)
}
  0x69   :  { %s6867_s0 = smov 64   ;;  %s6868_s12 = smov 4  }
  0x6a   :  { %55 = dma.hbm_to_vmem [thread:$0]  %s8090_s2, 9216, %s50_s10, [#allocation8], %s6867_s0, %s6867_s0, %s6868_s12  }
  0x6b   :  { %s6869_s25 = smov [#allocation12]   ;;  %s6870_s28 = smov [#allocation15]  }
  0x6c   :  { %s72_s27 = sshll.u32 %s6869_s25, 4  ;;  %s92_s3 = sshll.u32 %s6870_s28, 4  ;;  %s73_s27 = int_to_ptr.vmem [resolvable:$true] %s72_s27  ;;  %s93_s3 = int_to_ptr.vmem [resolvable:$true] %s92_s3 }
  0x6d   :  { %s6757_s7 = scalar_lea.hbm %s8092_s4, 16 }
  0x6e   :  { %p6758_p6 = scmp.ne.s32.totalorder %s8092_s4, %s6757_s7  ;;  %p6761_p7 = scmp.lt.u32.totalorder %s6757_s7, %s8092_s4 }
  0x70   :  { %p6763_p8 = pnand %p6761_p7, %p6758_p6 }
  0x72   :  { %6766 = shalt.err (!%p6763_p8)
}
  0x73   :  { %s6767_s2 = scalar_lea.vmem %s73_s27, 16  ;;  %s6771_s10 = scalar_lea.vmem %s73_s27, 32 }
  0x74   :  { %p6768_p9 = scmp.ne.s32.totalorder %s73_s27, %s6767_s2  ;;  %p6772_p10 = scmp.lt.s32.totalorder %s73_s27, %s73_s27 }
  0x75   :  { %p6773_p11 = scmp.lt.s32.totalorder %s6771_s10, %s6767_s2 }
  0x77   :  { %p6774_p12 = por %p6773_p11, %p6772_p10 }
  0x79   :  { %p6775_p13 = pnand %p6774_p12, %p6768_p9 }
  0x7b   :  { %6778 = shalt.err (!%p6775_p13)
}
  0x7c   :  { %75 = dma.hbm_to_vmem [thread:$0]  %s8092_s4, 16, %s73_s27, [#allocation11]  }
  0x7d   :  { %s6779_s5 = scalar_lea.hbm %s8094_s6, 16 }
  0x7e   :  { %p6780_p0 = scmp.ne.s32.totalorder %s8094_s6, %s6779_s5  ;;  %p6783_p1 = scmp.lt.u32.totalorder %s6779_s5, %s8094_s6 }
  0x80   :  { %p6785_p2 = pnand %p6783_p1, %p6780_p0 }
  0x82   :  { %6788 = shalt.err (!%p6785_p2)
}
  0x83   :  { %s6789_s22 = scalar_lea.vmem %s93_s3, 16  ;;  %s6793_s23 = scalar_lea.vmem %s93_s3, 32 }
  0x84   :  { %p6790_p3 = scmp.ne.s32.totalorder %s93_s3, %s6789_s22  ;;  %p6794_p4 = scmp.lt.s32.totalorder %s93_s3, %s93_s3 }
  0x85   :  { %p6795_p5 = scmp.lt.s32.totalorder %s6793_s23, %s6789_s22 }
  0x87   :  { %p6796_p6 = por %p6795_p5, %p6794_p4 }
  0x89   :  { %p6797_p7 = pnand %p6796_p6, %p6790_p3 }
  0x8b   :  { %6800 = shalt.err (!%p6797_p7)
}
  0x8c   :  { %95 = dma.hbm_to_vmem [thread:$0]  %s8094_s6, 16, %s93_s3, [#allocation14]  }
  0x8d   :  { %s6871_s27 = smov [#allocation18]   ;;  %s6801_s7 = scalar_lea.hbm %s8096_s8, 16 }
  0x8e   :  { %s112_s28 = sshll.u32 %s6871_s27, 4  ;;  %p6802_p8 = scmp.ne.s32.totalorder %s8096_s8, %s6801_s7  ;;  %s113_s28 = int_to_ptr.vmem [resolvable:$true] %s112_s28 }
  0x8f   :  { %p6805_p9 = scmp.lt.u32.totalorder %s6801_s7, %s8096_s8 }
  0x91   :  { %p6807_p10 = pnand %p6805_p9, %p6802_p8 }
  0x93   :  { %6810 = shalt.err (!%p6807_p10)
}
  0x94   :  { %s6811_s2 = scalar_lea.vmem %s113_s28, 16  ;;  %s6815_s6 = scalar_lea.vmem %s113_s28, 32 }
  0x95   :  { %p6812_p11 = scmp.ne.s32.totalorder %s113_s28, %s6811_s2  ;;  %p6816_p12 = scmp.lt.s32.totalorder %s113_s28, %s113_s28 }
  0x96   :  { %p6817_p13 = scmp.lt.s32.totalorder %s6815_s6, %s6811_s2 }
  0x98   :  { %p6818_p0 = por %p6817_p13, %p6816_p12 }
  0x9a   :  { %p6819_p1 = pnand %p6818_p0, %p6812_p11 }
  0x9c   :  { %6822 = shalt.err (!%p6819_p1)
}
  0x9d   :  { %115 = dma.hbm_to_vmem [thread:$0]  %s8096_s8, 16, %s113_s28, [#allocation17]  }
  0x9e   :  { %6845 = dma.done.wait [#allocation5], 9216  }
  0x9f   :  { %6846 = vsyncadd [#allocation5], 4294958080 }
  0xa0   :  { %6847 = dma.done.wait [#allocation8], 18432  }
  0xa1   :  { %6848 = vsyncadd [#allocation8], 4294948864 }
  0xa2   :  { %6849 = dma.done.wait [#allocation11], 32  }
  0xa3   :  { %6850 = vsyncadd [#allocation11], 4294967264 }
  0xa4   :  { %6851 = dma.done.wait [#allocation14], 32  }
  0xa5   :  { %6852 = vsyncadd [#allocation14], 4294967264 }
  0xa6   :  { %6853 = dma.done.wait [#allocation17], 32  }
  0xa7   :  { %6854 = vsyncadd [#allocation17], 4294967264  ;;  %v629_v0 = vld [vmem:[#allocation4 + $0x8] sm:$0xff]  ;;  %v920_v17 = vld [vmem:[#allocation4 + $0x38] sm:$0x1]  ;;  %vm176_vm3 = vcmask 519168  }
  0xa8   :  { %v631_v1 = vld [vmem:[#allocation4 + $0x48] sm:$0xff]  ;;  %v7037_v3 = vpack.c.bf16 %v629_v0, %v629_v0  ;;  %v918_v20 = vld [vmem:[#allocation4 + $0x18] sm:$0x1]  ;;  %v5751_v22 = vpack.c.bf16 %v920_v17, %v920_v17  ;;  %v6344_v25 = vld [vmem:[#allocation7 + $0x14] ss:$8 sps:$4 sm:$0xff]   ;;  %vm225_vm4 = vcmask 1043968  }
  0xa9   :  { %v630_v2 = vld [vmem:[#allocation4 + $0x28] sm:$0xff]  ;;  %v7039_v4 = vpack.c.bf16 %v631_v1, %v631_v1  ;;  %v5749_v24 = vpack.c.bf16 %v918_v20, %v918_v20  ;;  %vm370_vm0 = vsmask.f32 3328  ;;  %vm371_vm1 = vsmask.f32 7440  ;;  %s6873_s8 = smov [#allocation19]  }
  0xaa   :  { %v632_v5 = vld [vmem:[#allocation4 + $0x68] sm:$0xff]  ;;  %709 = vrot.lane.b32.xlu0 %v7037_v3, %s6867_s0  ;;  %v7045_v6 = vpack.c.bf16 %v630_v2, %v630_v2  ;;  %v6346_v28 = vld [vmem:[#allocation7 + $0x10] ss:$8 sps:$4 sm:$0xff]   ;;  %v7065_v39 = vshll.u32 %v5751_v22, 16  ;;  %v6350_v58 = vld [vmem:[#allocation7 + $0x34] ss:$8 sps:$4 sm:$0xff]  }
  0xab   :  { %713 = vrot.lane.b32.xlu1 %v7039_v4, %s6867_s0  ;;  %v7047_v7 = vpack.c.bf16 %v632_v5, %v632_v5  ;;  %v634_v8 = vld [vmem:[#allocation4 + $0xa8] sm:$0xff]  ;;  %v7067_v44 = vshll.u32 %v5749_v24, 16  ;;  %v924_v45 = vld [vmem:[#allocation4 + $0x78] sm:$0x1]  ;;  %vm7099_vm2 = vmor %vm370_vm0, %vm371_vm1  ;;  %vm2494_vm5 = vcmask 523264   ;;  %vm3129_vm6 = vcmask 1043456  }
  0xac   :  { %v633_v9 = vld [vmem:[#allocation4 + $0x88] sm:$0xff]  ;;  %v7053_v15 = vpack.c.bf16 %v634_v8, %v634_v8  ;;  %v5755_v55 = vpack.c.bf16 %v924_v45, %v924_v45  ;;  %v922_v56 = vld [vmem:[#allocation4 + $0x58] sm:$0x1]  ;;  %v1071_v61 = vrot.slane %v7065_v39, 5  ;;  %vm3130_vm7 = vsmask.f32 7938  ;;  %vm7515_vm9 = vmand %vm3129_vm6, %vm370_vm0 }
  0xad   :  { %v636_v10 = vld [vmem:[#allocation4 + $0xe8] sm:$0xff]  ;;  %v7055_v16 = vpack.c.bf16 %v633_v9, %v633_v9  ;;  %v1057_v2 = vrot.slane %v7067_v44, 5  ;;  %v6352_v9 = vld [vmem:[#allocation7 + $0x30] ss:$8 sps:$4 sm:$0xff]   ;;  %v6356_v44 = vld [vmem:[#allocation7 + $0x54] ss:$8 sps:$4 sm:$0xff]  }
  0xae   :  { %v635_v11 = vld [vmem:[#allocation4 + $0xc8] sm:$0xff]  ;;  %711 = vrot.lane.b32.xlu0 %v7045_v6, %s6867_s0  ;;  %v7057_v29 = vpack.c.bf16 %v636_v10, %v636_v10  ;;  %v928_v24 = vld [vmem:[#allocation4 + $0xb8] sm:$0x1]  ;;  %vm7508_vm8 = vmand %vm3129_vm6, %vm3130_vm7  ;;  %vm3334_vm10 = vcmask 1040384   ;;  %vm3335_vm11 = vsmask.f32 256 }
  0xaf   :  { %v6341_v12 = vld [vmem:[#allocation7 + $0x4] ss:$8 sps:$4 sm:$0xff]   ;;  %v6343_v13 = vld [vmem:[#allocation7] ss:$8 sps:$4 sm:$0xff]   ;;  %715 = vrot.lane.b32.xlu1 %v7047_v7, %s6867_s0  ;;  %v7063_v35 = vpack.c.bf16 %v635_v11, %v635_v11  ;;  %vm3385_vm12 = vcmask 1043459   ;;  %vm7537_vm14 = vmand %vm3334_vm10, %vm3335_vm11 }
  0xb0   :  { %v919_v14 = vld [vmem:[#allocation4 + $0x28] sm:$0xfe]  ;;  %2519 = vmatprep.subr.bf16.mxu0 %v6341_v12  ;;  %vm3386_vm13 = vsmask.f32 7950 }
  0xb1   :  { %v5750_v18 = vpack.c.bf16 %v919_v14, %v919_v14  ;;  %v917_v19 = vld [vmem:[#allocation4 + $0x8] sm:$0xfe]  ;;  %2520 = vmatpush1.bf16.msra.mxu0 %v6343_v13  ;;  %v5753_v13 = vpack.c.bf16 %v922_v56, %v922_v56  ;;  %vm7543_vm15 = vmand %vm3385_vm12, %vm3386_vm13 }
  0xb2   :  { %v638_v21 = vld [vmem:[#allocation4 + $0x148] sm:$0xff]  ;;  %v5748_v23 = vpack.c.bf16 %v917_v19, %v917_v19  ;;  %2521 = vmatprep.subr.bf16.mxu0 %v6344_v25  ;;  %717 = vrot.lane.b32.xlu0 %v7055_v16, %s6867_s0 }
  0xb3   :  { %v1060_v26 = vshrl.u32 %v5750_v18, 16  ;;  %v1063_v27 = vshll.u32 %v5750_v18, 16  ;;  %v637_v30 = vld [vmem:[#allocation4 + $0x128] sm:$0xff]  ;;  %719 = vrot.lane.b32.xlu1 %v7053_v15, %s6867_s0  ;;  %v7069_v46 = vpack.c.bf16 %v638_v21, %v638_v21  ;;  %v7087_v18 = vshll.u32 %v5755_v55, 16 }
  0xb4   :  { %v640_v31 = vld [vmem:[#allocation4 + $0x188] sm:$0xff]  ;;  %v1046_v32 = vshrl.u32 %v5748_v23, 16  ;;  %v1049_v33 = vshll.u32 %v5748_v23, 16  ;;  %v7071_v47 = vpack.c.bf16 %v637_v30, %v637_v30 }
  0xb5   :  { %v6347_v34 = vld [vmem:[#allocation7 + $0x24] ss:$8 sps:$4 sm:$0xff]   ;;  %v1062_v37 = vrot.slane %v1060_v26, 4  ;;  %v1065_v38 = vrot.slane %v1063_v27, 5  ;;  %2522 = vmatpush1.bf16.msra.mxu0 %v6346_v28  ;;  %v6349_v50 = vld [vmem:[#allocation7 + $0x20] ss:$8 sps:$4 sm:$0xff]   ;;  %v7073_v53 = vpack.c.bf16 %v640_v31, %v640_v31  ;;  %v5759_v31 = vpack.c.bf16 %v928_v24, %v928_v24 }
  0xb6   :  { %v639_v36 = vld [vmem:[#allocation4 + $0x168] sm:$0xff]  ;;  %v1048_v42 = vrot.slane %v1046_v32, 4  ;;  %v1051_v43 = vrot.slane %v1049_v33, 5  ;;  %2523 = vmatprep.subr.bf16.mxu0 %v6347_v34  ;;  %721 = vrot.lane.b32.xlu0 %v7063_v35, %s6867_s0  ;;  %v926_v27 = vld [vmem:[#allocation4 + $0x98] sm:$0x1] }
  0xb7   :  { %v923_v40 = vld [vmem:[#allocation4 + $0x68] sm:$0xfe]  ;;  %v1066_v49 = vor.u32 %v1065_v38, %v1062_v37  ;;  %v7075_v54 = vpack.c.bf16 %v639_v36, %v639_v36  ;;  %723 = vrot.lane.b32.xlu1 %v7057_v29, %s6867_s0  ;;  %v5757_v33 = vpack.c.bf16 %v926_v27, %v926_v27  ;;  %v1083_v36 = vshll.u32 %v5753_v13, 16 }
  0xb8   :  { %v642_v41 = vld [vmem:[#allocation4 + $0x1c8] sm:$0xff]  ;;  %v5754_v51 = vpack.c.bf16 %v923_v40, %v923_v40  ;;  %v1052_v1 = vor.u32 %v1051_v43, %v1048_v42  ;;  %v1099_v40 = vrot.slane %v7087_v18, 5 }
  0xb9   :  { %v641_v48 = vld [vmem:[#allocation4 + $0x1a8] sm:$0xff]  ;;  %v7081_v59 = vpack.c.bf16 %v642_v41, %v642_v41  ;;  %v1067_v10 = vrot.slane %v1066_v49, 4  ;;  %2524 = vmatpush1.bf16.msra.mxu0 %v6349_v50  ;;  %v7112_v50 = vshll.u32 %v5759_v31, 16 }
  0xba   :  { %v921_v52 = vld [vmem:[#allocation4 + $0x48] sm:$0xfe]  ;;  %v1088_v62 = vshrl.u32 %v5754_v51, 16  ;;  %v1091_v63 = vshll.u32 %v5754_v51, 16  ;;  %v7085_v17 = vpack.c.bf16 %v641_v48, %v641_v48  ;;  %2525 = vmatprep.subr.bf16.mxu0 %v6350_v58  ;;  %725 = vrot.lane.b32.xlu0 %v7071_v47, %s6867_s0  ;;  %v1053_v30 = vrot.slane %v1052_v1, 4 }
  0xbb   :  { %v5752_v57 = vpack.c.bf16 %v921_v52, %v921_v52  ;;  %v644_v60 = vld [vmem:[#allocation4 + $0x208] sm:$0xff]  ;;  %727 = vrot.lane.b32.xlu1 %v7069_v46, %s6867_s0  ;;  %v7110_v45 = vsel %vm7099_vm2, %v1067_v10, %v1071_v61  ;;  %v6358_v51 = vld [vmem:[#allocation7 + $0x50] ss:$8 sps:$4 sm:$0xff]   ;;  %v7118_v58 = vshll.u32 %v5757_v33, 16 }
  0xbc   :  { %v643_v0 = vld [vmem:[#allocation4 + $0x1e8] sm:$0xff]  ;;  %v1090_v11 = vrot.slane %v1088_v62, 4  ;;  %v1093_v12 = vrot.slane %v1091_v63, 5  ;;  %v7093_v22 = vpack.c.bf16 %v644_v60, %v644_v60  ;;  %v7116_v55 = vsel %vm7099_vm2, %v1053_v30, %v1057_v2  ;;  %v932_v60 = vld [vmem:[#allocation4 + $0xf8] sm:$0x1] }
  0xbd   :  { %v1074_v5 = vshrl.u32 %v5752_v57, 16  ;;  %v1077_v8 = vshll.u32 %v5752_v57, 16  ;;  %v6353_v14 = vld [vmem:[#allocation7 + $0x44] ss:$8 sps:$4 sm:$0xff]   ;;  %v7095_v23 = vpack.c.bf16 %v643_v0, %v643_v0  ;;  %2526 = vmatpush1.bf16.msra.mxu0 %v6352_v9  ;;  %v6355_v37 = vld [vmem:[#allocation7 + $0x40] ss:$8 sps:$4 sm:$0xff]   ;;  %v5763_v0 = vpack.c.bf16 %v932_v60, %v932_v60 }
  0xbe   :  { %v927_v21 = vld [vmem:[#allocation4 + $0xa8] sm:$0xfe]  ;;  %v1094_v34 = vor.u32 %v1093_v12, %v1090_v11  ;;  %2527 = vmatprep.subr.bf16.mxu0 %v6353_v14  ;;  %729 = vrot.lane.b32.xlu0 %v7075_v54, %s6867_s0  ;;  %v1085_v9 = vrot.slane %v1083_v36, 5  ;;  %v1127_v2 = vrot.slane %v7112_v50, 5 }
  0xbf   :  { %v1076_v19 = vrot.slane %v1074_v5, 4  ;;  %v1079_v20 = vrot.slane %v1077_v8, 5  ;;  %v5758_v25 = vpack.c.bf16 %v927_v21, %v927_v21  ;;  %v925_v26 = vld [vmem:[#allocation4 + $0x88] sm:$0xfe]  ;;  %731 = vrot.lane.b32.xlu1 %v7073_v53, %s6867_s0  ;;  %v930_v5 = vld [vmem:[#allocation4 + $0xd8] sm:$0x1] }
  0xc0   :  { %v5756_v32 = vpack.c.bf16 %v925_v26, %v925_v26  ;;  %v931_v52 = vld [vmem:[#allocation4 + $0xe8] sm:$0xfe]  ;;  %v1095_v62 = vrot.slane %v1094_v34, 4  ;;  %v1153_v21 = vshll.u32 %v5763_v0, 16  ;;  %v6362_v26 = vld [vmem:[#allocation7 + $0x74] ss:$8 sps:$4 sm:$0xff]  }
  0xc1   :  { %v1116_v38 = vshrl.u32 %v5758_v25, 16  ;;  %v1119_v39 = vshll.u32 %v5758_v25, 16  ;;  %v1080_v41 = vor.u32 %v1079_v20, %v1076_v19  ;;  %2528 = vmatpush1.bf16.msra.mxu0 %v6355_v37  ;;  %v5762_v61 = vpack.c.bf16 %v931_v52, %v931_v52  ;;  %v929_v1 = vld [vmem:[#allocation4 + $0xc8] sm:$0xfe] }
  0xc2   :  { %v1102_v42 = vshrl.u32 %v5756_v32, 16  ;;  %v1105_v43 = vshll.u32 %v5756_v32, 16  ;;  %2529 = vmatprep.subr.bf16.mxu0 %v6356_v44  ;;  %v6359_v11 = vld [vmem:[#allocation7 + $0x64] ss:$8 sps:$4 sm:$0xff]   ;;  %v5760_v12 = vpack.c.bf16 %v929_v1, %v929_v1  ;;  %733 = vrot.lane.b32.xlu0 %v7085_v17, %s6867_s0  ;;  %v6361_v13 = vld [vmem:[#allocation7 + $0x60] ss:$8 sps:$4 sm:$0xff]   ;;  %v5761_v19 = vpack.c.bf16 %v930_v5, %v930_v5 }
  0xc3   :  { %v1118_v48 = vrot.slane %v1116_v38, 4  ;;  %v1121_v49 = vrot.slane %v1119_v39, 5  ;;  %v1081_v8 = vrot.slane %v1080_v41, 4  ;;  %735 = vrot.lane.b32.xlu1 %v7081_v59, %s6867_s0  ;;  %v1144_v14 = vshrl.u32 %v5762_v61, 16  ;;  %v935_v33 = vld [vmem:[#allocation4 + $0x148] sm:$0xfe] }
  0xc4   :  { %v1104_v56 = vrot.slane %v1102_v42, 4  ;;  %v1107_v57 = vrot.slane %v1105_v43, 5  ;;  %v1147_v18 = vshll.u32 %v5762_v61, 16  ;;  %v1113_v20 = vrot.slane %v7118_v58, 5  ;;  %v936_v39 = vld [vmem:[#allocation4 + $0x158] sm:$0x1] }
  0xc5   :  { %v1122_v63 = vor.u32 %v1121_v49, %v1118_v48  ;;  %v1130_v24 = vshrl.u32 %v5760_v12, 16  ;;  %v1133_v25 = vshll.u32 %v5760_v12, 16  ;;  %v7128_v27 = vsel %vm7099_vm2, %v1095_v62, %v1099_v40  ;;  %2530 = vmatpush1.bf16.msra.mxu0 %v6358_v51  ;;  %v933_v44 = vld [vmem:[#allocation4 + $0x128] sm:$0xfe]  ;;  %v934_v48 = vld [vmem:[#allocation4 + $0x138] sm:$0x1] }
  0xc6   :  { %v1108_v10 = vor.u32 %v1107_v57, %v1104_v56  ;;  %v1146_v31 = vrot.slane %v1144_v14, 4  ;;  %v1149_v32 = vrot.slane %v1147_v18, 5  ;;  %v7132_v34 = vsel %vm7099_vm2, %v1081_v8, %v1085_v9  ;;  %2531 = vmatprep.subr.bf16.mxu0 %v6359_v11  ;;  %737 = vrot.lane.b32.xlu0 %v7095_v23, %s6867_s0  ;;  %v6364_v57 = vld [vmem:[#allocation7 + $0x70] ss:$8 sps:$4 sm:$0xff]   ;;  %v6365_v61 = vld [vmem:[#allocation7 + $0x84] ss:$8 sps:$4 sm:$0xff]  }
  0xc7   :  { %v1123_v30 = vrot.slane %v1122_v63, 4  ;;  %v1132_v37 = vrot.slane %v1130_v24, 4  ;;  %v1135_v38 = vrot.slane %v1133_v25, 5  ;;  %739 = vrot.lane.b32.xlu1 %v7093_v22, %s6867_s0  ;;  %v1139_v41 = vshll.u32 %v5761_v19, 16 }
  0xc8   :  { %v1109_v36 = vrot.slane %v1108_v10, 4  ;;  %v1150_v40 = vor.u32 %v1149_v32, %v1146_v31  ;;  %v5766_v42 = vpack.c.bf16 %v935_v33, %v935_v33  ;;  %v5767_v43 = vpack.c.bf16 %v936_v39, %v936_v39  ;;  %v6367_v10 = vld [vmem:[#allocation7 + $0x80] ss:$8 sps:$4 sm:$0xff]   ;;  %v6368_v32 = vld [vmem:[#allocation7 + $0x94] ss:$8 sps:$4 sm:$0xff]  }
  0xc9   :  { %v1155_v49 = vrot.slane %v1153_v21, 5  ;;  %v1136_v50 = vor.u32 %v1135_v38, %v1132_v37  ;;  %v5764_v51 = vpack.c.bf16 %v933_v44, %v933_v44  ;;  %v5765_v52 = vpack.c.bf16 %v934_v48, %v934_v48  ;;  %2532 = vmatpush1.bf16.msra.mxu0 %v6361_v13  ;;  %v6370_v38 = vld [vmem:[#allocation7 + $0x90] ss:$8 sps:$4 sm:$0xff]   ;;  %v6371_v44 = vld [vmem:[#allocation7 + $0xa4] ss:$8 sps:$4 sm:$0xff]  }
  0xca   :  { %v1151_v56 = vrot.slane %v1150_v40, 4  ;;  %v1172_v58 = vshrl.u32 %v5766_v42, 16  ;;  %v1175_v60 = vshll.u32 %v5766_v42, 16  ;;  %v1181_v62 = vshll.u32 %v5767_v43, 16  ;;  %2533 = vmatprep.subr.bf16.mxu0 %v6362_v26  ;;  %853 = vrot.lane.b32.xlu0 %v7037_v3, %s6867_s0  ;;  %v938_v26 = vld [vmem:[#allocation4 + $0x178] sm:$0x1] }
  0xcb   :  { %v7140_v63 = vsel %vm7099_vm2, %v1123_v30, %v1127_v2  ;;  %v1158_v0 = vshrl.u32 %v5764_v51, 16  ;;  %v1161_v1 = vshll.u32 %v5764_v51, 16  ;;  %v1167_v5 = vshll.u32 %v5765_v52, 16  ;;  %855 = vrot.lane.b32.xlu1 %v7045_v6, %s6867_s0  ;;  %v939_v2 = vld [vmem:[#allocation4 + $0x188] sm:$0xfe] }
  0xcc   :  { %v7148_v8 = vsel %vm7099_vm2, %v1109_v36, %v1113_v20  ;;  %v1141_v9 = vrot.slane %v1139_v41, 5  ;;  %v1174_v11 = vrot.slane %v1172_v58, 4  ;;  %v1177_v12 = vrot.slane %v1175_v60, 5  ;;  %v940_v6 = vld [vmem:[#allocation4 + $0x198] sm:$0x1] }
  0xcd   :  { %v7152_v13 = vsel %vm7099_vm2, %v1151_v56, %v1155_v49  ;;  %v1137_v14 = vrot.slane %v1136_v50, 4  ;;  %v1160_v18 = vrot.slane %v1158_v0, 4  ;;  %v1163_v19 = vrot.slane %v1161_v1, 5  ;;  %2534 = vmatpush1.bf16.msra.mxu0 %v6364_v57  ;;  %v937_v20 = vld [vmem:[#allocation4 + $0x168] sm:$0xfe] }
  0xce   :  { %v1178_v21 = vor.u32 %v1177_v12, %v1174_v11  ;;  %v1183_v3 = vrot.slane %v1181_v62, 5  ;;  %v5770_v24 = vpack.c.bf16 %v939_v2, %v939_v2  ;;  %v5771_v25 = vpack.c.bf16 %v940_v6, %v940_v6  ;;  %2535 = vmatprep.subr.bf16.mxu0 %v6365_v61  ;;  %1269 = vrot.lane.b32.xlu0 %v7116_v55, %s6867_s0  ;;  %v242_v52 = vld [vmem:[#allocation4] sm:$0xfe]  ;;  %v243_v62 = vld [vmem:[#allocation4 + $0x10] sm:$0x1] }
  0xcf   :  { %v1164_v30 = vor.u32 %v1163_v19, %v1160_v18  ;;  %v1169_v31 = vrot.slane %v1167_v5, 5  ;;  %v5768_v33 = vpack.c.bf16 %v937_v20, %v937_v20  ;;  %v5769_v36 = vpack.c.bf16 %v938_v26, %v938_v26  ;;  %1271 = vrot.lane.b32.xlu1 %v7110_v45, %s6867_s0  ;;  %v943_v5 = vld [vmem:[#allocation4 + $0x1c8] sm:$0xfe]  ;;  %v6374_v2 = vld [vmem:[#allocation7 + $0xb4] ss:$8 sps:$4 sm:$0xff]  }
  0xd0   :  { %v1179_v37 = vrot.slane %v1178_v21, 4  ;;  %v1200_v39 = vshrl.u32 %v5770_v24, 16  ;;  %v1203_v40 = vshll.u32 %v5770_v24, 16  ;;  %v1209_v41 = vshll.u32 %v5771_v25, 16  ;;  %v6373_v11 = vld [vmem:[#allocation7 + $0xa0] ss:$8 sps:$4 sm:$0xff]  }
  0xd1   :  { %v7160_v42 = vsel %vm7099_vm2, %v1137_v14, %v1141_v9  ;;  %v1165_v43 = vrot.slane %v1164_v30, 4  ;;  %v1186_v48 = vshrl.u32 %v5768_v33, 16  ;;  %v1189_v49 = vshll.u32 %v5768_v33, 16  ;;  %2536 = vmatpush1.bf16.msra.mxu0 %v6367_v10  ;;  %v944_v9 = vld [vmem:[#allocation4 + $0x1d8] sm:$0x1] }
  0xd2   :  { %v7164_v45 = vsel %vm7099_vm2, %v1179_v37, %v1183_v3  ;;  %v1202_v50 = vrot.slane %v1200_v39, 4  ;;  %v1205_v55 = vrot.slane %v1203_v40, 5  ;;  %v7166_v51 = vshll.u32 %v5769_v36, 16  ;;  %2537 = vmatprep.subr.bf16.mxu0 %v6368_v32  ;;  %857 = vrot.lane.b32.xlu0 %v7039_v4, %s6867_s0  ;;  %v941_v10 = vld [vmem:[#allocation4 + $0x1a8] sm:$0xfe] }
  0xd3   :  { %v7170_v56 = vsel %vm7099_vm2, %v1165_v43, %v1169_v31  ;;  %v1211_v57 = vrot.slane %v1209_v41, 5  ;;  %v1188_v58 = vrot.slane %v1186_v48, 4  ;;  %v1191_v60 = vrot.slane %v1189_v49, 5  ;;  %859 = vrot.lane.b32.xlu1 %v7047_v7, %s6867_s0  ;;  %v942_v19 = vld [vmem:[#allocation4 + $0x1b8] sm:$0x1] }
  0xd4   :  { %v1206_v61 = vor.u32 %v1205_v55, %v1202_v50  ;;  %v5684_v0 = vpack.c.bf16 %v242_v52, %v242_v52  ;;  %v5685_v1 = vpack.c.bf16 %v243_v62, %v243_v62  ;;  %v5774_v14 = vpack.c.bf16 %v943_v5, %v943_v5  ;;  %v246_v4 = vld [vmem:[#allocation4 + $0x40] sm:$0xfe]  ;;  %v247_v31 = vld [vmem:[#allocation4 + $0x50] sm:$0x1] }
  0xd5   :  { %v1192_v12 = vor.u32 %v1191_v60, %v1188_v58  ;;  %v5775_v18 = vpack.c.bf16 %v944_v9, %v944_v9  ;;  %v5772_v6 = vpack.c.bf16 %v941_v10, %v941_v10  ;;  %2538 = vmatpush1.bf16.msra.mxu0 %v6370_v38  ;;  %v1197_v25 = vrot.slane %v7166_v51, 5  ;;  %v244_v38 = vld [vmem:[#allocation4 + $0x20] sm:$0xfe] }
  0xd6   :  { %v1207_v21 = vrot.slane %v1206_v61, 4  ;;  %v374_v7 = vshrl.u32 %v5684_v0, 16  ;;  %v377_v3 = vshll.u32 %v5684_v0, 16  ;;  %v383_v24 = vshll.u32 %v5685_v1, 16  ;;  %2539 = vmatprep.subr.bf16.mxu0 %v6371_v44  ;;  %1273 = vrot.lane.b32.xlu0 %v7132_v34, %s6867_s0  ;;  %v6376_v44 = vld [vmem:[#allocation7 + $0xb0] ss:$8 sps:$4 sm:$0xff]  }
  0xd7   :  { %v1228_v20 = vshrl.u32 %v5774_v14, 16  ;;  %v1231_v26 = vshll.u32 %v5774_v14, 16  ;;  %v1237_v30 = vshll.u32 %v5775_v18, 16  ;;  %1275 = vrot.lane.b32.xlu1 %v7128_v27, %s6867_s0  ;;  %v1193_v33 = vrot.slane %v1192_v12, 4  ;;  %v6377_v34 = vld [vmem:[#allocation7 + $0xc4] ss:$8 sps:$4 sm:$0xff]  }
  0xd8   :  { %v7183_v32 = vsel %vm7099_vm2, %v1207_v21, %v1211_v57  ;;  %v376_v36 = vrot.slane %v374_v7, 4  ;;  %v379_v37 = vrot.slane %v377_v3, 5  ;;  %v385_v39 = vrot.slane %v383_v24, 5  ;;  %v245_v57 = vld [vmem:[#allocation4 + $0x30] sm:$0x1] }
  0xd9   :  { %v1230_v40 = vrot.slane %v1228_v20, 4  ;;  %v1233_v41 = vrot.slane %v1231_v26, 5  ;;  %v1239_v43 = vrot.slane %v1237_v30, 5  ;;  %2540 = vmatpush1.bf16.msra.mxu0 %v6373_v11  ;;  %v5773_v49 = vpack.c.bf16 %v942_v19, %v942_v19  ;;  %v6379_v60 = vld [vmem:[#allocation7 + $0xc0] ss:$8 sps:$4 sm:$0xff]  }
  0xda   :  { %v380_v48 = vor.u32 %v379_v37, %v376_v36  ;;  %v1214_v27 = vshrl.u32 %v5772_v6, 16  ;;  %v1217_v50 = vshll.u32 %v5772_v6, 16  ;;  %2541 = vmatprep.subr.bf16.mxu0 %v6374_v2  ;;  %v5688_v51 = vpack.c.bf16 %v246_v4, %v246_v4  ;;  %861 = vrot.lane.b32.xlu0 %v7055_v16, %s6867_s0  ;;  %v248_v5 = vld [vmem:[#allocation4 + $0x60] sm:$0xfe]  ;;  %v249_v2 = vld [vmem:[#allocation4 + $0x70] sm:$0x1] }
  0xdb   :  { %v1234_v55 = vor.u32 %v1233_v41, %v1230_v40  ;;  %v5689_v52 = vpack.c.bf16 %v247_v31, %v247_v31  ;;  %v5686_v58 = vpack.c.bf16 %v244_v38, %v244_v38  ;;  %863 = vrot.lane.b32.xlu1 %v7053_v15, %s6867_s0  ;;  %v7189_v1 = vshll.u32 %v5773_v49, 16  ;;  %v947_v19 = vld [vmem:[#allocation4 + $0x208] sm:$0xfe]  ;;  %v6380_v7 = vld [vmem:[#allocation7 + $0xd4] ss:$8 sps:$4 sm:$0xff]  }
  0xdc   :  { %v381_v62 = vrot.slane %v380_v48, 4  ;;  %v1216_v61 = vrot.slane %v1214_v27, 4  ;;  %v1219_v0 = vrot.slane %v1217_v50, 5  ;;  %v402_v10 = vshrl.u32 %v5688_v51, 16  ;;  %v6382_v4 = vld [vmem:[#allocation7 + $0xd0] ss:$8 sps:$4 sm:$0xff]  }
  0xdd   :  { %v1235_v9 = vrot.slane %v1234_v55, 4  ;;  %v405_v11 = vshll.u32 %v5688_v51, 16  ;;  %v411_v12 = vshll.u32 %v5689_v52, 16  ;;  %v7193_v14 = vsel %vm7099_vm2, %v1193_v33, %v1197_v25  ;;  %2542 = vmatpush1.bf16.msra.mxu0 %v6376_v44  ;;  %v6383_v33 = vld [vmem:[#allocation7 + $0xe4] ss:$8 sps:$4 sm:$0xff]  }
  0xde   :  { %v386_v15 = vsel %vm7099_vm2, %v381_v62, %v385_v39  ;;  %v1220_v16 = vor.u32 %v1219_v0, %v1216_v61  ;;  %v5687_v18 = vpack.c.bf16 %v245_v57, %v245_v57  ;;  %2543 = vmatprep.subr.bf16.mxu0 %v6377_v34  ;;  %v1225_v21 = vrot.slane %v7189_v1, 5  ;;  %1277 = vrot.lane.b32.xlu0 %v7148_v8, %s6867_s0  ;;  %v948_v38 = vld [vmem:[#allocation4 + $0x218] sm:$0x1]  ;;  %v945_v44 = vld [vmem:[#allocation4 + $0x1e8] sm:$0xfe] }
  0xdf   :  { %613 = vst.msk [vmem:[#allocation2 + $0x4] sm:$0xf] %vm176_vm3, %v386_v15  ;;  %v7200_v6 = vsel %vm7099_vm2, %v1235_v9, %v1239_v43  ;;  %v404_v3 = vrot.slane %v402_v10, 4  ;;  %v407_v24 = vrot.slane %v405_v11, 5  ;;  %1279 = vrot.lane.b32.xlu1 %v7140_v63, %s6867_s0  ;;  %v413_v25 = vrot.slane %v411_v12, 5 }
  0xe0   :  { %v388_v20 = vshrl.u32 %v5686_v58, 16  ;;  %v391_v26 = vshll.u32 %v5686_v58, 16  ;;  %v397_v30 = vshll.u32 %v5687_v18, 16  ;;  %v5690_v36 = vpack.c.bf16 %v248_v5, %v248_v5  ;;  %v946_v50 = vld [vmem:[#allocation4 + $0x1f8] sm:$0x1]  ;;  %v144_v58 = vld [vmem:[#allocation4] sm:$0xff] }
  0xe1   :  { %v408_v31 = vor.u32 %v407_v24, %v404_v3  ;;  %v5691_v37 = vpack.c.bf16 %v249_v2, %v249_v2  ;;  %v5778_v39 = vpack.c.bf16 %v947_v19, %v947_v19  ;;  %2544 = vmatpush1.bf16.msra.mxu0 %v6379_v60  ;;  %v7207_v40 = vrot.slane %v1220_v16, 4  ;;  %v6385_v55 = vld [vmem:[#allocation7 + $0xe0] ss:$8 sps:$4 sm:$0xff]   ;;  %v6386_v11 = vld [vmem:[#allocation7 + $0xf4] ss:$8 sps:$4 sm:$0xff]  }
  0xe2   :  { %v390_v41 = vrot.slane %v388_v20, 4  ;;  %v393_v43 = vrot.slane %v391_v26, 5  ;;  %v399_v63 = vrot.slane %v397_v30, 5  ;;  %2545 = vmatprep.subr.bf16.mxu0 %v6380_v7  ;;  %v416_v48 = vshrl.u32 %v5690_v36, 16  ;;  %865 = vrot.lane.b32.xlu0 %v7063_v35, %s6867_s0  ;;  %v145_v5 = vld [vmem:[#allocation4 + $0x20] sm:$0xff] }
  0xe3   :  { %v409_v8 = vrot.slane %v408_v31, 4  ;;  %v419_v49 = vshll.u32 %v5690_v36, 16  ;;  %v425_v27 = vshll.u32 %v5691_v37, 16  ;;  %867 = vrot.lane.b32.xlu1 %v7057_v29, %s6867_s0  ;;  %v5779_v51 = vpack.c.bf16 %v948_v38, %v948_v38  ;;  %v146_v18 = vld [vmem:[#allocation4 + $0x40] sm:$0xff]  ;;  %v253_v26 = vld [vmem:[#allocation4 + $0xb0] sm:$0x1] }
  0xe4   :  { %v394_v34 = vor.u32 %v393_v43, %v390_v41  ;;  %v1256_v52 = vshrl.u32 %v5778_v39, 16  ;;  %v1259_v57 = vshll.u32 %v5778_v39, 16  ;;  %v418_v62 = vrot.slane %v416_v48, 4  ;;  %v147_v19 = vld [vmem:[#allocation4 + $0x60] sm:$0xff]  ;;  %v251_v41 = vld [vmem:[#allocation4 + $0x90] sm:$0x1] }
  0xe5   :  { %v414_v60 = vsel %vm7099_vm2, %v409_v8, %v413_v25  ;;  %v421_v61 = vrot.slane %v419_v49, 5  ;;  %v427_v0 = vrot.slane %v425_v27, 5  ;;  %2546 = vmatpush1.bf16.msra.mxu0 %v6382_v4  ;;  %v7216_v35 = vshll.u32 %v5779_v51, 16  ;;  %v252_v7 = vld [vmem:[#allocation4 + $0xa0] sm:$0xfe] }
  0xe6   :  { %615 = vst.msk [vmem:[#allocation2 + $0x2c] sm:$0xf] %vm176_vm3, %v414_v60  ;;  %v395_v29 = vrot.slane %v394_v34, 4  ;;  %v1258_v9 = vrot.slane %v1256_v52, 4  ;;  %v1261_v10 = vrot.slane %v1259_v57, 5  ;;  %2547 = vmatprep.subr.bf16.mxu0 %v6383_v33  ;;  %v5776_v2 = vpack.c.bf16 %v945_v44, %v945_v44  ;;  %1281 = vrot.lane.b32.xlu0 %v7160_v42, %s6867_s0 }
  0xe7   :  { %v422_v12 = vor.u32 %v421_v61, %v418_v62  ;;  %v5777_v15 = vpack.c.bf16 %v946_v50, %v946_v50  ;;  %v160_v16 = vpack.c.bf16 %v144_v58, %v144_v58  ;;  %1283 = vrot.lane.b32.xlu1 %v7152_v13, %s6867_s0  ;;  %v1267_v4 = vrot.slane %v7216_v35, 5  ;;  %v6388_v25 = vld [vmem:[#allocation7 + $0xf0] ss:$8 sps:$4 sm:$0xff]   ;;  %v250_v13 = vld [vmem:[#allocation4 + $0x80] sm:$0xfe] }
  0xe8   :  { %v400_v3 = vsel %vm7099_vm2, %v395_v29, %v399_v63  ;;  %v1262_v24 = vor.u32 %v1261_v10, %v1258_v9  ;;  %v161_v20 = vpack.c.bf16 %v145_v5, %v145_v5  ;;  %v1242_v31 = vshrl.u32 %v5776_v2, 16  ;;  %v6394_v48 = vld [vmem:[#allocation7 + $0x104] ss:$8 sps:$4 sm:$0xff]  }
  0xe9   :  { %614 = vst.msk [vmem:[#allocation2 + $0x18] sm:$0xf] %vm176_vm3, %v400_v3  ;;  %v423_v30 = vrot.slane %v422_v12, 4  ;;  %v1245_v33 = vshll.u32 %v5776_v2, 16  ;;  %v7226_v36 = vshll.u32 %v5777_v15, 16  ;;  %2548 = vmatpush1.bf16.msra.mxu0 %v6385_v55  ;;  %v162_v37 = vpack.c.bf16 %v146_v18, %v146_v18  ;;  %v148_v29 = vld [vmem:[#allocation4 + $0x80] sm:$0xff] }
  0xea   :  { %177 = vst.msk [vmem:[#allocation2] sm:$0xf] %vm176_vm3, %v160_v16  ;;  %v1263_v42 = vrot.slane %v1262_v24, 4  ;;  %178 = vst.msk [vmem:[#allocation2 + $0x14] sm:$0xf] %vm176_vm3, %v161_v20  ;;  %v163_v38 = vpack.c.bf16 %v147_v19, %v147_v19  ;;  %v5694_v39 = vpack.c.bf16 %v252_v7, %v252_v7  ;;  %v1244_v63 = vrot.slane %v1242_v31, 4  ;;  %2549 = vmatprep.subr.bf16.mxu0 %v6386_v11 }
  0xeb   :  { %226 = vst.msk [vmem:[#allocation2] sm:$0xf] %vm225_vm4, %v160_v16  ;;  %v428_v43 = vsel %vm7099_vm2, %v423_v30, %v427_v0  ;;  %v1247_v44 = vrot.slane %v1245_v33, 5  ;;  %v1253_v8 = vrot.slane %v7226_v36, 5  ;;  %227 = vst.msk [vmem:[#allocation2 + $0x14] sm:$0xf] %vm225_vm4, %v161_v20  ;;  %871 = vrot.lane.b32.xlu1 %v7069_v46, %s6867_s0  ;;  %869 = vrot.lane.b32.xlu0 %v7071_v47, %s6867_s0 }
  0xec   :  { %1366 = vst.msk [vmem:[#allocation2 + $0xc] sm:$0xf] %vm176_vm3, %v161_v20  ;;  %v7246_v49 = vsel %vm7099_vm2, %v7207_v40, %v1225_v21  ;;  %616 = vst.msk [vmem:[#allocation2 + $0x40] sm:$0xf] %vm176_vm3, %v428_v43  ;;  %v5695_v27 = vpack.c.bf16 %v253_v26, %v253_v26  ;;  %v444_v50 = vshrl.u32 %v5694_v39, 16  ;;  %v447_v34 = vshll.u32 %v5694_v39, 16 }
  0xed   :  { %1414 = vst.msk [vmem:[#allocation2 + $0xc] sm:$0xf] %vm225_vm4, %v161_v20  ;;  %v256_v46 = vld [vmem:[#allocation4 + $0xe0] sm:$0xfe]  ;;  %v257_v55 = vld [vmem:[#allocation4 + $0xf0] sm:$0x1]  ;;  %v1248_v47 = vor.u32 %v1247_v44, %v1244_v63  ;;  %v5692_v1 = vpack.c.bf16 %v250_v13, %v250_v13  ;;  %v5693_v21 = vpack.c.bf16 %v251_v41, %v251_v41  ;;  %2550 = vmatpush1.bf16.msra.mxu0 %v6388_v25 }
  0xee   :  { %179 = vst.msk [vmem:[#allocation2 + $0x28] sm:$0xf] %vm176_vm3, %v162_v37  ;;  %180 = vst.msk [vmem:[#allocation2 + $0x3c] sm:$0xf] %vm176_vm3, %v163_v38  ;;  %v5698_v40 = vpack.c.bf16 %v256_v46, %v256_v46  ;;  %v446_v51 = vrot.slane %v444_v50, 4  ;;  %v449_v52 = vrot.slane %v447_v34, 5  ;;  %v5699_v58 = vpack.c.bf16 %v257_v55, %v257_v55  ;;  %2632 = vmatprep.subr.bf16.mxu0 %v6394_v48 }
  0xef   :  { %1367 = vst.msk [vmem:[#allocation2 + $0x20] sm:$0xf] %vm176_vm3, %v162_v37  ;;  %1368 = vst.msk [vmem:[#allocation2 + $0x34] sm:$0xf] %vm176_vm3, %v163_v38  ;;  %v453_v57 = vshll.u32 %v5695_v27, 16  ;;  %v7259_v60 = vsel %vm7099_vm2, %v1263_v42, %v1267_v4  ;;  %v430_v62 = vshrl.u32 %v5692_v1, 16  ;;  %1287 = vrot.lane.b32.xlu1 %v7164_v45, %s6867_s0  ;;  %1285 = vrot.lane.b32.xlu0 %v7170_v56, %s6867_s0 }
  0xf0   :  { %228 = vst.msk [vmem:[#allocation2 + $0x28] sm:$0xf] %vm225_vm4, %v162_v37  ;;  %229 = vst.msk [vmem:[#allocation2 + $0x3c] sm:$0xf] %vm225_vm4, %v163_v38  ;;  %v433_v61 = vshll.u32 %v5692_v1, 16  ;;  %v439_v0 = vshll.u32 %v5693_v21, 16  ;;  %v450_v9 = vor.u32 %v449_v52, %v446_v51  ;;  %v164_v26 = vpack.c.bf16 %v148_v29, %v148_v29 }
  0xf1   :  { %1415 = vst.msk [vmem:[#allocation2 + $0x20] sm:$0xf] %vm225_vm4, %v162_v37  ;;  %1416 = vst.msk [vmem:[#allocation2 + $0x34] sm:$0xf] %vm225_vm4, %v163_v38  ;;  %v254_v5 = vld [vmem:[#allocation4 + $0xc0] sm:$0xfe] }
  0xf2   :  { %v455_v10 = vrot.slane %v453_v57, 5  ;;  %v472_v35 = vshrl.u32 %v5698_v40, 16  ;;  %v475_v11 = vshll.u32 %v5698_v40, 16  ;;  %v255_v12 = vld [vmem:[#allocation4 + $0xd0] sm:$0x1]  ;;  %v1249_v2 = vrot.slane %v1248_v47, 4 }
  0xf3   :  { %v432_v15 = vrot.slane %v430_v62, 4  ;;  %v435_v16 = vrot.slane %v433_v61, 5  ;;  %v441_v18 = vrot.slane %v439_v0, 5  ;;  %v149_v19 = vld [vmem:[#allocation4 + $0xa0] sm:$0xff]  ;;  %v451_v7 = vrot.slane %v450_v9, 4  ;;  %875 = vrot.lane.b32.xlu1 %v7073_v53, %s6867_s0  ;;  %873 = vrot.lane.b32.xlu0 %v7075_v54, %s6867_s0 }
  0xf4   :  { %v474_v3 = vrot.slane %v472_v35, 4  ;;  %v477_v24 = vrot.slane %v475_v11, 5  ;;  %v481_v4 = vshll.u32 %v5699_v58, 16  ;;  %v5696_v20 = vpack.c.bf16 %v254_v5, %v254_v5  ;;  %v260_v30 = vld [vmem:[#allocation4 + $0x140] sm:$0xfe] }
  0xf5   :  { %v436_v25 = vor.u32 %v435_v16, %v432_v15  ;;  %v5697_v45 = vpack.c.bf16 %v255_v12, %v255_v12  ;;  %v261_v56 = vld [vmem:[#allocation4 + $0x150] sm:$0x1]  ;;  %v258_v31 = vld [vmem:[#allocation4 + $0x120] sm:$0xfe]  ;;  %v456_v33 = vsel %vm7099_vm2, %v451_v7, %v455_v10  ;;  %v165_v37 = vpack.c.bf16 %v149_v19, %v149_v19  ;;  %181 = vst.msk [vmem:[#allocation2 + $0x50] sm:$0xf] %vm176_vm3, %v164_v26 }
  0xf6   :  { %v478_v13 = vor.u32 %v477_v24, %v474_v3  ;;  %v483_v42 = vrot.slane %v481_v4, 5  ;;  %618 = vst.msk [vmem:[#allocation2 + $0x68] sm:$0xf] %vm176_vm3, %v456_v33  ;;  %v458_v39 = vshrl.u32 %v5696_v20, 16  ;;  %v461_v41 = vshll.u32 %v5696_v20, 16  ;;  %v150_v55 = vld [vmem:[#allocation4 + $0xc0] sm:$0xff] }
  0xf7   :  { %v437_v38 = vrot.slane %v436_v25, 4  ;;  %v467_v43 = vshll.u32 %v5697_v45, 16  ;;  %1369 = vst.msk [vmem:[#allocation2 + $0x48] sm:$0xf] %vm176_vm3, %v164_v26  ;;  %182 = vst.msk [vmem:[#allocation2 + $0x64] sm:$0xf] %vm176_vm3, %v165_v37  ;;  %v5702_v54 = vpack.c.bf16 %v260_v30, %v260_v30  ;;  %v5703_v63 = vpack.c.bf16 %v261_v56, %v261_v56  ;;  %1291 = vrot.lane.b32.xlu1 %v7183_v32, %s6867_s0 }
  0xf8   :  { %v479_v53 = vrot.slane %v478_v13, 4  ;;  %230 = vst.msk [vmem:[#allocation2 + $0x50] sm:$0xf] %vm225_vm4, %v164_v26  ;;  %v259_v44 = vld [vmem:[#allocation4 + $0x130] sm:$0x1]  ;;  %v5700_v48 = vpack.c.bf16 %v258_v31, %v258_v31  ;;  %v460_v50 = vrot.slane %v458_v39, 4  ;;  %1289 = vrot.lane.b32.xlu0 %v7193_v14, %s6867_s0  ;;  %v7294_v32 = vsel %vm7099_vm2, %v1249_v2, %v1253_v8 }
  0xf9   :  { %1417 = vst.msk [vmem:[#allocation2 + $0x48] sm:$0xf] %vm225_vm4, %v164_v26  ;;  %v442_v27 = vsel %vm7099_vm2, %v437_v38, %v441_v18  ;;  %v463_v34 = vrot.slane %v461_v41, 5  ;;  %v469_v46 = vrot.slane %v467_v43, 5  ;;  %231 = vst.msk [vmem:[#allocation2 + $0x64] sm:$0xf] %vm225_vm4, %v165_v37  ;;  %v5701_v52 = vpack.c.bf16 %v259_v44, %v259_v44 }
  0xfa   :  { %1370 = vst.msk [vmem:[#allocation2 + $0x5c] sm:$0xf] %vm176_vm3, %v165_v37  ;;  %617 = vst.msk [vmem:[#allocation2 + $0x54] sm:$0xf] %vm176_vm3, %v442_v27  ;;  %v484_v47 = vsel %vm7099_vm2, %v479_v53, %v483_v42  ;;  %v500_v1 = vshrl.u32 %v5702_v54, 16  ;;  %v503_v21 = vshll.u32 %v5702_v54, 16  ;;  %v166_v5 = vpack.c.bf16 %v150_v55, %v150_v55 }
  0xfb   :  { %1418 = vst.msk [vmem:[#allocation2 + $0x5c] sm:$0xf] %vm225_vm4, %v165_v37  ;;  %v509_v40 = vshll.u32 %v5703_v63, 16  ;;  %v464_v51 = vor.u32 %v463_v34, %v460_v50  ;;  %v486_v57 = vshrl.u32 %v5700_v48, 16  ;;  %v489_v58 = vshll.u32 %v5700_v48, 16  ;;  %v151_v62 = vld [vmem:[#allocation4 + $0xe0] sm:$0xff]  ;;  %879 = vrot.lane.b32.xlu1 %v7081_v59, %s6867_s0 }
  0xfc   :  { %620 = vst.msk [vmem:[#allocation2 + $0x90] sm:$0xf] %vm176_vm3, %v484_v47  ;;  %v264_v61 = vld [vmem:[#allocation4 + $0x180] sm:$0xfe]  ;;  %v502_v14 = vrot.slane %v500_v1, 4  ;;  %v505_v0 = vrot.slane %v503_v21, 5  ;;  %877 = vrot.lane.b32.xlu0 %v7085_v17, %s6867_s0  ;;  %v167_v16 = vpack.c.bf16 %v151_v62, %v151_v62 }
  0xfd   :  { %v265_v29 = vld [vmem:[#allocation4 + $0x190] sm:$0x1]  ;;  %v465_v9 = vrot.slane %v464_v51, 4  ;;  %v488_v10 = vrot.slane %v486_v57, 4  ;;  %v491_v35 = vrot.slane %v489_v58, 5  ;;  %v495_v11 = vshll.u32 %v5701_v52, 16 }
  0xfe   :  { %v262_v12 = vld [vmem:[#allocation4 + $0x160] sm:$0xfe]  ;;  %v506_v36 = vor.u32 %v505_v0, %v502_v14  ;;  %v511_v15 = vrot.slane %v509_v40, 5  ;;  %183 = vst.msk [vmem:[#allocation2 + $0x78] sm:$0xf] %vm176_vm3, %v166_v5  ;;  %v5706_v8 = vpack.c.bf16 %v264_v61, %v264_v61  ;;  %v5707_v59 = vpack.c.bf16 %v265_v29, %v265_v29 }
  0xff   :  { %v263_v2 = vld [vmem:[#allocation4 + $0x170] sm:$0x1]  ;;  %v152_v18 = vld [vmem:[#allocation4 + $0x120] sm:$0xff]  ;;  %1371 = vst.msk [vmem:[#allocation2 + $0x70] sm:$0xf] %vm176_vm3, %v166_v5  ;;  %v470_v19 = vsel %vm7099_vm2, %v465_v9, %v469_v46  ;;  %v492_v7 = vor.u32 %v491_v35, %v488_v10  ;;  %v497_v3 = vrot.slane %v495_v11, 5  ;;  %v5704_v25 = vpack.c.bf16 %v262_v12, %v262_v12  ;;  %1295 = vrot.lane.b32.xlu1 %v7200_v6, %s6867_s0 }
 0x100   :  { %232 = vst.msk [vmem:[#allocation2 + $0x78] sm:$0xf] %vm225_vm4, %v166_v5  ;;  %1419 = vst.msk [vmem:[#allocation2 + $0x70] sm:$0xf] %vm225_vm4, %v166_v5  ;;  %v507_v17 = vrot.slane %v506_v36, 4  ;;  %v528_v24 = vshrl.u32 %v5706_v8, 16  ;;  %v5705_v30 = vpack.c.bf16 %v263_v2, %v263_v2  ;;  %v168_v56 = vpack.c.bf16 %v152_v18, %v152_v18  ;;  %1293 = vrot.lane.b32.xlu0 %v7246_v49, %s6867_s0 }
 0x101   :  { %619 = vst.msk [vmem:[#allocation2 + $0x7c] sm:$0xf] %vm176_vm3, %v470_v19  ;;  %184 = vst.msk [vmem:[#allocation2 + $0x8c] sm:$0xf] %vm176_vm3, %v167_v16  ;;  %v531_v4 = vshll.u32 %v5706_v8, 16  ;;  %v153_v20 = vld [vmem:[#allocation4 + $0x140] sm:$0xff] }
 0x102   :  { %1372 = vst.msk [vmem:[#allocation2 + $0x84] sm:$0xf] %vm176_vm3, %v167_v16  ;;  %v493_v45 = vrot.slane %v492_v7, 4  ;;  %v537_v26 = vshll.u32 %v5707_v59, 16  ;;  %v268_v31 = vld [vmem:[#allocation4 + $0x1c0] sm:$0xfe]  ;;  %v512_v13 = vsel %vm7099_vm2, %v507_v17, %v511_v15  ;;  %v169_v44 = vpack.c.bf16 %v153_v20, %v153_v20 }
 0x103   :  { %233 = vst.msk [vmem:[#allocation2 + $0x8c] sm:$0xf] %vm225_vm4, %v167_v16  ;;  %v269_v33 = vld [vmem:[#allocation4 + $0x1d0] sm:$0x1]  ;;  %1420 = vst.msk [vmem:[#allocation2 + $0x84] sm:$0xf] %vm225_vm4, %v167_v16  ;;  %v5710_v48 = vpack.c.bf16 %v268_v31, %v268_v31  ;;  %883 = vrot.lane.b32.xlu1 %v7093_v22, %s6867_s0 }
 0x104   :  { %v530_v42 = vrot.slane %v528_v24, 4  ;;  %v533_v37 = vrot.slane %v531_v4, 5  ;;  %v514_v38 = vshrl.u32 %v5704_v25, 16  ;;  %v266_v39 = vld [vmem:[#allocation4 + $0x1a0] sm:$0xfe]  ;;  %v498_v41 = vsel %vm7099_vm2, %v493_v45, %v497_v3  ;;  %881 = vrot.lane.b32.xlu0 %v7095_v23, %s6867_s0 }
 0x105   :  { %622 = vst.msk [vmem:[#allocation2 + $0xb8] sm:$0xf] %vm176_vm3, %v512_v13  ;;  %v539_v43 = vrot.slane %v537_v26, 5  ;;  %v517_v53 = vshll.u32 %v5704_v25, 16  ;;  %v523_v54 = vshll.u32 %v5705_v30, 16  ;;  %v5711_v34 = vpack.c.bf16 %v269_v33, %v269_v33  ;;  %v154_v40 = vld [vmem:[#allocation4 + $0x160] sm:$0xff] }
 0x106   :  { %185 = vst.msk [vmem:[#allocation2 + $0xa0] sm:$0xf] %vm176_vm3, %v168_v56  ;;  %v267_v6 = vld [vmem:[#allocation4 + $0x1b0] sm:$0x1]  ;;  %621 = vst.msk [vmem:[#allocation2 + $0xa4] sm:$0xf] %vm176_vm3, %v498_v41  ;;  %v534_v49 = vor.u32 %v533_v37, %v530_v42  ;;  %v5708_v46 = vpack.c.bf16 %v266_v39, %v266_v39  ;;  %v170_v16 = vpack.c.bf16 %v154_v40, %v154_v40 }
 0x107   :  { %v516_v63 = vrot.slane %v514_v38, 4  ;;  %234 = vst.msk [vmem:[#allocation2 + $0xa0] sm:$0xf] %vm225_vm4, %v168_v56  ;;  %v519_v27 = vrot.slane %v517_v53, 5  ;;  %v525_v50 = vrot.slane %v523_v54, 5  ;;  %v556_v47 = vshrl.u32 %v5710_v48, 16  ;;  %1299 = vrot.lane.b32.xlu1 %v7259_v60, %s6867_s0 }
 0x108   :  { %v535_v55 = vrot.slane %v534_v49, 4  ;;  %186 = vst.msk [vmem:[#allocation2 + $0xb4] sm:$0xf] %vm176_vm3, %v169_v44  ;;  %v559_v1 = vshll.u32 %v5710_v48, 16  ;;  %v5709_v21 = vpack.c.bf16 %v267_v6, %v267_v6  ;;  %v155_v51 = vld [vmem:[#allocation4 + $0x180] sm:$0xff]  ;;  %v565_v57 = vshll.u32 %v5711_v34, 16  ;;  %1297 = vrot.lane.b32.xlu0 %v7294_v32, %s6867_s0 }
 0x109   :  { %1374 = vst.msk [vmem:[#allocation2 + $0xac] sm:$0xf] %vm176_vm3, %v169_v44  ;;  %v520_v52 = vor.u32 %v519_v27, %v516_v63  ;;  %v542_v58 = vshrl.u32 %v5708_v46, 16  ;;  %v545_v62 = vshll.u32 %v5708_v46, 16  ;;  %v272_v22 = vld [vmem:[#allocation4 + $0x200] sm:$0xfe]  ;;  %v171_v8 = vpack.c.bf16 %v155_v51, %v155_v51 }
 0x10a   :  { %235 = vst.msk [vmem:[#allocation2 + $0xb4] sm:$0xf] %vm225_vm4, %v169_v44  ;;  %v156_v61 = vld [vmem:[#allocation4 + $0x1a0] sm:$0xff]  ;;  %1422 = vst.msk [vmem:[#allocation2 + $0xac] sm:$0xf] %vm225_vm4, %v169_v44  ;;  %v540_v23 = vsel %vm7099_vm2, %v535_v55, %v539_v43  ;;  %v558_v14 = vrot.slane %v556_v47, 4  ;;  %v5714_v7 = vpack.c.bf16 %v272_v22, %v272_v22 }
 0x10b   :  { %v561_v0 = vrot.slane %v559_v1, 5  ;;  %v551_v5 = vshll.u32 %v5709_v21, 16  ;;  %v273_v29 = vld [vmem:[#allocation4 + $0x210] sm:$0x1]  ;;  %624 = vst.msk [vmem:[#allocation2 + $0xe0] sm:$0xf] %vm176_vm3, %v540_v23  ;;  %v172_v17 = vpack.c.bf16 %v156_v61, %v156_v61 }
 0x10c   :  { %v521_v9 = vrot.slane %v520_v52, 4  ;;  %v567_v10 = vrot.slane %v565_v57, 5  ;;  %v544_v35 = vrot.slane %v542_v58, 4  ;;  %v547_v11 = vrot.slane %v545_v62, 5  ;;  %v270_v12 = vld [vmem:[#allocation4 + $0x1e0] sm:$0xfe] }
 0x10d   :  { %v562_v36 = vor.u32 %v561_v0, %v558_v14  ;;  %v553_v15 = vrot.slane %v551_v5, 5  ;;  %v271_v2 = vld [vmem:[#allocation4 + $0x1f0] sm:$0x1]  ;;  %v5715_v3 = vpack.c.bf16 %v273_v29, %v273_v29  ;;  %187 = vst.msk [vmem:[#allocation2 + $0xc8] sm:$0xf] %vm176_vm3, %v170_v16  ;;  %v5712_v60 = vpack.c.bf16 %v270_v12, %v270_v12  ;;  %v157_v45 = vld [vmem:[#allocation4 + $0x1c0] sm:$0xff] }
 0x10e   :  { %v526_v18 = vsel %vm7099_vm2, %v521_v9, %v525_v50  ;;  %v548_v19 = vor.u32 %v547_v11, %v544_v35  ;;  %188 = vst.msk [vmem:[#allocation2 + $0xdc] sm:$0xf] %vm176_vm3, %v171_v8  ;;  %v5713_v32 = vpack.c.bf16 %v271_v2, %v271_v2  ;;  %1375 = vst.msk [vmem:[#allocation2 + $0xc0] sm:$0xf] %vm176_vm3, %v170_v16  ;;  %v584_v4 = vshrl.u32 %v5714_v7, 16  ;;  %v158_v33 = vld [vmem:[#allocation4 + $0x1e0] sm:$0xff] }
 0x10f   :  { %623 = vst.msk [vmem:[#allocation2 + $0xcc] sm:$0xf] %vm176_vm3, %v526_v18  ;;  %v563_v59 = vrot.slane %v562_v36, 4  ;;  %1376 = vst.msk [vmem:[#allocation2 + $0xd4] sm:$0xf] %vm176_vm3, %v171_v8  ;;  %v587_v25 = vshll.u32 %v5714_v7, 16  ;;  %v173_v43 = vpack.c.bf16 %v157_v45, %v157_v45  ;;  %v174_v6 = vpack.c.bf16 %v158_v33, %v158_v33 }
 0x110   :  { %v549_v24 = vrot.slane %v548_v19, 4  ;;  %236 = vst.msk [vmem:[#allocation2 + $0xc8] sm:$0xf] %vm225_vm4, %v170_v16  ;;  %237 = vst.msk [vmem:[#allocation2 + $0xdc] sm:$0xf] %vm225_vm4, %v171_v8  ;;  %v593_v20 = vshll.u32 %v5715_v3, 16 }
 0x111   :  { %1423 = vst.msk [vmem:[#allocation2 + $0xc0] sm:$0xf] %vm225_vm4, %v170_v16  ;;  %1424 = vst.msk [vmem:[#allocation2 + $0xd4] sm:$0xf] %vm225_vm4, %v171_v8  ;;  %v568_v26 = vsel %vm7099_vm2, %v563_v59, %v567_v10  ;;  %v570_v30 = vshrl.u32 %v5712_v60, 16  ;;  %v573_v56 = vshll.u32 %v5712_v60, 16 }
 0x112   :  { %v579_v31 = vshll.u32 %v5713_v32, 16  ;;  %189 = vst.msk [vmem:[#allocation2 + $0xf0] sm:$0xf] %vm176_vm3, %v172_v17  ;;  %v159_v13 = vld [vmem:[#allocation4 + $0x200] sm:$0xff]  ;;  %1377 = vst.msk [vmem:[#allocation2 + $0xe8] sm:$0xf] %vm176_vm3, %v172_v17  ;;  %v554_v42 = vsel %vm7099_vm2, %v549_v24, %v553_v15 }
 0x113   :  { %626 = vst.msk [vmem:[#allocation2 + $0x108] sm:$0xf] %vm176_vm3, %v568_v26  ;;  %v586_v37 = vrot.slane %v584_v4, 4  ;;  %v589_v38 = vrot.slane %v587_v25, 5  ;;  %625 = vst.msk [vmem:[#allocation2 + $0xf4] sm:$0xf] %vm176_vm3, %v554_v42  ;;  %v175_v49 = vpack.c.bf16 %v159_v13, %v159_v13 }
 0x114   :  { %238 = vst.msk [vmem:[#allocation2 + $0xf0] sm:$0xf] %vm225_vm4, %v172_v17  ;;  %1425 = vst.msk [vmem:[#allocation2 + $0xe8] sm:$0xf] %vm225_vm4, %v172_v17  ;;  %v572_v39 = vrot.slane %v570_v30, 4  ;;  %v575_v41 = vrot.slane %v573_v56, 5 }
 0x115   :  { %v590_v53 = vor.u32 %v589_v38, %v586_v37  ;;  %v595_v54 = vrot.slane %v593_v20, 5  ;;  %v581_v44 = vrot.slane %v579_v31, 5  ;;  %190 = vst.msk [vmem:[#allocation2 + $0x104] sm:$0xf] %vm176_vm3, %v173_v43  ;;  %1378 = vst.msk [vmem:[#allocation2 + $0xfc] sm:$0xf] %vm176_vm3, %v173_v43 }
 0x116   :  { %v576_v63 = vor.u32 %v575_v41, %v572_v39  ;;  %239 = vst.msk [vmem:[#allocation2 + $0x104] sm:$0xf] %vm225_vm4, %v173_v43  ;;  %1426 = vst.msk [vmem:[#allocation2 + $0xfc] sm:$0xf] %vm225_vm4, %v173_v43  ;;  %v1341_v50 = vld [vmem:[#allocation4 + $0x100] sm:$0xff]  ;;  %v6872_v38 = vmov 0  }
 0x117   :  { %v591_v48 = vrot.slane %v590_v53, 4  ;;  %191 = vst.msk [vmem:[#allocation2 + $0x118] sm:$0xf] %vm176_vm3, %v174_v6  ;;  %192 = vst.msk [vmem:[#allocation2 + $0x12c] sm:$0xf] %vm176_vm3, %v175_v49  ;;  %v1357_v46 = vpack.c.bf16 %v1341_v50, %v1341_v50  ;;  %v1349_v47 = vld [vmem:[#allocation4 + $0x220] sm:$0xff] }
 0x118   :  { %1379 = vst.msk [vmem:[#allocation2 + $0x110] sm:$0xf] %vm176_vm3, %v174_v6  ;;  %1380 = vst.msk [vmem:[#allocation2 + $0x124] sm:$0xf] %vm176_vm3, %v175_v49  ;;  %v577_v27 = vrot.slane %v576_v63, 4  ;;  %v1365_v1 = vpack.c.bf16 %v1349_v47, %v1349_v47  ;;  %s5254_s0 = sshll.u32 %s6873_s8, 4  ;;  %s5255_s0 = int_to_ptr.vmem [resolvable:$true] %s5254_s0 }
 0x119   :  { %240 = vst.msk [vmem:[#allocation2 + $0x118] sm:$0xf] %vm225_vm4, %v174_v6  ;;  %241 = vst.msk [vmem:[#allocation2 + $0x12c] sm:$0xf] %vm225_vm4, %v175_v49  ;;  %v596_v34 = vsel %vm7099_vm2, %v591_v48, %v595_v54  ;;  %v1430_v21 = vld [vmem:[#allocation4 + $0x20] sm:$0xfe]  ;;  %p6828_p3 = scmp.lt.s32.totalorder %s5255_s0, %s5255_s0 }
 0x11a   :  { %1427 = vst.msk [vmem:[#allocation2 + $0x110] sm:$0xf] %vm225_vm4, %v174_v6  ;;  %1428 = vst.msk [vmem:[#allocation2 + $0x124] sm:$0xf] %vm225_vm4, %v175_v49  ;;  %v582_v55 = vsel %vm7099_vm2, %v577_v27, %v581_v44  ;;  %v1432_v40 = vld [vmem:[#allocation4 + $0x40] sm:$0xfe]  ;;  %v5780_v51 = vpack.c.bf16 %v1430_v21, %v1430_v21 }
 0x11b   :  { %628 = vst.msk [vmem:[#allocation2 + $0x130] sm:$0xf] %vm176_vm3, %v596_v34  ;;  %627 = vst.msk [vmem:[#allocation2 + $0x11c] sm:$0xf] %vm176_vm3, %v582_v55  ;;  %v5782_v52 = vpack.c.bf16 %v1432_v40, %v1432_v40  ;;  %v1431_v61 = vld [vmem:[#allocation4 + $0x30] sm:$0x1] }
 0x11c   :  { %1373 = vst.msk [vmem:[#allocation2 + $0x98] sm:$0xf] %vm176_vm3, %v1357_v46  ;;  %1381 = vst.msk [vmem:[#allocation2 + $0x138] sm:$0xf] %vm176_vm3, %v1365_v1  ;;  %v1559_v57 = vshrl.u32 %v5780_v51, 16  ;;  %v1562_v58 = vshll.u32 %v5780_v51, 16  ;;  %v5781_v14 = vpack.c.bf16 %v1431_v61, %v1431_v61  ;;  %v710_v9 = vpop.permute.xlu0 %709 }
 0x11d   :  { %1421 = vst.msk [vmem:[#allocation2 + $0x98] sm:$0xf] %vm225_vm4, %v1357_v46  ;;  %1429 = vst.msk [vmem:[#allocation2 + $0x138] sm:$0xf] %vm225_vm4, %v1365_v1  ;;  %v1573_v62 = vshrl.u32 %v5782_v52, 16  ;;  %v1576_v22 = vshll.u32 %v5782_v52, 16  ;;  %v714_v10 = vpop.permute.xlu1 %713 }
 0x11e   :  { %v1433_v23 = vld [vmem:[#allocation4 + $0x50] sm:$0x1]  ;;  %v1561_v5 = vrot.slane %v1559_v57, 4  ;;  %v1564_v29 = vrot.slane %v1562_v58, 5  ;;  %757 = vst.msk [vmem:[#allocation2 + $0x4] sm:$0xf] %vm225_vm4, %v710_v9 }
 0x11f   :  { %v5783_v0 = vpack.c.bf16 %v1433_v23, %v1433_v23  ;;  %v1575_v35 = vrot.slane %v1573_v62, 4  ;;  %v1578_v11 = vrot.slane %v1576_v22, 5  ;;  %759 = vst.msk [vmem:[#allocation2 + $0x2c] sm:$0xf] %vm225_vm4, %v714_v10  ;;  %v1568_v36 = vshll.u32 %v5781_v14, 16  ;;  %3325 = vst [vmem:[#allocation3] sm:$0xff] %v6872_v38 }
 0x120   :  { %v1565_v12 = vor.u32 %v1564_v29, %v1561_v5  ;;  %v1434_v8 = vld [vmem:[#allocation4 + $0x60] sm:$0xfe]  ;;  %v712_v59 = vpop.permute.xlu0 %711  ;;  %v1435_v45 = vld [vmem:[#allocation4 + $0x70] sm:$0x1]  ;;  %3326 = vst [vmem:[#allocation3 + $0x8] sm:$0xf] %v6872_v38 }
 0x121   :  { %v1582_v15 = vshll.u32 %v5783_v0, 16  ;;  %v1579_v16 = vor.u32 %v1578_v11, %v1575_v35  ;;  %v1436_v2 = vld [vmem:[#allocation4 + $0x80] sm:$0xfe]  ;;  %v1570_v19 = vrot.slane %v1568_v36, 5  ;;  %v5784_v3 = vpack.c.bf16 %v1434_v8, %v1434_v8  ;;  %v716_v60 = vpop.permute.xlu1 %715  ;;  %758 = vst.msk [vmem:[#allocation2 + $0x18] sm:$0xf] %vm225_vm4, %v712_v59 }
 0x122   :  { %v1566_v18 = vrot.slane %v1565_v12, 4  ;;  %v5786_v17 = vpack.c.bf16 %v1436_v2, %v1436_v2  ;;  %760 = vst.msk [vmem:[#allocation2 + $0x40] sm:$0xf] %vm225_vm4, %v716_v60  ;;  %v1437_v26 = vld [vmem:[#allocation4 + $0x90] sm:$0x1]  ;;  %v5785_v31 = vpack.c.bf16 %v1435_v45, %v1435_v45  ;;  %s6823_s14 = scalar_lea.vmem %s5255_s0, 2048 }
 0x123   :  { %v1584_v7 = vrot.slane %v1582_v15, 5  ;;  %v1580_v32 = vrot.slane %v1579_v16, 4  ;;  %v1587_v4 = vshrl.u32 %v5784_v3, 16  ;;  %v1590_v25 = vshll.u32 %v5784_v3, 16  ;;  %3328 = vst [vmem:[#allocation3 + $0x80] sm:$0xf] %v6872_v38  ;;  %p6824_p2 = scmp.ne.s32.totalorder %s5255_s0, %s6823_s14  ;;  %p6829_p4 = scmp.lt.s32.totalorder %s6823_s14, %s6823_s14 }
 0x124   :  { %v1571_v24 = vsel %vm7099_vm2, %v1566_v18, %v1570_v19  ;;  %v1601_v30 = vshrl.u32 %v5786_v17, 16  ;;  %v1604_v56 = vshll.u32 %v5786_v17, 16  ;;  %v5787_v33 = vpack.c.bf16 %v1437_v26, %v1437_v26  ;;  %v718_v37 = vpop.permute.xlu0 %717  ;;  %3331 = vst [vmem:[#allocation3 + $0x74] sm:$0xf] %v6872_v38  ;;  %3333 = vst [vmem:[#allocation3 + $0xec] sm:$0xf] %v6872_v38 }
 0x125   :  { %v1585_v20 = vsel %vm7099_vm2, %v1580_v32, %v1584_v7  ;;  %1798 = vst.msk [vmem:[#allocation2 + $0x10] sm:$0xf] %vm176_vm3, %v1571_v24  ;;  %v1589_v13 = vrot.slane %v1587_v4, 4  ;;  %v720_v42 = vpop.permute.xlu1 %719  ;;  %v1592_v39 = vrot.slane %v1590_v25, 5  ;;  %v1596_v53 = vshll.u32 %v5785_v31, 16  ;;  %p6830_p5 = por %p6829_p4, %p6828_p3 }
 0x126   :  { %1799 = vst.msk [vmem:[#allocation2 + $0x24] sm:$0xf] %vm176_vm3, %v1585_v20  ;;  %v1603_v41 = vrot.slane %v1601_v30, 4  ;;  %v1606_v43 = vrot.slane %v1604_v56, 5  ;;  %v1610_v54 = vshll.u32 %v5787_v33, 16  ;;  %v1820_v12 = vld [vmem:[#allocation2 + $0x28] sm:$0xff] }
 0x127   :  { %762 = vst.msk [vmem:[#allocation2 + $0x68] sm:$0xf] %vm225_vm4, %v720_v42  ;;  %761 = vst.msk [vmem:[#allocation2 + $0x54] sm:$0xf] %vm225_vm4, %v718_v37  ;;  %v6392_v6 = vld [vmem:[#allocation7 + $0x100] ss:$8 sps:$4 sm:$0xff]   ;;  %v1593_v49 = vor.u32 %v1592_v39, %v1589_v13  ;;  %p6831_p6 = pnand %p6830_p5, %p6824_p2 }
 0x128   :  { %v1607_v63 = vor.u32 %v1606_v43, %v1603_v41  ;;  %v1438_v44 = vld [vmem:[#allocation4 + $0xa0] sm:$0xfe]  ;;  %v6399_v27 = vld [vmem:[#allocation7 + $0x114] ss:$8 sps:$4 sm:$0xff]   ;;  %v1598_v50 = vrot.slane %v1596_v53, 5  ;;  %v1612_v34 = vrot.slane %v1610_v54, 5  ;;  %v722_v21 = vpop.permute.xlu0 %721 }
 0x129   :  { %v1440_v48 = vld [vmem:[#allocation4 + $0xc0] sm:$0xfe]  ;;  %v5788_v46 = vpack.c.bf16 %v1438_v44, %v1438_v44  ;;  %v6391_v47 = vld [vmem:[#allocation2 + $0x4] ss:$20 sps:$4 sm:$0xff]   ;;  %v724_v1 = vpop.permute.xlu1 %723  ;;  %v1594_v40 = vrot.slane %v1593_v49, 4  ;;  %v1823_v2 = vld [vmem:[#allocation2 + $0x3c] sm:$0xff] }
 0x12a   :  { %v6389_v55 = vld [vmem:[#allocation2] ss:$20 sps:$4 sm:$0xff]   ;;  %v5790_v51 = vpack.c.bf16 %v1440_v48, %v1440_v48  ;;  %764 = vst.msk [vmem:[#allocation2 + $0x90] sm:$0xf] %vm225_vm4, %v724_v1  ;;  %763 = vst.msk [vmem:[#allocation2 + $0x7c] sm:$0xf] %vm225_vm4, %v722_v21  ;;  %2551 = vmatprep.mubr.bf16.mxu0 %v6391_v47  ;;  %v5403_v56 = vcombine.low %v1820_v12, %v1823_v2 }
 0x12b   :  { %v6395_v52 = vld [vmem:[#allocation2 + $0x2c] ss:$20 sps:$4 sm:$0xff]   ;;  %v1608_v57 = vrot.slane %v1607_v63, 4  ;;  %v1599_v58 = vsel %vm7099_vm2, %v1594_v40, %v1598_v50  ;;  %2552 = vmatmul.mubr.bf16.vlgmr.msra.gmra.mrb[0].mxu0 %v6389_v55  ;;  %v1615_v14 = vshrl.u32 %v5788_v46, 16  ;;  %v1618_v0 = vshll.u32 %v5788_v46, 16 }
 0x12c   :  { %v1439_v62 = vld [vmem:[#allocation4 + $0xb0] sm:$0x1]  ;;  %1800 = vst.msk [vmem:[#allocation2 + $0x38] sm:$0xf] %vm176_vm3, %v1599_v58  ;;  %2633 = vmatpush1.bf16.msra.mxu0 %v6392_v6  ;;  %2561 = vmatprep.mubr.bf16.mxu0 %v6395_v52  ;;  %v726_v9 = vpop.permute.xlu0 %725  ;;  %v1629_v35 = vshrl.u32 %v5790_v51, 16  ;;  %v1632_v11 = vshll.u32 %v5790_v51, 16 }
 0x12d   :  { %v1613_v22 = vsel %vm7099_vm2, %v1608_v57, %v1612_v34  ;;  %v1441_v61 = vld [vmem:[#allocation4 + $0xd0] sm:$0x1]  ;;  %v5789_v23 = vpack.c.bf16 %v1439_v62, %v1439_v62  ;;  %v728_v29 = vpop.permute.xlu1 %727  ;;  %2634 = vmatprep.subr.bf16.mxu0 %v6399_v27  ;;  %v6402_v36 = vld [vmem:[#allocation7 + $0x124] ss:$8 sps:$4 sm:$0xff]   ;;  %765 = vst.msk [vmem:[#allocation2 + $0xa4] sm:$0xf] %vm225_vm4, %v726_v9 }
 0x12e   :  { %v6397_v5 = vld [vmem:[#allocation7 + $0x110] ss:$8 sps:$4 sm:$0xff]   ;;  %1801 = vst.msk [vmem:[#allocation2 + $0x4c] sm:$0xf] %vm176_vm3, %v1613_v22  ;;  %v5791_v10 = vpack.c.bf16 %v1441_v61, %v1441_v61  ;;  %v1617_v15 = vrot.slane %v1615_v14, 4  ;;  %v1620_v16 = vrot.slane %v1618_v0, 5 }
 0x12f   :  { %766 = vst.msk [vmem:[#allocation2 + $0xb8] sm:$0xf] %vm225_vm4, %v728_v29  ;;  %v1624_v8 = vshll.u32 %v5789_v23, 16  ;;  %v6400_v18 = vld [vmem:[#allocation7 + $0x120] ss:$8 sps:$4 sm:$0xff]   ;;  %v1631_v19 = vrot.slane %v1629_v35, 4 }
 0x130   :  { %v1634_v7 = vrot.slane %v1632_v11, 5  ;;  %v1638_v3 = vshll.u32 %v5791_v10, 16  ;;  %v1442_v59 = vld [vmem:[#allocation4 + $0xe0] sm:$0xfe]  ;;  %v1621_v60 = vor.u32 %v1620_v16, %v1617_v15  ;;  %2635 = vmatpush1.bf16.msra.mxu0 %v6397_v5  ;;  %v730_v20 = vpop.permute.xlu0 %729  ;;  %v6405_v31 = vld [vmem:[#allocation7 + $0x134] ss:$8 sps:$4 sm:$0xff]  }
 0x131   :  { %v1626_v32 = vrot.slane %v1624_v8, 5  ;;  %v1444_v17 = vld [vmem:[#allocation4 + $0x100] sm:$0xfe]  ;;  %v5792_v24 = vpack.c.bf16 %v1442_v59, %v1442_v59  ;;  %v732_v25 = vpop.permute.xlu1 %731  ;;  %2636 = vmatprep.subr.bf16.mxu0 %v6402_v36  ;;  %767 = vst.msk [vmem:[#allocation2 + $0xcc] sm:$0xf] %vm225_vm4, %v730_v20 }
 0x132   :  { %v6406_v4 = vld [vmem:[#allocation2 + $0x54] ss:$20 sps:$4 sm:$0xff]   ;;  %v1635_v45 = vor.u32 %v1634_v7, %v1631_v19  ;;  %v1640_v26 = vrot.slane %v1638_v3, 5  ;;  %v5794_v30 = vpack.c.bf16 %v1444_v17, %v1444_v17  ;;  %768 = vst.msk [vmem:[#allocation2 + $0xe0] sm:$0xf] %vm225_vm4, %v732_v25  ;;  %v1622_v33 = vrot.slane %v1621_v60, 4 }
 0x133   :  { %v1643_v13 = vshrl.u32 %v5792_v24, 16  ;;  %v1646_v42 = vshll.u32 %v5792_v24, 16  ;;  %v1443_v38 = vld [vmem:[#allocation4 + $0xf0] sm:$0x1]  ;;  %2562 = vmatmul.mubr.bf16.gmra.mrb[4].mxu0 %v5403_v56  ;;  %v6410_v6 = vld [vmem:[#allocation7 + $0x144] ss:$8 sps:$4 sm:$0xff]  }
 0x134   :  { %v1636_v37 = vrot.slane %v1635_v45, 4  ;;  %v1657_v39 = vshrl.u32 %v5794_v30, 16  ;;  %v6403_v41 = vld [vmem:[#allocation7 + $0x130] ss:$8 sps:$4 sm:$0xff]   ;;  %v1627_v43 = vsel %vm7099_vm2, %v1622_v33, %v1626_v32  ;;  %v5793_v54 = vpack.c.bf16 %v1443_v38, %v1443_v38  ;;  %2637 = vmatpush1.bf16.msra.mxu0 %v6400_v18  ;;  %2571 = vmatprep.mubr.bf16.mxu0 %v6406_v4  ;;  %v734_v63 = vpop.permute.xlu0 %733  ;;  %v6411_v34 = vld [vmem:[#allocation2 + $0x50] ss:$20 sps:$4 sm:$0xff]  }
 0x135   :  { %v1445_v53 = vld [vmem:[#allocation4 + $0x110] sm:$0x1]  ;;  %v736_v49 = vpop.permute.xlu1 %735  ;;  %1802 = vst.msk [vmem:[#allocation2 + $0x60] sm:$0xf] %vm176_vm3, %v1627_v43  ;;  %v1645_v27 = vrot.slane %v1643_v13, 4  ;;  %v1648_v50 = vrot.slane %v1646_v42, 5  ;;  %2638 = vmatprep.subr.bf16.mxu0 %v6405_v31 }
 0x136   :  { %v1641_v44 = vsel %vm7099_vm2, %v1636_v37, %v1640_v26  ;;  %v5795_v48 = vpack.c.bf16 %v1445_v53, %v1445_v53  ;;  %770 = vst.msk [vmem:[#allocation2 + $0x108] sm:$0xf] %vm225_vm4, %v736_v49  ;;  %769 = vst.msk [vmem:[#allocation2 + $0xf4] sm:$0xf] %vm225_vm4, %v734_v63  ;;  %v1652_v46 = vshll.u32 %v5793_v54, 16  ;;  %v1659_v55 = vrot.slane %v1657_v39, 4 }
 0x137   :  { %1803 = vst.msk [vmem:[#allocation2 + $0x74] sm:$0xf] %vm176_vm3, %v1641_v44  ;;  %v1660_v47 = vshll.u32 %v5794_v30, 16  ;;  %v6408_v1 = vld [vmem:[#allocation7 + $0x140] ss:$8 sps:$4 sm:$0xff]   ;;  %v1649_v21 = vor.u32 %v1648_v50, %v1645_v27 }
 0x138   :  { %v1666_v40 = vshll.u32 %v5795_v48, 16  ;;  %v1446_v51 = vld [vmem:[#allocation4 + $0x140] sm:$0xfe]  ;;  %v1654_v57 = vrot.slane %v1652_v46, 5  ;;  %2639 = vmatpush1.bf16.msra.mxu0 %v6403_v41  ;;  %v738_v14 = vpop.permute.xlu0 %737  ;;  %v6414_v29 = vld [vmem:[#allocation7 + $0x154] ss:$8 sps:$4 sm:$0xff]  }
 0x139   :  { %v1448_v52 = vld [vmem:[#allocation4 + $0x160] sm:$0xfe]  ;;  %v1662_v58 = vrot.slane %v1660_v47, 5  ;;  %v5796_v62 = vpack.c.bf16 %v1446_v51, %v1446_v51  ;;  %v740_v23 = vpop.permute.xlu1 %739  ;;  %v1650_v0 = vrot.slane %v1649_v21, 4  ;;  %2640 = vmatprep.subr.bf16.mxu0 %v6410_v6  ;;  %771 = vst.msk [vmem:[#allocation2 + $0x11c] sm:$0xf] %vm225_vm4, %v738_v14 }
 0x13a   :  { %v5798_v22 = vpack.c.bf16 %v1448_v52, %v1448_v52  ;;  %v6415_v61 = vld [vmem:[#allocation2 + $0x7c] ss:$20 sps:$4 sm:$0xff]   ;;  %v1668_v5 = vrot.slane %v1666_v40, 5  ;;  %772 = vst.msk [vmem:[#allocation2 + $0x130] sm:$0xf] %vm225_vm4, %v740_v23 }
 0x13b   :  { %v1663_v9 = vor.u32 %v1662_v58, %v1659_v55  ;;  %v1671_v10 = vshrl.u32 %v5796_v62, 16  ;;  %v1674_v35 = vshll.u32 %v5796_v62, 16  ;;  %v1655_v12 = vsel %vm7099_vm2, %v1650_v0, %v1654_v57  ;;  %v1447_v36 = vld [vmem:[#allocation4 + $0x150] sm:$0x1]  ;;  %2572 = vmatmul.mubr.bf16.gmra.mrb[8].mxu0 %v6411_v34  ;;  %v6419_v3 = vld [vmem:[#allocation7 + $0x164] ss:$8 sps:$4 sm:$0xff]  }
 0x13c   :  { %v1685_v11 = vshrl.u32 %v5798_v22, 16  ;;  %v1449_v15 = vld [vmem:[#allocation4 + $0x170] sm:$0x1]  ;;  %v1688_v16 = vshll.u32 %v5798_v22, 16  ;;  %1804 = vst.msk [vmem:[#allocation2 + $0x88] sm:$0xf] %vm176_vm3, %v1655_v12  ;;  %v5797_v2 = vpack.c.bf16 %v1447_v36, %v1447_v36  ;;  %2641 = vmatpush1.bf16.msra.mxu0 %v6408_v1  ;;  %2581 = vmatprep.mubr.bf16.mxu0 %v6415_v61  ;;  %v854_v60 = vpop.permute.xlu0 %853 }
 0x13d   :  { %v1664_v8 = vrot.slane %v1663_v9, 4  ;;  %v5799_v18 = vpack.c.bf16 %v1449_v15, %v1449_v15  ;;  %v1673_v19 = vrot.slane %v1671_v10, 4  ;;  %v6412_v7 = vld [vmem:[#allocation7 + $0x150] ss:$8 sps:$4 sm:$0xff]   ;;  %v856_v59 = vpop.permute.xlu1 %855  ;;  %v1676_v32 = vrot.slane %v1674_v35, 5  ;;  %2642 = vmatprep.subr.bf16.mxu0 %v6414_v29 }
 0x13e   :  { %v1687_v17 = vrot.slane %v1685_v11, 4  ;;  %v6420_v24 = vld [vmem:[#allocation2 + $0x78] ss:$20 sps:$4 sm:$0xff]   ;;  %902 = vst.msk [vmem:[#allocation2 + $0x1c] sm:$0xf] %vm176_vm3, %v856_v59  ;;  %v1680_v25 = vshll.u32 %v5797_v2, 16 }
 0x13f   :  { %901 = vst.msk [vmem:[#allocation2 + $0x8] sm:$0xf] %vm176_vm3, %v854_v60  ;;  %v1669_v4 = vsel %vm7099_vm2, %v1664_v8, %v1668_v5  ;;  %v1690_v20 = vrot.slane %v1688_v16, 5  ;;  %v6417_v45 = vld [vmem:[#allocation7 + $0x160] ss:$8 sps:$4 sm:$0xff]   ;;  %v1677_v26 = vor.u32 %v1676_v32, %v1673_v19  ;;  %v1694_v30 = vshll.u32 %v5799_v18, 16 }
 0x140   :  { %1805 = vst.msk [vmem:[#allocation2 + $0x9c] sm:$0xf] %vm176_vm3, %v1669_v4  ;;  %v1450_v56 = vld [vmem:[#allocation4 + $0x180] sm:$0xfe]  ;;  %v1682_v33 = vrot.slane %v1680_v25, 5  ;;  %2643 = vmatpush1.bf16.msra.mxu0 %v6412_v7  ;;  %v1270_v41 = vpop.permute.xlu0 %1269 }
 0x141   :  { %v1452_v31 = vld [vmem:[#allocation4 + $0x1a0] sm:$0xfe]  ;;  %v1691_v13 = vor.u32 %v1690_v20, %v1687_v17  ;;  %v5800_v42 = vpack.c.bf16 %v1450_v56, %v1450_v56  ;;  %v6423_v37 = vld [vmem:[#allocation7 + $0x174] ss:$8 sps:$4 sm:$0xff]   ;;  %v1272_v39 = vpop.permute.xlu1 %1271  ;;  %v1678_v43 = vrot.slane %v1677_v26, 4  ;;  %v1696_v53 = vrot.slane %v1694_v30, 5  ;;  %2644 = vmatprep.subr.bf16.mxu0 %v6419_v3 }
 0x142   :  { %v6424_v38 = vld [vmem:[#allocation2 + $0xa4] ss:$20 sps:$4 sm:$0xff]   ;;  %v5802_v54 = vpack.c.bf16 %v1452_v31, %v1452_v31  ;;  %1318 = vst.msk [vmem:[#allocation2 + $0x1c] sm:$0xf] %vm225_vm4, %v1272_v39  ;;  %1317 = vst.msk [vmem:[#allocation2 + $0x8] sm:$0xf] %vm225_vm4, %v1270_v41 }
 0x143   :  { %v1692_v6 = vrot.slane %v1691_v13, 4  ;;  %v1699_v49 = vshrl.u32 %v5800_v42, 16  ;;  %v1702_v63 = vshll.u32 %v5800_v42, 16  ;;  %v6421_v44 = vld [vmem:[#allocation7 + $0x170] ss:$8 sps:$4 sm:$0xff]   ;;  %v1683_v48 = vsel %vm7099_vm2, %v1678_v43, %v1682_v33  ;;  %2582 = vmatmul.mubr.bf16.gmra.mrb[12].mxu0 %v6420_v24 }
 0x144   :  { %v1451_v27 = vld [vmem:[#allocation4 + $0x190] sm:$0x1]  ;;  %v6428_v34 = vld [vmem:[#allocation7 + $0x184] ss:$8 sps:$4 sm:$0xff]   ;;  %1806 = vst.msk [vmem:[#allocation2 + $0xb0] sm:$0xf] %vm176_vm3, %v1683_v48  ;;  %2645 = vmatpush1.bf16.msra.mxu0 %v6417_v45  ;;  %2591 = vmatprep.mubr.bf16.mxu0 %v6424_v38  ;;  %v858_v40 = vpop.permute.xlu0 %857 }
 0x145   :  { %v1453_v50 = vld [vmem:[#allocation4 + $0x1b0] sm:$0x1]  ;;  %v1697_v46 = vsel %vm7099_vm2, %v1692_v6, %v1696_v53  ;;  %v5801_v55 = vpack.c.bf16 %v1451_v27, %v1451_v27  ;;  %v1701_v1 = vrot.slane %v1699_v49, 4  ;;  %v860_v21 = vpop.permute.xlu1 %859  ;;  %v1704_v51 = vrot.slane %v1702_v63, 5  ;;  %2646 = vmatprep.subr.bf16.mxu0 %v6423_v37  ;;  %903 = vst.msk [vmem:[#allocation2 + $0x30] sm:$0xf] %vm176_vm3, %v858_v40 }
 0x146   :  { %v5803_v47 = vpack.c.bf16 %v1453_v50, %v1453_v50  ;;  %1807 = vst.msk [vmem:[#allocation2 + $0xc4] sm:$0xf] %vm176_vm3, %v1697_v46  ;;  %v1713_v52 = vshrl.u32 %v5802_v54, 16  ;;  %v1716_v57 = vshll.u32 %v5802_v54, 16  ;;  %v6429_v58 = vld [vmem:[#allocation2 + $0xa0] ss:$20 sps:$4 sm:$0xff]  }
 0x147   :  { %904 = vst.msk [vmem:[#allocation2 + $0x44] sm:$0xf] %vm176_vm3, %v860_v21  ;;  %v1708_v62 = vshll.u32 %v5801_v55, 16  ;;  %v6426_v61 = vld [vmem:[#allocation7 + $0x180] ss:$8 sps:$4 sm:$0xff]   ;;  %v1705_v23 = vor.u32 %v1704_v51, %v1701_v1 }
 0x148   :  { %v1722_v22 = vshll.u32 %v5803_v47, 16  ;;  %v1715_v14 = vrot.slane %v1713_v52, 4  ;;  %v1718_v0 = vrot.slane %v1716_v57, 5  ;;  %v1454_v5 = vld [vmem:[#allocation4 + $0x1c0] sm:$0xfe]  ;;  %2647 = vmatpush1.bf16.msra.mxu0 %v6421_v44  ;;  %v1274_v36 = vpop.permute.xlu0 %1273 }
 0x149   :  { %v1456_v29 = vld [vmem:[#allocation4 + $0x1e0] sm:$0xfe]  ;;  %v1710_v9 = vrot.slane %v1708_v62, 5  ;;  %v5804_v10 = vpack.c.bf16 %v1454_v5, %v1454_v5  ;;  %v6433_v11 = vld [vmem:[#allocation2 + $0xcc] ss:$20 sps:$4 sm:$0xff]   ;;  %v1276_v12 = vpop.permute.xlu1 %1275  ;;  %v1706_v15 = vrot.slane %v1705_v23, 4  ;;  %2648 = vmatprep.subr.bf16.mxu0 %v6428_v34 }
 0x14a   :  { %v5806_v35 = vpack.c.bf16 %v1456_v29, %v1456_v29  ;;  %v1719_v16 = vor.u32 %v1718_v0, %v1715_v14  ;;  %v1724_v8 = vrot.slane %v1722_v22, 5  ;;  %v6432_v2 = vld [vmem:[#allocation7 + $0x194] ss:$8 sps:$4 sm:$0xff]   ;;  %1320 = vst.msk [vmem:[#allocation2 + $0x44] sm:$0xf] %vm225_vm4, %v1276_v12  ;;  %v1850_v23 = vld [vmem:[#allocation2 + $0xf0] sm:$0xff] }
 0x14b   :  { %1319 = vst.msk [vmem:[#allocation2 + $0x30] sm:$0xf] %vm225_vm4, %v1274_v36  ;;  %v1727_v18 = vshrl.u32 %v5804_v10, 16  ;;  %v1730_v19 = vshll.u32 %v5804_v10, 16  ;;  %v6430_v59 = vld [vmem:[#allocation7 + $0x190] ss:$8 sps:$4 sm:$0xff]   ;;  %v1711_v60 = vsel %vm7099_vm2, %v1706_v15, %v1710_v9  ;;  %2592 = vmatmul.mubr.bf16.gmra.mrb[16].mxu0 %v6429_v58 }
 0x14c   :  { %v1741_v7 = vshrl.u32 %v5806_v35, 16  ;;  %v1744_v3 = vshll.u32 %v5806_v35, 16  ;;  %v1720_v32 = vrot.slane %v1719_v16, 4  ;;  %v1455_v17 = vld [vmem:[#allocation4 + $0x1d0] sm:$0x1]  ;;  %2649 = vmatpush1.bf16.msra.mxu0 %v6426_v61  ;;  %2601 = vmatprep.mubr.bf16.mxu0 %v6433_v11  ;;  %v862_v45 = vpop.permute.xlu0 %861  ;;  %v1853_v14 = vld [vmem:[#allocation2 + $0x104] sm:$0xff] }
 0x14d   :  { %v6437_v24 = vld [vmem:[#allocation7 + $0x1a4] ss:$8 sps:$4 sm:$0xff]   ;;  %1808 = vst.msk [vmem:[#allocation2 + $0xd8] sm:$0xf] %vm176_vm3, %v1711_v60  ;;  %v1457_v4 = vld [vmem:[#allocation4 + $0x1f0] sm:$0x1]  ;;  %v5805_v25 = vpack.c.bf16 %v1455_v17, %v1455_v17  ;;  %v864_v20 = vpop.permute.xlu1 %863  ;;  %2650 = vmatprep.subr.bf16.mxu0 %v6432_v2  ;;  %v5428_v16 = vcombine.low %v1850_v23, %v1853_v14 }
 0x14e   :  { %v1725_v26 = vsel %vm7099_vm2, %v1720_v32, %v1724_v8  ;;  %v5807_v30 = vpack.c.bf16 %v1457_v4, %v1457_v4  ;;  %v1729_v56 = vrot.slane %v1727_v18, 4  ;;  %v1732_v31 = vrot.slane %v1730_v19, 5  ;;  %v6438_v33 = vld [vmem:[#allocation2 + $0xc8] ss:$20 sps:$4 sm:$0xff]   ;;  %906 = vst.msk [vmem:[#allocation2 + $0x6c] sm:$0xf] %vm176_vm3, %v864_v20 }
 0x14f   :  { %905 = vst.msk [vmem:[#allocation2 + $0x58] sm:$0xf] %vm176_vm3, %v862_v45  ;;  %1809 = vst.msk [vmem:[#allocation2 + $0xec] sm:$0xf] %vm176_vm3, %v1725_v26  ;;  %v1736_v13 = vshll.u32 %v5805_v25, 16  ;;  %v1743_v42 = vrot.slane %v1741_v7, 4 }
 0x150   :  { %v1746_v37 = vrot.slane %v1744_v3, 5  ;;  %v6435_v38 = vld [vmem:[#allocation7 + $0x1a0] ss:$8 sps:$4 sm:$0xff]   ;;  %v1733_v39 = vor.u32 %v1732_v31, %v1729_v56  ;;  %v1750_v41 = vshll.u32 %v5807_v30, 16  ;;  %2651 = vmatpush1.bf16.msra.mxu0 %v6430_v59  ;;  %v6441_v63 = vld [vmem:[#allocation7 + $0x1b4] ss:$8 sps:$4 sm:$0xff]   ;;  %v1278_v27 = vpop.permute.xlu0 %1277 }
 0x151   :  { %v1458_v43 = vld [vmem:[#allocation4 + $0x200] sm:$0xfe]  ;;  %v1738_v54 = vrot.slane %v1736_v13, 5  ;;  %v1280_v48 = vpop.permute.xlu1 %1279  ;;  %2652 = vmatprep.subr.bf16.mxu0 %v6437_v24  ;;  %1321 = vst.msk [vmem:[#allocation2 + $0x58] sm:$0xf] %vm225_vm4, %v1278_v27  ;;  %v1856_v4 = vld [vmem:[#allocation2 + $0x118] sm:$0xff] }
 0x152   :  { %v1460_v53 = vld [vmem:[#allocation4 + $0x220] sm:$0xfe]  ;;  %v1747_v6 = vor.u32 %v1746_v37, %v1743_v42  ;;  %v5808_v49 = vpack.c.bf16 %v1458_v43, %v1458_v43  ;;  %v1734_v50 = vrot.slane %v1733_v39, 4  ;;  %v1752_v34 = vrot.slane %v1750_v41, 5  ;;  %1322 = vst.msk [vmem:[#allocation2 + $0x6c] sm:$0xf] %vm225_vm4, %v1280_v48 }
 0x153   :  { %v6442_v44 = vld [vmem:[#allocation2 + $0xf4] ss:$20 sps:$4 sm:$0xff]   ;;  %v5810_v46 = vpack.c.bf16 %v1460_v53, %v1460_v53  ;;  %v1459_v51 = vld [vmem:[#allocation4 + $0x210] sm:$0x1]  ;;  %2602 = vmatmul.mubr.bf16.gmra.mrb[20].mxu0 %v6438_v33  ;;  %v6444_v15 = vld [vmem:[#allocation7 + $0x1c0] ss:$8 sps:$4 sm:$0xff]  }
 0x154   :  { %v1748_v55 = vrot.slane %v1747_v6, 4  ;;  %v1755_v47 = vshrl.u32 %v5808_v49, 16  ;;  %v1758_v1 = vshll.u32 %v5808_v49, 16  ;;  %v6439_v21 = vld [vmem:[#allocation7 + $0x1b0] ss:$8 sps:$4 sm:$0xff]   ;;  %v1739_v40 = vsel %vm7099_vm2, %v1734_v50, %v1738_v54  ;;  %2653 = vmatpush1.bf16.msra.mxu0 %v6435_v38  ;;  %2611 = vmatprep.mubr.bf16.mxu0 %v6442_v44  ;;  %v866_v5 = vpop.permute.xlu0 %865  ;;  %v1859_v25 = vld [vmem:[#allocation2 + $0x12c] sm:$0xff] }
 0x155   :  { %v1461_v52 = vld [vmem:[#allocation4 + $0x230] sm:$0x1]  ;;  %v6446_v57 = vld [vmem:[#allocation7 + $0x1c4] ss:$8 sps:$4 sm:$0xff]   ;;  %1810 = vst.msk [vmem:[#allocation2 + $0x100] sm:$0xf] %vm176_vm3, %v1739_v40  ;;  %v5809_v62 = vpack.c.bf16 %v1459_v51, %v1459_v51  ;;  %v868_v0 = vpop.permute.xlu1 %867  ;;  %2654 = vmatprep.subr.bf16.mxu0 %v6441_v63  ;;  %v5433_v31 = vcombine.low %v1856_v4, %v1859_v25 }
 0x156   :  { %v1753_v58 = vsel %vm7099_vm2, %v1748_v55, %v1752_v34  ;;  %v5811_v22 = vpack.c.bf16 %v1461_v52, %v1461_v52  ;;  %v1757_v61 = vrot.slane %v1755_v47, 4  ;;  %v1760_v29 = vrot.slane %v1758_v1, 5  ;;  %908 = vst.msk [vmem:[#allocation2 + $0x94] sm:$0xf] %vm176_vm3, %v868_v0  ;;  %907 = vst.msk [vmem:[#allocation2 + $0x80] sm:$0xf] %vm176_vm3, %v866_v5 }
 0x157   :  { %1811 = vst.msk [vmem:[#allocation2 + $0x114] sm:$0xf] %vm176_vm3, %v1753_v58  ;;  %v1769_v9 = vshrl.u32 %v5810_v46, 16  ;;  %v1764_v10 = vshll.u32 %v5809_v62, 16  ;;  %v1772_v35 = vshll.u32 %v5810_v46, 16  ;;  %v1821_v48 = vld [vmem:[#allocation2 + $0x30] sm:$0xff] }
 0x158   :  { %v1778_v11 = vshll.u32 %v5811_v22, 16  ;;  %v1761_v12 = vor.u32 %v1760_v29, %v1757_v61  ;;  %2655 = vmatpush1.bf16.msra.mxu0 %v6439_v21  ;;  %v6449_v18 = vld [vmem:[#allocation7 + $0x1d4] ss:$8 sps:$4 sm:$0xff]   ;;  %v6450_v19 = vld [vmem:[#allocation2 + $0x11c] ss:$20 sps:$4 sm:$0xff]   ;;  %v1282_v3 = vpop.permute.xlu0 %1281 }
 0x159   :  { %v1771_v36 = vrot.slane %v1769_v9, 4  ;;  %v1766_v8 = vrot.slane %v1764_v10, 5  ;;  %v1774_v2 = vrot.slane %v1772_v35, 5  ;;  %v1284_v7 = vpop.permute.xlu1 %1283  ;;  %2656 = vmatprep.subr.bf16.mxu0 %v6446_v57  ;;  %1323 = vst.msk [vmem:[#allocation2 + $0x80] sm:$0xf] %vm225_vm4, %v1282_v3  ;;  %v1824_v27 = vld [vmem:[#allocation2 + $0x44] sm:$0xff] }
 0x15a   :  { %v1762_v59 = vrot.slane %v1761_v12, 4  ;;  %v1780_v60 = vrot.slane %v1778_v11, 5  ;;  %1324 = vst.msk [vmem:[#allocation2 + $0x94] sm:$0xf] %vm225_vm4, %v1284_v7  ;;  %v6447_v17 = vld [vmem:[#allocation7 + $0x1d0] ss:$8 sps:$4 sm:$0xff]   ;;  %v5405_v47 = vcombine.low %v1821_v48, %v1824_v27 }
 0x15b   :  { %v1775_v32 = vor.u32 %v1774_v2, %v1771_v36  ;;  %2612 = vmatmul.mubr.bf16.gmra.mrb[24].mxu0 %v5428_v16  ;;  %v6454_v20 = vld [vmem:[#allocation7 + $0x1e4] ss:$8 sps:$4 sm:$0xff]   ;;  %v6452_v33 = vld [vmem:[#allocation7 + $0x1e0] ss:$8 sps:$4 sm:$0xff]   ;;  %v6457_v13 = vld [vmem:[#allocation7 + $0x1f4] ss:$8 sps:$4 sm:$0xff]  }
 0x15c   :  { %v1767_v24 = vsel %vm7099_vm2, %v1762_v59, %v1766_v8  ;;  %2657 = vmatpush1.bf16.msra.mxu0 %v6444_v15  ;;  %2621 = vmatprep.mubr.bf16.mxu0 %v6450_v19  ;;  %v6460_v42 = vld [vmem:[#allocation2 + $0xc] ss:$20 sps:$4 sm:$0xff]   ;;  %v6463_v41 = vld [vmem:[#allocation7 + $0x204] ss:$8 sps:$4 sm:$0xff]   ;;  %v6461_v54 = vld [vmem:[#allocation7 + $0x200] ss:$8 sps:$4 sm:$0xff]  }
 0x15d   :  { %v1776_v45 = vrot.slane %v1775_v32, 4  ;;  %1812 = vst.msk [vmem:[#allocation2 + $0x128] sm:$0xf] %vm176_vm3, %v1767_v24  ;;  %v872_v26 = vpop.permute.xlu1 %871  ;;  %v870_v30 = vpop.permute.xlu0 %869  ;;  %2658 = vmatprep.subr.bf16.mxu0 %v6449_v18  ;;  %v6455_v39 = vld [vmem:[#allocation7 + $0x1f0] ss:$8 sps:$4 sm:$0xff]   ;;  %v1827_v57 = vld [vmem:[#allocation2 + $0x58] sm:$0xff] }
 0x15e   :  { %910 = vst.msk [vmem:[#allocation2 + $0xbc] sm:$0xf] %vm176_vm3, %v872_v26  ;;  %909 = vst.msk [vmem:[#allocation2 + $0xa8] sm:$0xf] %vm176_vm3, %v870_v30  ;;  %v6458_v53 = vld [vmem:[#allocation2 + $0x8] ss:$20 sps:$4 sm:$0xff]  }
 0x15f   :  { %v1781_v56 = vsel %vm7099_vm2, %v1776_v45, %v1780_v60  ;;  %v6464_v6 = vld [vmem:[#allocation2 + $0x34] ss:$20 sps:$4 sm:$0xff]   ;;  %v6470_v49 = vld [vmem:[#allocation7 + $0x214] ss:$8 sps:$4 sm:$0xff]   ;;  %v6466_v1 = vld [vmem:[#allocation2 + $0x5c] ss:$20 sps:$4 sm:$0xff]  }
 0x160   :  { %1813 = vst.msk [vmem:[#allocation2 + $0x13c] sm:$0xf] %vm176_vm3, %v1781_v56  ;;  %2659 = vmatpush1.bf16.msra.mxu0 %v6447_v17  ;;  %v6468_v50 = vld [vmem:[#allocation7 + $0x210] ss:$8 sps:$4 sm:$0xff]   ;;  %v6477_v34 = vld [vmem:[#allocation7 + $0x224] ss:$8 sps:$4 sm:$0xff]  }
 0x161   :  { %v1288_v37 = vpop.permute.xlu1 %1287  ;;  %v1286_v38 = vpop.permute.xlu0 %1285  ;;  %2660 = vmatprep.subr.bf16.mxu0 %v6454_v20  ;;  %v6475_v21 = vld [vmem:[#allocation7 + $0x220] ss:$8 sps:$4 sm:$0xff]   ;;  %v6484_v52 = vld [vmem:[#allocation7 + $0x234] ss:$8 sps:$4 sm:$0xff]   ;;  %v6482_v62 = vld [vmem:[#allocation7 + $0x230] ss:$8 sps:$4 sm:$0xff]  }
 0x162   :  { %1326 = vst.msk [vmem:[#allocation2 + $0xbc] sm:$0xf] %vm225_vm4, %v1288_v37  ;;  %1325 = vst.msk [vmem:[#allocation2 + $0xa8] sm:$0xf] %vm225_vm4, %v1286_v38  ;;  %v1830_v58 = vld [vmem:[#allocation2 + $0x6c] sm:$0xff]  ;;  %v1833_v29 = vld [vmem:[#allocation2 + $0x80] sm:$0xff] }
 0x163   :  { %2622 = vmatmul.mubr.bf16.gmra.mrb[28].mxu0 %v5433_v31  ;;  %v5410_v23 = vcombine.low %v1827_v57, %v1830_v58  ;;  %v6471_v14 = vld [vmem:[#allocation2 + $0x84] ss:$20 sps:$4 sm:$0xff]   ;;  %v6473_v35 = vld [vmem:[#allocation2 + $0xac] ss:$20 sps:$4 sm:$0xff]   ;;  %v6478_v15 = vld [vmem:[#allocation2 + $0xd4] ss:$20 sps:$4 sm:$0xff]  }
 0x164   :  { %2661 = vmatpush1.bf16.msra.mxu0 %v6452_v33  ;;  %2664 = vmatprep.mubr.bf16.mxu0 %v6460_v42  ;;  %v1836_v9 = vld [vmem:[#allocation2 + $0x94] sm:$0xff]  ;;  %v6480_v18 = vld [vmem:[#allocation2 + $0xfc] ss:$20 sps:$4 sm:$0xff]   ;;  %v6623_v59 = vld [vmem:[#allocation3] sm:$0xff] }
 0x165   :  { %v876_v28 = vpop.permute.xlu1 %875  ;;  %v874_v43 = vpop.permute.xlu0 %873  ;;  %2662 = vmatprep.subr.bf16.mxu0 %v6457_v13  ;;  %v5415_v10 = vcombine.low %v1833_v29, %v1836_v9  ;;  %v6486_v7 = vld [vmem:[#allocation2 + $0x124] ss:$20 sps:$4 sm:$0xff]   ;;  %v6491_v17 = vld [vmem:[#allocation2 + $0x60] ss:$20 sps:$4 sm:$0xff]   ;;  %v6492_v24 = vld [vmem:[#allocation2 + $0x88] ss:$20 sps:$4 sm:$0xff]  }
 0x166   :  { %912 = vst.msk [vmem:[#allocation2 + $0xe4] sm:$0xf] %vm176_vm3, %v876_v28  ;;  %911 = vst.msk [vmem:[#allocation2 + $0xd0] sm:$0xf] %vm176_vm3, %v874_v43  ;;  %v6489_v60 = vld [vmem:[#allocation2 + $0x10] ss:$20 sps:$4 sm:$0xff]  }
 0x167   :  { %v6490_v32 = vld [vmem:[#allocation2 + $0x38] ss:$20 sps:$4 sm:$0xff]   ;;  %v6493_v4 = vld [vmem:[#allocation2 + $0xb0] ss:$20 sps:$4 sm:$0xff]   ;;  %v6495_v20 = vld [vmem:[#allocation2 + $0x100] ss:$20 sps:$4 sm:$0xff]  }
 0x168   :  { %2663 = vmatpush1.bf16.msra.mxu0 %v6455_v39  ;;  %v6494_v25 = vld [vmem:[#allocation2 + $0xd8] ss:$20 sps:$4 sm:$0xff]   ;;  %v6496_v45 = vld [vmem:[#allocation2 + $0x128] ss:$20 sps:$4 sm:$0xff]   ;;  %v6497_v26 = vld [vmem:[#allocation9 + $0x100] sm:$0xff]  }
 0x169   :  { %v1292_v63 = vpop.permute.xlu1 %1291  ;;  %2745 = vmatprep.subr.bf16.mxu0 %v6463_v41  ;;  %v1839_v11 = vld [vmem:[#allocation2 + $0xa8] sm:$0xff]  ;;  %v1842_v12 = vld [vmem:[#allocation2 + $0xbc] sm:$0xff]  ;;  %v6498_v30 = vld [vmem:[#allocation9 + $0xc0] sm:$0xff]   ;;  %6164 = vmatprep.subr.bf16.mxu1 %v6497_v26 }
 0x16a   :  { %v1290_v44 = vpop.permute.xlu0 %1289  ;;  %1328 = vst.msk [vmem:[#allocation2 + $0xe4] sm:$0xf] %vm225_vm4, %v1292_v63  ;;  %v5420_v36 = vcombine.low %v1839_v11, %v1842_v12  ;;  %6172 = vmatpush3.bf16.msra.mxu1 %v6498_v30  ;;  %v6499_v56 = vld [vmem:[#allocation9 + $0x108] sm:$0xff]   ;;  %v6501_v33 = vld [vmem:[#allocation9 + $0x110] sm:$0xff]   ;;  %v6503_v42 = vld [vmem:[#allocation9 + $0x118] sm:$0xff]  }
 0x16b   :  { %1327 = vst.msk [vmem:[#allocation2 + $0xd0] sm:$0xf] %vm225_vm4, %v1290_v44  ;;  %2665 = vmatmul.mubr.bf16.vlgmr.msra.gmra.mrb[0].mxu0 %v6458_v53  ;;  %v6500_v31 = vld [vmem:[#allocation9 + $0xc8] sm:$0xff]   ;;  %6165 = vmatprep.subr.bf16.mxu1 %v6499_v56  ;;  %v6502_v13 = vld [vmem:[#allocation9 + $0xd0] sm:$0xff]   ;;  %v6504_v37 = vld [vmem:[#allocation9 + $0xd8] sm:$0xff]  }
 0x16c   :  { %2746 = vmatpush1.bf16.msra.mxu0 %v6461_v54  ;;  %2674 = vmatprep.mubr.bf16.mxu0 %v6464_v6  ;;  %v6505_v38 = vld [vmem:[#allocation9 + $0x120] sm:$0xff]   ;;  %v6507_v41 = vld [vmem:[#allocation9 + $0x128] sm:$0xff]   ;;  %v6509_v43 = vld [vmem:[#allocation9 + $0x130] sm:$0xff]  }
 0x16d   :  { %v880_v46 = vpop.permute.xlu1 %879  ;;  %2747 = vmatprep.subr.bf16.mxu0 %v6470_v49  ;;  %v6506_v39 = vld [vmem:[#allocation9 + $0xe0] sm:$0xff]   ;;  %v6508_v28 = vld [vmem:[#allocation9 + $0xe8] sm:$0xff]   ;;  %v6510_v53 = vld [vmem:[#allocation9 + $0xf0] sm:$0xff]  }
 0x16e   :  { %v878_v55 = vpop.permute.xlu0 %877  ;;  %914 = vst.msk [vmem:[#allocation2 + $0x10c] sm:$0xf] %vm176_vm3, %v880_v46  ;;  %6173 = vmatpush3.bf16.msra.mxu1 %v6500_v31  ;;  %v6511_v54 = vld [vmem:[#allocation9 + $0x138] sm:$0xff]   ;;  %v7485_v49 = vld [vmem:[#allocation9 + $0x140] sm:$0xff]  }
 0x16f   :  { %913 = vst.msk [vmem:[#allocation2 + $0xf8] sm:$0xf] %vm176_vm3, %v878_v55  ;;  %6166 = vmatprep.subr.bf16.mxu1 %v6501_v33  ;;  %v6512_v6 = vld [vmem:[#allocation9 + $0xf8] sm:$0xff]   ;;  %v7488_v63 = vld [vmem:[#allocation10] ss:$0 sm:$0xff] }
 0x170   :  { %2748 = vmatpush1.bf16.msra.mxu0 %v6468_v50  ;;  %v7490_v48 = vld [vmem:[#allocation12] ss:$0 sm:$0xff] }
 0x171   :  { %v1296_v40 = vpop.permute.xlu1 %1295  ;;  %2749 = vmatprep.subr.bf16.mxu0 %v6477_v34  ;;  %v1848_v8 = vld [vmem:[#allocation2 + $0xe4] sm:$0xff] }
 0x172   :  { %v1294_v51 = vpop.permute.xlu0 %1293  ;;  %1330 = vst.msk [vmem:[#allocation2 + $0x10c] sm:$0xf] %vm225_vm4, %v1296_v40  ;;  %v1845_v16 = vld [vmem:[#allocation2 + $0xd0] sm:$0xff]  ;;  %6174 = vmatpush3.bf16.msra.mxu1 %v6502_v13 }
 0x173   :  { %1329 = vst.msk [vmem:[#allocation2 + $0xf8] sm:$0xf] %vm225_vm4, %v1294_v51  ;;  %2675 = vmatmul.mubr.bf16.gmra.mrb[4].mxu0 %v5405_v47  ;;  %v5425_v2 = vcombine.low %v1845_v16, %v1848_v8  ;;  %6167 = vmatprep.subr.bf16.mxu1 %v6503_v42 }
 0x174   :  { %2684 = vmatprep.mubr.bf16.mxu0 %v6466_v1  ;;  %2750 = vmatpush1.bf16.msra.mxu0 %v6475_v21 }
 0x175   :  { %v884_v22 = vpop.permute.xlu1 %883  ;;  %2751 = vmatprep.subr.bf16.mxu0 %v6484_v52 }
 0x176   :  { %v882_v61 = vpop.permute.xlu0 %881  ;;  %916 = vst.msk [vmem:[#allocation2 + $0x134] sm:$0xf] %vm176_vm3, %v884_v22  ;;  %6175 = vmatpush3.bf16.msra.mxu1 %v6504_v37 }
 0x177   :  { %915 = vst.msk [vmem:[#allocation2 + $0x120] sm:$0xf] %vm176_vm3, %v882_v61  ;;  %6168 = vmatprep.subr.bf16.mxu1 %v6505_v38 }
 0x178   :  { %2752 = vmatpush1.bf16.msra.mxu0 %v6482_v62 }
 0x179   :  { %v1300_v0 = vpop.permute.xlu1 %1299  ;;  %5828 = vmatprep.subr.bf16.mxu0 %v6497_v26 }
 0x17a   :  { %v1298_v5 = vpop.permute.xlu0 %1297  ;;  %1332 = vst.msk [vmem:[#allocation2 + $0x134] sm:$0xf] %vm225_vm4, %v1300_v0  ;;  %v6485_v19 = vld [vmem:[#allocation2 + $0xf8] ss:$20 sps:$4 sm:$0xff]   ;;  %6176 = vmatpush3.bf16.msra.mxu1 %v6506_v39 }
 0x17b   :  { %1331 = vst.msk [vmem:[#allocation2 + $0x120] sm:$0xf] %vm225_vm4, %v1298_v5  ;;  %2685 = vmatmul.mubr.bf16.gmra.mrb[8].mxu0 %v5410_v23  ;;  %6169 = vmatprep.subr.bf16.mxu1 %v6507_v41 }
 0x17c   :  { %2694 = vmatprep.mubr.bf16.mxu0 %v6471_v14 }
 0x17e   :  { %6177 = vmatpush3.bf16.msra.mxu1 %v6508_v28 }
 0x17f   :  { %6170 = vmatprep.subr.bf16.mxu1 %v6509_v43 }
 0x182   :  { %v6488_v3 = vld [vmem:[#allocation2 + $0x120] ss:$20 sps:$4 sm:$0xff]   ;;  %6178 = vmatpush3.bf16.msra.mxu1 %v6510_v53 }
 0x183   :  { %2695 = vmatmul.mubr.bf16.gmra.mrb[12].mxu0 %v5415_v10  ;;  %6171 = vmatprep.subr.bf16.mxu1 %v6511_v54 }
 0x184   :  { %2704 = vmatprep.mubr.bf16.mxu0 %v6473_v35 }
 0x186   :  { %6179 = vmatpush3.bf16.msra.mxu1 %v6512_v6 }
 0x187   :  { %6068 = vmatprep.subr.bf16.mxu1 %v7485_v49 }
 0x18b   :  { %2705 = vmatmul.mubr.bf16.gmra.mrb[16].mxu0 %v5420_v36 }
 0x18c   :  { %2714 = vmatprep.mubr.bf16.mxu0 %v6478_v15  ;;  %v3132_v15 = vld [vmem:[#allocation3 + $0xc] sm:$0xf] }
 0x193   :  { %2715 = vmatmul.mubr.bf16.gmra.mrb[20].mxu0 %v5425_v2 }
 0x194   :  { %2724 = vmatprep.mubr.bf16.mxu0 %v6480_v18 }
 0x19b   :  { %2725 = vmatmul.mubr.bf16.gmra.mrb[24].mxu0 %v6485_v19 }
 0x19c   :  { %2734 = vmatprep.mubr.bf16.mxu0 %v6486_v7  ;;  %v3277_v7 = vld [vmem:[#allocation3 + $0x14] sm:$0xf] }
 0x1a3   :  { %2735 = vmatmul.mubr.bf16.gmra.mrb[28].mxu0 %v6488_v3 }
 0x1a4   :  { %2777 = vmatprep.mubr.bf16.mxu0 %v6623_v59 }
 0x1ab   :  { %5510 = vmatmul.mubr.msk.bf16.vlgmr.msra.gmra.mrb[0].mxu0 %vm2494_vm5, %v6489_v60 }
 0x1ac   :  { %2787 = vmatprep.mubr.bf16.mxu0 %v6623_v59  ;;  %5829 = vmatpush3.bf16.msra.mxu0 %v6498_v30 }
 0x1ad   :  { %5830 = vmatprep.subr.bf16.mxu0 %v6499_v56 }
 0x1b0   :  { %5831 = vmatpush3.bf16.msra.mxu0 %v6500_v31 }
 0x1b1   :  { %5832 = vmatprep.subr.bf16.mxu0 %v6501_v33 }
 0x1b3   :  { %5511 = vmatmul.mubr.msk.bf16.gmra.mrb[4].mxu0 %vm2494_vm5, %v6490_v32 }
 0x1b4   :  { %2797 = vmatprep.mubr.bf16.mxu0 %v6623_v59  ;;  %5833 = vmatpush3.bf16.msra.mxu0 %v6502_v13 }
 0x1b5   :  { %5834 = vmatprep.subr.bf16.mxu0 %v6503_v42 }
 0x1b8   :  { %5835 = vmatpush3.bf16.msra.mxu0 %v6504_v37 }
 0x1b9   :  { %5836 = vmatprep.subr.bf16.mxu0 %v6505_v38 }
 0x1bb   :  { %5512 = vmatmul.mubr.msk.bf16.gmra.mrb[8].mxu0 %vm2494_vm5, %v6491_v17 }
 0x1bc   :  { %2807 = vmatprep.mubr.bf16.mxu0 %v6623_v59  ;;  %5837 = vmatpush3.bf16.msra.mxu0 %v6506_v39  ;;  %v3280_v39 = vld [vmem:[#allocation3 + $0x20] sm:$0xf] }
 0x1bd   :  { %5838 = vmatprep.subr.bf16.mxu0 %v6507_v41 }
 0x1c0   :  { %5839 = vmatpush3.bf16.msra.mxu0 %v6508_v28 }
 0x1c1   :  { %5840 = vmatprep.subr.bf16.mxu0 %v6509_v43 }
 0x1c3   :  { %5513 = vmatmul.mubr.msk.bf16.gmra.mrb[12].mxu0 %vm2494_vm5, %v6492_v24 }
 0x1c4   :  { %2817 = vmatprep.mubr.bf16.mxu0 %v6623_v59  ;;  %5841 = vmatpush3.bf16.msra.mxu0 %v6510_v53 }
 0x1c5   :  { %5842 = vmatprep.subr.bf16.mxu0 %v6511_v54 }
 0x1c8   :  { %5843 = vmatpush3.bf16.msra.mxu0 %v6512_v6 }
 0x1cb   :  { %5514 = vmatmul.mubr.msk.bf16.gmra.mrb[16].mxu0 %vm2494_vm5, %v6493_v4 }
 0x1cc   :  { %2827 = vmatprep.mubr.bf16.mxu0 %v6623_v59 }
 0x1d3   :  { %5515 = vmatmul.mubr.msk.bf16.gmra.mrb[20].mxu0 %vm2494_vm5, %v6494_v25 }
 0x1d4   :  { %2837 = vmatprep.mubr.bf16.mxu0 %v6623_v59 }
 0x1db   :  { %5516 = vmatmul.mubr.msk.bf16.gmra.mrb[24].mxu0 %vm2494_vm5, %v6495_v20 }
 0x1dc   :  { %2847 = vmatprep.mubr.bf16.mxu0 %v6623_v59  ;;  %v3135_v59 = vld [vmem:[#allocation3 + $0x18] sm:$0xf] }
 0x1e3   :  { %5517 = vmatmul.mubr.msk.bf16.gmra.mrb[28].mxu0 %vm2494_vm5, %v6496_v45 }
 0x27e   :  { %v2779_v44 = vpop.f32.mrb[0].mxu0 }
 0x27f   :  { %v2865_v27 = vmul.f32 %v7488_v63, %v2779_v44  ;;  %v7493_v50 = vpop.f32.mrb[1].mxu0 }
 0x280   :  { %v2783_v34 = vpop.f32.mrb[2].mxu0 }
 0x281   :  { %v2888_v46 = vadd.f32 %v7490_v48, %v2865_v27  ;;  %v2866_v55 = vmul.f32 %v7488_v63, %v2783_v34  ;;  %v7497_v47 = vpop.f32.mrb[3].mxu0 }
 0x283   :  { %v2904_v1 = vmul.f32 0.01, %v2888_v46  ;;  %v2889_v21 = vadd.f32 %v7490_v48, %v2866_v55 }
 0x285   :  { %v2920_v40 = vmax.f32 %v2888_v46, %v2904_v1  ;;  %v2905_v51 = vmul.f32 0.01, %v2889_v21 }
 0x286   :  { %v2789_v52 = vpop.f32.mrb[4].mxu0 }
 0x287   :  { %v2936_v57 = vpack.c.bf16 %v2920_v40, %v2920_v40  ;;  %v2921_v58 = vmax.f32 %v2889_v21, %v2905_v51  ;;  %v2867_v62 = vmul.f32 %v7488_v63, %v2789_v52  ;;  %v7501_v22 = vpop.f32.mrb[5].mxu0  ;;  %v3138_v51 = vld [vmem:[#allocation3 + $0x24] sm:$0xf] }
 0x288   :  { %v2793_v61 = vpop.f32.mrb[6].mxu0 }
 0x289   :  { %v3001_v23 = vshrl.u32 %v2936_v57, 16  ;;  %v3004_v14 = vshll.u32 %v2936_v57, 16  ;;  %3180 = vst [vmem:[#allocation3 + $0x10] sm:$0xf] %v2936_v57  ;;  %v2937_v0 = vpack.c.bf16 %v2921_v58, %v2921_v58  ;;  %v2890_v5 = vadd.f32 %v7490_v48, %v2867_v62  ;;  %v7504_v29 = vpop.f32.mrb[7].mxu0 }
 0x28a   :  { %v2868_v9 = vmul.f32 %v7488_v63, %v2793_v61 }
 0x28b   :  { %v3003_v10 = vrot.slane %v3001_v23, 7  ;;  %v3196_v35 = vrot.slane %v3001_v23, 4  ;;  %v3197_v11 = vrot.slane %v3004_v14, 5  ;;  %v3008_v12 = vshrl.u32 %v2937_v0, 16  ;;  %3181 = vst [vmem:[#allocation3 + $0x1c] sm:$0xf] %v2937_v0 }
 0x28c   :  { %v3011_v16 = vshll.u32 %v2937_v0, 16  ;;  %v2906_v8 = vmul.f32 0.01, %v2890_v5  ;;  %v2891_v2 = vadd.f32 %v7490_v48, %v2868_v9  ;;  %v6538_v9 = vld [vmem:[#allocation9 + $0x40] sm:$0xff]  }
 0x28d   :  { %v3006_v18 = vor.u32 %v3004_v14, %v3003_v10  ;;  %v3198_v19 = vor.u32 %v3197_v11, %v3196_v35  ;;  %v3010_v3 = vrot.slane %v3008_v12, 7  ;;  %v3200_v60 = vrot.slane %v3008_v12, 4  ;;  %v3283_v14 = vld [vmem:[#allocation3 + $0x2c] sm:$0xf] }
 0x28e   :  { %v3201_v17 = vrot.slane %v3011_v16, 5  ;;  %v2922_v24 = vmax.f32 %v2890_v5, %v2906_v8  ;;  %v2907_v4 = vmul.f32 0.01, %v2891_v2  ;;  %v2799_v25 = vpop.f32.mrb[8].mxu0 }
 0x28f   :  { %v3133_v20 = vsel %vm7508_vm8, %v3006_v18, %v3132_v15  ;;  %v3199_v45 = vrot.slane %v3198_v19, 4  ;;  %v3013_v26 = vor.u32 %v3011_v16, %v3010_v3  ;;  %v2869_v30 = vmul.f32 %v7488_v63, %v2799_v25  ;;  %v7522_v56 = vpop.f32.mrb[9].mxu0  ;;  %v3141_v18 = vld [vmem:[#allocation3 + $0x30] sm:$0xf] }
 0x290   :  { %3134 = vst [vmem:[#allocation3 + $0xc] sm:$0xf] %v3133_v20  ;;  %v3202_v31 = vor.u32 %v3201_v17, %v3200_v60  ;;  %v2938_v33 = vpack.c.bf16 %v2922_v24, %v2922_v24  ;;  %v2923_v13 = vmax.f32 %v2891_v2, %v2907_v4  ;;  %v2803_v42 = vpop.f32.mrb[10].mxu0 }
 0x291   :  { %v3278_v37 = vsel %vm7515_vm9, %v3199_v45, %v3277_v7  ;;  %v3136_v38 = vsel %vm7508_vm8, %v3013_v26, %v3135_v59  ;;  %v2892_v41 = vadd.f32 %v7490_v48, %v2869_v30  ;;  %v2870_v28 = vmul.f32 %v7488_v63, %v2803_v42  ;;  %v7530_v43 = vpop.f32.mrb[11].mxu0  ;;  %v3286_v26 = vld [vmem:[#allocation3 + $0x38] sm:$0xf] }
 0x292   :  { %3279 = vst [vmem:[#allocation3 + $0x14] sm:$0xf] %v3278_v37  ;;  %3137 = vst [vmem:[#allocation3 + $0x18] sm:$0xf] %v3136_v38  ;;  %v3203_v53 = vrot.slane %v3202_v31, 4  ;;  %v3015_v54 = vshrl.u32 %v2938_v33, 16  ;;  %v2939_v44 = vpack.c.bf16 %v2923_v13, %v2923_v13 }
 0x293   :  { %v3018_v6 = vshll.u32 %v2938_v33, 16  ;;  %3182 = vst [vmem:[#allocation3 + $0x28] sm:$0xf] %v2938_v33  ;;  %v2908_v27 = vmul.f32 0.01, %v2892_v41  ;;  %v2893_v34 = vadd.f32 %v7490_v48, %v2870_v28 }
 0x294   :  { %v3281_v46 = vsel %vm7515_vm9, %v3203_v53, %v3280_v39  ;;  %v3017_v55 = vrot.slane %v3015_v54, 7  ;;  %v3204_v1 = vrot.slane %v3015_v54, 4  ;;  %3183 = vst [vmem:[#allocation3 + $0x34] sm:$0xf] %v2939_v44  ;;  %v3022_v52 = vshrl.u32 %v2939_v44, 16 }
 0x295   :  { %v3205_v21 = vrot.slane %v3018_v6, 5  ;;  %3282 = vst [vmem:[#allocation3 + $0x20] sm:$0xf] %v3281_v46  ;;  %v3025_v57 = vshll.u32 %v2939_v44, 16  ;;  %v2924_v58 = vmax.f32 %v2892_v41, %v2908_v27  ;;  %v2909_v62 = vmul.f32 0.01, %v2893_v34 }
 0x296   :  { %v3020_v61 = vor.u32 %v3018_v6, %v3017_v55  ;;  %v2809_v0 = vpop.f32.mrb[12].mxu0  ;;  %v3024_v10 = vrot.slane %v3022_v52, 7  ;;  %v3208_v35 = vrot.slane %v3022_v52, 4  ;;  %v3144_v37 = vld [vmem:[#allocation3 + $0x3c] sm:$0xf] }
 0x297   :  { %v3206_v23 = vor.u32 %v3205_v21, %v3204_v1  ;;  %v3337_v5 = vld [vmem:[#allocation3 + $0xc] sm:$0x1]  ;;  %v3209_v11 = vrot.slane %v3025_v57, 5  ;;  %v2940_v12 = vpack.c.bf16 %v2924_v58, %v2924_v58  ;;  %v7547_v15 = vpop.f32.mrb[13].mxu0  ;;  %v2925_v19 = vmax.f32 %v2893_v34, %v2909_v62  ;;  %v3289_v52 = vld [vmem:[#allocation3 + $0x44] sm:$0xf] }
 0x298   :  { %v3338_v16 = vsel %vm7537_vm14, 0, %v3337_v5  ;;  %v3139_v8 = vsel %vm7508_vm8, %v3020_v61, %v3138_v51  ;;  %v2813_v7 = vpop.f32.mrb[14].mxu0  ;;  %v3027_v60 = vor.u32 %v3025_v57, %v3024_v10  ;;  %v2871_v54 = vmul.f32 %v7488_v63, %v2809_v0  ;;  %v3147_v57 = vld [vmem:[#allocation3 + $0x48] sm:$0xf] }
 0x299   :  { %v3207_v2 = vrot.slane %v3206_v23, 4  ;;  %3339 = vst [vmem:[#allocation3 + $0xc] sm:$0x1] %v3338_v16  ;;  %v3388_v3 = vld [vmem:[#allocation3 + $0x14] sm:$0x8]  ;;  %v3210_v17 = vor.u32 %v3209_v11, %v3208_v35  ;;  %v3029_v24 = vshrl.u32 %v2940_v12, 16  ;;  %v2941_v30 = vpack.c.bf16 %v2925_v19, %v2925_v19 }
 0x29a   :  { %v3340_v59 = vld [vmem:[#allocation3 + $0x18] sm:$0x1]  ;;  %3140 = vst [vmem:[#allocation3 + $0x24] sm:$0xf] %v3139_v8  ;;  %v3032_v4 = vshll.u32 %v2940_v12, 16  ;;  %v3389_v25 = vsel %vm7543_vm15, 0, %v3388_v3  ;;  %v3142_v33 = vsel %vm7508_vm8, %v3027_v60, %v3141_v18  ;;  %v2894_v58 = vadd.f32 %v7490_v48, %v2871_v54 }
 0x29b   :  { %3184 = vst [vmem:[#allocation3 + $0x40] sm:$0xf] %v2940_v12  ;;  %v3341_v20 = vsel %vm7537_vm14, 0, %v3340_v59  ;;  %v3284_v45 = vsel %vm7515_vm9, %v3207_v2, %v3283_v14  ;;  %v7559_v31 = vpop.f32.mrb[15].mxu0  ;;  %3390 = vst [vmem:[#allocation3 + $0x14] sm:$0x8] %v3389_v25  ;;  %v2872_v62 = vmul.f32 %v7488_v63, %v2813_v7 }
 0x29c   :  { %3342 = vst [vmem:[#allocation3 + $0x18] sm:$0x1] %v3341_v20  ;;  %3285 = vst [vmem:[#allocation3 + $0x2c] sm:$0xf] %v3284_v45  ;;  %v3211_v13 = vrot.slane %v3210_v17, 4  ;;  %v3031_v42 = vrot.slane %v3029_v24, 7 }
 0x29d   :  { %v3212_v38 = vrot.slane %v3029_v24, 4  ;;  %v3391_v39 = vld [vmem:[#allocation3 + $0x20] sm:$0x8]  ;;  %3143 = vst [vmem:[#allocation3 + $0x30] sm:$0xf] %v3142_v33  ;;  %v3213_v41 = vrot.slane %v3032_v4, 5  ;;  %v2895_v16 = vadd.f32 %v7490_v48, %v2872_v62 }
 0x29e   :  { %v3036_v28 = vshrl.u32 %v2941_v30, 16  ;;  %v3039_v53 = vshll.u32 %v2941_v30, 16  ;;  %3185 = vst [vmem:[#allocation3 + $0x4c] sm:$0xf] %v2941_v30  ;;  %v3392_v6 = vsel %vm7543_vm15, 0, %v3391_v39  ;;  %v3287_v44 = vsel %vm7515_vm9, %v3211_v13, %v3286_v26  ;;  %v2819_v21 = vpop.f32.mrb[16].mxu0 }
 0x29f   :  { %v3034_v27 = vor.u32 %v3032_v4, %v3031_v42  ;;  %3393 = vst [vmem:[#allocation3 + $0x20] sm:$0x8] %v3392_v6  ;;  %3288 = vst [vmem:[#allocation3 + $0x38] sm:$0xf] %v3287_v44  ;;  %v3214_v34 = vor.u32 %v3213_v41, %v3212_v38  ;;  %v7572_v61 = vpop.f32.mrb[17].mxu0  ;;  %v2873_v8 = vmul.f32 %v7488_v63, %v2819_v21 }
 0x2a0   :  { %v3038_v46 = vrot.slane %v3036_v28, 7  ;;  %v3216_v55 = vrot.slane %v3036_v28, 4  ;;  %v3217_v1 = vrot.slane %v3039_v53, 5  ;;  %v2823_v10 = vpop.f32.mrb[18].mxu0  ;;  %v3292_v11 = vld [vmem:[#allocation3 + $0x50] sm:$0xf] }
 0x2a1   :  { %v3145_v51 = vsel %vm7508_vm8, %v3034_v27, %v3144_v37  ;;  %v3343_v23 = vld [vmem:[#allocation3 + $0x24] sm:$0x1]  ;;  %v3215_v14 = vrot.slane %v3214_v34, 4  ;;  %v2910_v12 = vmul.f32 0.01, %v2894_v58  ;;  %v7578_v2 = vpop.f32.mrb[19].mxu0  ;;  %v2896_v4 = vadd.f32 %v7490_v48, %v2873_v8 }
 0x2a2   :  { %3146 = vst [vmem:[#allocation3 + $0x3c] sm:$0xf] %v3145_v51  ;;  %v3041_v0 = vor.u32 %v3039_v53, %v3038_v46  ;;  %v3218_v5 = vor.u32 %v3217_v1, %v3216_v55  ;;  %v3344_v35 = vsel %vm7537_vm14, 0, %v3343_v23  ;;  %v2911_v24 = vmul.f32 0.01, %v2895_v16  ;;  %v7594_v30 = vld [vmem:[#allocation3 + $0xc] sm:$0xff] }
 0x2a3   :  { %3345 = vst [vmem:[#allocation3 + $0x24] sm:$0x1] %v3344_v35  ;;  %v3394_v18 = vld [vmem:[#allocation3 + $0x2c] sm:$0x8]  ;;  %v3290_v19 = vsel %vm7515_vm9, %v3215_v14, %v3289_v52  ;;  %v2926_v17 = vmax.f32 %v2894_v58, %v2910_v12  ;;  %v7587_v25 = vld [vmem:[#allocation3 + $0x18] sm:$0xff]  ;;  %v2874_v26 = vmul.f32 %v7488_v63, %v2823_v10 }
 0x2a4   :  { %v3148_v7 = vsel %vm7508_vm8, %v3041_v0, %v3147_v57  ;;  %v3219_v3 = vrot.slane %v3218_v5, 4  ;;  %v3395_v59 = vsel %vm7543_vm15, 0, %v3394_v18  ;;  %v3346_v60 = vld [vmem:[#allocation3 + $0x30] sm:$0x1]  ;;  %3291 = vst [vmem:[#allocation3 + $0x44] sm:$0xf] %v3290_v19  ;;  %v2927_v42 = vmax.f32 %v2895_v16, %v2911_v24 }
 0x2a5   :  { %3149 = vst [vmem:[#allocation3 + $0x48] sm:$0xf] %v3148_v7  ;;  %3396 = vst [vmem:[#allocation3 + $0x2c] sm:$0x8] %v3395_v59  ;;  %v3347_v20 = vsel %vm7537_vm14, 0, %v3346_v60  ;;  %v2942_v13 = vpack.c.bf16 %v2926_v17, %v2926_v17  ;;  %v2897_v39 = vadd.f32 %v7490_v48, %v2874_v26  ;;  %v5536_v41 = vcombine.low %v7594_v30, %v7587_v25 }
 0x2a6   :  { %v3293_v45 = vsel %vm7515_vm9, %v3219_v3, %v3292_v11  ;;  %3348 = vst [vmem:[#allocation3 + $0x30] sm:$0x1] %v3347_v20  ;;  %v3397_v33 = vld [vmem:[#allocation3 + $0x38] sm:$0x8]  ;;  %v2912_v37 = vmul.f32 0.01, %v2896_v4  ;;  %v2943_v44 = vpack.c.bf16 %v2927_v42, %v2927_v42  ;;  %v5537_v21 = vcombine.high %v7594_v30, %v7587_v25 }
 0x2a7   :  { %3294 = vst [vmem:[#allocation3 + $0x50] sm:$0xf] %v3293_v45  ;;  %v3398_v38 = vsel %vm7543_vm15, 0, %v3397_v33  ;;  %v2829_v28 = vpop.f32.mrb[20].mxu0  ;;  %v3043_v54 = vshrl.u32 %v2942_v13, 16  ;;  %v3046_v6 = vshll.u32 %v2942_v13, 16 }
 0x2a8   :  { %3399 = vst [vmem:[#allocation3 + $0x38] sm:$0x8] %v3398_v38  ;;  %3186 = vst [vmem:[#allocation3 + $0x58] sm:$0xf] %v2942_v13  ;;  %v2928_v27 = vmax.f32 %v2896_v4, %v2912_v37  ;;  %v7601_v34 = vpop.f32.mrb[21].mxu0  ;;  %v3050_v62 = vshrl.u32 %v2943_v44, 16  ;;  %3901 = vmatprep.mubr.bf16.mxu0 %v5537_v21  ;;  %v2875_v12 = vmul.f32 %v7488_v63, %v2829_v28 }
 0x2a9   :  { %v3349_v53 = vld [vmem:[#allocation3 + $0x3c] sm:$0x1]  ;;  %v3150_v55 = vld [vmem:[#allocation3 + $0x54] sm:$0xf]  ;;  %v2913_v1 = vmul.f32 0.01, %v2897_v39  ;;  %3902 = vmatmul.mubr.bf16.vlgmr.msra.gmra.mrb[32].mxu0 %v5536_v41 }
 0x2aa   :  { %v3350_v46 = vsel %vm7537_vm14, 0, %v3349_v53  ;;  %v7607_v51 = vpop.f32.mrb[22].mxu0  ;;  %v3045_v52 = vrot.slane %v3043_v54, 7  ;;  %v3220_v57 = vrot.slane %v3043_v54, 4  ;;  %v3221_v58 = vrot.slane %v3046_v6, 5 }
 0x2ab   :  { %3351 = vst [vmem:[#allocation3 + $0x3c] sm:$0x1] %v3350_v46  ;;  %3187 = vst [vmem:[#allocation3 + $0x64] sm:$0xf] %v2943_v44  ;;  %v7609_v23 = vpop.f32.mrb[23].mxu0  ;;  %v3053_v10 = vshll.u32 %v2943_v44, 16  ;;  %v2944_v35 = vpack.c.bf16 %v2928_v27, %v2928_v27  ;;  %v2929_v11 = vmax.f32 %v2897_v39, %v2913_v1 }
 0x2ac   :  { %v3400_v14 = vld [vmem:[#allocation3 + $0x44] sm:$0x8]  ;;  %v3352_v0 = vld [vmem:[#allocation3 + $0x48] sm:$0x1]  ;;  %v3295_v5 = vld [vmem:[#allocation3 + $0x5c] sm:$0xf]  ;;  %v3048_v18 = vor.u32 %v3046_v6, %v3045_v52  ;;  %v3222_v19 = vor.u32 %v3221_v58, %v3220_v57  ;;  %v2898_v6 = vadd.f32 %v7490_v48, %v2875_v12 }
 0x2ad   :  { %v3401_v16 = vsel %vm7543_vm15, 0, %v3400_v14  ;;  %v3353_v8 = vsel %vm7537_vm14, 0, %v3352_v0  ;;  %v3153_v7 = vld [vmem:[#allocation3 + $0x60] sm:$0xf]  ;;  %v3052_v59 = vrot.slane %v3050_v62, 7  ;;  %v3224_v60 = vrot.slane %v3050_v62, 4 }
 0x2ae   :  { %3402 = vst [vmem:[#allocation3 + $0x44] sm:$0x8] %v3401_v16  ;;  %3354 = vst [vmem:[#allocation3 + $0x48] sm:$0x1] %v3353_v8  ;;  %v3403_v3 = vld [vmem:[#allocation3 + $0x50] sm:$0x8]  ;;  %v3151_v20 = vsel %vm7508_vm8, %v3048_v18, %v3150_v55  ;;  %v2945_v54 = vpack.c.bf16 %v2929_v11, %v2929_v11 }
 0x2af   :  { %v3225_v17 = vrot.slane %v3053_v10, 5  ;;  %v3057_v24 = vshrl.u32 %v2944_v35, 16  ;;  %3188 = vst [vmem:[#allocation3 + $0x88] sm:$0xf] %v2944_v35  ;;  %v3404_v4 = vsel %vm7543_vm15, 0, %v3403_v3  ;;  %v3223_v45 = vrot.slane %v3222_v19, 4 }
 0x2b0   :  { %v3060_v26 = vshll.u32 %v2944_v35, 16  ;;  %3405 = vst [vmem:[#allocation3 + $0x50] sm:$0x8] %v3404_v4  ;;  %3152 = vst [vmem:[#allocation3 + $0x54] sm:$0xf] %v3151_v20  ;;  %v3055_v33 = vor.u32 %v3053_v10, %v3052_v59  ;;  %v2839_v38 = vpop.f32.mrb[24].mxu0  ;;  %v2876_v35 = vmul.f32 %v7488_v63, %v7607_v51 }
 0x2b1   :  { %v3226_v13 = vor.u32 %v3225_v17, %v3224_v60  ;;  %v3059_v42 = vrot.slane %v3057_v24, 7  ;;  %v3228_v37 = vrot.slane %v3057_v24, 4  ;;  %v3296_v39 = vsel %vm7515_vm9, %v3223_v45, %v3295_v5  ;;  %v3298_v41 = vld [vmem:[#allocation3 + $0x68] sm:$0xf]  ;;  %v3156_v28 = vld [vmem:[#allocation3 + $0x84] sm:$0xf] }
 0x2b2   :  { %v3229_v53 = vrot.slane %v3060_v26, 5  ;;  %v7623_v44 = vpop.f32.mrb[25].mxu0  ;;  %3297 = vst [vmem:[#allocation3 + $0x5c] sm:$0xf] %v3296_v39  ;;  %v3154_v27 = vsel %vm7508_vm8, %v3055_v33, %v3153_v7  ;;  %v3064_v52 = vshrl.u32 %v2945_v54, 16  ;;  %v3067_v57 = vshll.u32 %v2945_v54, 16 }
 0x2b3   :  { %v3227_v46 = vrot.slane %v3226_v13, 4  ;;  %v3062_v55 = vor.u32 %v3060_v26, %v3059_v42  ;;  %v7627_v1 = vpop.f32.mrb[26].mxu0  ;;  %3155 = vst [vmem:[#allocation3 + $0x60] sm:$0xf] %v3154_v27  ;;  %3189 = vst [vmem:[#allocation3 + $0x94] sm:$0xf] %v2945_v54  ;;  %v2899_v3 = vadd.f32 %v7490_v48, %v2876_v35  ;;  %v2877_v20 = vmul.f32 %v7488_v63, %v2839_v38 }
 0x2b4   :  { %v3230_v21 = vor.u32 %v3229_v53, %v3228_v37  ;;  %v2914_v58 = vmul.f32 0.01, %v2898_v6  ;;  %v7629_v62 = vld [vmem:[#allocation3 + $0x30] sm:$0xff]  ;;  %v7631_v14 = vpop.f32.mrb[27].mxu0  ;;  %v3301_v10 = vld [vmem:[#allocation3 + $0x8c] sm:$0xf] }
 0x2b5   :  { %v3299_v0 = vsel %vm7515_vm9, %v3227_v46, %v3298_v41  ;;  %v3157_v5 = vsel %vm7508_vm8, %v3062_v55, %v3156_v28  ;;  %v3066_v12 = vrot.slane %v3064_v52, 7  ;;  %v3232_v16 = vrot.slane %v3064_v52, 4  ;;  %v7639_v18 = vld [vmem:[#allocation3 + $0x24] sm:$0xff]  ;;  %v3159_v19 = vld [vmem:[#allocation3 + $0x90] sm:$0xf] }
 0x2b6   :  { %3300 = vst [vmem:[#allocation3 + $0x68] sm:$0xf] %v3299_v0  ;;  %3158 = vst [vmem:[#allocation3 + $0x84] sm:$0xf] %v3157_v5  ;;  %v3231_v11 = vrot.slane %v3230_v21, 4  ;;  %v3233_v8 = vrot.slane %v3067_v57, 5  ;;  %v2930_v7 = vmax.f32 %v2898_v6, %v2914_v58  ;;  %v5540_v59 = vcombine.high %v7639_v18, %v7629_v62 }
 0x2b7   :  { %v3355_v60 = vld [vmem:[#allocation3 + $0x54] sm:$0x1]  ;;  %v3069_v51 = vor.u32 %v3067_v57, %v3066_v12  ;;  %v3304_v4 = vld [vmem:[#allocation3 + $0x98] sm:$0xf]  ;;  %v2915_v33 = vmul.f32 0.01, %v2899_v3  ;;  %v2900_v41 = vadd.f32 %v7490_v48, %v2877_v20  ;;  %v5539_v38 = vcombine.low %v7639_v18, %v7629_v62 }
 0x2b8   :  { %v3302_v17 = vsel %vm7515_vm9, %v3231_v11, %v3301_v10  ;;  %v3234_v24 = vor.u32 %v3233_v8, %v3232_v16  ;;  %v3356_v45 = vsel %vm7537_vm14, 0, %v3355_v60  ;;  %v2946_v26 = vpack.c.bf16 %v2930_v7, %v2930_v7  ;;  %3909 = vmatprep.mubr.bf16.mxu0 %v5540_v59  ;;  %v7649_v13 = vpop.f32.mrb[28].mxu0  ;;  %v3162_v57 = vld [vmem:[#allocation3 + $0x9c] sm:$0xf] }
 0x2b9   :  { %3303 = vst [vmem:[#allocation3 + $0x8c] sm:$0xf] %v3302_v17  ;;  %3357 = vst [vmem:[#allocation3 + $0x54] sm:$0x1] %v3356_v45  ;;  %v3406_v42 = vld [vmem:[#allocation3 + $0x5c] sm:$0x8]  ;;  %v3160_v37 = vsel %vm7508_vm8, %v3069_v51, %v3159_v19  ;;  %v2931_v46 = vmax.f32 %v2899_v3, %v2915_v33  ;;  %3910 = vmatmul.mubr.bf16.gmra.mrb[36].mxu0 %v5539_v38  ;;  %v2878_v16 = vmul.f32 %v7488_v63, %v7627_v1 }
 0x2ba   :  { %v3235_v39 = vrot.slane %v3234_v24, 4  ;;  %v7656_v28 = vpop.f32.mrb[29].mxu0  ;;  %v3407_v53 = vsel %vm7543_vm15, 0, %v3406_v42  ;;  %v3358_v54 = vld [vmem:[#allocation3 + $0x60] sm:$0x1]  ;;  %v3071_v6 = vshrl.u32 %v2946_v26, 16 }
 0x2bb   :  { %3161 = vst [vmem:[#allocation3 + $0x90] sm:$0xf] %v3160_v37  ;;  %v3074_v27 = vshll.u32 %v2946_v26, 16  ;;  %3190 = vst [vmem:[#allocation3 + $0xa0] sm:$0xf] %v2946_v26  ;;  %v7660_v55 = vpop.f32.mrb[30].mxu0  ;;  %v2947_v12 = vpack.c.bf16 %v2931_v46, %v2931_v46  ;;  %v2901_v1 = vadd.f32 %v7490_v48, %v2878_v16 }
 0x2bc   :  { %3408 = vst [vmem:[#allocation3 + $0x5c] sm:$0x8] %v3407_v53  ;;  %v3359_v21 = vsel %vm7537_vm14, 0, %v3358_v54  ;;  %v3305_v52 = vsel %vm7515_vm9, %v3235_v39, %v3304_v4  ;;  %v2916_v58 = vmul.f32 0.01, %v2900_v41  ;;  %v7666_v0 = vpop.f32.mrb[31].mxu0 }
 0x2bd   :  { %3360 = vst [vmem:[#allocation3 + $0x60] sm:$0x1] %v3359_v21  ;;  %v3409_v5 = vld [vmem:[#allocation3 + $0x68] sm:$0x8]  ;;  %v3361_v10 = vld [vmem:[#allocation3 + $0x84] sm:$0x1] }
 0x2be   :  { %3306 = vst [vmem:[#allocation3 + $0x98] sm:$0xf] %v3305_v52  ;;  %v3073_v35 = vrot.slane %v3071_v6, 7  ;;  %v3236_v11 = vrot.slane %v3071_v6, 4  ;;  %v3410_v8 = vsel %vm7543_vm15, 0, %v3409_v5  ;;  %v3362_v19 = vsel %vm7537_vm14, 0, %v3361_v10 }
 0x2bf   :  { %v3237_v7 = vrot.slane %v3074_v27, 5  ;;  %v2932_v3 = vmax.f32 %v2900_v41, %v2916_v58  ;;  %3411 = vst [vmem:[#allocation3 + $0x68] sm:$0x8] %v3410_v8  ;;  %3363 = vst [vmem:[#allocation3 + $0x84] sm:$0x1] %v3362_v19  ;;  %v3078_v60 = vshrl.u32 %v2947_v12, 16 }
 0x2c0   :  { %v3076_v59 = vor.u32 %v3074_v27, %v3073_v35  ;;  %v3081_v17 = vshll.u32 %v2947_v12, 16  ;;  %3191 = vst [vmem:[#allocation3 + $0xac] sm:$0xf] %v2947_v12  ;;  %v3412_v51 = vld [vmem:[#allocation3 + $0x8c] sm:$0x8] }
 0x2c1   :  { %v3238_v24 = vor.u32 %v3237_v7, %v3236_v11  ;;  %v3307_v4 = vld [vmem:[#allocation3 + $0xa4] sm:$0xf]  ;;  %v2948_v20 = vpack.c.bf16 %v2932_v3, %v2932_v3  ;;  %v3413_v45 = vsel %vm7543_vm15, 0, %v3412_v51  ;;  %v3080_v33 = vrot.slane %v3078_v60, 7  ;;  %v3165_v42 = vld [vmem:[#allocation3 + $0xa8] sm:$0xf] }
 0x2c2   :  { %v3163_v26 = vsel %vm7508_vm8, %v3076_v59, %v3162_v57  ;;  %v3240_v37 = vrot.slane %v3078_v60, 4  ;;  %3414 = vst [vmem:[#allocation3 + $0x8c] sm:$0x8] %v3413_v45  ;;  %v3364_v39 = vld [vmem:[#allocation3 + $0x90] sm:$0x1]  ;;  %v3241_v38 = vrot.slane %v3081_v17, 5 }
 0x2c3   :  { %3164 = vst [vmem:[#allocation3 + $0x9c] sm:$0xf] %v3163_v26  ;;  %v3239_v41 = vrot.slane %v3238_v24, 4  ;;  %v3085_v53 = vshrl.u32 %v2948_v20, 16  ;;  %v3088_v54 = vshll.u32 %v2948_v20, 16  ;;  %v3365_v6 = vsel %vm7537_vm14, 0, %v3364_v39 }
 0x2c4   :  { %3192 = vst [vmem:[#allocation3 + $0xb8] sm:$0xf] %v2948_v20  ;;  %v3083_v27 = vor.u32 %v3081_v17, %v3080_v33  ;;  %v3310_v46 = vld [vmem:[#allocation3 + $0xb0] sm:$0xf]  ;;  %v2917_v21 = vmul.f32 0.01, %v2901_v1  ;;  %v3242_v5 = vor.u32 %v3241_v38, %v3240_v37  ;;  %v2879_v17 = vmul.f32 %v7488_v63, %v7649_v13 }
 0x2c5   :  { %v7681_v52 = vld [vmem:[#allocation3 + $0x48] sm:$0xff]  ;;  %3366 = vst [vmem:[#allocation3 + $0x90] sm:$0x1] %v3365_v6  ;;  %v3415_v57 = vld [vmem:[#allocation3 + $0x98] sm:$0x8]  ;;  %v3308_v58 = vsel %vm7515_vm9, %v3239_v41, %v3307_v4  ;;  %v3087_v10 = vrot.slane %v3085_v53, 7  ;;  %v2880_v33 = vmul.f32 %v7488_v63, %v7660_v55 }
 0x2c6   :  { %v3168_v35 = vld [vmem:[#allocation3 + $0xb4] sm:$0xf]  ;;  %v3244_v11 = vrot.slane %v3085_v53, 4  ;;  %v3416_v12 = vsel %vm7543_vm15, 0, %v3415_v57  ;;  %3309 = vst [vmem:[#allocation3 + $0xa4] sm:$0xf] %v3308_v58  ;;  %v3166_v16 = vsel %vm7508_vm8, %v3083_v27, %v3165_v42  ;;  %v2933_v19 = vmax.f32 %v2901_v1, %v2917_v21 }
 0x2c7   :  { %v3245_v8 = vrot.slane %v3088_v54, 5  ;;  %v7689_v7 = vld [vmem:[#allocation3 + $0x3c] sm:$0xff]  ;;  %3417 = vst [vmem:[#allocation3 + $0x98] sm:$0x8] %v3416_v12  ;;  %3167 = vst [vmem:[#allocation3 + $0xa8] sm:$0xf] %v3166_v16  ;;  %v3090_v59 = vor.u32 %v3088_v54, %v3087_v10  ;;  %v2902_v26 = vadd.f32 %v7490_v48, %v2879_v17  ;;  %v2903_v54 = vadd.f32 %v7490_v48, %v2880_v33 }
 0x2c8   :  { %v3243_v3 = vrot.slane %v3242_v5, 4  ;;  %v5543_v60 = vcombine.high %v7689_v7, %v7681_v52  ;;  %v2949_v24 = vpack.c.bf16 %v2933_v19, %v2933_v19  ;;  %v5542_v4 = vcombine.low %v7689_v7, %v7681_v52  ;;  %v3313_v45 = vld [vmem:[#allocation3 + $0xbc] sm:$0xf]  ;;  %v7704_v41 = vld [vmem:[#allocation3 + $0x60] sm:$0xff]  ;;  %v7709_v6 = vld [vmem:[#allocation3 + $0x54] sm:$0xff] }
 0x2c9   :  { %v3246_v51 = vor.u32 %v3245_v8, %v3244_v11  ;;  %v3169_v1 = vsel %vm7508_vm8, %v3090_v59, %v3168_v35  ;;  %v2918_v53 = vmul.f32 0.01, %v2902_v26  ;;  %v3171_v58 = vld [vmem:[#allocation3 + $0xc0] sm:$0xf]  ;;  %v2919_v10 = vmul.f32 0.01, %v2903_v54 }
 0x2ca   :  { %v3311_v20 = vsel %vm7515_vm9, %v3243_v3, %v3310_v46  ;;  %3917 = vmatprep.mubr.bf16.mxu0 %v5543_v60  ;;  %v3367_v42 = vld [vmem:[#allocation3 + $0x9c] sm:$0x1]  ;;  %3170 = vst [vmem:[#allocation3 + $0xb4] sm:$0xf] %v3169_v1  ;;  %v3092_v37 = vshrl.u32 %v2949_v24, 16  ;;  %v3095_v39 = vshll.u32 %v2949_v24, 16  ;;  %v5546_v35 = vcombine.high %v7709_v6, %v7704_v41 }
 0x2cb   :  { %3312 = vst [vmem:[#allocation3 + $0xb0] sm:$0xf] %v3311_v20  ;;  %v3247_v13 = vrot.slane %v3246_v51, 4  ;;  %3193 = vst [vmem:[#allocation3 + $0xc4] sm:$0xf] %v2949_v24  ;;  %3918 = vmatmul.mubr.bf16.gmra.mrb[40].mxu0 %v5542_v4  ;;  %v3368_v38 = vsel %vm7537_vm14, 0, %v3367_v42  ;;  %v2934_v5 = vmax.f32 %v2902_v26, %v2918_v53  ;;  %v5545_v8 = vcombine.low %v7709_v6, %v7704_v41 }
 0x2cc   :  { %3369 = vst [vmem:[#allocation3 + $0x9c] sm:$0x1] %v3368_v38  ;;  %v3094_v55 = vrot.slane %v3092_v37, 7  ;;  %v3248_v27 = vrot.slane %v3092_v37, 4  ;;  %v3249_v46 = vrot.slane %v3095_v39, 5  ;;  %v7713_v21 = vld [vmem:[#allocation3 + $0x90] sm:$0xff]  ;;  %v2935_v17 = vmax.f32 %v2903_v54, %v2919_v10  ;;  %3925 = vmatprep.mubr.bf16.mxu0 %v5546_v35 }
 0x2cd   :  { %v3314_v63 = vsel %vm7515_vm9, %v3247_v13, %v3313_v45  ;;  %v3418_v57 = vld [vmem:[#allocation3 + $0xa4] sm:$0x8]  ;;  %v3316_v59 = vld [vmem:[#allocation3 + $0xc8] sm:$0xf]  ;;  %v2950_v60 = vpack.c.bf16 %v2934_v5, %v2934_v5  ;;  %v6524_v1 = vld [vmem:[#allocation9 + $0x148] sm:$0xff]   ;;  %v5588_v53 = vcombine.high %v7587_v25, %v7639_v18  ;;  %v5587_v10 = vcombine.low %v7587_v25, %v7639_v18 }
 0x2ce   :  { %3315 = vst [vmem:[#allocation3 + $0xbc] sm:$0xf] %v3314_v63  ;;  %v3419_v48 = vsel %vm7543_vm15, 0, %v3418_v57  ;;  %v3370_v11 = vld [vmem:[#allocation3 + $0xa8] sm:$0x1]  ;;  %v3097_v12 = vor.u32 %v3095_v39, %v3094_v55  ;;  %v3250_v16 = vor.u32 %v3249_v46, %v3248_v27  ;;  %v2951_v13 = vpack.c.bf16 %v2935_v17, %v2935_v17 }
 0x2cf   :  { %v7721_v19 = vld [vmem:[#allocation3 + $0x84] sm:$0xff]  ;;  %3420 = vst [vmem:[#allocation3 + $0xa4] sm:$0x8] %v3419_v48  ;;  %v3371_v3 = vsel %vm7537_vm14, 0, %v3370_v11  ;;  %v3099_v33 = vshrl.u32 %v2950_v60, 16  ;;  %v3102_v42 = vshll.u32 %v2950_v60, 16  ;;  %v7744_v35 = vcombine.high %v7629_v62, %v7689_v7 }
 0x2d0   :  { %v5548_v51 = vcombine.low %v7721_v19, %v7713_v21  ;;  %3372 = vst [vmem:[#allocation3 + $0xa8] sm:$0x1] %v3371_v3  ;;  %v3172_v24 = vsel %vm7508_vm8, %v3097_v12, %v3171_v58  ;;  %v3251_v4 = vrot.slane %v3250_v16, 4  ;;  %v5549_v20 = vcombine.high %v7721_v19, %v7713_v21  ;;  %3194 = vst [vmem:[#allocation3 + $0xd0] sm:$0xf] %v2950_v60 }
 0x2d1   :  { %v3373_v26 = vld [vmem:[#allocation3 + $0xb4] sm:$0x1]  ;;  %3173 = vst [vmem:[#allocation3 + $0xc0] sm:$0xf] %v3172_v24  ;;  %v3101_v54 = vrot.slane %v3099_v33, 7  ;;  %v3252_v55 = vrot.slane %v3099_v33, 4  ;;  %v7748_v48 = vcombine.low %v7629_v62, %v7689_v7  ;;  %v7758_v62 = vcombine.low %v7681_v52, %v7709_v6 }
 0x2d2   :  { %v3421_v45 = vld [vmem:[#allocation3 + $0xb0] sm:$0x8]  ;;  %v3374_v39 = vsel %vm7537_vm14, 0, %v3373_v26  ;;  %v3317_v38 = vsel %vm7515_vm9, %v3251_v4, %v3316_v59  ;;  %3933 = vmatprep.mubr.bf16.mxu1 %v5549_v20  ;;  %v3174_v63 = vld [vmem:[#allocation3 + $0xcc] sm:$0xf]  ;;  %v3253_v27 = vrot.slane %v3102_v42, 5 }
 0x2d3   :  { %v3422_v37 = vsel %vm7543_vm15, 0, %v3421_v45  ;;  %3926 = vmatmul.mubr.bf16.gmra.mrb[44].mxu0 %v5545_v8  ;;  %3375 = vst [vmem:[#allocation3 + $0xb4] sm:$0x1] %v3374_v39  ;;  %3318 = vst [vmem:[#allocation3 + $0xc8] sm:$0xf] %v3317_v38  ;;  %v3106_v46 = vshrl.u32 %v2951_v13, 16  ;;  %3934 = vmatmul.mubr.bf16.vlgmr.msra.gmra.mrb[0].mxu1 %v5548_v51  ;;  %v3104_v12 = vor.u32 %v3102_v42, %v3101_v54 }
 0x2d4   :  { %3423 = vst [vmem:[#allocation3 + $0xb0] sm:$0x8] %v3422_v37  ;;  %3195 = vst [vmem:[#allocation3 + $0xdc] sm:$0xf] %v2951_v13  ;;  %v3319_v58 = vld [vmem:[#allocation3 + $0xd4] sm:$0xf]  ;;  %6069 = vmatpush3.bf16.msra.mxu1 %v7485_v49  ;;  %v3254_v16 = vor.u32 %v3253_v27, %v3252_v55  ;;  %v7754_v51 = vcombine.high %v7681_v52, %v7709_v6 }
 0x2d5   :  { %v3424_v57 = vld [vmem:[#allocation3 + $0xbc] sm:$0x8]  ;;  %v3109_v5 = vshll.u32 %v2951_v13, 16  ;;  %v3108_v8 = vrot.slane %v3106_v46, 7  ;;  %v3177_v3 = vld [vmem:[#allocation3 + $0xd8] sm:$0xf]  ;;  %6070 = vmatprep.subr.bf16.mxu1 %v6524_v1  ;;  %v3175_v7 = vsel %vm7508_vm8, %v3104_v12, %v3174_v63 }
 0x2d6   :  { %v3425_v11 = vsel %vm7543_vm15, 0, %v3424_v57  ;;  %v6526_v49 = vld [vmem:[#allocation9 + $0x150] sm:$0xff]   ;;  %v3256_v59 = vrot.slane %v3106_v46, 4  ;;  %v3255_v24 = vrot.slane %v3254_v16, 4  ;;  %3176 = vst [vmem:[#allocation3 + $0xcc] sm:$0xf] %v3175_v7 }
 0x2d7   :  { %3426 = vst [vmem:[#allocation3 + $0xbc] sm:$0x8] %v3425_v11  ;;  %v3257_v60 = vrot.slane %v3109_v5, 5  ;;  %v3536_v17 = vld [vmem:[#allocation3 + $0x9c] sm:$0xff]  ;;  %v3111_v4 = vor.u32 %v3109_v5, %v3108_v8  ;;  %v3538_v20 = vld [vmem:[#allocation3 + $0xa8] sm:$0xff] }
 0x2d8   :  { %v3376_v45 = vld [vmem:[#allocation3 + $0xc0] sm:$0x1]  ;;  %6071 = vmatpush3.bf16.msra.mxu1 %v6524_v1  ;;  %v5552_v33 = vcombine.high %v3536_v17, %v3538_v20  ;;  %v5551_v42 = vcombine.low %v3536_v17, %v3538_v20  ;;  %v3320_v37 = vsel %vm7515_vm9, %v3255_v24, %v3319_v58  ;;  %v6528_v39 = vld [vmem:[#allocation9 + $0x158] sm:$0xff]   ;;  %v7769_v38 = vcombine.high %v7713_v21, %v3536_v17  ;;  %v6530_v58 = vld [vmem:[#allocation9 + $0x160] sm:$0xff]  }
 0x2d9   :  { %v3258_v26 = vor.u32 %v3257_v60, %v3256_v59  ;;  %v3377_v13 = vsel %vm7537_vm14, 0, %v3376_v45  ;;  %v3178_v52 = vsel %vm7508_vm8, %v3111_v4, %v3177_v3  ;;  %v3322_v6 = vld [vmem:[#allocation3 + $0xe0] sm:$0xf]  ;;  %6072 = vmatprep.subr.bf16.mxu1 %v6526_v49  ;;  %3321 = vst [vmem:[#allocation3 + $0xd4] sm:$0xf] %v3320_v37  ;;  %v7772_v55 = vcombine.low %v7713_v21, %v3536_v17  ;;  %v6532_v11 = vld [vmem:[#allocation9 + $0x168] sm:$0xff]  }
 0x2da   :  { %3378 = vst [vmem:[#allocation3 + $0xc0] sm:$0x1] %v3377_v13  ;;  %v3427_v54 = vld [vmem:[#allocation3 + $0xc8] sm:$0x8]  ;;  %3179 = vst [vmem:[#allocation3 + $0xd8] sm:$0xf] %v3178_v52  ;;  %3941 = vmatprep.mubr.bf16.mxu1 %v5552_v33 }
 0x2db   :  { %v3259_v1 = vrot.slane %v3258_v26, 4  ;;  %v3540_v63 = vld [vmem:[#allocation3 + $0xb4] sm:$0xff]  ;;  %v3428_v36 = vsel %vm7543_vm15, 0, %v3427_v54  ;;  %3942 = vmatmul.mubr.bf16.gmra.mrb[4].mxu1 %v5551_v42  ;;  %v6534_v7 = vld [vmem:[#allocation9 + $0x170] sm:$0xff]   ;;  %v6537_v4 = vld [vmem:[#allocation9 + $0x178] sm:$0xff]  }
 0x2dc   :  { %v7776_v27 = vcombine.high %v3538_v20, %v3540_v63  ;;  %v7778_v46 = vcombine.low %v3538_v20, %v3540_v63  ;;  %3429 = vst [vmem:[#allocation3 + $0xc8] sm:$0x8] %v3428_v36  ;;  %6073 = vmatpush3.bf16.msra.mxu1 %v6526_v49  ;;  %v6536_v42 = vld [vmem:[#allocation3 + $0x14] ss:$12 sps:$4 sm:$0xff]   ;;  %v6539_v37 = vld [vmem:[#allocation3 + $0x2c] ss:$12 sps:$4 sm:$0xff]  }
 0x2dd   :  { %v3323_v57 = vsel %vm7515_vm9, %v3259_v1, %v3322_v6  ;;  %6074 = vmatprep.subr.bf16.mxu1 %v6528_v39  ;;  %v3379_v5 = vld [vmem:[#allocation3 + $0xcc] sm:$0x1]  ;;  %v6540_v13 = vld [vmem:[#allocation9] sm:$0xff]   ;;  %v6542_v52 = vld [vmem:[#allocation9 + $0x48] sm:$0xff]  }
 0x2de   :  { %3324 = vst [vmem:[#allocation3 + $0xe0] sm:$0xf] %v3323_v57  ;;  %v3380_v21 = vsel %vm7537_vm14, 0, %v3379_v5  ;;  %v6541_v6 = vld [vmem:[#allocation3 + $0x44] ss:$12 sps:$4 sm:$0xff]   ;;  %v6548_v36 = vld [vmem:[#allocation9 + $0x58] sm:$0xff]  }
 0x2df   :  { %3381 = vst [vmem:[#allocation3 + $0xcc] sm:$0x1] %v3380_v21  ;;  %v6544_v54 = vld [vmem:[#allocation9 + $0x50] sm:$0xff]   ;;  %v6547_v57 = vld [vmem:[#allocation3 + $0x8c] ss:$12 sps:$4 sm:$0xff]   ;;  %v6550_v5 = vld [vmem:[#allocation9 + $0x60] sm:$0xff]  }
 0x2e0   :  { %6075 = vmatpush3.bf16.msra.mxu1 %v6528_v39  ;;  %v3430_v12 = vld [vmem:[#allocation3 + $0xd4] sm:$0x8]  ;;  %v6543_v39 = vld [vmem:[#allocation9 + $0x8] sm:$0xff]   ;;  %v6546_v1 = vld [vmem:[#allocation9 + $0x10] sm:$0xff]  }
 0x2e1   :  { %v3382_v16 = vld [vmem:[#allocation3 + $0xd8] sm:$0x1]  ;;  %v3542_v8 = vld [vmem:[#allocation3 + $0xc0] sm:$0xff]  ;;  %6076 = vmatprep.subr.bf16.mxu1 %v6530_v58  ;;  %v3431_v3 = vsel %vm7543_vm15, 0, %v3430_v12  ;;  %v6552_v21 = vld [vmem:[#allocation9 + $0x20] sm:$0xff]  }
 0x2e2   :  { %v3383_v32 = vsel %vm7537_vm14, 0, %v3382_v16  ;;  %v5555_v49 = vcombine.high %v3540_v63, %v3542_v8  ;;  %v5554_v59 = vcombine.low %v3540_v63, %v3542_v8  ;;  %3432 = vst [vmem:[#allocation3 + $0xd4] sm:$0x8] %v3431_v3  ;;  %v6545_v63 = vld [vmem:[#allocation3 + $0x5c] ss:$12 sps:$4 sm:$0xff]   ;;  %v6556_v3 = vld [vmem:[#allocation9 + $0x70] sm:$0xff]  }
 0x2e3   :  { %3384 = vst [vmem:[#allocation3 + $0xd8] sm:$0x1] %v3383_v32  ;;  %v6554_v12 = vld [vmem:[#allocation9 + $0x68] sm:$0xff]   ;;  %v6558_v32 = vld [vmem:[#allocation9 + $0x30] sm:$0xff]  }
 0x2e4   :  { %3949 = vmatprep.mubr.bf16.mxu1 %v5555_v49  ;;  %6077 = vmatpush3.bf16.msra.mxu1 %v6530_v58  ;;  %v6549_v58 = vld [vmem:[#allocation9 + $0x18] sm:$0xff]  }
 0x2e5   :  { %v3433_v60 = vld [vmem:[#allocation3 + $0xe0] sm:$0x8]  ;;  %3950 = vmatmul.mubr.bf16.gmra.mrb[8].mxu1 %v5554_v59  ;;  %6078 = vmatprep.subr.bf16.mxu1 %v6532_v11  ;;  %v6553_v16 = vld [vmem:[#allocation3 + $0xbc] ss:$12 sps:$4 sm:$0xff]  }
 0x2e6   :  { %v3434_v17 = vsel %vm7543_vm15, 0, %v3433_v60  ;;  %v3544_v24 = vld [vmem:[#allocation3 + $0xcc] sm:$0xff]  ;;  %v7798_v60 = vld [vmem:[#allocation3] sm:$0xff] }
 0x2e7   :  { %3435 = vst [vmem:[#allocation3 + $0xe0] sm:$0x8] %v3434_v17  ;;  %v7790_v40 = vcombine.high %v3542_v8, %v3544_v24  ;;  %v7792_v20 = vcombine.low %v3542_v8, %v3544_v24  ;;  %v6555_v8 = vld [vmem:[#allocation9 + $0x28] sm:$0xff]   ;;  %v6559_v59 = vld [vmem:[#allocation9 + $0x78] sm:$0xff]   ;;  %v5585_v17 = vcombine.high %v7798_v60, %v7594_v30  ;;  %v5597_v25 = vcombine.high %v7798_v60, %v7721_v19 }
 0x2e8   :  { %6079 = vmatpush3.bf16.msra.mxu1 %v6532_v11  ;;  %v6551_v11 = vld [vmem:[#allocation3 + $0xa4] ss:$12 sps:$4 sm:$0xff]  }
 0x2e9   :  { %6080 = vmatprep.subr.bf16.mxu1 %v6534_v7 }
 0x2ea   :  { %v7794_v45 = vld [vmem:[#allocation3 + $0xd8] sm:$0xff] }
 0x2eb   :  { %v5558_v26 = vcombine.high %v3544_v24, %v7794_v45  ;;  %v5557_v33 = vcombine.low %v3544_v24, %v7794_v45  ;;  %v6561_v24 = vld [vmem:[#allocation9 + $0x80] sm:$0xff]  }
 0x2ec   :  { %6081 = vmatpush3.bf16.msra.mxu1 %v6534_v7  ;;  %v6560_v7 = vld [vmem:[#allocation9 + $0x38] sm:$0xff]  }
 0x2ed   :  { %3957 = vmatprep.mubr.bf16.mxu1 %v5558_v26  ;;  %6082 = vmatprep.subr.bf16.mxu1 %v6537_v4  ;;  %v6563_v26 = vld [vmem:[#allocation9 + $0x88] sm:$0xff]  }
 0x2ee   :  { %3958 = vmatmul.mubr.bf16.gmra.mrb[12].mxu1 %v5557_v33  ;;  %v6557_v49 = vld [vmem:[#allocation3 + $0xd4] ss:$12 sps:$4 sm:$0xff]  }
 0x2ef   :  { %6084 = vmatprep.mubr.bf16.mxu1 %v6536_v42  ;;  %v6566_v33 = vld [vmem:[#allocation9 + $0x90] sm:$0xff]   ;;  %v6573_v42 = vld [vmem:[#allocation9 + $0xa8] sm:$0xff]  }
 0x2f0   :  { %6083 = vmatpush3.bf16.msra.mxu1 %v6537_v4  ;;  %v5584_v4 = vcombine.low %v7798_v60, %v7594_v30  ;;  %v6571_v30 = vld [vmem:[#allocation9 + $0xa0] sm:$0xff]  }
 0x2f1   :  { %5908 = vmatprep.subr.bf16.mxu1 %v6538_v9  ;;  %v6569_v9 = vld [vmem:[#allocation9 + $0x98] sm:$0xff]  }
 0x2f6   :  { %6085 = vmatmul.mubr.bf16.vlgmr.msra.gmra.mrb[16].mxu1 %v6539_v37  ;;  %v5596_v37 = vcombine.low %v7798_v60, %v7721_v19  ;;  %v6585_v19 = vld [vmem:[#allocation3 + $0x38] ss:$12 sps:$4 sm:$0xff]  }
 0x2f7   :  { %5909 = vmatpush3.bf16.msra.mxu1 %v6540_v13  ;;  %6088 = vmatprep.mubr.bf16.mxu1 %v6541_v6  ;;  %v6579_v13 = vld [vmem:[#allocation9 + $0xb8] sm:$0xff]   ;;  %v6584_v6 = vld [vmem:[#allocation9 + $0x180] sm:$0xff]  }
 0x2f8   :  { %5910 = vmatprep.subr.bf16.mxu1 %v6542_v52  ;;  %v6581_v52 = vld [vmem:[#allocation3 + $0x8] ss:$12 sps:$4 sm:$0xff]  }
 0x2fb   :  { %5911 = vmatpush3.bf16.msra.mxu1 %v6543_v39  ;;  %v6583_v39 = vld [vmem:[#allocation3 + $0x20] ss:$12 sps:$4 sm:$0xff]  }
 0x2fc   :  { %5912 = vmatprep.subr.bf16.mxu1 %v6544_v54  ;;  %v6586_v54 = vld [vmem:[#allocation9 + $0x1c8] sm:$0xff]  }
 0x2fe   :  { %6089 = vmatmul.mubr.bf16.gmra.mrb[20].mxu1 %v6545_v63  ;;  %v6588_v63 = vld [vmem:[#allocation9 + $0x1d0] sm:$0xff]  }
 0x2ff   :  { %5913 = vmatpush3.bf16.msra.mxu1 %v6546_v1  ;;  %6092 = vmatprep.mubr.bf16.mxu1 %v6547_v57  ;;  %v6587_v1 = vld [vmem:[#allocation9 + $0x188] sm:$0xff]  }
 0x300   :  { %5914 = vmatprep.subr.bf16.mxu1 %v6548_v36  ;;  %v6590_v36 = vld [vmem:[#allocation9 + $0x190] sm:$0xff]   ;;  %v6589_v57 = vld [vmem:[#allocation3 + $0x50] ss:$12 sps:$4 sm:$0xff]  }
 0x303   :  { %5915 = vmatpush3.bf16.msra.mxu1 %v6549_v58  ;;  %v6592_v58 = vld [vmem:[#allocation9 + $0x1d8] sm:$0xff]  }
 0x304   :  { %5916 = vmatprep.subr.bf16.mxu1 %v6550_v5  ;;  %v6591_v5 = vld [vmem:[#allocation3 + $0x80] ss:$12 sps:$4 sm:$0xff]  }
 0x306   :  { %6093 = vmatmul.mubr.bf16.gmra.mrb[24].mxu1 %v6551_v11  ;;  %v6594_v11 = vld [vmem:[#allocation9 + $0x1e0] sm:$0xff]  }
 0x307   :  { %5917 = vmatpush3.bf16.msra.mxu1 %v6552_v21  ;;  %6096 = vmatprep.mubr.bf16.mxu1 %v6553_v16  ;;  %v6593_v21 = vld [vmem:[#allocation9 + $0x198] sm:$0xff]   ;;  %v6595_v16 = vld [vmem:[#allocation3 + $0x98] ss:$12 sps:$4 sm:$0xff]  }
 0x308   :  { %5918 = vmatprep.subr.bf16.mxu1 %v6554_v12  ;;  %v6596_v12 = vld [vmem:[#allocation9 + $0x1a0] sm:$0xff]  }
 0x30b   :  { %5919 = vmatpush3.bf16.msra.mxu1 %v6555_v8  ;;  %v6598_v8 = vld [vmem:[#allocation9 + $0x1e8] sm:$0xff]  }
 0x30c   :  { %5920 = vmatprep.subr.bf16.mxu1 %v6556_v3  ;;  %v6597_v3 = vld [vmem:[#allocation3 + $0xb0] ss:$12 sps:$4 sm:$0xff]  }
 0x30e   :  { %6097 = vmatmul.mubr.bf16.gmra.mrb[28].mxu1 %v6557_v49  ;;  %v6600_v49 = vld [vmem:[#allocation9 + $0x1f0] sm:$0xff]  }
 0x30f   :  { %5921 = vmatpush3.bf16.msra.mxu1 %v6558_v32  ;;  %4367 = vmatprep.mubr.bf16.mxu1 %v5585_v17  ;;  %v6599_v32 = vld [vmem:[#allocation9 + $0x1a8] sm:$0xff]   ;;  %v6601_v17 = vld [vmem:[#allocation3 + $0xc8] ss:$12 sps:$4 sm:$0xff]  }
 0x310   :  { %5922 = vmatprep.subr.bf16.mxu1 %v6559_v59  ;;  %v6602_v59 = vld [vmem:[#allocation9 + $0x1b0] sm:$0xff]  }
 0x313   :  { %5923 = vmatpush3.bf16.msra.mxu1 %v6560_v7  ;;  %v4530_v7 = vld [vmem:[#allocation3 + $0x18] sm:$0xff] }
 0x314   :  { %6100 = vmatprep.subr.bf16.mxu1 %v6561_v24 }
 0x316   :  { %4368 = vmatmul.mubr.bf16.vlgmr.msra.gmra.mrb[32].mxu1 %v5584_v4  ;;  %v5633_v4 = vcombine.high %v4530_v7, %v7639_v18 }
 0x317   :  { %6101 = vmatpush3.bf16.msra.mxu1 %v6561_v24  ;;  %4375 = vmatprep.mubr.bf16.mxu1 %v5588_v53  ;;  %v6576_v53 = vld [vmem:[#allocation9 + $0xb0] sm:$0xff]   ;;  %v6605_v24 = vld [vmem:[#allocation9 + $0x1f8] sm:$0xff]  }
 0x318   :  { %6102 = vmatprep.subr.bf16.mxu1 %v6563_v26 }
 0x31b   :  { %6103 = vmatpush3.bf16.msra.mxu1 %v6563_v26  ;;  %v6606_v26 = vld [vmem:[#allocation9 + $0x1b8] sm:$0xff]  }
 0x31c   :  { %6104 = vmatprep.subr.bf16.mxu1 %v6566_v33 }
 0x31e   :  { %4376 = vmatmul.mubr.bf16.gmra.mrb[36].mxu1 %v5587_v10  ;;  %v6582_v10 = vld [vmem:[#allocation9 + $0x1c0] sm:$0xff]  }
 0x31f   :  { %4383 = vmatprep.mubr.bf16.mxu1 %v7744_v35  ;;  %6105 = vmatpush3.bf16.msra.mxu1 %v6566_v33  ;;  %v6607_v33 = vld [vmem:[#allocation9 + $0x200] sm:$0xff]  }
 0x320   :  { %6106 = vmatprep.subr.bf16.mxu1 %v6569_v9 }
 0x323   :  { %6107 = vmatpush3.bf16.msra.mxu1 %v6569_v9  ;;  %v5632_v9 = vcombine.low %v4530_v7, %v7639_v18 }
 0x324   :  { %6108 = vmatprep.subr.bf16.mxu1 %v6571_v30 }
 0x326   :  { %4384 = vmatmul.mubr.bf16.gmra.mrb[40].mxu1 %v7748_v48 }
 0x327   :  { %4391 = vmatprep.mubr.bf16.mxu1 %v7754_v51  ;;  %6109 = vmatpush3.bf16.msra.mxu1 %v6571_v30  ;;  %v6608_v30 = vld [vmem:[#allocation9 + $0x208] sm:$0xff]  }
 0x328   :  { %6110 = vmatprep.subr.bf16.mxu1 %v6573_v42 }
 0x32b   :  { %6111 = vmatpush3.bf16.msra.mxu1 %v6573_v42  ;;  %v6609_v42 = vld [vmem:[#allocation9 + $0x210] sm:$0xff]  }
 0x32c   :  { %6112 = vmatprep.subr.bf16.mxu1 %v6576_v53 }
 0x32e   :  { %4392 = vmatmul.mubr.bf16.gmra.mrb[44].mxu1 %v7758_v62 }
 0x32f   :  { %4399 = vmatprep.mubr.bf16.mxu1 %v5597_v25  ;;  %6113 = vmatpush3.bf16.msra.mxu1 %v6576_v53  ;;  %v6610_v53 = vld [vmem:[#allocation9 + $0x218] sm:$0xff]  }
 0x330   :  { %6114 = vmatprep.subr.bf16.mxu1 %v6579_v13 }
 0x333   :  { %6115 = vmatpush3.bf16.msra.mxu1 %v6579_v13  ;;  %v6611_v13 = vld [vmem:[#allocation9 + $0x220] sm:$0xff]  }
 0x334   :  { %5988 = vmatprep.subr.bf16.mxu1 %v6582_v10 }
 0x336   :  { %4400 = vmatmul.mubr.bf16.gmra.mrb[48].mxu1 %v5596_v37 }
 0x337   :  { %4407 = vmatprep.mubr.bf16.mxu1 %v7769_v38 }
 0x33e   :  { %4408 = vmatmul.mubr.bf16.gmra.mrb[52].mxu1 %v7772_v55 }
 0x33f   :  { %4415 = vmatprep.mubr.bf16.mxu1 %v7776_v27 }
 0x346   :  { %4416 = vmatmul.mubr.bf16.gmra.mrb[56].mxu1 %v7778_v46 }
 0x347   :  { %4423 = vmatprep.mubr.bf16.mxu1 %v7790_v40 }
 0x34e   :  { %4424 = vmatmul.mubr.bf16.gmra.mrb[60].mxu1 %v7792_v20 }
 0x34f   :  { %6116 = vmatprep.mubr.bf16.mxu1 %v6581_v52  ;;  %v5642_v52 = vcombine.high %v7704_v41, %v7798_v60 }
 0x356   :  { %6117 = vmatmul.mubr.bf16.vlgmr.msra.gmra.mrb[16].mxu1 %v6583_v39  ;;  %v5641_v39 = vcombine.low %v7704_v41, %v7798_v60 }
 0x357   :  { %5989 = vmatpush3.bf16.msra.mxu1 %v6584_v6  ;;  %6120 = vmatprep.mubr.bf16.mxu1 %v6585_v19 }
 0x358   :  { %5990 = vmatprep.subr.bf16.mxu1 %v6586_v54  ;;  %v6614_v54 = vld [vmem:[#allocation9 + $0x238] sm:$0xff]  }
 0x35b   :  { %5991 = vmatpush3.bf16.msra.mxu1 %v6587_v1 }
 0x35c   :  { %5992 = vmatprep.subr.bf16.mxu1 %v6588_v63 }
 0x35e   :  { %6121 = vmatmul.mubr.bf16.gmra.mrb[20].mxu1 %v6589_v57 }
 0x35f   :  { %5993 = vmatpush3.bf16.msra.mxu1 %v6590_v36  ;;  %6124 = vmatprep.mubr.bf16.mxu1 %v6591_v5 }
 0x360   :  { %5994 = vmatprep.subr.bf16.mxu1 %v6592_v58 }
 0x363   :  { %5995 = vmatpush3.bf16.msra.mxu1 %v6593_v21 }
 0x364   :  { %5996 = vmatprep.subr.bf16.mxu1 %v6594_v11 }
 0x366   :  { %6125 = vmatmul.mubr.bf16.gmra.mrb[24].mxu1 %v6595_v16  ;;  %v5654_v16 = vcombine.high %v7794_v45, %v7798_v60 }
 0x367   :  { %5997 = vmatpush3.bf16.msra.mxu1 %v6596_v12  ;;  %6128 = vmatprep.mubr.bf16.mxu1 %v6597_v3 }
 0x368   :  { %5998 = vmatprep.subr.bf16.mxu1 %v6598_v8 }
 0x36b   :  { %5999 = vmatpush3.bf16.msra.mxu1 %v6599_v32 }
 0x36c   :  { %6000 = vmatprep.subr.bf16.mxu1 %v6600_v49 }
 0x36e   :  { %6129 = vmatmul.mubr.bf16.gmra.mrb[28].mxu1 %v6601_v17 }
 0x36f   :  { %6001 = vmatpush3.bf16.msra.mxu1 %v6602_v59  ;;  %4915 = vmatprep.mubr.bf16.mxu1 %v5633_v4  ;;  %v6615_v4 = vld [vmem:[#allocation3 + $0x20] ss:$12 sps:$4 sm:$0xff]  }
 0x370   :  { %6002 = vmatprep.subr.bf16.mxu1 %v6605_v24  ;;  %v5653_v24 = vcombine.low %v7794_v45, %v7798_v60 }
 0x373   :  { %6003 = vmatpush3.bf16.msra.mxu1 %v6606_v26 }
 0x374   :  { %6132 = vmatprep.subr.bf16.mxu1 %v6607_v33 }
 0x376   :  { %4916 = vmatmul.mubr.bf16.vlgmr.msra.gmra.mrb[64].mxu1 %v5632_v9 }
 0x377   :  { %6133 = vmatpush3.bf16.msra.mxu1 %v6607_v33  ;;  %4923 = vmatprep.mubr.bf16.mxu1 %v7744_v35  ;;  %v6612_v35 = vld [vmem:[#allocation9 + $0x228] sm:$0xff]  }
 0x378   :  { %6134 = vmatprep.subr.bf16.mxu1 %v6608_v30 }
 0x37b   :  { %6135 = vmatpush3.bf16.msra.mxu1 %v6608_v30 }
 0x37c   :  { %6136 = vmatprep.subr.bf16.mxu1 %v6609_v42  ;;  %v5844_v25 = vpop.f32.mrb[32].mxu0 }
 0x37d   :  { %v5845_v18 = vpop.f32.mrb[33].mxu0 }
 0x37e   :  { %4924 = vmatmul.mubr.bf16.gmra.mrb[68].mxu1 %v7748_v48  ;;  %v7829_v10 = vadd.f32 %v5845_v18, %v5844_v25  ;;  %v5847_v37 = vpop.f32.mrb[34].mxu0 }
 0x37f   :  { %4931 = vmatprep.mubr.bf16.mxu1 %v7754_v51  ;;  %6137 = vmatpush3.bf16.msra.mxu1 %v6609_v42  ;;  %v5848_v6 = vpop.f32.mrb[35].mxu0  ;;  %v6613_v51 = vld [vmem:[#allocation9 + $0x230] sm:$0xff]  }
 0x380   :  { %6138 = vmatprep.subr.bf16.mxu1 %v6610_v53  ;;  %v7834_v48 = vadd.f32 %v5848_v6, %v5847_v37  ;;  %v6619_v6 = vld [vmem:[#allocation3 + $0x98] ss:$12 sps:$4 sm:$0xff]  }
 0x383   :  { %6139 = vmatpush3.bf16.msra.mxu1 %v6610_v53  ;;  %v6616_v53 = vld [vmem:[#allocation3 + $0x38] ss:$12 sps:$4 sm:$0xff]  }
 0x384   :  { %6140 = vmatprep.subr.bf16.mxu1 %v6611_v13 }
 0x386   :  { %4932 = vmatmul.mubr.bf16.gmra.mrb[72].mxu1 %v7758_v62 }
 0x387   :  { %4939 = vmatprep.mubr.bf16.mxu1 %v5642_v52  ;;  %6141 = vmatpush3.bf16.msra.mxu1 %v6611_v13  ;;  %v6617_v13 = vld [vmem:[#allocation3 + $0x50] ss:$12 sps:$4 sm:$0xff]   ;;  %v6618_v52 = vld [vmem:[#allocation3 + $0x68] ss:$12 sps:$4 sm:$0xff]  }
 0x388   :  { %6142 = vmatprep.subr.bf16.mxu1 %v6612_v35 }
 0x38b   :  { %6143 = vmatpush3.bf16.msra.mxu1 %v6612_v35 }
 0x38c   :  { %6144 = vmatprep.subr.bf16.mxu1 %v6613_v51  ;;  %v5850_v19 = vpop.f32.mrb[36].mxu0 }
 0x38d   :  { %v5851_v1 = vpop.f32.mrb[37].mxu0 }
 0x38e   :  { %4940 = vmatmul.mubr.bf16.gmra.mrb[76].mxu1 %v5641_v39  ;;  %v7839_v62 = vadd.f32 %v5851_v1, %v5850_v19  ;;  %v5853_v63 = vpop.f32.mrb[38].mxu0 }
 0x38f   :  { %4947 = vmatprep.mubr.bf16.mxu1 %v7769_v38  ;;  %6145 = vmatpush3.bf16.msra.mxu1 %v6613_v51  ;;  %v5854_v36 = vpop.f32.mrb[39].mxu0 }
 0x390   :  { %6146 = vmatprep.subr.bf16.mxu1 %v6614_v54  ;;  %v7841_v57 = vadd.f32 %v5854_v36, %v5853_v63  ;;  %v6620_v63 = vld [vmem:[#allocation3 + $0xb0] ss:$12 sps:$4 sm:$0xff]  }
 0x393   :  { %6147 = vmatpush3.bf16.msra.mxu1 %v6614_v54 }
 0x396   :  { %4948 = vmatmul.mubr.bf16.gmra.mrb[80].mxu1 %v7772_v55 }
 0x397   :  { %4955 = vmatprep.mubr.bf16.mxu1 %v7776_v27 }
 0x39e   :  { %v5856_v41 = vpop.f32.mrb[40].mxu0  ;;  %4956 = vmatmul.mubr.bf16.gmra.mrb[84].mxu1 %v7778_v46 }
 0x39f   :  { %v5857_v58 = vpop.f32.mrb[41].mxu0  ;;  %4963 = vmatprep.mubr.bf16.mxu1 %v7790_v40 }
 0x3a0   :  { %v7846_v38 = vadd.f32 %v5857_v58, %v5856_v41  ;;  %v5859_v5 = vpop.f32.mrb[42].mxu0  ;;  %v6621_v41 = vld [vmem:[#allocation3 + $0xc8] ss:$12 sps:$4 sm:$0xff]   ;;  %v6622_v58 = vld [vmem:[#allocation3 + $0xe0] ss:$12 sps:$4 sm:$0xff]  }
 0x3a1   :  { %v5860_v21 = vpop.f32.mrb[43].mxu0 }
 0x3a2   :  { %v7849_v11 = vadd.f32 %v5860_v21, %v5859_v5 }
 0x3a6   :  { %v5862_v12 = vpop.f32.mrb[44].mxu0  ;;  %4964 = vmatmul.mubr.bf16.gmra.mrb[88].mxu1 %v7792_v20  ;;  %v5868_v55 = vpop.f32.mrb[0].mxu1 }
 0x3a7   :  { %v5863_v8 = vpop.f32.mrb[45].mxu0  ;;  %4971 = vmatprep.mubr.bf16.mxu1 %v5654_v16  ;;  %v5869_v46 = vpop.f32.mrb[1].mxu1 }
 0x3a8   :  { %v7854_v27 = vadd.f32 %v5863_v8, %v5862_v12  ;;  %v5865_v3 = vpop.f32.mrb[46].mxu0  ;;  %v7856_v49 = vadd.f32 %v5869_v46, %v5868_v55  ;;  %v5871_v40 = vpop.f32.mrb[2].mxu1 }
 0x3a9   :  { %v5866_v32 = vpop.f32.mrb[47].mxu0  ;;  %v5872_v17 = vpop.f32.mrb[3].mxu1 }
 0x3aa   :  { %v7858_v59 = vadd.f32 %v5866_v32, %v5865_v3  ;;  %v7860_v7 = vadd.f32 %v5872_v17, %v5871_v40 }
 0x3ae   :  { %4972 = vmatmul.mubr.bf16.gmra.mrb[92].mxu1 %v5653_v24  ;;  %v5874_v20 = vpop.f32.mrb[4].mxu1 }
 0x3af   :  { %6148 = vmatprep.mubr.bf16.mxu1 %v6615_v4  ;;  %v5875_v26 = vpop.f32.mrb[5].mxu1 }
 0x3b0   :  { %v7864_v33 = vadd.f32 %v5875_v26, %v5874_v20  ;;  %v5877_v9 = vpop.f32.mrb[6].mxu1 }
 0x3b1   :  { %v5878_v30 = vpop.f32.mrb[7].mxu1 }
 0x3b2   :  { %v7866_v42 = vadd.f32 %v5878_v30, %v5877_v9 }
 0x3b6   :  { %6149 = vmatmul.mubr.bf16.vlgmr.msra.gmra.mrb[16].mxu1 %v6616_v53 }
 0x3b7   :  { %6152 = vmatprep.mubr.bf16.mxu1 %v6617_v13 }
 0x3b8   :  { %v5880_v25 = vpop.f32.mrb[8].mxu1 }
 0x3b9   :  { %v5881_v18 = vpop.f32.mrb[9].mxu1 }
 0x3ba   :  { %v7868_v37 = vadd.f32 %v5881_v18, %v5880_v25  ;;  %v5883_v45 = vpop.f32.mrb[10].mxu1 }
 0x3bb   :  { %v5884_v60 = vpop.f32.mrb[11].mxu1 }
 0x3bc   :  { %v7870_v35 = vadd.f32 %v5884_v60, %v5883_v45 }
 0x3be   :  { %6153 = vmatmul.mubr.bf16.gmra.mrb[20].mxu1 %v6618_v52 }
 0x3bf   :  { %6156 = vmatprep.mubr.bf16.mxu1 %v6619_v6 }
 0x3c1   :  { %v5886_v51 = vpop.f32.mrb[12].mxu1 }
 0x3c2   :  { %v5887_v39 = vpop.f32.mrb[13].mxu1 }
 0x3c3   :  { %v7872_v54 = vadd.f32 %v5887_v39, %v5886_v51  ;;  %v5889_v19 = vpop.f32.mrb[14].mxu1 }
 0x3c4   :  { %v5890_v1 = vpop.f32.mrb[15].mxu1 }
 0x3c5   :  { %v7874_v36 = vadd.f32 %v5890_v1, %v5889_v19 }
 0x3c6   :  { %6157 = vmatmul.mubr.bf16.gmra.mrb[24].mxu1 %v6620_v63 }
 0x3c7   :  { %6160 = vmatprep.mubr.bf16.mxu1 %v6621_v41 }
 0x3ce   :  { %6161 = vmatmul.mubr.bf16.gmra.mrb[28].mxu1 %v6622_v58 }
 0x3e9   :  { %v5924_v5 = vpop.f32.mrb[32].mxu1 }
 0x3ea   :  { %v5925_v21 = vpop.f32.mrb[33].mxu1 }
 0x3eb   :  { %v5926_v12 = vadd.f32 %v5925_v21, %v5924_v5  ;;  %v5927_v16 = vpop.f32.mrb[34].mxu1 }
 0x3ec   :  { %v5928_v8 = vpop.f32.mrb[35].mxu1 }
 0x3ed   :  { %v7877_v55 = vadd.f32 %v5926_v12, %v7829_v10  ;;  %v5929_v3 = vadd.f32 %v5928_v8, %v5927_v16 }
 0x3ef   :  { %v7880_v46 = vadd.f32 %v5929_v3, %v7834_v48 }
 0x3f1   :  { %v5930_v32 = vpop.f32.mrb[36].mxu1 }
 0x3f2   :  { %v5931_v40 = vpop.f32.mrb[37].mxu1 }
 0x3f3   :  { %v5932_v17 = vadd.f32 %v5931_v40, %v5930_v32  ;;  %v5933_v24 = vpop.f32.mrb[38].mxu1 }
 0x3f4   :  { %v5934_v4 = vpop.f32.mrb[39].mxu1 }
 0x3f5   :  { %v7883_v20 = vadd.f32 %v5932_v17, %v7839_v62  ;;  %v5935_v26 = vadd.f32 %v5934_v4, %v5933_v24 }
 0x3f7   :  { %v7886_v9 = vadd.f32 %v5935_v26, %v7841_v57 }
 0x3f9   :  { %v5936_v30 = vpop.f32.mrb[40].mxu1 }
 0x3fa   :  { %v5937_v53 = vpop.f32.mrb[41].mxu1 }
 0x3fb   :  { %v5938_v10 = vadd.f32 %v5937_v53, %v5936_v30  ;;  %v5939_v13 = vpop.f32.mrb[42].mxu1 }
 0x3fc   :  { %v5940_v25 = vpop.f32.mrb[43].mxu1 }
 0x3fd   :  { %v7889_v48 = vadd.f32 %v5938_v10, %v7846_v38  ;;  %v5941_v18 = vadd.f32 %v5940_v25, %v5939_v13 }
 0x3ff   :  { %v7892_v45 = vadd.f32 %v5941_v18, %v7849_v11 }
 0x401   :  { %v5942_v60 = vpop.f32.mrb[44].mxu1 }
 0x402   :  { %v5943_v52 = vpop.f32.mrb[45].mxu1 }
 0x403   :  { %v5944_v62 = vadd.f32 %v5943_v52, %v5942_v60  ;;  %v5945_v6 = vpop.f32.mrb[46].mxu1 }
 0x404   :  { %v5946_v51 = vpop.f32.mrb[47].mxu1 }
 0x405   :  { %v7895_v57 = vadd.f32 %v5944_v62, %v7854_v27  ;;  %v5947_v39 = vadd.f32 %v5946_v51, %v5945_v6 }
 0x407   :  { %v7898_v19 = vadd.f32 %v5947_v39, %v7858_v59 }
 0x409   :  { %v5948_v1 = vpop.f32.mrb[48].mxu1 }
 0x40a   :  { %v5949_v63 = vpop.f32.mrb[49].mxu1 }
 0x40b   :  { %v5950_v38 = vadd.f32 %v5949_v63, %v5948_v1  ;;  %v5951_v41 = vpop.f32.mrb[50].mxu1 }
 0x40c   :  { %v5952_v58 = vpop.f32.mrb[51].mxu1 }
 0x40d   :  { %v7901_v11 = vadd.f32 %v5950_v38, %v7856_v49  ;;  %v5953_v5 = vadd.f32 %v5952_v58, %v5951_v41 }
 0x40f   :  { %v7904_v21 = vadd.f32 %v5953_v5, %v7860_v7 }
 0x411   :  { %v5954_v12 = vpop.f32.mrb[52].mxu1 }
 0x412   :  { %v5955_v16 = vpop.f32.mrb[53].mxu1 }
 0x413   :  { %v5956_v27 = vadd.f32 %v5955_v16, %v5954_v12  ;;  %v5957_v8 = vpop.f32.mrb[54].mxu1 }
 0x414   :  { %v5958_v3 = vpop.f32.mrb[55].mxu1 }
 0x415   :  { %v7907_v59 = vadd.f32 %v5956_v27, %v7864_v33  ;;  %v5959_v32 = vadd.f32 %v5958_v3, %v5957_v8 }
 0x417   :  { %v7910_v40 = vadd.f32 %v5959_v32, %v7866_v42 }
 0x419   :  { %v5960_v17 = vpop.f32.mrb[56].mxu1 }
 0x41a   :  { %v5961_v24 = vpop.f32.mrb[57].mxu1 }
 0x41b   :  { %v5962_v49 = vadd.f32 %v5961_v24, %v5960_v17  ;;  %v5963_v4 = vpop.f32.mrb[58].mxu1 }
 0x41c   :  { %v5964_v26 = vpop.f32.mrb[59].mxu1 }
 0x41d   :  { %v7913_v7 = vadd.f32 %v5962_v49, %v7868_v37  ;;  %v5965_v30 = vadd.f32 %v5964_v26, %v5963_v4 }
 0x41f   :  { %v7916_v53 = vadd.f32 %v5965_v30, %v7870_v35 }
 0x421   :  { %v5966_v10 = vpop.f32.mrb[60].mxu1 }
 0x422   :  { %v5967_v13 = vpop.f32.mrb[61].mxu1 }
 0x423   :  { %v5968_v33 = vadd.f32 %v5967_v13, %v5966_v10  ;;  %v5969_v25 = vpop.f32.mrb[62].mxu1 }
 0x424   :  { %v5970_v18 = vpop.f32.mrb[63].mxu1 }
 0x425   :  { %v7919_v42 = vadd.f32 %v5968_v33, %v7872_v54  ;;  %v5971_v60 = vadd.f32 %v5970_v18, %v5969_v25 }
 0x427   :  { %v7922_v52 = vadd.f32 %v5971_v60, %v7874_v36 }
 0x449   :  { %v6004_v62 = vpop.f32.mrb[64].mxu1 }
 0x44a   :  { %v6005_v6 = vpop.f32.mrb[65].mxu1 }
 0x44b   :  { %v6006_v37 = vadd.f32 %v6005_v6, %v6004_v62  ;;  %v6007_v51 = vpop.f32.mrb[66].mxu1 }
 0x44c   :  { %v6008_v39 = vpop.f32.mrb[67].mxu1 }
 0x44d   :  { %v6009_v1 = vadd.f32 %v6008_v39, %v6007_v51  ;;  %v7925_v35 = vadd.f32 %v7877_v55, %v6006_v37 }
 0x44f   :  { %v7928_v63 = vadd.f32 %v7880_v46, %v6009_v1 }
 0x451   :  { %v6010_v38 = vpop.f32.mrb[68].mxu1 }
 0x452   :  { %v6011_v41 = vpop.f32.mrb[69].mxu1 }
 0x453   :  { %v6012_v54 = vadd.f32 %v6011_v41, %v6010_v38  ;;  %v6013_v58 = vpop.f32.mrb[70].mxu1 }
 0x454   :  { %v6014_v5 = vpop.f32.mrb[71].mxu1 }
 0x455   :  { %v6015_v12 = vadd.f32 %v6014_v5, %v6013_v58  ;;  %v6181_v36 = vadd.f32 %v7883_v20, %v6012_v54 }
 0x457   :  { %v7932_v16 = vadd.f32 %v7886_v9, %v6015_v12 }
 0x459   :  { %v6016_v27 = vpop.f32.mrb[72].mxu1 }
 0x45a   :  { %v6017_v8 = vpop.f32.mrb[73].mxu1 }
 0x45b   :  { %v6018_v3 = vadd.f32 %v6017_v8, %v6016_v27  ;;  %v6019_v32 = vpop.f32.mrb[74].mxu1 }
 0x45c   :  { %v6020_v55 = vpop.f32.mrb[75].mxu1 }
 0x45d   :  { %v6021_v17 = vadd.f32 %v6020_v55, %v6019_v32  ;;  %v7935_v46 = vadd.f32 %v7889_v48, %v6018_v3 }
 0x45f   :  { %v7938_v24 = vadd.f32 %v7892_v45, %v6021_v17 }
 0x461   :  { %v6022_v49 = vpop.f32.mrb[76].mxu1 }
 0x462   :  { %v6023_v4 = vpop.f32.mrb[77].mxu1 }
 0x463   :  { %v6024_v26 = vadd.f32 %v6023_v4, %v6022_v49  ;;  %v6025_v30 = vpop.f32.mrb[78].mxu1 }
 0x464   :  { %v6026_v20 = vpop.f32.mrb[79].mxu1 }
 0x465   :  { %v6027_v10 = vadd.f32 %v6026_v20, %v6025_v30  ;;  %v7941_v9 = vadd.f32 %v7895_v57, %v6024_v26  ;;  %v7970_v26 = vld [vmem:[#allocation16] ss:$0 sm:$0xff] }
 0x467   :  { %v7944_v13 = vadd.f32 %v7898_v19, %v6027_v10 }
 0x469   :  { %v6028_v33 = vpop.f32.mrb[80].mxu1 }
 0x46a   :  { %v6029_v25 = vpop.f32.mrb[81].mxu1 }
 0x46b   :  { %v6030_v18 = vadd.f32 %v6029_v25, %v6028_v33  ;;  %v6031_v48 = vpop.f32.mrb[82].mxu1  ;;  %v5146_v33 = vmul.f32 %v7970_v26, %v7493_v50  ;;  %v7978_v25 = vld [vmem:[#allocation15] ss:$0 sm:$0xff] }
 0x46c   :  { %v6032_v60 = vpop.f32.mrb[83].mxu1 }
 0x46d   :  { %v6033_v62 = vadd.f32 %v6032_v60, %v6031_v48  ;;  %v7947_v45 = vadd.f32 %v7901_v11, %v6030_v18  ;;  %v5147_v48 = vmul.f32 %v7970_v26, %v7497_v47  ;;  %v5149_v60 = vmul.f32 %v7970_v26, %v7504_v29 }
 0x46f   :  { %v7950_v6 = vadd.f32 %v7904_v21, %v6033_v62 }
 0x471   :  { %v6034_v37 = vpop.f32.mrb[84].mxu1 }
 0x472   :  { %v6035_v51 = vpop.f32.mrb[85].mxu1 }
 0x473   :  { %v6036_v39 = vadd.f32 %v6035_v51, %v6034_v37  ;;  %v6037_v57 = vpop.f32.mrb[86].mxu1 }
 0x474   :  { %v6038_v1 = vpop.f32.mrb[87].mxu1 }
 0x475   :  { %v6039_v38 = vadd.f32 %v6038_v1, %v6037_v57  ;;  %v7953_v19 = vadd.f32 %v7907_v59, %v6036_v39 }
 0x477   :  { %v7956_v41 = vadd.f32 %v7910_v40, %v6039_v38 }
 0x479   :  { %v6040_v54 = vpop.f32.mrb[88].mxu1 }
 0x47a   :  { %v6041_v58 = vpop.f32.mrb[89].mxu1 }
 0x47b   :  { %v6042_v5 = vadd.f32 %v6041_v58, %v6040_v54  ;;  %v6043_v11 = vpop.f32.mrb[90].mxu1  ;;  %v5151_v58 = vmul.f32 %v7970_v26, %v7530_v43 }
 0x47c   :  { %v6044_v12 = vpop.f32.mrb[91].mxu1 }
 0x47d   :  { %v6045_v27 = vadd.f32 %v6044_v12, %v6043_v11  ;;  %v7959_v21 = vadd.f32 %v7913_v7, %v6042_v5  ;;  %v7972_v7 = vld [vmem:[#allocation13] ss:$0 sm:$0xff] }
 0x47f   :  { %v7962_v8 = vadd.f32 %v7916_v53, %v6045_v27  ;;  %v5148_v53 = vmul.f32 %v7970_v26, %v7501_v22  ;;  %v5152_v27 = vmul.f32 %v7970_v26, %v7547_v15 }
 0x481   :  { %v6046_v3 = vpop.f32.mrb[92].mxu1 }
 0x482   :  { %v6047_v32 = vpop.f32.mrb[93].mxu1 }
 0x483   :  { %v6048_v55 = vadd.f32 %v6047_v32, %v6046_v3  ;;  %v6049_v59 = vpop.f32.mrb[94].mxu1 }
 0x484   :  { %v6050_v17 = vpop.f32.mrb[95].mxu1 }
 0x485   :  { %v6051_v49 = vadd.f32 %v6050_v17, %v6049_v59  ;;  %v7965_v40 = vadd.f32 %v7919_v42, %v6048_v55  ;;  %v5153_v17 = vmul.f32 %v7970_v26, %v7559_v31 }
 0x487   :  { %v7968_v4 = vadd.f32 %v7922_v52, %v6051_v49  ;;  %v7981_v52 = vld [vmem:[#allocation18] ss:$0 sm:$0xff] }
 0x488   :  { %v5169_v47 = vadd.f32 %v7981_v52, %v5146_v33  ;;  %v5170_v1 = vadd.f32 %v7981_v52, %v5147_v48  ;;  %v5175_v31 = vadd.f32 %v7981_v52, %v5152_v27 }
 0x489   :  { %v6150_v30 = vpop.f32.mrb[16].mxu1 }
 0x48a   :  { %v6182_v20 = vadd.f32 %v6181_v36, %v6150_v30  ;;  %v5014_v10 = vpop.f32.mrb[17].mxu1 }
 0x48b   :  { %v6185_v42 = vadd.f32 %v7925_v35, %v5014_v10  ;;  %v6151_v18 = vpop.f32.mrb[18].mxu1  ;;  %v5171_v35 = vadd.f32 %v7981_v52, %v5148_v53 }
 0x48c   :  { %v5102_v22 = vmul.f32 %v6182_v20, %v7972_v7  ;;  %v6188_v36 = vadd.f32 %v7932_v16, %v6151_v18  ;;  %v5017_v62 = vpop.f32.mrb[19].mxu1  ;;  %v5172_v16 = vadd.f32 %v7981_v52, %v5149_v60 }
 0x48d   :  { %v5100_v50 = vmul.f32 %v6185_v42, %v7972_v7  ;;  %v6191_v37 = vadd.f32 %v7928_v63, %v5017_v62  ;;  %v5150_v63 = vmul.f32 %v7970_v26, %v7522_v56 }
 0x48e   :  { %v5125_v51 = vadd.f32 %v7978_v25, %v5102_v22  ;;  %v5103_v39 = vmul.f32 %v6188_v36, %v7972_v7 }
 0x48f   :  { %v5123_v57 = vadd.f32 %v7978_v25, %v5100_v50  ;;  %v5101_v29 = vmul.f32 %v6191_v37, %v7972_v7  ;;  %v5173_v36 = vadd.f32 %v7981_v52, %v5150_v63  ;;  %v5174_v37 = vadd.f32 %v7981_v52, %v5151_v58 }
 0x490   :  { %v5187_v38 = vadd.f32 %v5171_v35, %v5125_v51  ;;  %v5126_v54 = vadd.f32 %v7978_v25, %v5103_v39  ;;  %v5154_v39 = vmul.f32 %v7970_v26, %v7572_v61 }
 0x491   :  { %v5185_v5 = vadd.f32 %v5169_v47, %v5123_v57  ;;  %v5124_v11 = vadd.f32 %v7978_v25, %v5101_v29  ;;  %v6154_v12 = vpop.f32.mrb[20].mxu1  ;;  %v5155_v47 = vmul.f32 %v7970_v26, %v7578_v2 }
 0x492   :  { %v5203_v3 = vmul.f32 0.01, %v5187_v38  ;;  %v5188_v32 = vadd.f32 %v5172_v16, %v5126_v54  ;;  %v6194_v55 = vadd.f32 %v7941_v9, %v6154_v12  ;;  %v5030_v59 = vpop.f32.mrb[21].mxu1  ;;  %v5156_v16 = vmul.f32 %v7970_v26, %v7601_v34 }
 0x493   :  { %v5201_v49 = vmul.f32 0.01, %v5185_v5  ;;  %v5186_v56 = vadd.f32 %v5170_v1, %v5124_v11  ;;  %v6197_v30 = vadd.f32 %v7935_v46, %v5030_v59  ;;  %v6155_v43 = vpop.f32.mrb[22].mxu1 }
 0x494   :  { %v5219_v53 = vmax.f32 %v5187_v38, %v5203_v3  ;;  %v5204_v20 = vmul.f32 0.01, %v5188_v32  ;;  %v5106_v10 = vmul.f32 %v6194_v55, %v7972_v7  ;;  %v6200_v33 = vadd.f32 %v7944_v13, %v6155_v43  ;;  %v5033_v15 = vpop.f32.mrb[23].mxu1 }
 0x495   :  { %v5217_v42 = vmax.f32 %v5185_v5, %v5201_v49  ;;  %v5202_v18 = vmul.f32 0.01, %v5186_v56  ;;  %v5104_v9 = vmul.f32 %v6197_v30, %v7972_v7  ;;  %v6203_v48 = vadd.f32 %v7938_v24, %v5033_v15 }
 0x496   :  { %5235 = vst [vmem:[#allocation19 + $0x10] sm:$0xff] %v5219_v53  ;;  %v5220_v60 = vmax.f32 %v5188_v32, %v5204_v20  ;;  %v5129_v46 = vadd.f32 %v7978_v25, %v5106_v10  ;;  %v5107_v22 = vmul.f32 %v6200_v33, %v7972_v7  ;;  %v5176_v24 = vadd.f32 %v7981_v52, %v5153_v17 }
 0x497   :  { %5233 = vst [vmem:[#allocation19] sm:$0xff] %v5217_v42  ;;  %v5218_v62 = vmax.f32 %v5186_v56, %v5202_v18  ;;  %v5127_v13 = vadd.f32 %v7978_v25, %v5104_v9  ;;  %v5105_v50 = vmul.f32 %v6203_v48, %v7972_v7  ;;  %v5157_v5 = vmul.f32 %v7970_v26, %v7609_v23 }
 0x498   :  { %5236 = vst [vmem:[#allocation19 + $0x18] sm:$0xff] %v5220_v60  ;;  %v5191_v35 = vadd.f32 %v5175_v31, %v5129_v46  ;;  %v5130_v51 = vadd.f32 %v7978_v25, %v5107_v22  ;;  %v5179_v23 = vadd.f32 %v7981_v52, %v5156_v16  ;;  %v5177_v43 = vadd.f32 %v7981_v52, %v5154_v39 }
 0x499   :  { %5234 = vst [vmem:[#allocation19 + $0x8] sm:$0xff] %v5218_v62  ;;  %v5189_v57 = vadd.f32 %v5173_v36, %v5127_v13  ;;  %v5128_v29 = vadd.f32 %v7978_v25, %v5105_v50  ;;  %v6158_v1 = vpop.f32.mrb[24].mxu1  ;;  %v5178_v10 = vadd.f32 %v7981_v52, %v5155_v47  ;;  %v5158_v42 = vmul.f32 %v7970_v26, %v7623_v44 }
 0x49a   :  { %v5207_v38 = vmul.f32 0.01, %v5191_v35  ;;  %v5192_v54 = vadd.f32 %v5176_v24, %v5130_v51  ;;  %v6206_v63 = vadd.f32 %v7953_v19, %v6158_v1  ;;  %v5046_v58 = vpop.f32.mrb[25].mxu1  ;;  %v5159_v18 = vmul.f32 %v7970_v26, %v7631_v14 }
 0x49b   :  { %v5205_v61 = vmul.f32 0.01, %v5189_v57  ;;  %v5190_v11 = vadd.f32 %v5174_v37, %v5128_v29  ;;  %v6209_v2 = vadd.f32 %v7947_v45, %v5046_v58  ;;  %v6159_v12 = vpop.f32.mrb[26].mxu1  ;;  %v5160_v60 = vmul.f32 %v7970_v26, %v7656_v28 }
 0x49c   :  { %v5223_v27 = vmax.f32 %v5191_v35, %v5207_v38  ;;  %v5208_v3 = vmul.f32 0.01, %v5192_v54  ;;  %v5110_v32 = vmul.f32 %v6206_v63, %v7972_v7  ;;  %v6212_v55 = vadd.f32 %v7956_v41, %v6159_v12  ;;  %v5049_v34 = vpop.f32.mrb[27].mxu1 }
 0x49d   :  { %v5221_v59 = vmax.f32 %v5189_v57, %v5205_v61  ;;  %v5206_v17 = vmul.f32 0.01, %v5190_v11  ;;  %v5108_v19 = vmul.f32 %v6209_v2, %v7972_v7  ;;  %v6215_v49 = vadd.f32 %v7950_v6, %v5049_v34 }
 0x49e   :  { %5239 = vst [vmem:[#allocation19 + $0x30] sm:$0xff] %v5223_v27  ;;  %v5224_v56 = vmax.f32 %v5192_v54, %v5208_v3  ;;  %v5133_v45 = vadd.f32 %v7978_v25, %v5110_v32  ;;  %v5111_v30 = vmul.f32 %v6212_v55, %v7972_v7  ;;  %v5180_v6 = vadd.f32 %v7981_v52, %v5157_v5 }
 0x49f   :  { %5237 = vst [vmem:[#allocation19 + $0x20] sm:$0xff] %v5221_v59  ;;  %v5222_v53 = vmax.f32 %v5190_v11, %v5206_v17  ;;  %v5131_v41 = vadd.f32 %v7978_v25, %v5108_v19  ;;  %v5109_v20 = vmul.f32 %v6215_v49, %v7972_v7  ;;  %v5161_v13 = vmul.f32 %v7970_v26, %v7666_v0 }
 0x4a0   :  { %5240 = vst [vmem:[#allocation19 + $0x38] sm:$0xff] %v5224_v56  ;;  %v5195_v33 = vadd.f32 %v5179_v23, %v5133_v45  ;;  %v5134_v15 = vadd.f32 %v7978_v25, %v5111_v30  ;;  %v5183_v0 = vadd.f32 %v7981_v52, %v5160_v60  ;;  %v5181_v16 = vadd.f32 %v7981_v52, %v5158_v42 }
 0x4a1   :  { %5238 = vst [vmem:[#allocation19 + $0x28] sm:$0xff] %v5222_v53  ;;  %v5193_v9 = vadd.f32 %v5177_v43, %v5131_v41  ;;  %v5132_v48 = vadd.f32 %v7978_v25, %v5109_v20  ;;  %v6162_v31 = vpop.f32.mrb[28].mxu1  ;;  %v5184_v63 = vadd.f32 %v7981_v52, %v5161_v13  ;;  %v5182_v5 = vadd.f32 %v7981_v52, %v5159_v18 }
 0x4a2   :  { %v5211_v46 = vmul.f32 0.01, %v5195_v33  ;;  %v5196_v22 = vadd.f32 %v5180_v6, %v5134_v15  ;;  %v6218_v36 = vadd.f32 %v7965_v40, %v6162_v31  ;;  %v5062_v62 = vpop.f32.mrb[29].mxu1 }
 0x4a3   :  { %v5209_v44 = vmul.f32 0.01, %v5193_v9  ;;  %v5194_v50 = vadd.f32 %v5178_v10, %v5132_v48  ;;  %v6221_v14 = vadd.f32 %v7959_v21, %v5062_v62  ;;  %v6163_v37 = vpop.f32.mrb[30].mxu1 }
 0x4a4   :  { %v5227_v24 = vmax.f32 %v5195_v33, %v5211_v46  ;;  %v5212_v35 = vmul.f32 0.01, %v5196_v22  ;;  %v5114_v51 = vmul.f32 %v6218_v36, %v7972_v7  ;;  %v6224_v39 = vadd.f32 %v7968_v4, %v6163_v37  ;;  %v5065_v28 = vpop.f32.mrb[31].mxu1 }
 0x4a5   :  { %v5225_v47 = vmax.f32 %v5193_v9, %v5209_v44  ;;  %v5210_v57 = vmul.f32 0.01, %v5194_v50  ;;  %v5112_v40 = vmul.f32 %v6221_v14, %v7972_v7  ;;  %v6227_v29 = vadd.f32 %v7962_v8, %v5065_v28 }
 0x4a6   :  { %5243 = vst [vmem:[#allocation19 + $0x50] sm:$0xff] %v5227_v24  ;;  %v5228_v26 = vmax.f32 %v5196_v22, %v5212_v35  ;;  %v5137_v21 = vadd.f32 %v7978_v25, %v5114_v51  ;;  %v5115_v1 = vmul.f32 %v6224_v39, %v7972_v7 }
 0x4a7   :  { %5241 = vst [vmem:[#allocation19 + $0x40] sm:$0xff] %v5225_v47  ;;  %v5226_v38 = vmax.f32 %v5194_v50, %v5210_v57  ;;  %v5135_v4 = vadd.f32 %v7978_v25, %v5112_v40  ;;  %v5113_v54 = vmul.f32 %v6227_v29, %v7972_v7 }
 0x4a8   :  { %5244 = vst [vmem:[#allocation19 + $0x58] sm:$0xff] %v5228_v26  ;;  %v5199_v8 = vadd.f32 %v5183_v0, %v5137_v21  ;;  %v5138_v58 = vadd.f32 %v7978_v25, %v5115_v1 }
 0x4a9   :  { %5242 = vst [vmem:[#allocation19 + $0x48] sm:$0xff] %v5226_v38  ;;  %v5197_v61 = vadd.f32 %v5181_v16, %v5135_v4  ;;  %v5136_v11 = vadd.f32 %v7978_v25, %v5113_v54 }
 0x4aa   :  { %v5215_v2 = vmul.f32 0.01, %v5199_v8  ;;  %v5200_v12 = vadd.f32 %v5184_v63, %v5138_v58 }
 0x4ab   :  { %v5213_v27 = vmul.f32 0.01, %v5197_v61  ;;  %v5198_v3 = vadd.f32 %v5182_v5, %v5136_v11 }
 0x4ac   :  { %v5231_v32 = vmax.f32 %v5199_v8, %v5215_v2  ;;  %v5216_v55 = vmul.f32 0.01, %v5200_v12 }
 0x4ad   :  { %v5229_v7 = vmax.f32 %v5197_v61, %v5213_v27  ;;  %v5214_v34 = vmul.f32 0.01, %v5198_v3 }
 0x4ae   :  { %5247 = vst [vmem:[#allocation19 + $0x70] sm:$0xff] %v5231_v32  ;;  %v5232_v59 = vmax.f32 %v5200_v12, %v5216_v55 }
 0x4af   :  { %5245 = vst [vmem:[#allocation19 + $0x60] sm:$0xff] %v5229_v7  ;;  %v5230_v17 = vmax.f32 %v5198_v3, %v5214_v34 }
 0x4b0   :  { %5248 = vst [vmem:[#allocation19 + $0x78] sm:$0xff] %v5232_v59 }
 0x4b1   :  { %5246 = vst [vmem:[#allocation19 + $0x68] sm:$0xff] %v5230_v17 }
 0x4b2   :  { %6834 = shalt.err (!%p6831_p6)
}
 0x4b3   :  { %s6835_s17 = scalar_lea.hbm %s8097_s9, 2048 }
 0x4b4   :  { %p6836_p7 = scmp.ne.s32.totalorder %s8097_s9, %s6835_s17  ;;  %p6839_p8 = scmp.lt.u32.totalorder %s6835_s17, %s8097_s9 }
 0x4b6   :  { %p6841_p9 = pnand %p6839_p8, %p6836_p7 }
 0x4b8   :  { %6844 = shalt.err (!%p6841_p9)
}
 0x4b9   :  { %5260 = dma.vmem_to_hbm [thread:$0]  %s5255_s0, 2048, %s8097_s9, [#allocation6], %s6858_s19, %s6858_s19, %s6859_s20  }
 0x4ba   :  { %6855 = dma.done.wait [#allocation6], 2048  }
 0x4bb   :  { %6856 = vsyncadd [#allocation6], 4294965248 }
 0x4bc   :  { %5264 = vsyncpa [#allocation5], 1 }
 0x4bd   :  { %5265 = vsyncpa [#allocation8], 1 }
 0x4be   :  { %5266 = vsyncpa [#allocation11], 1 }
 0x4bf   :  { %5267 = vsyncpa [#allocation14], 1 }
 0x4c0   :  { %5268 = vsyncpa [#allocation17], 1 }
 0x4c1   :  { %5269 = vsyncpa [#allocation6], 1 }

</bundles_post_ra>
